<compile_context>
chip_gen: v6e
topology: v6e:2x2x1
jax: 0.10.0
libtpu: 0.0.40
codegen_flags: <defaults>
</compile_context>

<pallas_src>
import functools

import jax
import jax.numpy as jnp
import numpy as np
from jax import lax
from jax.experimental import pallas as pl
from jax.experimental.pallas import tpu as pltpu


# ---------------------------------------------------------------------------
# Small in-kernel helpers (operate on values / refs inside a kernel body)
# ---------------------------------------------------------------------------
def _leaky(x):
    return jnp.where(x > 0, x, 0.01 * x)          # nn.LeakyReLU default slope


def _elu(x):
    return jnp.where(x > 0, x, jnp.exp(x) - 1.0)  # F.elu


def _vmem():
    return pl.BlockSpec(memory_space=pltpu.MemorySpace.VMEM)


def _smem():
    return pl.BlockSpec(memory_space=pltpu.MemorySpace.SMEM)


_FUSED_CP = pltpu.CompilerParams(vmem_limit_bytes=64 * 1024 * 1024)


def _gather_rows(out_ref, src_ref, idx_ref, n_rows):
    """out_ref[e, :] = src_ref[idx_ref[e], :]   (index-based gather, no one-hot)."""
    if n_rows <= 64:
        # short gather: unroll so the store offsets are static (LLO-visible)
        for e in range(n_rows):
            out_ref[pl.ds(e, 1), :] = src_ref[pl.ds(idx_ref[e], 1), :]
    else:
        def body(e, carry):
            out_ref[pl.ds(e, 1), :] = src_ref[pl.ds(idx_ref[e], 1), :]
            return carry
        lax.fori_loop(0, n_rows, body, 0)


def _linear1(x, w, b):
    return jnp.dot(x, w, preferred_element_type=jnp.float32) + b


def _linear2(xa, wa, xb, wb, b):
    # fused concat+Linear: Linear(cat([xa, xb])) == xa @ Wa + xb @ Wb + b
    return (jnp.dot(xa, wa, preferred_element_type=jnp.float32)
            + jnp.dot(xb, wb, preferred_element_type=jnp.float32) + b)


def _seg_softmax_agg(logits, vals, onehot):
    """edge_softmax over segments (columns of onehot) + weighted segment sum.

    logits [R,1], vals [R,D], onehot [R,S] -> [S,D].
    Gathers/scatters are MXU contractions; reciprocal goes to the EUP.
    Softmax math stays in f32.
    """
    neg = jnp.float32(-1e30)
    masked = logits * onehot + neg * (1.0 - onehot)                       # [R,S]
    seg_max = jnp.max(masked, axis=0, keepdims=True)                      # [1,S]
    gmax = lax.dot_general(onehot, seg_max, (((1,), (1,)), ((), ())),
                           preferred_element_type=jnp.float32)            # [R,1]
    exp_l = jnp.exp(logits - gmax)                                        # [R,1]
    seg_sum = lax.dot_general(onehot, exp_l, (((0,), (0,)), ((), ())),
                              preferred_element_type=jnp.float32)         # [S,1]
    gsum = jnp.dot(onehot, seg_sum, preferred_element_type=jnp.float32)   # [R,1]
    attn = exp_l * pl.reciprocal(gsum, approx=True)                       # [R,1]
    weighted = attn * vals                                                # [R,D]
    return lax.dot_general(onehot, weighted, (((0,), (0,)), ((), ())),
                           preferred_element_type=jnp.float32)            # [S,D]


def _gru(x, h, w_ih, w_hh, b_ih, b_hh, hid):
    """PyTorch GRUCell with the three gates fused into two wide matmuls."""
    gi = _linear1(x, w_ih, b_ih)                                          # [R,3H]
    gh = _linear1(h, w_hh, b_hh)                                          # [R,3H]
    r = jax.nn.sigmoid(gi[:, 0:hid] + gh[:, 0:hid])
    z = jax.nn.sigmoid(gi[:, hid:2 * hid] + gh[:, hid:2 * hid])
    n = jnp.tanh(gi[:, 2 * hid:3 * hid] + r * gh[:, 2 * hid:3 * hid])
    return (1.0 - z) * n + z * h


# ---------------------------------------------------------------------------
# Kernel 1: fused GetContext + AttentiveGRU1 (GNN init context)
# ---------------------------------------------------------------------------
def _init_context_kernel(n_edges, hid,
                         hv_ref, ef_ref, src_ref, dst_ref, onehot_ref,
                         wpn_ref, bpn_ref,
                         w1a_ref, w1b_ref, b1_ref,
                         w2a_ref, w2b_ref, b2_ref,
                         wet_ref, bet_ref,
                         wih_ref, whh_ref, bih_ref, bhh_ref,
                         out_ref,
                         hv_new_ref, hv_p1_ref, src_buf_ref, dst_buf_ref):
    hv = hv_ref[...]                                                      # [N,Fn]
    # project_node: hv_new = leaky(hv @ Wpn + bpn)
    hv_new_ref[...] = _leaky(_linear1(hv, wpn_ref[...], bpn_ref[...]))    # [N,G]
    # src half of project_edge1 computed at node granularity (commutes with gather)
    hv_p1_ref[...] = jnp.dot(hv, w1a_ref[...], preferred_element_type=jnp.float32)
    # index-based row gathers (replace the old one-hot gather matmuls)
    _gather_rows(src_buf_ref, hv_p1_ref, src_ref, n_edges)                # (hv@W1a)[src]
    _gather_rows(dst_buf_ref, hv_new_ref, dst_ref, n_edges)               # hv_new[dst]
    # project_edge1 on cat(src_hv, edge_feats)
    he1 = _leaky(src_buf_ref[...]
                 + _linear1(ef_ref[...], w1b_ref[...], b1_ref[...]))      # [E,G]
    # project_edge2 on cat(dst_hv_new, he1)  ->  [E,1] (never leaves VMEM)
    logits = _leaky(_linear2(dst_buf_ref[...], w2a_ref[...],
                             he1, w2b_ref[...], b2_ref[...]))
    # AttentiveGRU1.edge_transform
    vals = _linear1(he1, wet_ref[...], bet_ref[...])                      # [E,G]
    ctx = _elu(_seg_softmax_agg(logits, vals, onehot_ref[...]))           # [N,G]
    new_h = _gru(ctx, hv_new_ref[...], wih_ref[...], whh_ref[...],
                 bih_ref[...], bhh_ref[...], hid)
    out_ref[...] = jnp.maximum(new_h, 0.0)                                # F.relu


def fused_init_context(p, hv, ef, src_idx, dst_idx, dst_onehot):
    n_nodes = hv.shape[0]
    n_edges = ef.shape[0]
    hid = p["wpn"].shape[1]
    return pl.pallas_call(
        functools.partial(_init_context_kernel, n_edges, hid),
        out_shape=jax.ShapeDtypeStruct((n_nodes, hid), jnp.float32),
        in_specs=[_vmem(), _vmem(), _smem(), _smem(), _vmem()] + [_vmem()] * 14,
        out_specs=_vmem(),
        scratch_shapes=[pltpu.VMEM((n_nodes, hid), jnp.float32),
                        pltpu.VMEM((n_nodes, hid), jnp.float32),
                        pltpu.VMEM((n_edges, hid), jnp.float32),
                        pltpu.VMEM((n_edges, hid), jnp.float32)],
        compiler_params=_FUSED_CP,
    )(hv, ef, src_idx, dst_idx, dst_onehot,
      p["wpn"], p["bpn"], p["w1a"], p["w1b"], p["b1"],
      p["w2a"], p["w2b"], p["b2"], p["wet"], p["bet"],
      p["w_ih"], p["w_hh"], p["b_ih"], p["b_hh"])


# ---------------------------------------------------------------------------
# Kernel 2: fused GNNLayer + AttentiveGRU2
# ---------------------------------------------------------------------------
def _gnn_layer_kernel(n_edges, hid,
                      nf_ref, src_ref, dst_ref, onehot_ref,
                      wea_ref, web_ref, be_ref,
                      wn_ref, bn_ref,
                      wih_ref, whh_ref, bih_ref, bhh_ref,
                      out_ref,
                      src_buf_ref, dst_buf_ref):
    _gather_rows(src_buf_ref, nf_ref, src_ref, n_edges)                   # nf[src]
    _gather_rows(dst_buf_ref, nf_ref, dst_ref, n_edges)                   # nf[dst]
    src_hv = src_buf_ref[...]
    dst_hv = dst_buf_ref[...]
    # project_edge on cat(dst_hv, src_hv)
    logits = _leaky(_linear2(dst_hv, wea_ref[...], src_hv, web_ref[...], be_ref[...]))
    # project_node applied to the src-gathered rows (Linear commutes with row gather)
    vals = _linear1(src_hv, wn_ref[...], bn_ref[...])                     # [E,G]
    ctx = _elu(_seg_softmax_agg(logits, vals, onehot_ref[...]))           # [N,G]
    new_h = _gru(ctx, nf_ref[...], wih_ref[...], whh_ref[...],
                 bih_ref[...], bhh_ref[...], hid)
    out_ref[...] = jnp.maximum(new_h, 0.0)


def fused_gnn_layer(p, nf, src_idx, dst_idx, dst_onehot):
    n_nodes, hid = nf.shape
    n_edges = src_idx.shape[0]
    return pl.pallas_call(
        functools.partial(_gnn_layer_kernel, n_edges, hid),
        out_shape=jax.ShapeDtypeStruct((n_nodes, hid), jnp.float32),
        in_specs=[_vmem(), _smem(), _smem(), _vmem()] + [_vmem()] * 9,
        out_specs=_vmem(),
        scratch_shapes=[pltpu.VMEM((n_edges, hid), jnp.float32),
                        pltpu.VMEM((n_edges, hid), jnp.float32)],
        compiler_params=_FUSED_CP,
    )(nf, src_idx, dst_idx, dst_onehot,
      p["wea"], p["web"], p["be"], p["wn"], p["bn"],
      p["w_ih"], p["w_hh"], p["b_ih"], p["b_hh"])


# ---------------------------------------------------------------------------
# Kernel 3: fused AttentiveFPReadout GlobalPool timestep
# ---------------------------------------------------------------------------
def _readout_kernel(hid,
                    nf_ref, gf_ref, onehot_ref,
                    wza_ref, wzb_ref, bz_ref,
                    wp_ref, bp_ref,
                    wih_ref, whh_ref, bih_ref, bhh_ref,
                    out_ref):
    nf = nf_ref[...]                                                      # [N,G]
    gf = gf_ref[...]                                                      # [Gg,G]
    onehot = onehot_ref[...]                                              # [N,Gg]
    # broadcast_nodes(relu(g_feats)) — small [N,Gg]@[Gg,G] contraction on the MXU
    bcast = jnp.dot(onehot, jnp.maximum(gf, 0.0),
                    preferred_element_type=jnp.float32)                   # [N,G]
    # compute_logits on cat(bcast, nf)
    z = _leaky(_linear2(bcast, wza_ref[...], nf, wzb_ref[...], bz_ref[...]))  # [N,1]
    hv_p = _linear1(nf, wp_ref[...], bp_ref[...])                         # [N,G]
    # softmax_nodes + weighted sum_nodes, then elu, then relu (context)
    ctx = jnp.maximum(_elu(_seg_softmax_agg(z, hv_p, onehot)), 0.0)       # [Gg,G]
    out_ref[...] = _gru(ctx, gf, wih_ref[...], whh_ref[...],
                        bih_ref[...], bhh_ref[...], hid)


def fused_readout_step(p, nf, g_feats, graph_onehot):
    n_graphs, hid = g_feats.shape
    return pl.pallas_call(
        functools.partial(_readout_kernel, hid),
        out_shape=jax.ShapeDtypeStruct((n_graphs, hid), jnp.float32),
        in_specs=[_vmem()] * 12,
        out_specs=_vmem(),
        compiler_params=_FUSED_CP,
    )(nf, g_feats, graph_onehot,
      p["wza"], p["wzb"], p["bz"], p["wp"], p["bp"],
      p["w_ih"], p["w_hh"], p["b_ih"], p["b_hh"])


# ---------------------------------------------------------------------------
# Kernel 4: segment sum (dgl.sum_nodes init):  out = onehot^T @ x  on the MXU
# ---------------------------------------------------------------------------
def _segment_sum_kernel(onehot_ref, x_ref, o_ref):
    o_ref[...] = lax.dot_general(onehot_ref[...], x_ref[...],
                                 (((0,), (0,)), ((), ())),
                                 preferred_element_type=jnp.float32)


def pallas_segment_sum(onehot, x):
    return pl.pallas_call(
        _segment_sum_kernel,
        out_shape=jax.ShapeDtypeStruct((onehot.shape[1], x.shape[1]), jnp.float32),
        in_specs=[_vmem(), _vmem()],
        out_specs=_vmem(),
    )(onehot, x)


# ---------------------------------------------------------------------------
# Kernel 5: row-tiled linear layer (final transform):  y = x @ Wt + b
# ---------------------------------------------------------------------------
def _linear_kernel(act, x_ref, w_ref, b_ref, o_ref):
    y = jnp.dot(x_ref[...], w_ref[...], preferred_element_type=jnp.float32) + b_ref[...]
    if act == "leaky":
        y = _leaky(y)
    o_ref[...] = y


def pallas_linear(x, wt, b, act="none", block_rows=256):
    m, k = x.shape
    n = wt.shape[1]
    bm = m if m <= block_rows else block_rows
    return pl.pallas_call(
        functools.partial(_linear_kernel, act),
        out_shape=jax.ShapeDtypeStruct((m, n), jnp.float32),
        grid=(pl.cdiv(m, bm),),
        in_specs=[pl.BlockSpec((bm, k), lambda i: (i, 0)),
                  pl.BlockSpec((k, n), lambda i: (0, 0)),
                  pl.BlockSpec((1, n), lambda i: (0, 0))],
        out_specs=pl.BlockSpec((bm, n), lambda i: (i, 0)),
        compiler_params=pltpu.CompilerParams(dimension_semantics=("parallel",)),
    )(x, wt, b)


# ---------------------------------------------------------------------------
# Full forward pass
# ---------------------------------------------------------------------------
def attentive_fp_forward(params, node_feats, edge_feats, src_idx, dst_idx,
                         dst_onehot, graph_onehot):
    # AttentiveFPGNN
    nf = fused_init_context(params["init_context"], node_feats, edge_feats,
                            src_idx, dst_idx, dst_onehot)
    for layer in params["gnn_layers"]:
        nf = fused_gnn_layer(layer, nf, src_idx, dst_idx, dst_onehot)
    # AttentiveFPReadout
    g_feats = pallas_segment_sum(graph_onehot, nf)                        # sum_nodes
    for pool in params["readouts"]:
        g_feats = fused_readout_step(pool, nf, g_feats, graph_onehot)
    # final transform
    wt, b = params["transform"]
    return pallas_linear(g_feats, wt, b, act="none")


# ---------------------------------------------------------------------------
# Parameter init (PyTorch layout) + one-time kernel-layout preparation
# ---------------------------------------------------------------------------
def init_params(key, node_feat, edge_feat, graph_feat, pred_dim, num_layers, num_timesteps):
    keys = iter(jax.random.split(key, 64))

    def lin(fan_in, fan_out):
        k1, k2 = jax.random.split(next(keys))
        bound = 1.0 / float(np.sqrt(fan_in))
        W = jax.random.uniform(k1, (fan_out, fan_in), jnp.float32, -bound, bound)
        b = jax.random.uniform(k2, (fan_out,), jnp.float32, -bound, bound)
        return (W, b)

    def gru(input_size, hidden):
        ks = jax.random.split(next(keys), 4)
        bound = 1.0 / float(np.sqrt(hidden))
        return {
            "w_ih": jax.random.uniform(ks[0], (3 * hidden, input_size), jnp.float32, -bound, bound),
            "w_hh": jax.random.uniform(ks[1], (3 * hidden, hidden), jnp.float32, -bound, bound),
            "b_ih": jax.random.uniform(ks[2], (3 * hidden,), jnp.float32, -bound, bound),
            "b_hh": jax.random.uniform(ks[3], (3 * hidden,), jnp.float32, -bound, bound),
        }

    return {
        "init_context": {
            "project_node": lin(node_feat, graph_feat),
            "project_edge1": lin(node_feat + edge_feat, graph_feat),
            "project_edge2": lin(2 * graph_feat, 1),
            "edge_transform": lin(graph_feat, graph_feat),
            "gru": gru(graph_feat, graph_feat),
        },
        "gnn_layers": [
            {"project_edge": lin(2 * graph_feat, 1),
             "project_node": lin(graph_feat, graph_feat),
             "gru": gru(graph_feat, graph_feat)}
            for _ in range(num_layers - 1)
        ],
        "readouts": [
            {"compute_logits": lin(2 * graph_feat, 1),
             "project_nodes": lin(graph_feat, graph_feat),
             "gru": gru(graph_feat, graph_feat)}
            for _ in range(num_timesteps)
        ],
        "transform": lin(graph_feat, pred_dim),
    }


def _prep_linear(W, b):
    return W.T, b.reshape(1, -1)


def _prep_split_linear(W, b, split):
    # Linear over cat([xa, xb], -1): split W along the input dim
    return W[:, :split].T, W[:, split:].T, b.reshape(1, -1)


def _prep_gru(g):
    return {"w_ih": g["w_ih"].T, "w_hh": g["w_hh"].T,
            "b_ih": g["b_ih"].reshape(1, -1), "b_hh": g["b_hh"].reshape(1, -1)}


def prepare_params(raw, node_feat, edge_feat, graph_feat):
    """Hoist all transposes / reshapes / weight splits out of the forward pass."""
    ic = raw["init_context"]
    wpn, bpn = _prep_linear(*ic["project_node"])
    w1a, w1b, b1 = _prep_split_linear(*ic["project_edge1"], split=node_feat)
    w2a, w2b, b2 = _prep_split_linear(*ic["project_edge2"], split=graph_feat)
    wet, bet = _prep_linear(*ic["edge_transform"])
    init_context = dict(wpn=wpn, bpn=bpn, w1a=w1a, w1b=w1b, b1=b1,
                        w2a=w2a, w2b=w2b, b2=b2, wet=wet, bet=bet,
                        **_prep_gru(ic["gru"]))
    gnn_layers = []
    for layer in raw["gnn_layers"]:
        wea, web, be = _prep_split_linear(*layer["project_edge"], split=graph_feat)
        wn, bn = _prep_linear(*layer["project_node"])
        gnn_layers.append(dict(wea=wea, web=web, be=be, wn=wn, bn=bn,
                               **_prep_gru(layer["gru"])))
    readouts = []
    for pool in raw["readouts"]:
        wza, wzb, bz = _prep_split_linear(*pool["compute_logits"], split=graph_feat)
        wp, bp = _prep_linear(*pool["project_nodes"])
        readouts.append(dict(wza=wza, wzb=wzb, bz=bz, wp=wp, bp=bp,
                             **_prep_gru(pool["gru"])))
    return {"init_context": init_context, "gnn_layers": gnn_layers,
            "readouts": readouts, "transform": _prep_linear(*raw["transform"])}


if __name__ == "__main__":
    # GRAPH_FEAT = 128 keeps every kernel-facing last dim lane-dense (perf review).
    NODE_FEAT, EDGE_FEAT, GRAPH_FEAT, PRED_DIM = 24, 8, 128, 32
    NUM_LAYERS, NUM_TIMESTEPS = 2, 2

    # Synthetic batched graph: 2 graphs of 6 nodes each, bidirected ring edges.
    nodes_per_graph = [6, 6]
    src_list, dst_list, graph_id = [], [], []
    offset = 0
    for gidx, n in enumerate(nodes_per_graph):
        for i in range(n):
            graph_id.append(gidx)
            u = offset + i
            v = offset + (i + 1) % n
            src_list += [u, v]
            dst_list += [v, u]
        offset += n
    N, E, Gg = offset, len(src_list), len(nodes_per_graph)

    src_idx = jnp.asarray(np.array(src_list, dtype=np.int32))
    dst_idx = jnp.asarray(np.array(dst_list, dtype=np.int32))
    # one-hots are kept ONLY for the segment-sum / softmax-denominator contractions
    dst_onehot = jnp.asarray(np.eye(N, dtype=np.float32)[np.array(dst_list)])     # [E, N]
    graph_onehot = jnp.asarray(np.eye(Gg, dtype=np.float32)[np.array(graph_id)])  # [N, Gg]

    key = jax.random.PRNGKey(0)
    k_nodes, k_edges, k_params = jax.random.split(key, 3)
    node_feats = jax.random.normal(k_nodes, (N, NODE_FEAT), jnp.float32)
    edge_feats = jax.random.normal(k_edges, (E, EDGE_FEAT), jnp.float32)
    raw_params = init_params(k_params, NODE_FEAT, EDGE_FEAT, GRAPH_FEAT, PRED_DIM,
                             NUM_LAYERS, NUM_TIMESTEPS)
    params = prepare_params(raw_params, NODE_FEAT, EDGE_FEAT, GRAPH_FEAT)

    fwd = jax.jit(attentive_fp_forward)
    out = fwd(params, node_feats, edge_feats, src_idx, dst_idx,
              dst_onehot, graph_onehot)
    out = jax.block_until_ready(out)
    assert out.shape == (Gg, PRED_DIM), out.shape
    assert bool(jnp.all(jnp.isfinite(out)))
    print("KERNEL_OK")
</pallas_src>

<mosaic_0001>
module attributes {stable_mosaic.version = 11 : i64} {
  func.func @_init_context_kernel(%arg0: memref<12x24xf32, #tpu.memory_space<vmem>>, %arg1: memref<24x8xf32, #tpu.memory_space<vmem>>, %arg2: memref<24xi32, #tpu.memory_space<smem>>, %arg3: memref<24xi32, #tpu.memory_space<smem>>, %arg4: memref<24x12xf32, #tpu.memory_space<vmem>>, %arg5: memref<24x128xf32, #tpu.memory_space<vmem>>, %arg6: memref<1x128xf32, #tpu.memory_space<vmem>>, %arg7: memref<24x128xf32, #tpu.memory_space<vmem>>, %arg8: memref<8x128xf32, #tpu.memory_space<vmem>>, %arg9: memref<1x128xf32, #tpu.memory_space<vmem>>, %arg10: memref<128x1xf32, #tpu.memory_space<vmem>>, %arg11: memref<128x1xf32, #tpu.memory_space<vmem>>, %arg12: memref<1x1xf32, #tpu.memory_space<vmem>>, %arg13: memref<128x128xf32, #tpu.memory_space<vmem>>, %arg14: memref<1x128xf32, #tpu.memory_space<vmem>>, %arg15: memref<128x384xf32, #tpu.memory_space<vmem>>, %arg16: memref<128x384xf32, #tpu.memory_space<vmem>>, %arg17: memref<1x384xf32, #tpu.memory_space<vmem>>, %arg18: memref<1x384xf32, #tpu.memory_space<vmem>>, %arg19: memref<12x128xf32, #tpu.memory_space<vmem>>, %arg20: memref<12x128xf32, #tpu.memory_space<vmem>>, %arg21: memref<12x128xf32, #tpu.memory_space<vmem>>, %arg22: memref<24x128xf32, #tpu.memory_space<vmem>>, %arg23: memref<24x128xf32, #tpu.memory_space<vmem>>) attributes {dimension_semantics = [], scalar_prefetch = 0 : i64, scratch_operands = 4 : i64, tpu.core_type = #tpu.core_type<tc>} {
    %c0 = arith.constant 0 : index
    %c0_0 = arith.constant 0 : index
    %0 = vector.load %arg0[%c0, %c0_0] : memref<12x24xf32, #tpu.memory_space<vmem>>, vector<12x24xf32>
    %c0_1 = arith.constant 0 : index
    %c0_2 = arith.constant 0 : index
    %1 = vector.load %arg5[%c0_1, %c0_2] : memref<24x128xf32, #tpu.memory_space<vmem>>, vector<24x128xf32>
    %c0_3 = arith.constant 0 : index
    %c0_4 = arith.constant 0 : index
    %2 = vector.load %arg6[%c0_3, %c0_4] : memref<1x128xf32, #tpu.memory_space<vmem>>, vector<1x128xf32>
    %cst = arith.constant dense<0.000000e+00> : vector<12x128xf32>
    %3 = tpu.matmul %0, %1, %cst {dimension_numbers = #tpu.dot_dimension_numbers<[1], [0], [0], [1], [0, 0, 1, 1], [], []>} : vector<12x24xf32>, vector<24x128xf32>, vector<12x128xf32> -> vector<12x128xf32>
    %4 = vector.broadcast %2 : vector<1x128xf32> to vector<12x128xf32>
    %5 = arith.addf %3, %4 : vector<12x128xf32>
    %cst_5 = arith.constant 0.000000e+00 : f32
    %6 = vector.broadcast %cst_5 : f32 to vector<12x128xf32>
    %7 = arith.cmpf ogt, %5, %6 : vector<12x128xf32>
    %cst_6 = arith.constant 0.00999999977 : f32
    %8 = vector.broadcast %cst_6 : f32 to vector<12x128xf32>
    %9 = arith.mulf %8, %5 : vector<12x128xf32>
    %10 = arith.select %7, %5, %9 : vector<12x128xi1>, vector<12x128xf32>
    %c0_7 = arith.constant 0 : index
    %c0_8 = arith.constant 0 : index
    %11 = vector.load %arg20[%c0_7, %c0_8] : memref<12x128xf32, #tpu.memory_space<vmem>>, vector<12x128xf32>
    tpu.vector_store %arg20[%c0_7, %c0_8], %10 {strides = array<i32>} : memref<12x128xf32, #tpu.memory_space<vmem>>, vector<12x128xf32>,
    %c0_9 = arith.constant 0 : index
    %c0_10 = arith.constant 0 : index
    %12 = vector.load %arg7[%c0_9, %c0_10] : memref<24x128xf32, #tpu.memory_space<vmem>>, vector<24x128xf32>
    %cst_11 = arith.constant dense<0.000000e+00> : vector<12x128xf32>
    %13 = tpu.matmul %0, %12, %cst_11 {dimension_numbers = #tpu.dot_dimension_numbers<[1], [0], [0], [1], [0, 0, 1, 1], [], []>} : vector<12x24xf32>, vector<24x128xf32>, vector<12x128xf32> -> vector<12x128xf32>
    %c0_12 = arith.constant 0 : index
    %c0_13 = arith.constant 0 : index
    %14 = vector.load %arg21[%c0_12, %c0_13] : memref<12x128xf32, #tpu.memory_space<vmem>>, vector<12x128xf32>
    tpu.vector_store %arg21[%c0_12, %c0_13], %13 {strides = array<i32>} : memref<12x128xf32, #tpu.memory_space<vmem>>, vector<12x128xf32>,
    %c0_14 = arith.constant 0 : index
    %15 = memref.load %arg2[%c0_14] : memref<24xi32, #tpu.memory_space<smem>>
    %16 = arith.index_cast %15 : i32 to index
    %c0_15 = arith.constant 0 : index
    %17 = vector.load %arg21[%16, %c0_15] : memref<12x128xf32, #tpu.memory_space<vmem>>, vector<1x128xf32>
    %c0_16 = arith.constant 0 : index
    %c0_17 = arith.constant 0 : index
    %18 = vector.load %arg22[%c0_16, %c0_17] : memref<24x128xf32, #tpu.memory_space<vmem>>, vector<1x128xf32>
    tpu.vector_store %arg22[%c0_16, %c0_17], %17 {strides = array<i32>} : memref<24x128xf32, #tpu.memory_space<vmem>>, vector<1x128xf32>,
    %c1 = arith.constant 1 : index
    %19 = memref.load %arg2[%c1] : memref<24xi32, #tpu.memory_space<smem>>
    %20 = arith.index_cast %19 : i32 to index
    %c0_18 = arith.constant 0 : index
    %21 = vector.load %arg21[%20, %c0_18] : memref<12x128xf32, #tpu.memory_space<vmem>>, vector<1x128xf32>
    %c1_19 = arith.constant 1 : index
    %c0_20 = arith.constant 0 : index
    %22 = vector.load %arg22[%c1_19, %c0_20] : memref<24x128xf32, #tpu.memory_space<vmem>>, vector<1x128xf32>
    tpu.vector_store %arg22[%c1_19, %c0_20], %21 {strides = array<i32>} : memref<24x128xf32, #tpu.memory_space<vmem>>, vector<1x128xf32>,
    %c2 = arith.constant 2 : index
    %23 = memref.load %arg2[%c2] : memref<24xi32, #tpu.memory_space<smem>>
    %24 = arith.index_cast %23 : i32 to index
    %c0_21 = arith.constant 0 : index
    %25 = vector.load %arg21[%24, %c0_21] : memref<12x128xf32, #tpu.memory_space<vmem>>, vector<1x128xf32>
    %c2_22 = arith.constant 2 : index
    %c0_23 = arith.constant 0 : index
    %26 = vector.load %arg22[%c2_22, %c0_23] : memref<24x128xf32, #tpu.memory_space<vmem>>, vector<1x128xf32>
    tpu.vector_store %arg22[%c2_22, %c0_23], %25 {strides = array<i32>} : memref<24x128xf32, #tpu.memory_space<vmem>>, vector<1x128xf32>,
    %c3 = arith.constant 3 : index
    %27 = memref.load %arg2[%c3] : memref<24xi32, #tpu.memory_space<smem>>
    %28 = arith.index_cast %27 : i32 to index
    %c0_24 = arith.constant 0 : index
    %29 = vector.load %arg21[%28, %c0_24] : memref<12x128xf32, #tpu.memory_space<vmem>>, vector<1x128xf32>
    %c3_25 = arith.constant 3 : index
    %c0_26 = arith.constant 0 : index
    %30 = vector.load %arg22[%c3_25, %c0_26] : memref<24x128xf32, #tpu.memory_space<vmem>>, vector<1x128xf32>
    tpu.vector_store %arg22[%c3_25, %c0_26], %29 {strides = array<i32>} : memref<24x128xf32, #tpu.memory_space<vmem>>, vector<1x128xf32>,
    %c4 = arith.constant 4 : index
    %31 = memref.load %arg2[%c4] : memref<24xi32, #tpu.memory_space<smem>>
    %32 = arith.index_cast %31 : i32 to index
    %c0_27 = arith.constant 0 : index
    %33 = vector.load %arg21[%32, %c0_27] : memref<12x128xf32, #tpu.memory_space<vmem>>, vector<1x128xf32>
    %c4_28 = arith.constant 4 : index
    %c0_29 = arith.constant 0 : index
    %34 = vector.load %arg22[%c4_28, %c0_29] : memref<24x128xf32, #tpu.memory_space<vmem>>, vector<1x128xf32>
    tpu.vector_store %arg22[%c4_28, %c0_29], %33 {strides = array<i32>} : memref<24x128xf32, #tpu.memory_space<vmem>>, vector<1x128xf32>,
    %c5 = arith.constant 5 : index
    %35 = memref.load %arg2[%c5] : memref<24xi32, #tpu.memory_space<smem>>
    %36 = arith.index_cast %35 : i32 to index
    %c0_30 = arith.constant 0 : index
    %37 = vector.load %arg21[%36, %c0_30] : memref<12x128xf32, #tpu.memory_space<vmem>>, vector<1x128xf32>
    %c5_31 = arith.constant 5 : index
    %c0_32 = arith.constant 0 : index
    %38 = vector.load %arg22[%c5_31, %c0_32] : memref<24x128xf32, #tpu.memory_space<vmem>>, vector<1x128xf32>
    tpu.vector_store %arg22[%c5_31, %c0_32], %37 {strides = array<i32>} : memref<24x128xf32, #tpu.memory_space<vmem>>, vector<1x128xf32>,
    %c6 = arith.constant 6 : index
    %39 = memref.load %arg2[%c6] : memref<24xi32, #tpu.memory_space<smem>>
    %40 = arith.index_cast %39 : i32 to index
    %c0_33 = arith.constant 0 : index
    %41 = vector.load %arg21[%40, %c0_33] : memref<12x128xf32, #tpu.memory_space<vmem>>, vector<1x128xf32>
    %c6_34 = arith.constant 6 : index
    %c0_35 = arith.constant 0 : index
    %42 = vector.load %arg22[%c6_34, %c0_35] : memref<24x128xf32, #tpu.memory_space<vmem>>, vector<1x128xf32>
    tpu.vector_store %arg22[%c6_34, %c0_35], %41 {strides = array<i32>} : memref<24x128xf32, #tpu.memory_space<vmem>>, vector<1x128xf32>,
    %c7 = arith.constant 7 : index
    %43 = memref.load %arg2[%c7] : memref<24xi32, #tpu.memory_space<smem>>
    %44 = arith.index_cast %43 : i32 to index
    %c0_36 = arith.constant 0 : index
    %45 = vector.load %arg21[%44, %c0_36] : memref<12x128xf32, #tpu.memory_space<vmem>>, vector<1x128xf32>
    %c7_37 = arith.constant 7 : index
    %c0_38 = arith.constant 0 : index
    %46 = vector.load %arg22[%c7_37, %c0_38] : memref<24x128xf32, #tpu.memory_space<vmem>>, vector<1x128xf32>
    tpu.vector_store %arg22[%c7_37, %c0_38], %45 {strides = array<i32>} : memref<24x128xf32, #tpu.memory_space<vmem>>, vector<1x128xf32>,
    %c8 = arith.constant 8 : index
    %47 = memref.load %arg2[%c8] : memref<24xi32, #tpu.memory_space<smem>>
    %48 = arith.index_cast %47 : i32 to index
    %c0_39 = arith.constant 0 : index
    %49 = vector.load %arg21[%48, %c0_39] : memref<12x128xf32, #tpu.memory_space<vmem>>, vector<1x128xf32>
    %c8_40 = arith.constant 8 : index
    %c0_41 = arith.constant 0 : index
    %50 = vector.load %arg22[%c8_40, %c0_41] : memref<24x128xf32, #tpu.memory_space<vmem>>, vector<1x128xf32>
    tpu.vector_store %arg22[%c8_40, %c0_41], %49 {strides = array<i32>} : memref<24x128xf32, #tpu.memory_space<vmem>>, vector<1x128xf32>,
    %c9 = arith.constant 9 : index
    %51 = memref.load %arg2[%c9] : memref<24xi32, #tpu.memory_space<smem>>
    %52 = arith.index_cast %51 : i32 to index
    %c0_42 = arith.constant 0 : index
    %53 = vector.load %arg21[%52, %c0_42] : memref<12x128xf32, #tpu.memory_space<vmem>>, vector<1x128xf32>
    %c9_43 = arith.constant 9 : index
    %c0_44 = arith.constant 0 : index
    %54 = vector.load %arg22[%c9_43, %c0_44] : memref<24x128xf32, #tpu.memory_space<vmem>>, vector<1x128xf32>
    tpu.vector_store %arg22[%c9_43, %c0_44], %53 {strides = array<i32>} : memref<24x128xf32, #tpu.memory_space<vmem>>, vector<1x128xf32>,
    %c10 = arith.constant 10 : index
    %55 = memref.load %arg2[%c10] : memref<24xi32, #tpu.memory_space<smem>>
    %56 = arith.index_cast %55 : i32 to index
    %c0_45 = arith.constant 0 : index
    %57 = vector.load %arg21[%56, %c0_45] : memref<12x128xf32, #tpu.memory_space<vmem>>, vector<1x128xf32>
    %c10_46 = arith.constant 10 : index
    %c0_47 = arith.constant 0 : index
    %58 = vector.load %arg22[%c10_46, %c0_47] : memref<24x128xf32, #tpu.memory_space<vmem>>, vector<1x128xf32>
    tpu.vector_store %arg22[%c10_46, %c0_47], %57 {strides = array<i32>} : memref<24x128xf32, #tpu.memory_space<vmem>>, vector<1x128xf32>,
    %c11 = arith.constant 11 : index
    %59 = memref.load %arg2[%c11] : memref<24xi32, #tpu.memory_space<smem>>
    %60 = arith.index_cast %59 : i32 to index
    %c0_48 = arith.constant 0 : index
    %61 = vector.load %arg21[%60, %c0_48] : memref<12x128xf32, #tpu.memory_space<vmem>>, vector<1x128xf32>
    %c11_49 = arith.constant 11 : index
    %c0_50 = arith.constant 0 : index
    %62 = vector.load %arg22[%c11_49, %c0_50] : memref<24x128xf32, #tpu.memory_space<vmem>>, vector<1x128xf32>
    tpu.vector_store %arg22[%c11_49, %c0_50], %61 {strides = array<i32>} : memref<24x128xf32, #tpu.memory_space<vmem>>, vector<1x128xf32>,
    %c12 = arith.constant 12 : index
    %63 = memref.load %arg2[%c12] : memref<24xi32, #tpu.memory_space<smem>>
    %64 = arith.index_cast %63 : i32 to index
    %c0_51 = arith.constant 0 : index
    %65 = vector.load %arg21[%64, %c0_51] : memref<12x128xf32, #tpu.memory_space<vmem>>, vector<1x128xf32>
    %c12_52 = arith.constant 12 : index
    %c0_53 = arith.constant 0 : index
    %66 = vector.load %arg22[%c12_52, %c0_53] : memref<24x128xf32, #tpu.memory_space<vmem>>, vector<1x128xf32>
    tpu.vector_store %arg22[%c12_52, %c0_53], %65 {strides = array<i32>} : memref<24x128xf32, #tpu.memory_space<vmem>>, vector<1x128xf32>,
    %c13 = arith.constant 13 : index
    %67 = memref.load %arg2[%c13] : memref<24xi32, #tpu.memory_space<smem>>
    %68 = arith.index_cast %67 : i32 to index
    %c0_54 = arith.constant 0 : index
    %69 = vector.load %arg21[%68, %c0_54] : memref<12x128xf32, #tpu.memory_space<vmem>>, vector<1x128xf32>
    %c13_55 = arith.constant 13 : index
    %c0_56 = arith.constant 0 : index
    %70 = vector.load %arg22[%c13_55, %c0_56] : memref<24x128xf32, #tpu.memory_space<vmem>>, vector<1x128xf32>
    tpu.vector_store %arg22[%c13_55, %c0_56], %69 {strides = array<i32>} : memref<24x128xf32, #tpu.memory_space<vmem>>, vector<1x128xf32>,
    %c14 = arith.constant 14 : index
    %71 = memref.load %arg2[%c14] : memref<24xi32, #tpu.memory_space<smem>>
    %72 = arith.index_cast %71 : i32 to index
    %c0_57 = arith.constant 0 : index
    %73 = vector.load %arg21[%72, %c0_57] : memref<12x128xf32, #tpu.memory_space<vmem>>, vector<1x128xf32>
    %c14_58 = arith.constant 14 : index
    %c0_59 = arith.constant 0 : index
    %74 = vector.load %arg22[%c14_58, %c0_59] : memref<24x128xf32, #tpu.memory_space<vmem>>, vector<1x128xf32>
    tpu.vector_store %arg22[%c14_58, %c0_59], %73 {strides = array<i32>} : memref<24x128xf32, #tpu.memory_space<vmem>>, vector<1x128xf32>,
    %c15 = arith.constant 15 : index
    %75 = memref.load %arg2[%c15] : memref<24xi32, #tpu.memory_space<smem>>
    %76 = arith.index_cast %75 : i32 to index
    %c0_60 = arith.constant 0 : index
    %77 = vector.load %arg21[%76, %c0_60] : memref<12x128xf32, #tpu.memory_space<vmem>>, vector<1x128xf32>
    %c15_61 = arith.constant 15 : index
    %c0_62 = arith.constant 0 : index
    %78 = vector.load %arg22[%c15_61, %c0_62] : memref<24x128xf32, #tpu.memory_space<vmem>>, vector<1x128xf32>
    tpu.vector_store %arg22[%c15_61, %c0_62], %77 {strides = array<i32>} : memref<24x128xf32, #tpu.memory_space<vmem>>, vector<1x128xf32>,
    %c16 = arith.constant 16 : index
    %79 = memref.load %arg2[%c16] : memref<24xi32, #tpu.memory_space<smem>>
    %80 = arith.index_cast %79 : i32 to index
    %c0_63 = arith.constant 0 : index
    %81 = vector.load %arg21[%80, %c0_63] : memref<12x128xf32, #tpu.memory_space<vmem>>, vector<1x128xf32>
    %c16_64 = arith.constant 16 : index
    %c0_65 = arith.constant 0 : index
    %82 = vector.load %arg22[%c16_64, %c0_65] : memref<24x128xf32, #tpu.memory_space<vmem>>, vector<1x128xf32>
    tpu.vector_store %arg22[%c16_64, %c0_65], %81 {strides = array<i32>} : memref<24x128xf32, #tpu.memory_space<vmem>>, vector<1x128xf32>,
    %c17 = arith.constant 17 : index
    %83 = memref.load %arg2[%c17] : memref<24xi32, #tpu.memory_space<smem>>
    %84 = arith.index_cast %83 : i32 to index
    %c0_66 = arith.constant 0 : index
    %85 = vector.load %arg21[%84, %c0_66] : memref<12x128xf32, #tpu.memory_space<vmem>>, vector<1x128xf32>
    %c17_67 = arith.constant 17 : index
    %c0_68 = arith.constant 0 : index
    %86 = vector.load %arg22[%c17_67, %c0_68] : memref<24x128xf32, #tpu.memory_space<vmem>>, vector<1x128xf32>
    tpu.vector_store %arg22[%c17_67, %c0_68], %85 {strides = array<i32>} : memref<24x128xf32, #tpu.memory_space<vmem>>, vector<1x128xf32>,
    %c18 = arith.constant 18 : index
    %87 = memref.load %arg2[%c18] : memref<24xi32, #tpu.memory_space<smem>>
    %88 = arith.index_cast %87 : i32 to index
    %c0_69 = arith.constant 0 : index
    %89 = vector.load %arg21[%88, %c0_69] : memref<12x128xf32, #tpu.memory_space<vmem>>, vector<1x128xf32>
    %c18_70 = arith.constant 18 : index
    %c0_71 = arith.constant 0 : index
    %90 = vector.load %arg22[%c18_70, %c0_71] : memref<24x128xf32, #tpu.memory_space<vmem>>, vector<1x128xf32>
    tpu.vector_store %arg22[%c18_70, %c0_71], %89 {strides = array<i32>} : memref<24x128xf32, #tpu.memory_space<vmem>>, vector<1x128xf32>,
    %c19 = arith.constant 19 : index
    %91 = memref.load %arg2[%c19] : memref<24xi32, #tpu.memory_space<smem>>
    %92 = arith.index_cast %91 : i32 to index
    %c0_72 = arith.constant 0 : index
    %93 = vector.load %arg21[%92, %c0_72] : memref<12x128xf32, #tpu.memory_space<vmem>>, vector<1x128xf32>
    %c19_73 = arith.constant 19 : index
    %c0_74 = arith.constant 0 : index
    %94 = vector.load %arg22[%c19_73, %c0_74] : memref<24x128xf32, #tpu.memory_space<vmem>>, vector<1x128xf32>
    tpu.vector_store %arg22[%c19_73, %c0_74], %93 {strides = array<i32>} : memref<24x128xf32, #tpu.memory_space<vmem>>, vector<1x128xf32>,
    %c20 = arith.constant 20 : index
    %95 = memref.load %arg2[%c20] : memref<24xi32, #tpu.memory_space<smem>>
    %96 = arith.index_cast %95 : i32 to index
    %c0_75 = arith.constant 0 : index
    %97 = vector.load %arg21[%96, %c0_75] : memref<12x128xf32, #tpu.memory_space<vmem>>, vector<1x128xf32>
    %c20_76 = arith.constant 20 : index
    %c0_77 = arith.constant 0 : index
    %98 = vector.load %arg22[%c20_76, %c0_77] : memref<24x128xf32, #tpu.memory_space<vmem>>, vector<1x128xf32>
    tpu.vector_store %arg22[%c20_76, %c0_77], %97 {strides = array<i32>} : memref<24x128xf32, #tpu.memory_space<vmem>>, vector<1x128xf32>,
    %c21 = arith.constant 21 : index
    %99 = memref.load %arg2[%c21] : memref<24xi32, #tpu.memory_space<smem>>
    %100 = arith.index_cast %99 : i32 to index
    %c0_78 = arith.constant 0 : index
    %101 = vector.load %arg21[%100, %c0_78] : memref<12x128xf32, #tpu.memory_space<vmem>>, vector<1x128xf32>
    %c21_79 = arith.constant 21 : index
    %c0_80 = arith.constant 0 : index
    %102 = vector.load %arg22[%c21_79, %c0_80] : memref<24x128xf32, #tpu.memory_space<vmem>>, vector<1x128xf32>
    tpu.vector_store %arg22[%c21_79, %c0_80], %101 {strides = array<i32>} : memref<24x128xf32, #tpu.memory_space<vmem>>, vector<1x128xf32>,
    %c22 = arith.constant 22 : index
    %103 = memref.load %arg2[%c22] : memref<24xi32, #tpu.memory_space<smem>>
    %104 = arith.index_cast %103 : i32 to index
    %c0_81 = arith.constant 0 : index
    %105 = vector.load %arg21[%104, %c0_81] : memref<12x128xf32, #tpu.memory_space<vmem>>, vector<1x128xf32>
    %c22_82 = arith.constant 22 : index
    %c0_83 = arith.constant 0 : index
    %106 = vector.load %arg22[%c22_82, %c0_83] : memref<24x128xf32, #tpu.memory_space<vmem>>, vector<1x128xf32>
    tpu.vector_store %arg22[%c22_82, %c0_83], %105 {strides = array<i32>} : memref<24x128xf32, #tpu.memory_space<vmem>>, vector<1x128xf32>,
    %c23 = arith.constant 23 : index
    %107 = memref.load %arg2[%c23] : memref<24xi32, #tpu.memory_space<smem>>
    %108 = arith.index_cast %107 : i32 to index
    %c0_84 = arith.constant 0 : index
    %109 = vector.load %arg21[%108, %c0_84] : memref<12x128xf32, #tpu.memory_space<vmem>>, vector<1x128xf32>
    %c23_85 = arith.constant 23 : index
    %c0_86 = arith.constant 0 : index
    %110 = vector.load %arg22[%c23_85, %c0_86] : memref<24x128xf32, #tpu.memory_space<vmem>>, vector<1x128xf32>
    tpu.vector_store %arg22[%c23_85, %c0_86], %109 {strides = array<i32>} : memref<24x128xf32, #tpu.memory_space<vmem>>, vector<1x128xf32>,
    %c0_87 = arith.constant 0 : index
    %111 = memref.load %arg3[%c0_87] : memref<24xi32, #tpu.memory_space<smem>>
    %112 = arith.index_cast %111 : i32 to index
    %c0_88 = arith.constant 0 : index
    %113 = vector.load %arg20[%112, %c0_88] : memref<12x128xf32, #tpu.memory_space<vmem>>, vector<1x128xf32>
    %c0_89 = arith.constant 0 : index
    %c0_90 = arith.constant 0 : index
    %114 = vector.load %arg23[%c0_89, %c0_90] : memref<24x128xf32, #tpu.memory_space<vmem>>, vector<1x128xf32>
    tpu.vector_store %arg23[%c0_89, %c0_90], %113 {strides = array<i32>} : memref<24x128xf32, #tpu.memory_space<vmem>>, vector<1x128xf32>,
    %c1_91 = arith.constant 1 : index
    %115 = memref.load %arg3[%c1_91] : memref<24xi32, #tpu.memory_space<smem>>
    %116 = arith.index_cast %115 : i32 to index
    %c0_92 = arith.constant 0 : index
    %117 = vector.load %arg20[%116, %c0_92] : memref<12x128xf32, #tpu.memory_space<vmem>>, vector<1x128xf32>
    %c1_93 = arith.constant 1 : index
    %c0_94 = arith.constant 0 : index
    %118 = vector.load %arg23[%c1_93, %c0_94] : memref<24x128xf32, #tpu.memory_space<vmem>>, vector<1x128xf32>
    tpu.vector_store %arg23[%c1_93, %c0_94], %117 {strides = array<i32>} : memref<24x128xf32, #tpu.memory_space<vmem>>, vector<1x128xf32>,
    %c2_95 = arith.constant 2 : index
    %119 = memref.load %arg3[%c2_95] : memref<24xi32, #tpu.memory_space<smem>>
    %120 = arith.index_cast %119 : i32 to index
    %c0_96 = arith.constant 0 : index
    %121 = vector.load %arg20[%120, %c0_96] : memref<12x128xf32, #tpu.memory_space<vmem>>, vector<1x128xf32>
    %c2_97 = arith.constant 2 : index
    %c0_98 = arith.constant 0 : index
    %122 = vector.load %arg23[%c2_97, %c0_98] : memref<24x128xf32, #tpu.memory_space<vmem>>, vector<1x128xf32>
    tpu.vector_store %arg23[%c2_97, %c0_98], %121 {strides = array<i32>} : memref<24x128xf32, #tpu.memory_space<vmem>>, vector<1x128xf32>,
    %c3_99 = arith.constant 3 : index
    %123 = memref.load %arg3[%c3_99] : memref<24xi32, #tpu.memory_space<smem>>
    %124 = arith.index_cast %123 : i32 to index
    %c0_100 = arith.constant 0 : index
    %125 = vector.load %arg20[%124, %c0_100] : memref<12x128xf32, #tpu.memory_space<vmem>>, vector<1x128xf32>
    %c3_101 = arith.constant 3 : index
    %c0_102 = arith.constant 0 : index
    %126 = vector.load %arg23[%c3_101, %c0_102] : memref<24x128xf32, #tpu.memory_space<vmem>>, vector<1x128xf32>
    tpu.vector_store %arg23[%c3_101, %c0_102], %125 {strides = array<i32>} : memref<24x128xf32, #tpu.memory_space<vmem>>, vector<1x128xf32>,
    %c4_103 = arith.constant 4 : index
    %127 = memref.load %arg3[%c4_103] : memref<24xi32, #tpu.memory_space<smem>>
    %128 = arith.index_cast %127 : i32 to index
    %c0_104 = arith.constant 0 : index
    %129 = vector.load %arg20[%128, %c0_104] : memref<12x128xf32, #tpu.memory_space<vmem>>, vector<1x128xf32>
    %c4_105 = arith.constant 4 : index
    %c0_106 = arith.constant 0 : index
    %130 = vector.load %arg23[%c4_105, %c0_106] : memref<24x128xf32, #tpu.memory_space<vmem>>, vector<1x128xf32>
    tpu.vector_store %arg23[%c4_105, %c0_106], %129 {strides = array<i32>} : memref<24x128xf32, #tpu.memory_space<vmem>>, vector<1x128xf32>,
    %c5_107 = arith.constant 5 : index
    %131 = memref.load %arg3[%c5_107] : memref<24xi32, #tpu.memory_space<smem>>
    %132 = arith.index_cast %131 : i32 to index
    %c0_108 = arith.constant 0 : index
    %133 = vector.load %arg20[%132, %c0_108] : memref<12x128xf32, #tpu.memory_space<vmem>>, vector<1x128xf32>
    %c5_109 = arith.constant 5 : index
    %c0_110 = arith.constant 0 : index
    %134 = vector.load %arg23[%c5_109, %c0_110] : memref<24x128xf32, #tpu.memory_space<vmem>>, vector<1x128xf32>
    tpu.vector_store %arg23[%c5_109, %c0_110], %133 {strides = array<i32>} : memref<24x128xf32, #tpu.memory_space<vmem>>, vector<1x128xf32>,
    %c6_111 = arith.constant 6 : index
    %135 = memref.load %arg3[%c6_111] : memref<24xi32, #tpu.memory_space<smem>>
    %136 = arith.index_cast %135 : i32 to index
    %c0_112 = arith.constant 0 : index
    %137 = vector.load %arg20[%136, %c0_112] : memref<12x128xf32, #tpu.memory_space<vmem>>, vector<1x128xf32>
    %c6_113 = arith.constant 6 : index
    %c0_114 = arith.constant 0 : index
    %138 = vector.load %arg23[%c6_113, %c0_114] : memref<24x128xf32, #tpu.memory_space<vmem>>, vector<1x128xf32>
    tpu.vector_store %arg23[%c6_113, %c0_114], %137 {strides = array<i32>} : memref<24x128xf32, #tpu.memory_space<vmem>>, vector<1x128xf32>,
    %c7_115 = arith.constant 7 : index
    %139 = memref.load %arg3[%c7_115] : memref<24xi32, #tpu.memory_space<smem>>
    %140 = arith.index_cast %139 : i32 to index
    %c0_116 = arith.constant 0 : index
    %141 = vector.load %arg20[%140, %c0_116] : memref<12x128xf32, #tpu.memory_space<vmem>>, vector<1x128xf32>
    %c7_117 = arith.constant 7 : index
    %c0_118 = arith.constant 0 : index
    %142 = vector.load %arg23[%c7_117, %c0_118] : memref<24x128xf32, #tpu.memory_space<vmem>>, vector<1x128xf32>
    tpu.vector_store %arg23[%c7_117, %c0_118], %141 {strides = array<i32>} : memref<24x128xf32, #tpu.memory_space<vmem>>, vector<1x128xf32>,
    %c8_119 = arith.constant 8 : index
    %143 = memref.load %arg3[%c8_119] : memref<24xi32, #tpu.memory_space<smem>>
    %144 = arith.index_cast %143 : i32 to index
    %c0_120 = arith.constant 0 : index
    %145 = vector.load %arg20[%144, %c0_120] : memref<12x128xf32, #tpu.memory_space<vmem>>, vector<1x128xf32>
    %c8_121 = arith.constant 8 : index
    %c0_122 = arith.constant 0 : index
    %146 = vector.load %arg23[%c8_121, %c0_122] : memref<24x128xf32, #tpu.memory_space<vmem>>, vector<1x128xf32>
    tpu.vector_store %arg23[%c8_121, %c0_122], %145 {strides = array<i32>} : memref<24x128xf32, #tpu.memory_space<vmem>>, vector<1x128xf32>,
    %c9_123 = arith.constant 9 : index
    %147 = memref.load %arg3[%c9_123] : memref<24xi32, #tpu.memory_space<smem>>
    %148 = arith.index_cast %147 : i32 to index
    %c0_124 = arith.constant 0 : index
    %149 = vector.load %arg20[%148, %c0_124] : memref<12x128xf32, #tpu.memory_space<vmem>>, vector<1x128xf32>
    %c9_125 = arith.constant 9 : index
    %c0_126 = arith.constant 0 : index
    %150 = vector.load %arg23[%c9_125, %c0_126] : memref<24x128xf32, #tpu.memory_space<vmem>>, vector<1x128xf32>
    tpu.vector_store %arg23[%c9_125, %c0_126], %149 {strides = array<i32>} : memref<24x128xf32, #tpu.memory_space<vmem>>, vector<1x128xf32>,
    %c10_127 = arith.constant 10 : index
    %151 = memref.load %arg3[%c10_127] : memref<24xi32, #tpu.memory_space<smem>>
    %152 = arith.index_cast %151 : i32 to index
    %c0_128 = arith.constant 0 : index
    %153 = vector.load %arg20[%152, %c0_128] : memref<12x128xf32, #tpu.memory_space<vmem>>, vector<1x128xf32>
    %c10_129 = arith.constant 10 : index
    %c0_130 = arith.constant 0 : index
    %154 = vector.load %arg23[%c10_129, %c0_130] : memref<24x128xf32, #tpu.memory_space<vmem>>, vector<1x128xf32>
    tpu.vector_store %arg23[%c10_129, %c0_130], %153 {strides = array<i32>} : memref<24x128xf32, #tpu.memory_space<vmem>>, vector<1x128xf32>,
    %c11_131 = arith.constant 11 : index
    %155 = memref.load %arg3[%c11_131] : memref<24xi32, #tpu.memory_space<smem>>
    %156 = arith.index_cast %155 : i32 to index
    %c0_132 = arith.constant 0 : index
    %157 = vector.load %arg20[%156, %c0_132] : memref<12x128xf32, #tpu.memory_space<vmem>>, vector<1x128xf32>
    %c11_133 = arith.constant 11 : index
    %c0_134 = arith.constant 0 : index
    %158 = vector.load %arg23[%c11_133, %c0_134] : memref<24x128xf32, #tpu.memory_space<vmem>>, vector<1x128xf32>
    tpu.vector_store %arg23[%c11_133, %c0_134], %157 {strides = array<i32>} : memref<24x128xf32, #tpu.memory_space<vmem>>, vector<1x128xf32>,
    %c12_135 = arith.constant 12 : index
    %159 = memref.load %arg3[%c12_135] : memref<24xi32, #tpu.memory_space<smem>>
    %160 = arith.index_cast %159 : i32 to index
    %c0_136 = arith.constant 0 : index
    %161 = vector.load %arg20[%160, %c0_136] : memref<12x128xf32, #tpu.memory_space<vmem>>, vector<1x128xf32>
    %c12_137 = arith.constant 12 : index
    %c0_138 = arith.constant 0 : index
    %162 = vector.load %arg23[%c12_137, %c0_138] : memref<24x128xf32, #tpu.memory_space<vmem>>, vector<1x128xf32>
    tpu.vector_store %arg23[%c12_137, %c0_138], %161 {strides = array<i32>} : memref<24x128xf32, #tpu.memory_space<vmem>>, vector<1x128xf32>,
    %c13_139 = arith.constant 13 : index
    %163 = memref.load %arg3[%c13_139] : memref<24xi32, #tpu.memory_space<smem>>
    %164 = arith.index_cast %163 : i32 to index
    %c0_140 = arith.constant 0 : index
    %165 = vector.load %arg20[%164, %c0_140] : memref<12x128xf32, #tpu.memory_space<vmem>>, vector<1x128xf32>
    %c13_141 = arith.constant 13 : index
    %c0_142 = arith.constant 0 : index
    %166 = vector.load %arg23[%c13_141, %c0_142] : memref<24x128xf32, #tpu.memory_space<vmem>>, vector<1x128xf32>
    tpu.vector_store %arg23[%c13_141, %c0_142], %165 {strides = array<i32>} : memref<24x128xf32, #tpu.memory_space<vmem>>, vector<1x128xf32>,
    %c14_143 = arith.constant 14 : index
    %167 = memref.load %arg3[%c14_143] : memref<24xi32, #tpu.memory_space<smem>>
    %168 = arith.index_cast %167 : i32 to index
    %c0_144 = arith.constant 0 : index
    %169 = vector.load %arg20[%168, %c0_144] : memref<12x128xf32, #tpu.memory_space<vmem>>, vector<1x128xf32>
    %c14_145 = arith.constant 14 : index
    %c0_146 = arith.constant 0 : index
    %170 = vector.load %arg23[%c14_145, %c0_146] : memref<24x128xf32, #tpu.memory_space<vmem>>, vector<1x128xf32>
    tpu.vector_store %arg23[%c14_145, %c0_146], %169 {strides = array<i32>} : memref<24x128xf32, #tpu.memory_space<vmem>>, vector<1x128xf32>,
    %c15_147 = arith.constant 15 : index
    %171 = memref.load %arg3[%c15_147] : memref<24xi32, #tpu.memory_space<smem>>
    %172 = arith.index_cast %171 : i32 to index
    %c0_148 = arith.constant 0 : index
    %173 = vector.load %arg20[%172, %c0_148] : memref<12x128xf32, #tpu.memory_space<vmem>>, vector<1x128xf32>
    %c15_149 = arith.constant 15 : index
    %c0_150 = arith.constant 0 : index
    %174 = vector.load %arg23[%c15_149, %c0_150] : memref<24x128xf32, #tpu.memory_space<vmem>>, vector<1x128xf32>
    tpu.vector_store %arg23[%c15_149, %c0_150], %173 {strides = array<i32>} : memref<24x128xf32, #tpu.memory_space<vmem>>, vector<1x128xf32>,
    %c16_151 = arith.constant 16 : index
    %175 = memref.load %arg3[%c16_151] : memref<24xi32, #tpu.memory_space<smem>>
    %176 = arith.index_cast %175 : i32 to index
    %c0_152 = arith.constant 0 : index
    %177 = vector.load %arg20[%176, %c0_152] : memref<12x128xf32, #tpu.memory_space<vmem>>, vector<1x128xf32>
    %c16_153 = arith.constant 16 : index
    %c0_154 = arith.constant 0 : index
    %178 = vector.load %arg23[%c16_153, %c0_154] : memref<24x128xf32, #tpu.memory_space<vmem>>, vector<1x128xf32>
    tpu.vector_store %arg23[%c16_153, %c0_154], %177 {strides = array<i32>} : memref<24x128xf32, #tpu.memory_space<vmem>>, vector<1x128xf32>,
    %c17_155 = arith.constant 17 : index
    %179 = memref.load %arg3[%c17_155] : memref<24xi32, #tpu.memory_space<smem>>
    %180 = arith.index_cast %179 : i32 to index
    %c0_156 = arith.constant 0 : index
    %181 = vector.load %arg20[%180, %c0_156] : memref<12x128xf32, #tpu.memory_space<vmem>>, vector<1x128xf32>
    %c17_157 = arith.constant 17 : index
    %c0_158 = arith.constant 0 : index
    %182 = vector.load %arg23[%c17_157, %c0_158] : memref<24x128xf32, #tpu.memory_space<vmem>>, vector<1x128xf32>
    tpu.vector_store %arg23[%c17_157, %c0_158], %181 {strides = array<i32>} : memref<24x128xf32, #tpu.memory_space<vmem>>, vector<1x128xf32>,
    %c18_159 = arith.constant 18 : index
    %183 = memref.load %arg3[%c18_159] : memref<24xi32, #tpu.memory_space<smem>>
    %184 = arith.index_cast %183 : i32 to index
    %c0_160 = arith.constant 0 : index
    %185 = vector.load %arg20[%184, %c0_160] : memref<12x128xf32, #tpu.memory_space<vmem>>, vector<1x128xf32>
    %c18_161 = arith.constant 18 : index
    %c0_162 = arith.constant 0 : index
    %186 = vector.load %arg23[%c18_161, %c0_162] : memref<24x128xf32, #tpu.memory_space<vmem>>, vector<1x128xf32>
    tpu.vector_store %arg23[%c18_161, %c0_162], %185 {strides = array<i32>} : memref<24x128xf32, #tpu.memory_space<vmem>>, vector<1x128xf32>,
    %c19_163 = arith.constant 19 : index
    %187 = memref.load %arg3[%c19_163] : memref<24xi32, #tpu.memory_space<smem>>
    %188 = arith.index_cast %187 : i32 to index
    %c0_164 = arith.constant 0 : index
    %189 = vector.load %arg20[%188, %c0_164] : memref<12x128xf32, #tpu.memory_space<vmem>>, vector<1x128xf32>
    %c19_165 = arith.constant 19 : index
    %c0_166 = arith.constant 0 : index
    %190 = vector.load %arg23[%c19_165, %c0_166] : memref<24x128xf32, #tpu.memory_space<vmem>>, vector<1x128xf32>
    tpu.vector_store %arg23[%c19_165, %c0_166], %189 {strides = array<i32>} : memref<24x128xf32, #tpu.memory_space<vmem>>, vector<1x128xf32>,
    %c20_167 = arith.constant 20 : index
    %191 = memref.load %arg3[%c20_167] : memref<24xi32, #tpu.memory_space<smem>>
    %192 = arith.index_cast %191 : i32 to index
    %c0_168 = arith.constant 0 : index
    %193 = vector.load %arg20[%192, %c0_168] : memref<12x128xf32, #tpu.memory_space<vmem>>, vector<1x128xf32>
    %c20_169 = arith.constant 20 : index
    %c0_170 = arith.constant 0 : index
    %194 = vector.load %arg23[%c20_169, %c0_170] : memref<24x128xf32, #tpu.memory_space<vmem>>, vector<1x128xf32>
    tpu.vector_store %arg23[%c20_169, %c0_170], %193 {strides = array<i32>} : memref<24x128xf32, #tpu.memory_space<vmem>>, vector<1x128xf32>,
    %c21_171 = arith.constant 21 : index
    %195 = memref.load %arg3[%c21_171] : memref<24xi32, #tpu.memory_space<smem>>
    %196 = arith.index_cast %195 : i32 to index
    %c0_172 = arith.constant 0 : index
    %197 = vector.load %arg20[%196, %c0_172] : memref<12x128xf32, #tpu.memory_space<vmem>>, vector<1x128xf32>
    %c21_173 = arith.constant 21 : index
    %c0_174 = arith.constant 0 : index
    %198 = vector.load %arg23[%c21_173, %c0_174] : memref<24x128xf32, #tpu.memory_space<vmem>>, vector<1x128xf32>
    tpu.vector_store %arg23[%c21_173, %c0_174], %197 {strides = array<i32>} : memref<24x128xf32, #tpu.memory_space<vmem>>, vector<1x128xf32>,
    %c22_175 = arith.constant 22 : index
    %199 = memref.load %arg3[%c22_175] : memref<24xi32, #tpu.memory_space<smem>>
    %200 = arith.index_cast %199 : i32 to index
    %c0_176 = arith.constant 0 : index
    %201 = vector.load %arg20[%200, %c0_176] : memref<12x128xf32, #tpu.memory_space<vmem>>, vector<1x128xf32>
    %c22_177 = arith.constant 22 : index
    %c0_178 = arith.constant 0 : index
    %202 = vector.load %arg23[%c22_177, %c0_178] : memref<24x128xf32, #tpu.memory_space<vmem>>, vector<1x128xf32>
    tpu.vector_store %arg23[%c22_177, %c0_178], %201 {strides = array<i32>} : memref<24x128xf32, #tpu.memory_space<vmem>>, vector<1x128xf32>,
    %c23_179 = arith.constant 23 : index
    %203 = memref.load %arg3[%c23_179] : memref<24xi32, #tpu.memory_space<smem>>
    %204 = arith.index_cast %203 : i32 to index
    %c0_180 = arith.constant 0 : index
    %205 = vector.load %arg20[%204, %c0_180] : memref<12x128xf32, #tpu.memory_space<vmem>>, vector<1x128xf32>
    %c23_181 = arith.constant 23 : index
    %c0_182 = arith.constant 0 : index
    %206 = vector.load %arg23[%c23_181, %c0_182] : memref<24x128xf32, #tpu.memory_space<vmem>>, vector<1x128xf32>
    tpu.vector_store %arg23[%c23_181, %c0_182], %205 {strides = array<i32>} : memref<24x128xf32, #tpu.memory_space<vmem>>, vector<1x128xf32>,
    %c0_183 = arith.constant 0 : index
    %c0_184 = arith.constant 0 : index
    %207 = vector.load %arg22[%c0_183, %c0_184] : memref<24x128xf32, #tpu.memory_space<vmem>>, vector<24x128xf32>
    %c0_185 = arith.constant 0 : index
    %c0_186 = arith.constant 0 : index
    %208 = vector.load %arg1[%c0_185, %c0_186] : memref<24x8xf32, #tpu.memory_space<vmem>>, vector<24x8xf32>
    %c0_187 = arith.constant 0 : index
    %c0_188 = arith.constant 0 : index
    %209 = vector.load %arg8[%c0_187, %c0_188] : memref<8x128xf32, #tpu.memory_space<vmem>>, vector<8x128xf32>
    %c0_189 = arith.constant 0 : index
    %c0_190 = arith.constant 0 : index
    %210 = vector.load %arg9[%c0_189, %c0_190] : memref<1x128xf32, #tpu.memory_space<vmem>>, vector<1x128xf32>
    %cst_191 = arith.constant dense<0.000000e+00> : vector<24x128xf32>
    %211 = tpu.matmul %208, %209, %cst_191 {dimension_numbers = #tpu.dot_dimension_numbers<[1], [0], [0], [1], [0, 0, 1, 1], [], []>} : vector<24x8xf32>, vector<8x128xf32>, vector<24x128xf32> -> vector<24x128xf32>
    %212 = vector.broadcast %210 : vector<1x128xf32> to vector<24x128xf32>
    %213 = arith.addf %211, %212 : vector<24x128xf32>
    %214 = arith.addf %207, %213 : vector<24x128xf32>
    %cst_192 = arith.constant 0.000000e+00 : f32
    %215 = vector.broadcast %cst_192 : f32 to vector<24x128xf32>
    %216 = arith.cmpf ogt, %214, %215 : vector<24x128xf32>
    %cst_193 = arith.constant 0.00999999977 : f32
    %217 = vector.broadcast %cst_193 : f32 to vector<24x128xf32>
    %218 = arith.mulf %217, %214 : vector<24x128xf32>
    %219 = arith.select %216, %214, %218 : vector<24x128xi1>, vector<24x128xf32>
    %c0_194 = arith.constant 0 : index
    %c0_195 = arith.constant 0 : index
    %220 = vector.load %arg23[%c0_194, %c0_195] : memref<24x128xf32, #tpu.memory_space<vmem>>, vector<24x128xf32>
    %c0_196 = arith.constant 0 : index
    %c0_197 = arith.constant 0 : index
    %221 = vector.load %arg10[%c0_196, %c0_197] : memref<128x1xf32, #tpu.memory_space<vmem>>, vector<128x1xf32>
    %c0_198 = arith.constant 0 : index
    %c0_199 = arith.constant 0 : index
    %222 = vector.load %arg11[%c0_198, %c0_199] : memref<128x1xf32, #tpu.memory_space<vmem>>, vector<128x1xf32>
    %c0_200 = arith.constant 0 : index
    %c0_201 = arith.constant 0 : index
    %223 = vector.load %arg12[%c0_200, %c0_201] : memref<1x1xf32, #tpu.memory_space<vmem>>, vector<1x1xf32>
    %cst_202 = arith.constant dense<0.000000e+00> : vector<24x1xf32>
    %224 = tpu.matmul %220, %221, %cst_202 {dimension_numbers = #tpu.dot_dimension_numbers<[1], [0], [0], [1], [0, 0, 1, 1], [], []>} : vector<24x128xf32>, vector<128x1xf32>, vector<24x1xf32> -> vector<24x1xf32>
    %cst_203 = arith.constant dense<0.000000e+00> : vector<24x1xf32>
    %225 = tpu.matmul %219, %222, %cst_203 {dimension_numbers = #tpu.dot_dimension_numbers<[1], [0], [0], [1], [0, 0, 1, 1], [], []>} : vector<24x128xf32>, vector<128x1xf32>, vector<24x1xf32> -> vector<24x1xf32>
    %226 = arith.addf %224, %225 : vector<24x1xf32>
    %227 = vector.broadcast %223 : vector<1x1xf32> to vector<24x1xf32>
    %228 = arith.addf %226, %227 : vector<24x1xf32>
    %cst_204 = arith.constant 0.000000e+00 : f32
    %229 = vector.broadcast %cst_204 : f32 to vector<24x1xf32>
    %230 = arith.cmpf ogt, %228, %229 : vector<24x1xf32>
    %cst_205 = arith.constant 0.00999999977 : f32
    %231 = vector.broadcast %cst_205 : f32 to vector<24x1xf32>
    %232 = arith.mulf %231, %228 : vector<24x1xf32>
    %233 = arith.select %230, %228, %232 : vector<24x1xi1>, vector<24x1xf32>
    %c0_206 = arith.constant 0 : index
    %c0_207 = arith.constant 0 : index
    %234 = vector.load %arg13[%c0_206, %c0_207] : memref<128x128xf32, #tpu.memory_space<vmem>>, vector<128x128xf32>
    %c0_208 = arith.constant 0 : index
    %c0_209 = arith.constant 0 : index
    %235 = vector.load %arg14[%c0_208, %c0_209] : memref<1x128xf32, #tpu.memory_space<vmem>>, vector<1x128xf32>
    %cst_210 = arith.constant dense<0.000000e+00> : vector<24x128xf32>
    %236 = tpu.matmul %219, %234, %cst_210 {dimension_numbers = #tpu.dot_dimension_numbers<[1], [0], [0], [1], [0, 0, 1, 1], [], []>} : vector<24x128xf32>, vector<128x128xf32>, vector<24x128xf32> -> vector<24x128xf32>
    %237 = vector.broadcast %235 : vector<1x128xf32> to vector<24x128xf32>
    %238 = arith.addf %236, %237 : vector<24x128xf32>
    %c0_211 = arith.constant 0 : index
    %c0_212 = arith.constant 0 : index
    %239 = vector.load %arg4[%c0_211, %c0_212] : memref<24x12xf32, #tpu.memory_space<vmem>>, vector<24x12xf32>
    %240 = vector.broadcast %233 : vector<24x1xf32> to vector<24x12xf32>
    %241 = arith.mulf %240, %239 : vector<24x12xf32>
    %cst_213 = arith.constant 1.000000e+00 : f32
    %242 = vector.broadcast %cst_213 : f32 to vector<24x12xf32>
    %243 = arith.subf %242, %239 : vector<24x12xf32>
    %cst_214 = arith.constant -1.000000e+30 : f32
    %244 = vector.broadcast %cst_214 : f32 to vector<24x12xf32>
    %245 = arith.mulf %244, %243 : vector<24x12xf32>
    %246 = arith.addf %241, %245 : vector<24x12xf32>
    %cst_215 = arith.constant dense<0xFF800000> : vector<12xf32>
    %247 = vector.multi_reduction <maximumf>, %246, %cst_215 [0] : vector<24x12xf32> to vector<12xf32>
    %248 = vector.shape_cast %247 : vector<12xf32> to vector<1x12xf32>
    %cst_216 = arith.constant dense<0.000000e+00> : vector<24x1xf32>
    %249 = tpu.matmul %239, %248, %cst_216 {dimension_numbers = #tpu.dot_dimension_numbers<[1], [1], [0], [0], [0, 0, 1, 0], [], []>} : vector<24x12xf32>, vector<1x12xf32>, vector<24x1xf32> -> vector<24x1xf32>
    %250 = arith.subf %233, %249 : vector<24x1xf32>
    %251 = math.exp %250 : vector<24x1xf32>
    %cst_217 = arith.constant dense<0.000000e+00> : vector<12x1xf32>
    %252 = tpu.matmul %239, %251, %cst_217 {dimension_numbers = #tpu.dot_dimension_numbers<[0], [0], [1], [1], [0, 1, 1, 1], [], []>} : vector<24x12xf32>, vector<24x1xf32>, vector<12x1xf32> -> vector<12x1xf32>
    %cst_218 = arith.constant dense<0.000000e+00> : vector<24x1xf32>
    %253 = tpu.matmul %239, %252, %cst_218 {dimension_numbers = #tpu.dot_dimension_numbers<[1], [0], [0], [1], [0, 0, 1, 1], [], []>} : vector<24x12xf32>, vector<12x1xf32>, vector<24x1xf32> -> vector<24x1xf32>
    %254 = tpu.reciprocal %253 {approx = true} : vector<24x1xf32> -> vector<24x1xf32>
    %255 = arith.mulf %251, %254 : vector<24x1xf32>
    %256 = vector.broadcast %255 : vector<24x1xf32> to vector<24x128xf32>
    %257 = arith.mulf %256, %238 : vector<24x128xf32>
    %cst_219 = arith.constant dense<0.000000e+00> : vector<12x128xf32>
    %258 = tpu.matmul %239, %257, %cst_219 {dimension_numbers = #tpu.dot_dimension_numbers<[0], [0], [1], [1], [0, 1, 1, 1], [], []>} : vector<24x12xf32>, vector<24x128xf32>, vector<12x128xf32> -> vector<12x128xf32>
    %cst_220 = arith.constant 0.000000e+00 : f32
    %259 = vector.broadcast %cst_220 : f32 to vector<12x128xf32>
    %260 = arith.cmpf ogt, %258, %259 : vector<12x128xf32>
    %261 = math.exp %258 : vector<12x128xf32>
    %cst_221 = arith.constant 1.000000e+00 : f32
    %262 = vector.broadcast %cst_221 : f32 to vector<12x128xf32>
    %263 = arith.subf %261, %262 : vector<12x128xf32>
    %264 = arith.select %260, %258, %263 : vector<12x128xi1>, vector<12x128xf32>
    %c0_222 = arith.constant 0 : index
    %c0_223 = arith.constant 0 : index
    %265 = vector.load %arg20[%c0_222, %c0_223] : memref<12x128xf32, #tpu.memory_space<vmem>>, vector<12x128xf32>
    %c0_224 = arith.constant 0 : index
    %c0_225 = arith.constant 0 : index
    %266 = vector.load %arg15[%c0_224, %c0_225] : memref<128x384xf32, #tpu.memory_space<vmem>>, vector<128x384xf32>
    %c0_226 = arith.constant 0 : index
    %c0_227 = arith.constant 0 : index
    %267 = vector.load %arg16[%c0_226, %c0_227] : memref<128x384xf32, #tpu.memory_space<vmem>>, vector<128x384xf32>
    %c0_228 = arith.constant 0 : index
    %c0_229 = arith.constant 0 : index
    %268 = vector.load %arg17[%c0_228, %c0_229] : memref<1x384xf32, #tpu.memory_space<vmem>>, vector<1x384xf32>
    %c0_230 = arith.constant 0 : index
    %c0_231 = arith.constant 0 : index
    %269 = vector.load %arg18[%c0_230, %c0_231] : memref<1x384xf32, #tpu.memory_space<vmem>>, vector<1x384xf32>
    %cst_232 = arith.constant dense<0.000000e+00> : vector<12x384xf32>
    %270 = tpu.matmul %264, %266, %cst_232 {dimension_numbers = #tpu.dot_dimension_numbers<[1], [0], [0], [1], [0, 0, 1, 1], [], []>} : vector<12x128xf32>, vector<128x384xf32>, vector<12x384xf32> -> vector<12x384xf32>
    %271 = vector.broadcast %268 : vector<1x384xf32> to vector<12x384xf32>
    %272 = arith.addf %270, %271 : vector<12x384xf32>
    %cst_233 = arith.constant dense<0.000000e+00> : vector<12x384xf32>
    %273 = tpu.matmul %265, %267, %cst_233 {dimension_numbers = #tpu.dot_dimension_numbers<[1], [0], [0], [1], [0, 0, 1, 1], [], []>} : vector<12x128xf32>, vector<128x384xf32>, vector<12x384xf32> -> vector<12x384xf32>
    %274 = vector.broadcast %269 : vector<1x384xf32> to vector<12x384xf32>
    %275 = arith.addf %273, %274 : vector<12x384xf32>
    %276 = vector.extract_strided_slice %272 {offsets = [0, 0], sizes = [12, 128], strides = [1, 1]} : vector<12x384xf32> to vector<12x128xf32>
    %277 = vector.extract_strided_slice %275 {offsets = [0, 0], sizes = [12, 128], strides = [1, 1]} : vector<12x384xf32> to vector<12x128xf32>
    %278 = arith.addf %276, %277 : vector<12x128xf32>
    %279 = arith.negf %278 : vector<12x128xf32>
    %280 = math.exp %279 : vector<12x128xf32>
    %cst_234 = arith.constant 1.000000e+00 : f32
    %281 = vector.broadcast %cst_234 : f32 to vector<12x128xf32>
    %282 = arith.addf %281, %280 : vector<12x128xf32>
    %283 = arith.divf %281, %282 : vector<12x128xf32>
    %284 = vector.extract_strided_slice %272 {offsets = [0, 128], sizes = [12, 128], strides = [1, 1]} : vector<12x384xf32> to vector<12x128xf32>
    %285 = vector.extract_strided_slice %275 {offsets = [0, 128], sizes = [12, 128], strides = [1, 1]} : vector<12x384xf32> to vector<12x128xf32>
    %286 = arith.addf %284, %285 : vector<12x128xf32>
    %287 = arith.negf %286 : vector<12x128xf32>
    %288 = math.exp %287 : vector<12x128xf32>
    %cst_235 = arith.constant 1.000000e+00 : f32
    %289 = vector.broadcast %cst_235 : f32 to vector<12x128xf32>
    %290 = arith.addf %289, %288 : vector<12x128xf32>
    %291 = arith.divf %289, %290 : vector<12x128xf32>
    %292 = vector.extract_strided_slice %272 {offsets = [0, 256], sizes = [12, 128], strides = [1, 1]} : vector<12x384xf32> to vector<12x128xf32>
    %293 = vector.extract_strided_slice %275 {offsets = [0, 256], sizes = [12, 128], strides = [1, 1]} : vector<12x384xf32> to vector<12x128xf32>
    %294 = arith.mulf %283, %293 : vector<12x128xf32>
    %295 = arith.addf %292, %294 : vector<12x128xf32>
    %296 = math.tanh %295 : vector<12x128xf32>
    %cst_236 = arith.constant 1.000000e+00 : f32
    %297 = vector.broadcast %cst_236 : f32 to vector<12x128xf32>
    %298 = arith.subf %297, %291 : vector<12x128xf32>
    %299 = arith.mulf %298, %296 : vector<12x128xf32>
    %300 = arith.mulf %291, %265 : vector<12x128xf32>
    %301 = arith.addf %299, %300 : vector<12x128xf32>
    %cst_237 = arith.constant 0.000000e+00 : f32
    %302 = vector.broadcast %cst_237 : f32 to vector<12x128xf32>
    %303 = arith.maximumf %301, %302 : vector<12x128xf32>
    %c0_238 = arith.constant 0 : index
    %c0_239 = arith.constant 0 : index
    %304 = vector.load %arg19[%c0_238, %c0_239] : memref<12x128xf32, #tpu.memory_space<vmem>>, vector<12x128xf32>
    tpu.vector_store %arg19[%c0_238, %c0_239], %303 {strides = array<i32>} : memref<12x128xf32, #tpu.memory_space<vmem>>, vector<12x128xf32>,
    return
  }
}

module attributes {stable_mosaic.version = 11 : i64} {
  func.func @_gnn_layer_kernel(%arg0: memref<12x128xf32, #tpu.memory_space<vmem>>, %arg1: memref<24xi32, #tpu.memory_space<smem>>, %arg2: memref<24xi32, #tpu.memory_space<smem>>, %arg3: memref<24x12xf32, #tpu.memory_space<vmem>>, %arg4: memref<128x1xf32, #tpu.memory_space<vmem>>, %arg5: memref<128x1xf32, #tpu.memory_space<vmem>>, %arg6: memref<1x1xf32, #tpu.memory_space<vmem>>, %arg7: memref<128x128xf32, #tpu.memory_space<vmem>>, %arg8: memref<1x128xf32, #tpu.memory_space<vmem>>, %arg9: memref<128x384xf32, #tpu.memory_space<vmem>>, %arg10: memref<128x384xf32, #tpu.memory_space<vmem>>, %arg11: memref<1x384xf32, #tpu.memory_space<vmem>>, %arg12: memref<1x384xf32, #tpu.memory_space<vmem>>, %arg13: memref<12x128xf32, #tpu.memory_space<vmem>>, %arg14: memref<24x128xf32, #tpu.memory_space<vmem>>, %arg15: memref<24x128xf32, #tpu.memory_space<vmem>>) attributes {dimension_semantics = [], scalar_prefetch = 0 : i64, scratch_operands = 2 : i64, tpu.core_type = #tpu.core_type<tc>} {
    %c0 = arith.constant 0 : index
    %0 = memref.load %arg1[%c0] : memref<24xi32, #tpu.memory_space<smem>>
    %1 = arith.index_cast %0 : i32 to index
    %c0_0 = arith.constant 0 : index
    %2 = vector.load %arg0[%1, %c0_0] : memref<12x128xf32, #tpu.memory_space<vmem>>, vector<1x128xf32>
    %c0_1 = arith.constant 0 : index
    %c0_2 = arith.constant 0 : index
    %3 = vector.load %arg14[%c0_1, %c0_2] : memref<24x128xf32, #tpu.memory_space<vmem>>, vector<1x128xf32>
    tpu.vector_store %arg14[%c0_1, %c0_2], %2 {strides = array<i32>} : memref<24x128xf32, #tpu.memory_space<vmem>>, vector<1x128xf32>,
    %c1 = arith.constant 1 : index
    %4 = memref.load %arg1[%c1] : memref<24xi32, #tpu.memory_space<smem>>
    %5 = arith.index_cast %4 : i32 to index
    %c0_3 = arith.constant 0 : index
    %6 = vector.load %arg0[%5, %c0_3] : memref<12x128xf32, #tpu.memory_space<vmem>>, vector<1x128xf32>
    %c1_4 = arith.constant 1 : index
    %c0_5 = arith.constant 0 : index
    %7 = vector.load %arg14[%c1_4, %c0_5] : memref<24x128xf32, #tpu.memory_space<vmem>>, vector<1x128xf32>
    tpu.vector_store %arg14[%c1_4, %c0_5], %6 {strides = array<i32>} : memref<24x128xf32, #tpu.memory_space<vmem>>, vector<1x128xf32>,
    %c2 = arith.constant 2 : index
    %8 = memref.load %arg1[%c2] : memref<24xi32, #tpu.memory_space<smem>>
    %9 = arith.index_cast %8 : i32 to index
    %c0_6 = arith.constant 0 : index
    %10 = vector.load %arg0[%9, %c0_6] : memref<12x128xf32, #tpu.memory_space<vmem>>, vector<1x128xf32>
    %c2_7 = arith.constant 2 : index
    %c0_8 = arith.constant 0 : index
    %11 = vector.load %arg14[%c2_7, %c0_8] : memref<24x128xf32, #tpu.memory_space<vmem>>, vector<1x128xf32>
    tpu.vector_store %arg14[%c2_7, %c0_8], %10 {strides = array<i32>} : memref<24x128xf32, #tpu.memory_space<vmem>>, vector<1x128xf32>,
    %c3 = arith.constant 3 : index
    %12 = memref.load %arg1[%c3] : memref<24xi32, #tpu.memory_space<smem>>
    %13 = arith.index_cast %12 : i32 to index
    %c0_9 = arith.constant 0 : index
    %14 = vector.load %arg0[%13, %c0_9] : memref<12x128xf32, #tpu.memory_space<vmem>>, vector<1x128xf32>
    %c3_10 = arith.constant 3 : index
    %c0_11 = arith.constant 0 : index
    %15 = vector.load %arg14[%c3_10, %c0_11] : memref<24x128xf32, #tpu.memory_space<vmem>>, vector<1x128xf32>
    tpu.vector_store %arg14[%c3_10, %c0_11], %14 {strides = array<i32>} : memref<24x128xf32, #tpu.memory_space<vmem>>, vector<1x128xf32>,
    %c4 = arith.constant 4 : index
    %16 = memref.load %arg1[%c4] : memref<24xi32, #tpu.memory_space<smem>>
    %17 = arith.index_cast %16 : i32 to index
    %c0_12 = arith.constant 0 : index
    %18 = vector.load %arg0[%17, %c0_12] : memref<12x128xf32, #tpu.memory_space<vmem>>, vector<1x128xf32>
    %c4_13 = arith.constant 4 : index
    %c0_14 = arith.constant 0 : index
    %19 = vector.load %arg14[%c4_13, %c0_14] : memref<24x128xf32, #tpu.memory_space<vmem>>, vector<1x128xf32>
    tpu.vector_store %arg14[%c4_13, %c0_14], %18 {strides = array<i32>} : memref<24x128xf32, #tpu.memory_space<vmem>>, vector<1x128xf32>,
    %c5 = arith.constant 5 : index
    %20 = memref.load %arg1[%c5] : memref<24xi32, #tpu.memory_space<smem>>
    %21 = arith.index_cast %20 : i32 to index
    %c0_15 = arith.constant 0 : index
    %22 = vector.load %arg0[%21, %c0_15] : memref<12x128xf32, #tpu.memory_space<vmem>>, vector<1x128xf32>
    %c5_16 = arith.constant 5 : index
    %c0_17 = arith.constant 0 : index
    %23 = vector.load %arg14[%c5_16, %c0_17] : memref<24x128xf32, #tpu.memory_space<vmem>>, vector<1x128xf32>
    tpu.vector_store %arg14[%c5_16, %c0_17], %22 {strides = array<i32>} : memref<24x128xf32, #tpu.memory_space<vmem>>, vector<1x128xf32>,
    %c6 = arith.constant 6 : index
    %24 = memref.load %arg1[%c6] : memref<24xi32, #tpu.memory_space<smem>>
    %25 = arith.index_cast %24 : i32 to index
    %c0_18 = arith.constant 0 : index
    %26 = vector.load %arg0[%25, %c0_18] : memref<12x128xf32, #tpu.memory_space<vmem>>, vector<1x128xf32>
    %c6_19 = arith.constant 6 : index
    %c0_20 = arith.constant 0 : index
    %27 = vector.load %arg14[%c6_19, %c0_20] : memref<24x128xf32, #tpu.memory_space<vmem>>, vector<1x128xf32>
    tpu.vector_store %arg14[%c6_19, %c0_20], %26 {strides = array<i32>} : memref<24x128xf32, #tpu.memory_space<vmem>>, vector<1x128xf32>,
    %c7 = arith.constant 7 : index
    %28 = memref.load %arg1[%c7] : memref<24xi32, #tpu.memory_space<smem>>
    %29 = arith.index_cast %28 : i32 to index
    %c0_21 = arith.constant 0 : index
    %30 = vector.load %arg0[%29, %c0_21] : memref<12x128xf32, #tpu.memory_space<vmem>>, vector<1x128xf32>
    %c7_22 = arith.constant 7 : index
    %c0_23 = arith.constant 0 : index
    %31 = vector.load %arg14[%c7_22, %c0_23] : memref<24x128xf32, #tpu.memory_space<vmem>>, vector<1x128xf32>
    tpu.vector_store %arg14[%c7_22, %c0_23], %30 {strides = array<i32>} : memref<24x128xf32, #tpu.memory_space<vmem>>, vector<1x128xf32>,
    %c8 = arith.constant 8 : index
    %32 = memref.load %arg1[%c8] : memref<24xi32, #tpu.memory_space<smem>>
    %33 = arith.index_cast %32 : i32 to index
    %c0_24 = arith.constant 0 : index
    %34 = vector.load %arg0[%33, %c0_24] : memref<12x128xf32, #tpu.memory_space<vmem>>, vector<1x128xf32>
    %c8_25 = arith.constant 8 : index
    %c0_26 = arith.constant 0 : index
    %35 = vector.load %arg14[%c8_25, %c0_26] : memref<24x128xf32, #tpu.memory_space<vmem>>, vector<1x128xf32>
    tpu.vector_store %arg14[%c8_25, %c0_26], %34 {strides = array<i32>} : memref<24x128xf32, #tpu.memory_space<vmem>>, vector<1x128xf32>,
    %c9 = arith.constant 9 : index
    %36 = memref.load %arg1[%c9] : memref<24xi32, #tpu.memory_space<smem>>
    %37 = arith.index_cast %36 : i32 to index
    %c0_27 = arith.constant 0 : index
    %38 = vector.load %arg0[%37, %c0_27] : memref<12x128xf32, #tpu.memory_space<vmem>>, vector<1x128xf32>
    %c9_28 = arith.constant 9 : index
    %c0_29 = arith.constant 0 : index
    %39 = vector.load %arg14[%c9_28, %c0_29] : memref<24x128xf32, #tpu.memory_space<vmem>>, vector<1x128xf32>
    tpu.vector_store %arg14[%c9_28, %c0_29], %38 {strides = array<i32>} : memref<24x128xf32, #tpu.memory_space<vmem>>, vector<1x128xf32>,
    %c10 = arith.constant 10 : index
    %40 = memref.load %arg1[%c10] : memref<24xi32, #tpu.memory_space<smem>>
    %41 = arith.index_cast %40 : i32 to index
    %c0_30 = arith.constant 0 : index
    %42 = vector.load %arg0[%41, %c0_30] : memref<12x128xf32, #tpu.memory_space<vmem>>, vector<1x128xf32>
    %c10_31 = arith.constant 10 : index
    %c0_32 = arith.constant 0 : index
    %43 = vector.load %arg14[%c10_31, %c0_32] : memref<24x128xf32, #tpu.memory_space<vmem>>, vector<1x128xf32>
    tpu.vector_store %arg14[%c10_31, %c0_32], %42 {strides = array<i32>} : memref<24x128xf32, #tpu.memory_space<vmem>>, vector<1x128xf32>,
    %c11 = arith.constant 11 : index
    %44 = memref.load %arg1[%c11] : memref<24xi32, #tpu.memory_space<smem>>
    %45 = arith.index_cast %44 : i32 to index
    %c0_33 = arith.constant 0 : index
    %46 = vector.load %arg0[%45, %c0_33] : memref<12x128xf32, #tpu.memory_space<vmem>>, vector<1x128xf32>
    %c11_34 = arith.constant 11 : index
    %c0_35 = arith.constant 0 : index
    %47 = vector.load %arg14[%c11_34, %c0_35] : memref<24x128xf32, #tpu.memory_space<vmem>>, vector<1x128xf32>
    tpu.vector_store %arg14[%c11_34, %c0_35], %46 {strides = array<i32>} : memref<24x128xf32, #tpu.memory_space<vmem>>, vector<1x128xf32>,
    %c12 = arith.constant 12 : index
    %48 = memref.load %arg1[%c12] : memref<24xi32, #tpu.memory_space<smem>>
    %49 = arith.index_cast %48 : i32 to index
    %c0_36 = arith.constant 0 : index
    %50 = vector.load %arg0[%49, %c0_36] : memref<12x128xf32, #tpu.memory_space<vmem>>, vector<1x128xf32>
    %c12_37 = arith.constant 12 : index
    %c0_38 = arith.constant 0 : index
    %51 = vector.load %arg14[%c12_37, %c0_38] : memref<24x128xf32, #tpu.memory_space<vmem>>, vector<1x128xf32>
    tpu.vector_store %arg14[%c12_37, %c0_38], %50 {strides = array<i32>} : memref<24x128xf32, #tpu.memory_space<vmem>>, vector<1x128xf32>,
    %c13 = arith.constant 13 : index
    %52 = memref.load %arg1[%c13] : memref<24xi32, #tpu.memory_space<smem>>
    %53 = arith.index_cast %52 : i32 to index
    %c0_39 = arith.constant 0 : index
    %54 = vector.load %arg0[%53, %c0_39] : memref<12x128xf32, #tpu.memory_space<vmem>>, vector<1x128xf32>
    %c13_40 = arith.constant 13 : index
    %c0_41 = arith.constant 0 : index
    %55 = vector.load %arg14[%c13_40, %c0_41] : memref<24x128xf32, #tpu.memory_space<vmem>>, vector<1x128xf32>
    tpu.vector_store %arg14[%c13_40, %c0_41], %54 {strides = array<i32>} : memref<24x128xf32, #tpu.memory_space<vmem>>, vector<1x128xf32>,
    %c14 = arith.constant 14 : index
    %56 = memref.load %arg1[%c14] : memref<24xi32, #tpu.memory_space<smem>>
    %57 = arith.index_cast %56 : i32 to index
    %c0_42 = arith.constant 0 : index
    %58 = vector.load %arg0[%57, %c0_42] : memref<12x128xf32, #tpu.memory_space<vmem>>, vector<1x128xf32>
    %c14_43 = arith.constant 14 : index
    %c0_44 = arith.constant 0 : index
    %59 = vector.load %arg14[%c14_43, %c0_44] : memref<24x128xf32, #tpu.memory_space<vmem>>, vector<1x128xf32>
    tpu.vector_store %arg14[%c14_43, %c0_44], %58 {strides = array<i32>} : memref<24x128xf32, #tpu.memory_space<vmem>>, vector<1x128xf32>,
    %c15 = arith.constant 15 : index
    %60 = memref.load %arg1[%c15] : memref<24xi32, #tpu.memory_space<smem>>
    %61 = arith.index_cast %60 : i32 to index
    %c0_45 = arith.constant 0 : index
    %62 = vector.load %arg0[%61, %c0_45] : memref<12x128xf32, #tpu.memory_space<vmem>>, vector<1x128xf32>
    %c15_46 = arith.constant 15 : index
    %c0_47 = arith.constant 0 : index
    %63 = vector.load %arg14[%c15_46, %c0_47] : memref<24x128xf32, #tpu.memory_space<vmem>>, vector<1x128xf32>
    tpu.vector_store %arg14[%c15_46, %c0_47], %62 {strides = array<i32>} : memref<24x128xf32, #tpu.memory_space<vmem>>, vector<1x128xf32>,
    %c16 = arith.constant 16 : index
    %64 = memref.load %arg1[%c16] : memref<24xi32, #tpu.memory_space<smem>>
    %65 = arith.index_cast %64 : i32 to index
    %c0_48 = arith.constant 0 : index
    %66 = vector.load %arg0[%65, %c0_48] : memref<12x128xf32, #tpu.memory_space<vmem>>, vector<1x128xf32>
    %c16_49 = arith.constant 16 : index
    %c0_50 = arith.constant 0 : index
    %67 = vector.load %arg14[%c16_49, %c0_50] : memref<24x128xf32, #tpu.memory_space<vmem>>, vector<1x128xf32>
    tpu.vector_store %arg14[%c16_49, %c0_50], %66 {strides = array<i32>} : memref<24x128xf32, #tpu.memory_space<vmem>>, vector<1x128xf32>,
    %c17 = arith.constant 17 : index
    %68 = memref.load %arg1[%c17] : memref<24xi32, #tpu.memory_space<smem>>
    %69 = arith.index_cast %68 : i32 to index
    %c0_51 = arith.constant 0 : index
    %70 = vector.load %arg0[%69, %c0_51] : memref<12x128xf32, #tpu.memory_space<vmem>>, vector<1x128xf32>
    %c17_52 = arith.constant 17 : index
    %c0_53 = arith.constant 0 : index
    %71 = vector.load %arg14[%c17_52, %c0_53] : memref<24x128xf32, #tpu.memory_space<vmem>>, vector<1x128xf32>
    tpu.vector_store %arg14[%c17_52, %c0_53], %70 {strides = array<i32>} : memref<24x128xf32, #tpu.memory_space<vmem>>, vector<1x128xf32>,
    %c18 = arith.constant 18 : index
    %72 = memref.load %arg1[%c18] : memref<24xi32, #tpu.memory_space<smem>>
    %73 = arith.index_cast %72 : i32 to index
    %c0_54 = arith.constant 0 : index
    %74 = vector.load %arg0[%73, %c0_54] : memref<12x128xf32, #tpu.memory_space<vmem>>, vector<1x128xf32>
    %c18_55 = arith.constant 18 : index
    %c0_56 = arith.constant 0 : index
    %75 = vector.load %arg14[%c18_55, %c0_56] : memref<24x128xf32, #tpu.memory_space<vmem>>, vector<1x128xf32>
    tpu.vector_store %arg14[%c18_55, %c0_56], %74 {strides = array<i32>} : memref<24x128xf32, #tpu.memory_space<vmem>>, vector<1x128xf32>,
    %c19 = arith.constant 19 : index
    %76 = memref.load %arg1[%c19] : memref<24xi32, #tpu.memory_space<smem>>
    %77 = arith.index_cast %76 : i32 to index
    %c0_57 = arith.constant 0 : index
    %78 = vector.load %arg0[%77, %c0_57] : memref<12x128xf32, #tpu.memory_space<vmem>>, vector<1x128xf32>
    %c19_58 = arith.constant 19 : index
    %c0_59 = arith.constant 0 : index
    %79 = vector.load %arg14[%c19_58, %c0_59] : memref<24x128xf32, #tpu.memory_space<vmem>>, vector<1x128xf32>
    tpu.vector_store %arg14[%c19_58, %c0_59], %78 {strides = array<i32>} : memref<24x128xf32, #tpu.memory_space<vmem>>, vector<1x128xf32>,
    %c20 = arith.constant 20 : index
    %80 = memref.load %arg1[%c20] : memref<24xi32, #tpu.memory_space<smem>>
    %81 = arith.index_cast %80 : i32 to index
    %c0_60 = arith.constant 0 : index
    %82 = vector.load %arg0[%81, %c0_60] : memref<12x128xf32, #tpu.memory_space<vmem>>, vector<1x128xf32>
    %c20_61 = arith.constant 20 : index
    %c0_62 = arith.constant 0 : index
    %83 = vector.load %arg14[%c20_61, %c0_62] : memref<24x128xf32, #tpu.memory_space<vmem>>, vector<1x128xf32>
    tpu.vector_store %arg14[%c20_61, %c0_62], %82 {strides = array<i32>} : memref<24x128xf32, #tpu.memory_space<vmem>>, vector<1x128xf32>,
    %c21 = arith.constant 21 : index
    %84 = memref.load %arg1[%c21] : memref<24xi32, #tpu.memory_space<smem>>
    %85 = arith.index_cast %84 : i32 to index
    %c0_63 = arith.constant 0 : index
    %86 = vector.load %arg0[%85, %c0_63] : memref<12x128xf32, #tpu.memory_space<vmem>>, vector<1x128xf32>
    %c21_64 = arith.constant 21 : index
    %c0_65 = arith.constant 0 : index
    %87 = vector.load %arg14[%c21_64, %c0_65] : memref<24x128xf32, #tpu.memory_space<vmem>>, vector<1x128xf32>
    tpu.vector_store %arg14[%c21_64, %c0_65], %86 {strides = array<i32>} : memref<24x128xf32, #tpu.memory_space<vmem>>, vector<1x128xf32>,
    %c22 = arith.constant 22 : index
    %88 = memref.load %arg1[%c22] : memref<24xi32, #tpu.memory_space<smem>>
    %89 = arith.index_cast %88 : i32 to index
    %c0_66 = arith.constant 0 : index
    %90 = vector.load %arg0[%89, %c0_66] : memref<12x128xf32, #tpu.memory_space<vmem>>, vector<1x128xf32>
    %c22_67 = arith.constant 22 : index
    %c0_68 = arith.constant 0 : index
    %91 = vector.load %arg14[%c22_67, %c0_68] : memref<24x128xf32, #tpu.memory_space<vmem>>, vector<1x128xf32>
    tpu.vector_store %arg14[%c22_67, %c0_68], %90 {strides = array<i32>} : memref<24x128xf32, #tpu.memory_space<vmem>>, vector<1x128xf32>,
    %c23 = arith.constant 23 : index
    %92 = memref.load %arg1[%c23] : memref<24xi32, #tpu.memory_space<smem>>
    %93 = arith.index_cast %92 : i32 to index
    %c0_69 = arith.constant 0 : index
    %94 = vector.load %arg0[%93, %c0_69] : memref<12x128xf32, #tpu.memory_space<vmem>>, vector<1x128xf32>
    %c23_70 = arith.constant 23 : index
    %c0_71 = arith.constant 0 : index
    %95 = vector.load %arg14[%c23_70, %c0_71] : memref<24x128xf32, #tpu.memory_space<vmem>>, vector<1x128xf32>
    tpu.vector_store %arg14[%c23_70, %c0_71], %94 {strides = array<i32>} : memref<24x128xf32, #tpu.memory_space<vmem>>, vector<1x128xf32>,
    %c0_72 = arith.constant 0 : index
    %96 = memref.load %arg2[%c0_72] : memref<24xi32, #tpu.memory_space<smem>>
    %97 = arith.index_cast %96 : i32 to index
    %c0_73 = arith.constant 0 : index
    %98 = vector.load %arg0[%97, %c0_73] : memref<12x128xf32, #tpu.memory_space<vmem>>, vector<1x128xf32>
    %c0_74 = arith.constant 0 : index
    %c0_75 = arith.constant 0 : index
    %99 = vector.load %arg15[%c0_74, %c0_75] : memref<24x128xf32, #tpu.memory_space<vmem>>, vector<1x128xf32>
    tpu.vector_store %arg15[%c0_74, %c0_75], %98 {strides = array<i32>} : memref<24x128xf32, #tpu.memory_space<vmem>>, vector<1x128xf32>,
    %c1_76 = arith.constant 1 : index
    %100 = memref.load %arg2[%c1_76] : memref<24xi32, #tpu.memory_space<smem>>
    %101 = arith.index_cast %100 : i32 to index
    %c0_77 = arith.constant 0 : index
    %102 = vector.load %arg0[%101, %c0_77] : memref<12x128xf32, #tpu.memory_space<vmem>>, vector<1x128xf32>
    %c1_78 = arith.constant 1 : index
    %c0_79 = arith.constant 0 : index
    %103 = vector.load %arg15[%c1_78, %c0_79] : memref<24x128xf32, #tpu.memory_space<vmem>>, vector<1x128xf32>
    tpu.vector_store %arg15[%c1_78, %c0_79], %102 {strides = array<i32>} : memref<24x128xf32, #tpu.memory_space<vmem>>, vector<1x128xf32>,
    %c2_80 = arith.constant 2 : index
    %104 = memref.load %arg2[%c2_80] : memref<24xi32, #tpu.memory_space<smem>>
    %105 = arith.index_cast %104 : i32 to index
    %c0_81 = arith.constant 0 : index
    %106 = vector.load %arg0[%105, %c0_81] : memref<12x128xf32, #tpu.memory_space<vmem>>, vector<1x128xf32>
    %c2_82 = arith.constant 2 : index
    %c0_83 = arith.constant 0 : index
    %107 = vector.load %arg15[%c2_82, %c0_83] : memref<24x128xf32, #tpu.memory_space<vmem>>, vector<1x128xf32>
    tpu.vector_store %arg15[%c2_82, %c0_83], %106 {strides = array<i32>} : memref<24x128xf32, #tpu.memory_space<vmem>>, vector<1x128xf32>,
    %c3_84 = arith.constant 3 : index
    %108 = memref.load %arg2[%c3_84] : memref<24xi32, #tpu.memory_space<smem>>
    %109 = arith.index_cast %108 : i32 to index
    %c0_85 = arith.constant 0 : index
    %110 = vector.load %arg0[%109, %c0_85] : memref<12x128xf32, #tpu.memory_space<vmem>>, vector<1x128xf32>
    %c3_86 = arith.constant 3 : index
    %c0_87 = arith.constant 0 : index
    %111 = vector.load %arg15[%c3_86, %c0_87] : memref<24x128xf32, #tpu.memory_space<vmem>>, vector<1x128xf32>
    tpu.vector_store %arg15[%c3_86, %c0_87], %110 {strides = array<i32>} : memref<24x128xf32, #tpu.memory_space<vmem>>, vector<1x128xf32>,
    %c4_88 = arith.constant 4 : index
    %112 = memref.load %arg2[%c4_88] : memref<24xi32, #tpu.memory_space<smem>>
    %113 = arith.index_cast %112 : i32 to index
    %c0_89 = arith.constant 0 : index
    %114 = vector.load %arg0[%113, %c0_89] : memref<12x128xf32, #tpu.memory_space<vmem>>, vector<1x128xf32>
    %c4_90 = arith.constant 4 : index
    %c0_91 = arith.constant 0 : index
    %115 = vector.load %arg15[%c4_90, %c0_91] : memref<24x128xf32, #tpu.memory_space<vmem>>, vector<1x128xf32>
    tpu.vector_store %arg15[%c4_90, %c0_91], %114 {strides = array<i32>} : memref<24x128xf32, #tpu.memory_space<vmem>>, vector<1x128xf32>,
    %c5_92 = arith.constant 5 : index
    %116 = memref.load %arg2[%c5_92] : memref<24xi32, #tpu.memory_space<smem>>
    %117 = arith.index_cast %116 : i32 to index
    %c0_93 = arith.constant 0 : index
    %118 = vector.load %arg0[%117, %c0_93] : memref<12x128xf32, #tpu.memory_space<vmem>>, vector<1x128xf32>
    %c5_94 = arith.constant 5 : index
    %c0_95 = arith.constant 0 : index
    %119 = vector.load %arg15[%c5_94, %c0_95] : memref<24x128xf32, #tpu.memory_space<vmem>>, vector<1x128xf32>
    tpu.vector_store %arg15[%c5_94, %c0_95], %118 {strides = array<i32>} : memref<24x128xf32, #tpu.memory_space<vmem>>, vector<1x128xf32>,
    %c6_96 = arith.constant 6 : index
    %120 = memref.load %arg2[%c6_96] : memref<24xi32, #tpu.memory_space<smem>>
    %121 = arith.index_cast %120 : i32 to index
    %c0_97 = arith.constant 0 : index
    %122 = vector.load %arg0[%121, %c0_97] : memref<12x128xf32, #tpu.memory_space<vmem>>, vector<1x128xf32>
    %c6_98 = arith.constant 6 : index
    %c0_99 = arith.constant 0 : index
    %123 = vector.load %arg15[%c6_98, %c0_99] : memref<24x128xf32, #tpu.memory_space<vmem>>, vector<1x128xf32>
    tpu.vector_store %arg15[%c6_98, %c0_99], %122 {strides = array<i32>} : memref<24x128xf32, #tpu.memory_space<vmem>>, vector<1x128xf32>,
    %c7_100 = arith.constant 7 : index
    %124 = memref.load %arg2[%c7_100] : memref<24xi32, #tpu.memory_space<smem>>
    %125 = arith.index_cast %124 : i32 to index
    %c0_101 = arith.constant 0 : index
    %126 = vector.load %arg0[%125, %c0_101] : memref<12x128xf32, #tpu.memory_space<vmem>>, vector<1x128xf32>
    %c7_102 = arith.constant 7 : index
    %c0_103 = arith.constant 0 : index
    %127 = vector.load %arg15[%c7_102, %c0_103] : memref<24x128xf32, #tpu.memory_space<vmem>>, vector<1x128xf32>
    tpu.vector_store %arg15[%c7_102, %c0_103], %126 {strides = array<i32>} : memref<24x128xf32, #tpu.memory_space<vmem>>, vector<1x128xf32>,
    %c8_104 = arith.constant 8 : index
    %128 = memref.load %arg2[%c8_104] : memref<24xi32, #tpu.memory_space<smem>>
    %129 = arith.index_cast %128 : i32 to index
    %c0_105 = arith.constant 0 : index
    %130 = vector.load %arg0[%129, %c0_105] : memref<12x128xf32, #tpu.memory_space<vmem>>, vector<1x128xf32>
    %c8_106 = arith.constant 8 : index
    %c0_107 = arith.constant 0 : index
    %131 = vector.load %arg15[%c8_106, %c0_107] : memref<24x128xf32, #tpu.memory_space<vmem>>, vector<1x128xf32>
    tpu.vector_store %arg15[%c8_106, %c0_107], %130 {strides = array<i32>} : memref<24x128xf32, #tpu.memory_space<vmem>>, vector<1x128xf32>,
    %c9_108 = arith.constant 9 : index
    %132 = memref.load %arg2[%c9_108] : memref<24xi32, #tpu.memory_space<smem>>
    %133 = arith.index_cast %132 : i32 to index
    %c0_109 = arith.constant 0 : index
    %134 = vector.load %arg0[%133, %c0_109] : memref<12x128xf32, #tpu.memory_space<vmem>>, vector<1x128xf32>
    %c9_110 = arith.constant 9 : index
    %c0_111 = arith.constant 0 : index
    %135 = vector.load %arg15[%c9_110, %c0_111] : memref<24x128xf32, #tpu.memory_space<vmem>>, vector<1x128xf32>
    tpu.vector_store %arg15[%c9_110, %c0_111], %134 {strides = array<i32>} : memref<24x128xf32, #tpu.memory_space<vmem>>, vector<1x128xf32>,
    %c10_112 = arith.constant 10 : index
    %136 = memref.load %arg2[%c10_112] : memref<24xi32, #tpu.memory_space<smem>>
    %137 = arith.index_cast %136 : i32 to index
    %c0_113 = arith.constant 0 : index
    %138 = vector.load %arg0[%137, %c0_113] : memref<12x128xf32, #tpu.memory_space<vmem>>, vector<1x128xf32>
    %c10_114 = arith.constant 10 : index
    %c0_115 = arith.constant 0 : index
    %139 = vector.load %arg15[%c10_114, %c0_115] : memref<24x128xf32, #tpu.memory_space<vmem>>, vector<1x128xf32>
    tpu.vector_store %arg15[%c10_114, %c0_115], %138 {strides = array<i32>} : memref<24x128xf32, #tpu.memory_space<vmem>>, vector<1x128xf32>,
    %c11_116 = arith.constant 11 : index
    %140 = memref.load %arg2[%c11_116] : memref<24xi32, #tpu.memory_space<smem>>
    %141 = arith.index_cast %140 : i32 to index
    %c0_117 = arith.constant 0 : index
    %142 = vector.load %arg0[%141, %c0_117] : memref<12x128xf32, #tpu.memory_space<vmem>>, vector<1x128xf32>
    %c11_118 = arith.constant 11 : index
    %c0_119 = arith.constant 0 : index
    %143 = vector.load %arg15[%c11_118, %c0_119] : memref<24x128xf32, #tpu.memory_space<vmem>>, vector<1x128xf32>
    tpu.vector_store %arg15[%c11_118, %c0_119], %142 {strides = array<i32>} : memref<24x128xf32, #tpu.memory_space<vmem>>, vector<1x128xf32>,
    %c12_120 = arith.constant 12 : index
    %144 = memref.load %arg2[%c12_120] : memref<24xi32, #tpu.memory_space<smem>>
    %145 = arith.index_cast %144 : i32 to index
    %c0_121 = arith.constant 0 : index
    %146 = vector.load %arg0[%145, %c0_121] : memref<12x128xf32, #tpu.memory_space<vmem>>, vector<1x128xf32>
    %c12_122 = arith.constant 12 : index
    %c0_123 = arith.constant 0 : index
    %147 = vector.load %arg15[%c12_122, %c0_123] : memref<24x128xf32, #tpu.memory_space<vmem>>, vector<1x128xf32>
    tpu.vector_store %arg15[%c12_122, %c0_123], %146 {strides = array<i32>} : memref<24x128xf32, #tpu.memory_space<vmem>>, vector<1x128xf32>,
    %c13_124 = arith.constant 13 : index
    %148 = memref.load %arg2[%c13_124] : memref<24xi32, #tpu.memory_space<smem>>
    %149 = arith.index_cast %148 : i32 to index
    %c0_125 = arith.constant 0 : index
    %150 = vector.load %arg0[%149, %c0_125] : memref<12x128xf32, #tpu.memory_space<vmem>>, vector<1x128xf32>
    %c13_126 = arith.constant 13 : index
    %c0_127 = arith.constant 0 : index
    %151 = vector.load %arg15[%c13_126, %c0_127] : memref<24x128xf32, #tpu.memory_space<vmem>>, vector<1x128xf32>
    tpu.vector_store %arg15[%c13_126, %c0_127], %150 {strides = array<i32>} : memref<24x128xf32, #tpu.memory_space<vmem>>, vector<1x128xf32>,
    %c14_128 = arith.constant 14 : index
    %152 = memref.load %arg2[%c14_128] : memref<24xi32, #tpu.memory_space<smem>>
    %153 = arith.index_cast %152 : i32 to index
    %c0_129 = arith.constant 0 : index
    %154 = vector.load %arg0[%153, %c0_129] : memref<12x128xf32, #tpu.memory_space<vmem>>, vector<1x128xf32>
    %c14_130 = arith.constant 14 : index
    %c0_131 = arith.constant 0 : index
    %155 = vector.load %arg15[%c14_130, %c0_131] : memref<24x128xf32, #tpu.memory_space<vmem>>, vector<1x128xf32>
    tpu.vector_store %arg15[%c14_130, %c0_131], %154 {strides = array<i32>} : memref<24x128xf32, #tpu.memory_space<vmem>>, vector<1x128xf32>,
    %c15_132 = arith.constant 15 : index
    %156 = memref.load %arg2[%c15_132] : memref<24xi32, #tpu.memory_space<smem>>
    %157 = arith.index_cast %156 : i32 to index
    %c0_133 = arith.constant 0 : index
    %158 = vector.load %arg0[%157, %c0_133] : memref<12x128xf32, #tpu.memory_space<vmem>>, vector<1x128xf32>
    %c15_134 = arith.constant 15 : index
    %c0_135 = arith.constant 0 : index
    %159 = vector.load %arg15[%c15_134, %c0_135] : memref<24x128xf32, #tpu.memory_space<vmem>>, vector<1x128xf32>
    tpu.vector_store %arg15[%c15_134, %c0_135], %158 {strides = array<i32>} : memref<24x128xf32, #tpu.memory_space<vmem>>, vector<1x128xf32>,
    %c16_136 = arith.constant 16 : index
    %160 = memref.load %arg2[%c16_136] : memref<24xi32, #tpu.memory_space<smem>>
    %161 = arith.index_cast %160 : i32 to index
    %c0_137 = arith.constant 0 : index
    %162 = vector.load %arg0[%161, %c0_137] : memref<12x128xf32, #tpu.memory_space<vmem>>, vector<1x128xf32>
    %c16_138 = arith.constant 16 : index
    %c0_139 = arith.constant 0 : index
    %163 = vector.load %arg15[%c16_138, %c0_139] : memref<24x128xf32, #tpu.memory_space<vmem>>, vector<1x128xf32>
    tpu.vector_store %arg15[%c16_138, %c0_139], %162 {strides = array<i32>} : memref<24x128xf32, #tpu.memory_space<vmem>>, vector<1x128xf32>,
    %c17_140 = arith.constant 17 : index
    %164 = memref.load %arg2[%c17_140] : memref<24xi32, #tpu.memory_space<smem>>
    %165 = arith.index_cast %164 : i32 to index
    %c0_141 = arith.constant 0 : index
    %166 = vector.load %arg0[%165, %c0_141] : memref<12x128xf32, #tpu.memory_space<vmem>>, vector<1x128xf32>
    %c17_142 = arith.constant 17 : index
    %c0_143 = arith.constant 0 : index
    %167 = vector.load %arg15[%c17_142, %c0_143] : memref<24x128xf32, #tpu.memory_space<vmem>>, vector<1x128xf32>
    tpu.vector_store %arg15[%c17_142, %c0_143], %166 {strides = array<i32>} : memref<24x128xf32, #tpu.memory_space<vmem>>, vector<1x128xf32>,
    %c18_144 = arith.constant 18 : index
    %168 = memref.load %arg2[%c18_144] : memref<24xi32, #tpu.memory_space<smem>>
    %169 = arith.index_cast %168 : i32 to index
    %c0_145 = arith.constant 0 : index
    %170 = vector.load %arg0[%169, %c0_145] : memref<12x128xf32, #tpu.memory_space<vmem>>, vector<1x128xf32>
    %c18_146 = arith.constant 18 : index
    %c0_147 = arith.constant 0 : index
    %171 = vector.load %arg15[%c18_146, %c0_147] : memref<24x128xf32, #tpu.memory_space<vmem>>, vector<1x128xf32>
    tpu.vector_store %arg15[%c18_146, %c0_147], %170 {strides = array<i32>} : memref<24x128xf32, #tpu.memory_space<vmem>>, vector<1x128xf32>,
    %c19_148 = arith.constant 19 : index
    %172 = memref.load %arg2[%c19_148] : memref<24xi32, #tpu.memory_space<smem>>
    %173 = arith.index_cast %172 : i32 to index
    %c0_149 = arith.constant 0 : index
    %174 = vector.load %arg0[%173, %c0_149] : memref<12x128xf32, #tpu.memory_space<vmem>>, vector<1x128xf32>
    %c19_150 = arith.constant 19 : index
    %c0_151 = arith.constant 0 : index
    %175 = vector.load %arg15[%c19_150, %c0_151] : memref<24x128xf32, #tpu.memory_space<vmem>>, vector<1x128xf32>
    tpu.vector_store %arg15[%c19_150, %c0_151], %174 {strides = array<i32>} : memref<24x128xf32, #tpu.memory_space<vmem>>, vector<1x128xf32>,
    %c20_152 = arith.constant 20 : index
    %176 = memref.load %arg2[%c20_152] : memref<24xi32, #tpu.memory_space<smem>>
    %177 = arith.index_cast %176 : i32 to index
    %c0_153 = arith.constant 0 : index
    %178 = vector.load %arg0[%177, %c0_153] : memref<12x128xf32, #tpu.memory_space<vmem>>, vector<1x128xf32>
    %c20_154 = arith.constant 20 : index
    %c0_155 = arith.constant 0 : index
    %179 = vector.load %arg15[%c20_154, %c0_155] : memref<24x128xf32, #tpu.memory_space<vmem>>, vector<1x128xf32>
    tpu.vector_store %arg15[%c20_154, %c0_155], %178 {strides = array<i32>} : memref<24x128xf32, #tpu.memory_space<vmem>>, vector<1x128xf32>,
    %c21_156 = arith.constant 21 : index
    %180 = memref.load %arg2[%c21_156] : memref<24xi32, #tpu.memory_space<smem>>
    %181 = arith.index_cast %180 : i32 to index
    %c0_157 = arith.constant 0 : index
    %182 = vector.load %arg0[%181, %c0_157] : memref<12x128xf32, #tpu.memory_space<vmem>>, vector<1x128xf32>
    %c21_158 = arith.constant 21 : index
    %c0_159 = arith.constant 0 : index
    %183 = vector.load %arg15[%c21_158, %c0_159] : memref<24x128xf32, #tpu.memory_space<vmem>>, vector<1x128xf32>
    tpu.vector_store %arg15[%c21_158, %c0_159], %182 {strides = array<i32>} : memref<24x128xf32, #tpu.memory_space<vmem>>, vector<1x128xf32>,
    %c22_160 = arith.constant 22 : index
    %184 = memref.load %arg2[%c22_160] : memref<24xi32, #tpu.memory_space<smem>>
    %185 = arith.index_cast %184 : i32 to index
    %c0_161 = arith.constant 0 : index
    %186 = vector.load %arg0[%185, %c0_161] : memref<12x128xf32, #tpu.memory_space<vmem>>, vector<1x128xf32>
    %c22_162 = arith.constant 22 : index
    %c0_163 = arith.constant 0 : index
    %187 = vector.load %arg15[%c22_162, %c0_163] : memref<24x128xf32, #tpu.memory_space<vmem>>, vector<1x128xf32>
    tpu.vector_store %arg15[%c22_162, %c0_163], %186 {strides = array<i32>} : memref<24x128xf32, #tpu.memory_space<vmem>>, vector<1x128xf32>,
    %c23_164 = arith.constant 23 : index
    %188 = memref.load %arg2[%c23_164] : memref<24xi32, #tpu.memory_space<smem>>
    %189 = arith.index_cast %188 : i32 to index
    %c0_165 = arith.constant 0 : index
    %190 = vector.load %arg0[%189, %c0_165] : memref<12x128xf32, #tpu.memory_space<vmem>>, vector<1x128xf32>
    %c23_166 = arith.constant 23 : index
    %c0_167 = arith.constant 0 : index
    %191 = vector.load %arg15[%c23_166, %c0_167] : memref<24x128xf32, #tpu.memory_space<vmem>>, vector<1x128xf32>
    tpu.vector_store %arg15[%c23_166, %c0_167], %190 {strides = array<i32>} : memref<24x128xf32, #tpu.memory_space<vmem>>, vector<1x128xf32>,
    %c0_168 = arith.constant 0 : index
    %c0_169 = arith.constant 0 : index
    %192 = vector.load %arg14[%c0_168, %c0_169] : memref<24x128xf32, #tpu.memory_space<vmem>>, vector<24x128xf32>
    %c0_170 = arith.constant 0 : index
    %c0_171 = arith.constant 0 : index
    %193 = vector.load %arg15[%c0_170, %c0_171] : memref<24x128xf32, #tpu.memory_space<vmem>>, vector<24x128xf32>
    %c0_172 = arith.constant 0 : index
    %c0_173 = arith.constant 0 : index
    %194 = vector.load %arg4[%c0_172, %c0_173] : memref<128x1xf32, #tpu.memory_space<vmem>>, vector<128x1xf32>
    %c0_174 = arith.constant 0 : index
    %c0_175 = arith.constant 0 : index
    %195 = vector.load %arg5[%c0_174, %c0_175] : memref<128x1xf32, #tpu.memory_space<vmem>>, vector<128x1xf32>
    %c0_176 = arith.constant 0 : index
    %c0_177 = arith.constant 0 : index
    %196 = vector.load %arg6[%c0_176, %c0_177] : memref<1x1xf32, #tpu.memory_space<vmem>>, vector<1x1xf32>
    %cst = arith.constant dense<0.000000e+00> : vector<24x1xf32>
    %197 = tpu.matmul %193, %194, %cst {dimension_numbers = #tpu.dot_dimension_numbers<[1], [0], [0], [1], [0, 0, 1, 1], [], []>} : vector<24x128xf32>, vector<128x1xf32>, vector<24x1xf32> -> vector<24x1xf32>
    %cst_178 = arith.constant dense<0.000000e+00> : vector<24x1xf32>
    %198 = tpu.matmul %192, %195, %cst_178 {dimension_numbers = #tpu.dot_dimension_numbers<[1], [0], [0], [1], [0, 0, 1, 1], [], []>} : vector<24x128xf32>, vector<128x1xf32>, vector<24x1xf32> -> vector<24x1xf32>
    %199 = arith.addf %197, %198 : vector<24x1xf32>
    %200 = vector.broadcast %196 : vector<1x1xf32> to vector<24x1xf32>
    %201 = arith.addf %199, %200 : vector<24x1xf32>
    %cst_179 = arith.constant 0.000000e+00 : f32
    %202 = vector.broadcast %cst_179 : f32 to vector<24x1xf32>
    %203 = arith.cmpf ogt, %201, %202 : vector<24x1xf32>
    %cst_180 = arith.constant 0.00999999977 : f32
    %204 = vector.broadcast %cst_180 : f32 to vector<24x1xf32>
    %205 = arith.mulf %204, %201 : vector<24x1xf32>
    %206 = arith.select %203, %201, %205 : vector<24x1xi1>, vector<24x1xf32>
    %c0_181 = arith.constant 0 : index
    %c0_182 = arith.constant 0 : index
    %207 = vector.load %arg7[%c0_181, %c0_182] : memref<128x128xf32, #tpu.memory_space<vmem>>, vector<128x128xf32>
    %c0_183 = arith.constant 0 : index
    %c0_184 = arith.constant 0 : index
    %208 = vector.load %arg8[%c0_183, %c0_184] : memref<1x128xf32, #tpu.memory_space<vmem>>, vector<1x128xf32>
    %cst_185 = arith.constant dense<0.000000e+00> : vector<24x128xf32>
    %209 = tpu.matmul %192, %207, %cst_185 {dimension_numbers = #tpu.dot_dimension_numbers<[1], [0], [0], [1], [0, 0, 1, 1], [], []>} : vector<24x128xf32>, vector<128x128xf32>, vector<24x128xf32> -> vector<24x128xf32>
    %210 = vector.broadcast %208 : vector<1x128xf32> to vector<24x128xf32>
    %211 = arith.addf %209, %210 : vector<24x128xf32>
    %c0_186 = arith.constant 0 : index
    %c0_187 = arith.constant 0 : index
    %212 = vector.load %arg3[%c0_186, %c0_187] : memref<24x12xf32, #tpu.memory_space<vmem>>, vector<24x12xf32>
    %213 = vector.broadcast %206 : vector<24x1xf32> to vector<24x12xf32>
    %214 = arith.mulf %213, %212 : vector<24x12xf32>
    %cst_188 = arith.constant 1.000000e+00 : f32
    %215 = vector.broadcast %cst_188 : f32 to vector<24x12xf32>
    %216 = arith.subf %215, %212 : vector<24x12xf32>
    %cst_189 = arith.constant -1.000000e+30 : f32
    %217 = vector.broadcast %cst_189 : f32 to vector<24x12xf32>
    %218 = arith.mulf %217, %216 : vector<24x12xf32>
    %219 = arith.addf %214, %218 : vector<24x12xf32>
    %cst_190 = arith.constant dense<0xFF800000> : vector<12xf32>
    %220 = vector.multi_reduction <maximumf>, %219, %cst_190 [0] : vector<24x12xf32> to vector<12xf32>
    %221 = vector.shape_cast %220 : vector<12xf32> to vector<1x12xf32>
    %cst_191 = arith.constant dense<0.000000e+00> : vector<24x1xf32>
    %222 = tpu.matmul %212, %221, %cst_191 {dimension_numbers = #tpu.dot_dimension_numbers<[1], [1], [0], [0], [0, 0, 1, 0], [], []>} : vector<24x12xf32>, vector<1x12xf32>, vector<24x1xf32> -> vector<24x1xf32>
    %223 = arith.subf %206, %222 : vector<24x1xf32>
    %224 = math.exp %223 : vector<24x1xf32>
    %cst_192 = arith.constant dense<0.000000e+00> : vector<12x1xf32>
    %225 = tpu.matmul %212, %224, %cst_192 {dimension_numbers = #tpu.dot_dimension_numbers<[0], [0], [1], [1], [0, 1, 1, 1], [], []>} : vector<24x12xf32>, vector<24x1xf32>, vector<12x1xf32> -> vector<12x1xf32>
    %cst_193 = arith.constant dense<0.000000e+00> : vector<24x1xf32>
    %226 = tpu.matmul %212, %225, %cst_193 {dimension_numbers = #tpu.dot_dimension_numbers<[1], [0], [0], [1], [0, 0, 1, 1], [], []>} : vector<24x12xf32>, vector<12x1xf32>, vector<24x1xf32> -> vector<24x1xf32>
    %227 = tpu.reciprocal %226 {approx = true} : vector<24x1xf32> -> vector<24x1xf32>
    %228 = arith.mulf %224, %227 : vector<24x1xf32>
    %229 = vector.broadcast %228 : vector<24x1xf32> to vector<24x128xf32>
    %230 = arith.mulf %229, %211 : vector<24x128xf32>
    %cst_194 = arith.constant dense<0.000000e+00> : vector<12x128xf32>
    %231 = tpu.matmul %212, %230, %cst_194 {dimension_numbers = #tpu.dot_dimension_numbers<[0], [0], [1], [1], [0, 1, 1, 1], [], []>} : vector<24x12xf32>, vector<24x128xf32>, vector<12x128xf32> -> vector<12x128xf32>
    %cst_195 = arith.constant 0.000000e+00 : f32
    %232 = vector.broadcast %cst_195 : f32 to vector<12x128xf32>
    %233 = arith.cmpf ogt, %231, %232 : vector<12x128xf32>
    %234 = math.exp %231 : vector<12x128xf32>
    %cst_196 = arith.constant 1.000000e+00 : f32
    %235 = vector.broadcast %cst_196 : f32 to vector<12x128xf32>
    %236 = arith.subf %234, %235 : vector<12x128xf32>
    %237 = arith.select %233, %231, %236 : vector<12x128xi1>, vector<12x128xf32>
    %c0_197 = arith.constant 0 : index
    %c0_198 = arith.constant 0 : index
    %238 = vector.load %arg0[%c0_197, %c0_198] : memref<12x128xf32, #tpu.memory_space<vmem>>, vector<12x128xf32>
    %c0_199 = arith.constant 0 : index
    %c0_200 = arith.constant 0 : index
    %239 = vector.load %arg9[%c0_199, %c0_200] : memref<128x384xf32, #tpu.memory_space<vmem>>, vector<128x384xf32>
    %c0_201 = arith.constant 0 : index
    %c0_202 = arith.constant 0 : index
    %240 = vector.load %arg10[%c0_201, %c0_202] : memref<128x384xf32, #tpu.memory_space<vmem>>, vector<128x384xf32>
    %c0_203 = arith.constant 0 : index
    %c0_204 = arith.constant 0 : index
    %241 = vector.load %arg11[%c0_203, %c0_204] : memref<1x384xf32, #tpu.memory_space<vmem>>, vector<1x384xf32>
    %c0_205 = arith.constant 0 : index
    %c0_206 = arith.constant 0 : index
    %242 = vector.load %arg12[%c0_205, %c0_206] : memref<1x384xf32, #tpu.memory_space<vmem>>, vector<1x384xf32>
    %cst_207 = arith.constant dense<0.000000e+00> : vector<12x384xf32>
    %243 = tpu.matmul %237, %239, %cst_207 {dimension_numbers = #tpu.dot_dimension_numbers<[1], [0], [0], [1], [0, 0, 1, 1], [], []>} : vector<12x128xf32>, vector<128x384xf32>, vector<12x384xf32> -> vector<12x384xf32>
    %244 = vector.broadcast %241 : vector<1x384xf32> to vector<12x384xf32>
    %245 = arith.addf %243, %244 : vector<12x384xf32>
    %cst_208 = arith.constant dense<0.000000e+00> : vector<12x384xf32>
    %246 = tpu.matmul %238, %240, %cst_208 {dimension_numbers = #tpu.dot_dimension_numbers<[1], [0], [0], [1], [0, 0, 1, 1], [], []>} : vector<12x128xf32>, vector<128x384xf32>, vector<12x384xf32> -> vector<12x384xf32>
    %247 = vector.broadcast %242 : vector<1x384xf32> to vector<12x384xf32>
    %248 = arith.addf %246, %247 : vector<12x384xf32>
    %249 = vector.extract_strided_slice %245 {offsets = [0, 0], sizes = [12, 128], strides = [1, 1]} : vector<12x384xf32> to vector<12x128xf32>
    %250 = vector.extract_strided_slice %248 {offsets = [0, 0], sizes = [12, 128], strides = [1, 1]} : vector<12x384xf32> to vector<12x128xf32>
    %251 = arith.addf %249, %250 : vector<12x128xf32>
    %252 = arith.negf %251 : vector<12x128xf32>
    %253 = math.exp %252 : vector<12x128xf32>
    %cst_209 = arith.constant 1.000000e+00 : f32
    %254 = vector.broadcast %cst_209 : f32 to vector<12x128xf32>
    %255 = arith.addf %254, %253 : vector<12x128xf32>
    %256 = arith.divf %254, %255 : vector<12x128xf32>
    %257 = vector.extract_strided_slice %245 {offsets = [0, 128], sizes = [12, 128], strides = [1, 1]} : vector<12x384xf32> to vector<12x128xf32>
    %258 = vector.extract_strided_slice %248 {offsets = [0, 128], sizes = [12, 128], strides = [1, 1]} : vector<12x384xf32> to vector<12x128xf32>
    %259 = arith.addf %257, %258 : vector<12x128xf32>
    %260 = arith.negf %259 : vector<12x128xf32>
    %261 = math.exp %260 : vector<12x128xf32>
    %cst_210 = arith.constant 1.000000e+00 : f32
    %262 = vector.broadcast %cst_210 : f32 to vector<12x128xf32>
    %263 = arith.addf %262, %261 : vector<12x128xf32>
    %264 = arith.divf %262, %263 : vector<12x128xf32>
    %265 = vector.extract_strided_slice %245 {offsets = [0, 256], sizes = [12, 128], strides = [1, 1]} : vector<12x384xf32> to vector<12x128xf32>
    %266 = vector.extract_strided_slice %248 {offsets = [0, 256], sizes = [12, 128], strides = [1, 1]} : vector<12x384xf32> to vector<12x128xf32>
    %267 = arith.mulf %256, %266 : vector<12x128xf32>
    %268 = arith.addf %265, %267 : vector<12x128xf32>
    %269 = math.tanh %268 : vector<12x128xf32>
    %cst_211 = arith.constant 1.000000e+00 : f32
    %270 = vector.broadcast %cst_211 : f32 to vector<12x128xf32>
    %271 = arith.subf %270, %264 : vector<12x128xf32>
    %272 = arith.mulf %271, %269 : vector<12x128xf32>
    %273 = arith.mulf %264, %238 : vector<12x128xf32>
    %274 = arith.addf %272, %273 : vector<12x128xf32>
    %cst_212 = arith.constant 0.000000e+00 : f32
    %275 = vector.broadcast %cst_212 : f32 to vector<12x128xf32>
    %276 = arith.maximumf %274, %275 : vector<12x128xf32>
    %c0_213 = arith.constant 0 : index
    %c0_214 = arith.constant 0 : index
    %277 = vector.load %arg13[%c0_213, %c0_214] : memref<12x128xf32, #tpu.memory_space<vmem>>, vector<12x128xf32>
    tpu.vector_store %arg13[%c0_213, %c0_214], %276 {strides = array<i32>} : memref<12x128xf32, #tpu.memory_space<vmem>>, vector<12x128xf32>,
    return
  }
}

module attributes {stable_mosaic.version = 11 : i64} {
  func.func @_segment_sum_kernel(%arg0: memref<12x2xf32, #tpu.memory_space<vmem>>, %arg1: memref<12x128xf32, #tpu.memory_space<vmem>>, %arg2: memref<2x128xf32, #tpu.memory_space<vmem>>) attributes {dimension_semantics = [], scalar_prefetch = 0 : i64, scratch_operands = 0 : i64, tpu.core_type = #tpu.core_type<tc>} {
    %c0 = arith.constant 0 : index
    %c0_0 = arith.constant 0 : index
    %0 = vector.load %arg0[%c0, %c0_0] : memref<12x2xf32, #tpu.memory_space<vmem>>, vector<12x2xf32>
    %c0_1 = arith.constant 0 : index
    %c0_2 = arith.constant 0 : index
    %1 = vector.load %arg1[%c0_1, %c0_2] : memref<12x128xf32, #tpu.memory_space<vmem>>, vector<12x128xf32>
    %cst = arith.constant dense<0.000000e+00> : vector<2x128xf32>
    %2 = tpu.matmul %0, %1, %cst {dimension_numbers = #tpu.dot_dimension_numbers<[0], [0], [1], [1], [0, 1, 1, 1], [], []>} : vector<12x2xf32>, vector<12x128xf32>, vector<2x128xf32> -> vector<2x128xf32>
    %c0_3 = arith.constant 0 : index
    %c0_4 = arith.constant 0 : index
    %3 = vector.load %arg2[%c0_3, %c0_4] : memref<2x128xf32, #tpu.memory_space<vmem>>, vector<2x128xf32>
    tpu.vector_store %arg2[%c0_3, %c0_4], %2 {strides = array<i32>} : memref<2x128xf32, #tpu.memory_space<vmem>>, vector<2x128xf32>,
    return
  }
}

module attributes {stable_mosaic.version = 11 : i64} {
  func.func @_readout_kernel(%arg0: memref<12x128xf32, #tpu.memory_space<vmem>>, %arg1: memref<2x128xf32, #tpu.memory_space<vmem>>, %arg2: memref<12x2xf32, #tpu.memory_space<vmem>>, %arg3: memref<128x1xf32, #tpu.memory_space<vmem>>, %arg4: memref<128x1xf32, #tpu.memory_space<vmem>>, %arg5: memref<1x1xf32, #tpu.memory_space<vmem>>, %arg6: memref<128x128xf32, #tpu.memory_space<vmem>>, %arg7: memref<1x128xf32, #tpu.memory_space<vmem>>, %arg8: memref<128x384xf32, #tpu.memory_space<vmem>>, %arg9: memref<128x384xf32, #tpu.memory_space<vmem>>, %arg10: memref<1x384xf32, #tpu.memory_space<vmem>>, %arg11: memref<1x384xf32, #tpu.memory_space<vmem>>, %arg12: memref<2x128xf32, #tpu.memory_space<vmem>>) attributes {dimension_semantics = [], scalar_prefetch = 0 : i64, scratch_operands = 0 : i64, tpu.core_type = #tpu.core_type<tc>} {
    %c0 = arith.constant 0 : index
    %c0_0 = arith.constant 0 : index
    %0 = vector.load %arg0[%c0, %c0_0] : memref<12x128xf32, #tpu.memory_space<vmem>>, vector<12x128xf32>
    %c0_1 = arith.constant 0 : index
    %c0_2 = arith.constant 0 : index
    %1 = vector.load %arg1[%c0_1, %c0_2] : memref<2x128xf32, #tpu.memory_space<vmem>>, vector<2x128xf32>
    %c0_3 = arith.constant 0 : index
    %c0_4 = arith.constant 0 : index
    %2 = vector.load %arg2[%c0_3, %c0_4] : memref<12x2xf32, #tpu.memory_space<vmem>>, vector<12x2xf32>
    %cst = arith.constant 0.000000e+00 : f32
    %3 = vector.broadcast %cst : f32 to vector<2x128xf32>
    %4 = arith.maximumf %1, %3 : vector<2x128xf32>
    %cst_5 = arith.constant dense<0.000000e+00> : vector<12x128xf32>
    %5 = tpu.matmul %2, %4, %cst_5 {dimension_numbers = #tpu.dot_dimension_numbers<[1], [0], [0], [1], [0, 0, 1, 1], [], []>} : vector<12x2xf32>, vector<2x128xf32>, vector<12x128xf32> -> vector<12x128xf32>
    %c0_6 = arith.constant 0 : index
    %c0_7 = arith.constant 0 : index
    %6 = vector.load %arg3[%c0_6, %c0_7] : memref<128x1xf32, #tpu.memory_space<vmem>>, vector<128x1xf32>
    %c0_8 = arith.constant 0 : index
    %c0_9 = arith.constant 0 : index
    %7 = vector.load %arg4[%c0_8, %c0_9] : memref<128x1xf32, #tpu.memory_space<vmem>>, vector<128x1xf32>
    %c0_10 = arith.constant 0 : index
    %c0_11 = arith.constant 0 : index
    %8 = vector.load %arg5[%c0_10, %c0_11] : memref<1x1xf32, #tpu.memory_space<vmem>>, vector<1x1xf32>
    %cst_12 = arith.constant dense<0.000000e+00> : vector<12x1xf32>
    %9 = tpu.matmul %5, %6, %cst_12 {dimension_numbers = #tpu.dot_dimension_numbers<[1], [0], [0], [1], [0, 0, 1, 1], [], []>} : vector<12x128xf32>, vector<128x1xf32>, vector<12x1xf32> -> vector<12x1xf32>
    %cst_13 = arith.constant dense<0.000000e+00> : vector<12x1xf32>
    %10 = tpu.matmul %0, %7, %cst_13 {dimension_numbers = #tpu.dot_dimension_numbers<[1], [0], [0], [1], [0, 0, 1, 1], [], []>} : vector<12x128xf32>, vector<128x1xf32>, vector<12x1xf32> -> vector<12x1xf32>
    %11 = arith.addf %9, %10 : vector<12x1xf32>
    %12 = vector.broadcast %8 : vector<1x1xf32> to vector<12x1xf32>
    %13 = arith.addf %11, %12 : vector<12x1xf32>
    %cst_14 = arith.constant 0.000000e+00 : f32
    %14 = vector.broadcast %cst_14 : f32 to vector<12x1xf32>
    %15 = arith.cmpf ogt, %13, %14 : vector<12x1xf32>
    %cst_15 = arith.constant 0.00999999977 : f32
    %16 = vector.broadcast %cst_15 : f32 to vector<12x1xf32>
    %17 = arith.mulf %16, %13 : vector<12x1xf32>
    %18 = arith.select %15, %13, %17 : vector<12x1xi1>, vector<12x1xf32>
    %c0_16 = arith.constant 0 : index
    %c0_17 = arith.constant 0 : index
    %19 = vector.load %arg6[%c0_16, %c0_17] : memref<128x128xf32, #tpu.memory_space<vmem>>, vector<128x128xf32>
    %c0_18 = arith.constant 0 : index
    %c0_19 = arith.constant 0 : index
    %20 = vector.load %arg7[%c0_18, %c0_19] : memref<1x128xf32, #tpu.memory_space<vmem>>, vector<1x128xf32>
    %cst_20 = arith.constant dense<0.000000e+00> : vector<12x128xf32>
    %21 = tpu.matmul %0, %19, %cst_20 {dimension_numbers = #tpu.dot_dimension_numbers<[1], [0], [0], [1], [0, 0, 1, 1], [], []>} : vector<12x128xf32>, vector<128x128xf32>, vector<12x128xf32> -> vector<12x128xf32>
    %22 = vector.broadcast %20 : vector<1x128xf32> to vector<12x128xf32>
    %23 = arith.addf %21, %22 : vector<12x128xf32>
    %24 = vector.broadcast %18 : vector<12x1xf32> to vector<12x2xf32>
    %25 = arith.mulf %24, %2 : vector<12x2xf32>
    %cst_21 = arith.constant 1.000000e+00 : f32
    %26 = vector.broadcast %cst_21 : f32 to vector<12x2xf32>
    %27 = arith.subf %26, %2 : vector<12x2xf32>
    %cst_22 = arith.constant -1.000000e+30 : f32
    %28 = vector.broadcast %cst_22 : f32 to vector<12x2xf32>
    %29 = arith.mulf %28, %27 : vector<12x2xf32>
    %30 = arith.addf %25, %29 : vector<12x2xf32>
    %cst_23 = arith.constant dense<0xFF800000> : vector<2xf32>
    %31 = vector.multi_reduction <maximumf>, %30, %cst_23 [0] : vector<12x2xf32> to vector<2xf32>
    %32 = vector.shape_cast %31 : vector<2xf32> to vector<1x2xf32>
    %cst_24 = arith.constant dense<0.000000e+00> : vector<12x1xf32>
    %33 = tpu.matmul %2, %32, %cst_24 {dimension_numbers = #tpu.dot_dimension_numbers<[1], [1], [0], [0], [0, 0, 1, 0], [], []>} : vector<12x2xf32>, vector<1x2xf32>, vector<12x1xf32> -> vector<12x1xf32>
    %34 = arith.subf %18, %33 : vector<12x1xf32>
    %35 = math.exp %34 : vector<12x1xf32>
    %cst_25 = arith.constant dense<0.000000e+00> : vector<2x1xf32>
    %36 = tpu.matmul %2, %35, %cst_25 {dimension_numbers = #tpu.dot_dimension_numbers<[0], [0], [1], [1], [0, 1, 1, 1], [], []>} : vector<12x2xf32>, vector<12x1xf32>, vector<2x1xf32> -> vector<2x1xf32>
    %cst_26 = arith.constant dense<0.000000e+00> : vector<12x1xf32>
    %37 = tpu.matmul %2, %36, %cst_26 {dimension_numbers = #tpu.dot_dimension_numbers<[1], [0], [0], [1], [0, 0, 1, 1], [], []>} : vector<12x2xf32>, vector<2x1xf32>, vector<12x1xf32> -> vector<12x1xf32>
    %38 = tpu.reciprocal %37 {approx = true} : vector<12x1xf32> -> vector<12x1xf32>
    %39 = arith.mulf %35, %38 : vector<12x1xf32>
    %40 = vector.broadcast %39 : vector<12x1xf32> to vector<12x128xf32>
    %41 = arith.mulf %40, %23 : vector<12x128xf32>
    %cst_27 = arith.constant dense<0.000000e+00> : vector<2x128xf32>
    %42 = tpu.matmul %2, %41, %cst_27 {dimension_numbers = #tpu.dot_dimension_numbers<[0], [0], [1], [1], [0, 1, 1, 1], [], []>} : vector<12x2xf32>, vector<12x128xf32>, vector<2x128xf32> -> vector<2x128xf32>
    %cst_28 = arith.constant 0.000000e+00 : f32
    %43 = vector.broadcast %cst_28 : f32 to vector<2x128xf32>
    %44 = arith.cmpf ogt, %42, %43 : vector<2x128xf32>
    %45 = math.exp %42 : vector<2x128xf32>
    %cst_29 = arith.constant 1.000000e+00 : f32
    %46 = vector.broadcast %cst_29 : f32 to vector<2x128xf32>
    %47 = arith.subf %45, %46 : vector<2x128xf32>
    %48 = arith.select %44, %42, %47 : vector<2x128xi1>, vector<2x128xf32>
    %cst_30 = arith.constant 0.000000e+00 : f32
    %49 = vector.broadcast %cst_30 : f32 to vector<2x128xf32>
    %50 = arith.maximumf %48, %49 : vector<2x128xf32>
    %c0_31 = arith.constant 0 : index
    %c0_32 = arith.constant 0 : index
    %51 = vector.load %arg8[%c0_31, %c0_32] : memref<128x384xf32, #tpu.memory_space<vmem>>, vector<128x384xf32>
    %c0_33 = arith.constant 0 : index
    %c0_34 = arith.constant 0 : index
    %52 = vector.load %arg9[%c0_33, %c0_34] : memref<128x384xf32, #tpu.memory_space<vmem>>, vector<128x384xf32>
    %c0_35 = arith.constant 0 : index
    %c0_36 = arith.constant 0 : index
    %53 = vector.load %arg10[%c0_35, %c0_36] : memref<1x384xf32, #tpu.memory_space<vmem>>, vector<1x384xf32>
    %c0_37 = arith.constant 0 : index
    %c0_38 = arith.constant 0 : index
    %54 = vector.load %arg11[%c0_37, %c0_38] : memref<1x384xf32, #tpu.memory_space<vmem>>, vector<1x384xf32>
    %cst_39 = arith.constant dense<0.000000e+00> : vector<2x384xf32>
    %55 = tpu.matmul %50, %51, %cst_39 {dimension_numbers = #tpu.dot_dimension_numbers<[1], [0], [0], [1], [0, 0, 1, 1], [], []>} : vector<2x128xf32>, vector<128x384xf32>, vector<2x384xf32> -> vector<2x384xf32>
    %56 = vector.broadcast %53 : vector<1x384xf32> to vector<2x384xf32>
    %57 = arith.addf %55, %56 : vector<2x384xf32>
    %cst_40 = arith.constant dense<0.000000e+00> : vector<2x384xf32>
    %58 = tpu.matmul %1, %52, %cst_40 {dimension_numbers = #tpu.dot_dimension_numbers<[1], [0], [0], [1], [0, 0, 1, 1], [], []>} : vector<2x128xf32>, vector<128x384xf32>, vector<2x384xf32> -> vector<2x384xf32>
    %59 = vector.broadcast %54 : vector<1x384xf32> to vector<2x384xf32>
    %60 = arith.addf %58, %59 : vector<2x384xf32>
    %61 = vector.extract_strided_slice %57 {offsets = [0, 0], sizes = [2, 128], strides = [1, 1]} : vector<2x384xf32> to vector<2x128xf32>
    %62 = vector.extract_strided_slice %60 {offsets = [0, 0], sizes = [2, 128], strides = [1, 1]} : vector<2x384xf32> to vector<2x128xf32>
    %63 = arith.addf %61, %62 : vector<2x128xf32>
    %64 = arith.negf %63 : vector<2x128xf32>
    %65 = math.exp %64 : vector<2x128xf32>
    %cst_41 = arith.constant 1.000000e+00 : f32
    %66 = vector.broadcast %cst_41 : f32 to vector<2x128xf32>
    %67 = arith.addf %66, %65 : vector<2x128xf32>
    %68 = arith.divf %66, %67 : vector<2x128xf32>
    %69 = vector.extract_strided_slice %57 {offsets = [0, 128], sizes = [2, 128], strides = [1, 1]} : vector<2x384xf32> to vector<2x128xf32>
    %70 = vector.extract_strided_slice %60 {offsets = [0, 128], sizes = [2, 128], strides = [1, 1]} : vector<2x384xf32> to vector<2x128xf32>
    %71 = arith.addf %69, %70 : vector<2x128xf32>
    %72 = arith.negf %71 : vector<2x128xf32>
    %73 = math.exp %72 : vector<2x128xf32>
    %cst_42 = arith.constant 1.000000e+00 : f32
    %74 = vector.broadcast %cst_42 : f32 to vector<2x128xf32>
    %75 = arith.addf %74, %73 : vector<2x128xf32>
    %76 = arith.divf %74, %75 : vector<2x128xf32>
    %77 = vector.extract_strided_slice %57 {offsets = [0, 256], sizes = [2, 128], strides = [1, 1]} : vector<2x384xf32> to vector<2x128xf32>
    %78 = vector.extract_strided_slice %60 {offsets = [0, 256], sizes = [2, 128], strides = [1, 1]} : vector<2x384xf32> to vector<2x128xf32>
    %79 = arith.mulf %68, %78 : vector<2x128xf32>
    %80 = arith.addf %77, %79 : vector<2x128xf32>
    %81 = math.tanh %80 : vector<2x128xf32>
    %cst_43 = arith.constant 1.000000e+00 : f32
    %82 = vector.broadcast %cst_43 : f32 to vector<2x128xf32>
    %83 = arith.subf %82, %76 : vector<2x128xf32>
    %84 = arith.mulf %83, %81 : vector<2x128xf32>
    %85 = arith.mulf %76, %1 : vector<2x128xf32>
    %86 = arith.addf %84, %85 : vector<2x128xf32>
    %c0_44 = arith.constant 0 : index
    %c0_45 = arith.constant 0 : index
    %87 = vector.load %arg12[%c0_44, %c0_45] : memref<2x128xf32, #tpu.memory_space<vmem>>, vector<2x128xf32>
    tpu.vector_store %arg12[%c0_44, %c0_45], %86 {strides = array<i32>} : memref<2x128xf32, #tpu.memory_space<vmem>>, vector<2x128xf32>,
    return
  }
}

module attributes {stable_mosaic.version = 11 : i64} {
  func.func @_linear_kernel(%arg0: i32, %arg1: memref<2x128xf32, #tpu.memory_space<vmem>>, %arg2: memref<128x32xf32, #tpu.memory_space<vmem>>, %arg3: memref<1x32xf32, #tpu.memory_space<vmem>>, %arg4: memref<2x32xf32, #tpu.memory_space<vmem>>) attributes {dimension_semantics = [#tpu.dimension_semantics<parallel>], iteration_bounds = array<i64: 1>, scalar_prefetch = 0 : i64, scratch_operands = 0 : i64, tpu.core_type = #tpu.core_type<tc>, window_params = [{transform_indices = @transform_0, window_bounds = array<i64: 2, 128>}, {pipeline_mode = #tpu.pipeline_mode<synchronous>, transform_indices = @transform_1, window_bounds = array<i64: 128, 32>}, {pipeline_mode = #tpu.pipeline_mode<synchronous>, transform_indices = @transform_2, window_bounds = array<i64: 1, 32>}, {transform_indices = @transform_3, window_bounds = array<i64: 2, 32>}]} {
    %c0 = arith.constant 0 : index
    %c0_0 = arith.constant 0 : index
    %0 = vector.load %arg1[%c0, %c0_0] : memref<2x128xf32, #tpu.memory_space<vmem>>, vector<2x128xf32>
    %c0_1 = arith.constant 0 : index
    %c0_2 = arith.constant 0 : index
    %1 = vector.load %arg2[%c0_1, %c0_2] : memref<128x32xf32, #tpu.memory_space<vmem>>, vector<128x32xf32>
    %cst = arith.constant dense<0.000000e+00> : vector<2x32xf32>
    %2 = tpu.matmul %0, %1, %cst {dimension_numbers = #tpu.dot_dimension_numbers<[1], [0], [0], [1], [0, 0, 1, 1], [], []>} : vector<2x128xf32>, vector<128x32xf32>, vector<2x32xf32> -> vector<2x32xf32>
    %c0_3 = arith.constant 0 : index
    %c0_4 = arith.constant 0 : index
    %3 = vector.load %arg3[%c0_3, %c0_4] : memref<1x32xf32, #tpu.memory_space<vmem>>, vector<1x32xf32>
    %4 = vector.broadcast %3 : vector<1x32xf32> to vector<2x32xf32>
    %5 = arith.addf %2, %4 : vector<2x32xf32>
    %c0_5 = arith.constant 0 : index
    %c0_6 = arith.constant 0 : index
    %6 = vector.load %arg4[%c0_5, %c0_6] : memref<2x32xf32, #tpu.memory_space<vmem>>, vector<2x32xf32>
    tpu.vector_store %arg4[%c0_5, %c0_6], %5 {strides = array<i32>} : memref<2x32xf32, #tpu.memory_space<vmem>>, vector<2x32xf32>,
    return
  }
  func.func @transform_0(%arg0: i32) -> (i32, i32) {
    %c0_i32 = arith.constant 0 : i32
    %c0_i32_0 = arith.constant 0 : i32
    return %arg0, %c0_i32 : i32, i32
  }
  func.func @transform_1(%arg0: i32) -> (i32, i32) {
    %c0_i32 = arith.constant 0 : i32
    %c0_i32_0 = arith.constant 0 : i32
    %c0_i32_1 = arith.constant 0 : i32
    return %c0_i32, %c0_i32_0 : i32, i32
  }
  func.func @transform_2(%arg0: i32) -> (i32, i32) {
    %c0_i32 = arith.constant 0 : i32
    %c0_i32_0 = arith.constant 0 : i32
    %c0_i32_1 = arith.constant 0 : i32
    return %c0_i32, %c0_i32_0 : i32, i32
  }
  func.func @transform_3(%arg0: i32) -> (i32, i32) {
    %c0_i32 = arith.constant 0 : i32
    %c0_i32_0 = arith.constant 0 : i32
    return %arg0, %c0_i32 : i32, i32
  }
}

</mosaic_0001>

<bundles_post_ra>
// kernel: attentive_fp_forward.8
= control target key start
LH: loop header
LB: loop body
LE: loop exit
PB: predicated region body
PF: predicated region fallthrough
CT: control target
= control target key end

     0   :  { %vm51_vm0 = vcmask 1043456   ;;  %v144_v1 = vmov 0.0   ;;  %vm145_vm1 = vmmov 0   ;;  %vm47_vm2 = vcmask 97280   ;;  %s176_s0 = inlined_call_operand.vmem [shape: f32[12,2], index: 0, kind: input, shape index: {}]   ;;  %s177_s1 = inlined_call_operand.vmem [shape: f32[12,128], index: 1, kind: input, shape index: {}]   ;;  %s178_s2 = inlined_call_operand.vmem [shape: f32[2,128], index: 2, kind: output, shape index: {}]  }
   0x1   :  { %v11_v0 = vld [vmem:[%s176_s0] sm:$0xff]  ;;  %135 = vmatprep.subr.mxu0 %v144_v1  ;;  %v14_v2 = vld [vmem:[%s177_s1 + $0x8] sm:$0xf]  ;;  %139 = vmatprep.mubr.msk.f32.mxu0 %vm145_vm1, %v144_v1 }
   0x2   :  { %15 = vxpose.xlu0.b32.start [1/2] (short) (narrow) %v11_v0, 8  ;;  %136 = vmatpush3.msk.msra.mxu0 %vm51_vm0, %v14_v2  ;;  %v13_v3 = vld [vmem:[%s177_s1] sm:$0xff]  ;;  %v12_v4 = vld [vmem:[%s176_s0 + $0x8] sm:$0xf] }
   0x3   :  { %137 = vmatprep.subr.mxu0 %v144_v1 }
   0x4   :  { %138 = vmatpush3.msra.mxu0 %v13_v3 }
   0x6   :  { %16 = vxpose.xlu0.b32.end [2/2] (short) (narrow) %v12_v4, 8 }
  0x7e   :  { %v31_v5 = vpop.trf.xlu0 }
  0x7f   :  { %140 = vmatmul.mubr.msk.f32.vlgmr.msra.gmra.mxu0 %vm47_vm2, %v31_v5 }
 0x13f   :  { %v121_v6 = vpop.f32.mrf.mxu0 }
 0x140   :  { %125 = vst [vmem:[%s178_s2] sm:$0x3] %v121_v6 }
 0x141   :  { %v141_v7 = vpop.f32.mrf.mxu0 }

// kernel: attentive_fp_forward.9
= control target key start
LH: loop header
LB: loop body
LE: loop exit
PB: predicated region body
PF: predicated region fallthrough
CT: control target
= control target key end

     0   :  { %vm49_vm0 = vcmask 15360   ;;  %vm56_vm1 = vcmask 1041408   ;;  %v1533_v41 = vmov 0   ;;  %vm449_vm4 = vcmask 11264   ;;  %s2163_s1 = inlined_call_operand.vmem [shape: f32[2,128], index: 1, kind: input, shape index: {}]   ;;  %s2164_s2 = inlined_call_operand.vmem [shape: f32[12,2], index: 2, kind: input, shape index: {}]   ;;  %s2165_s4 = inlined_call_operand.vmem [shape: f32[128,1], index: 4, kind: input, shape index: {}]   ;;  %s2166_s3 = inlined_call_operand.vmem [shape: f32[128,1], index: 3, kind: input, shape index: {}]   ;;  %s2167_s0 = inlined_call_operand.vmem [shape: f32[12,128], index: 0, kind: input, shape index: {}]   ;;  %s2168_s5 = inlined_call_operand.<no memory space> [shape: f32[1,1], index: 5, kind: input, shape index: {}]   ;;  %s2169_s6 = inlined_call_operand.vmem [shape: f32[128,128], index: 6, kind: input, shape index: {}]   ;;  %s2170_s8 = inlined_call_operand.vmem [shape: f32[128,384], index: 8, kind: input, shape index: {}]   ;;  %s2171_s7 = inlined_call_operand.vmem [shape: f32[1,128], index: 7, kind: input, shape index: {}]   ;;  %s2172_s9 = inlined_call_operand.vmem [shape: f32[128,384], index: 9, kind: input, shape index: {}]   ;;  %s2173_s10 = inlined_call_operand.vmem [shape: f32[1,384], index: 10, kind: input, shape index: {}]   ;;  %s2174_s11 = inlined_call_operand.vmem [shape: f32[1,384], index: 11, kind: input, shape index: {}]   ;;  %s2175_s12 = inlined_call_operand.vmem [shape: f32[2,128], index: 12, kind: output, shape index: {}]  }
   0x1   :  { %v1604_v0 = vld [vmem:[%s2163_s1] sm:$0x3]  ;;  %v166_v3 = vld [vmem:[%s2165_s4 + $0x78] sm:$0xff]  ;;  %v165_v4 = vld [vmem:[%s2165_s4 + $0x70] sm:$0xff]  ;;  %v17_v38 = vstv %s2168_s5  ;;  %1510 = vset.pattern.permute.xlu0 %v1533_v41  ;;  %1511 = vset.pattern.permute.xlu1 %v1533_v41  ;;  %vm1535_vm5 = vmmov 0   ;;  %vm508_vm6 = vcmask 1043456  }
   0x2   :  { %v1609_v1 = vld [vmem:[%s2164_s2] sm:$0xff]  ;;  %v48_v2 = vmax.f32 %v1604_v0, 0.0  ;;  %v1623_v5 = vld [vmem:[%s2164_s2 + $0x8] sm:$0xf]  ;;  %1313 = vmatprep.subr.mxu1 %v166_v3  ;;  %v150_v6 = vld [vmem:[%s2166_s3 + $0x78] sm:$0xff]  ;;  %vm504_vm7 = vcmask 97280  }
   0x3   :  { %1310 = vmatprep.mubr.msk.f32.mxu0 %vm49_vm0, %v1609_v1  ;;  %1314 = vmatpush3.msra.mxu1 %v166_v3  ;;  %v164_v7 = vld [vmem:[%s2165_s4 + $0x68] sm:$0xff]  ;;  %v149_v8 = vld [vmem:[%s2166_s3 + $0x70] sm:$0xff]  ;;  %v163_v9 = vld [vmem:[%s2165_s4 + $0x60] sm:$0xff]  ;;  %18 = vst [vmem:[#allocation2] sm:$0x1] %v17_v38  ;;  %v442_v55 = vsub.f32 1.0, %v1609_v1 }
   0x4   :  { %1308 = vmatprep.subr.msk.mxu0 %vm56_vm1, %v48_v2  ;;  %1315 = vmatprep.subr.mxu1 %v165_v4  ;;  %v148_v10 = vld [vmem:[%s2166_s3 + $0x68] sm:$0xff]  ;;  %v162_v11 = vld [vmem:[%s2165_s4 + $0x58] sm:$0xff]  ;;  %v147_v12 = vld [vmem:[%s2166_s3 + $0x60] sm:$0xff]  ;;  %v443_v56 = vsub.f32 1.0, %v1623_v5 }
   0x5   :  { %1309 = vmatpush3.msk.msra.mxu0 %vm56_vm1, %v48_v2  ;;  %1316 = vmatpush3.msra.mxu1 %v165_v4  ;;  %v161_v13 = vld [vmem:[%s2165_s4 + $0x50] sm:$0xff]  ;;  %v146_v14 = vld [vmem:[%s2166_s3 + $0x58] sm:$0xff]  ;;  %v160_v15 = vld [vmem:[%s2165_s4 + $0x48] sm:$0xff]  ;;  %v444_v58 = vmul.f32 -1e+30, %v442_v55 }
   0x6   :  { %1311 = vmatmul.mubr.msk.f32.vlgmr.msra.gmra.mxu0 %vm49_vm0, %v1623_v5  ;;  %1348 = vmatprep.subr.mxu0 %v150_v6  ;;  %v145_v16 = vld [vmem:[%s2166_s3 + $0x50] sm:$0xff]  ;;  %v159_v17 = vld [vmem:[%s2165_s4 + $0x40] sm:$0xff]  ;;  %v144_v18 = vld [vmem:[%s2166_s3 + $0x48] sm:$0xff]  ;;  %v445_v60 = vmul.f32 -1e+30, %v443_v56 }
   0x7   :  { %1349 = vmatpush3.msra.mxu0 %v150_v6  ;;  %1317 = vmatprep.subr.mxu1 %v164_v7  ;;  %v158_v19 = vld [vmem:[%s2165_s4 + $0x38] sm:$0xff]  ;;  %v143_v20 = vld [vmem:[%s2166_s3 + $0x40] sm:$0xff]  ;;  %v157_v21 = vld [vmem:[%s2165_s4 + $0x30] sm:$0xff] }
   0x8   :  { %1350 = vmatprep.subr.mxu0 %v149_v8  ;;  %1318 = vmatpush3.msra.mxu1 %v164_v7  ;;  %v142_v22 = vld [vmem:[%s2166_s3 + $0x38] sm:$0xff]  ;;  %v156_v23 = vld [vmem:[%s2165_s4 + $0x28] sm:$0xff]  ;;  %v141_v24 = vld [vmem:[%s2166_s3 + $0x30] sm:$0xff] }
   0x9   :  { %1351 = vmatpush3.msra.mxu0 %v149_v8  ;;  %1319 = vmatprep.subr.mxu1 %v163_v9  ;;  %v155_v25 = vld [vmem:[%s2165_s4 + $0x20] sm:$0xff]  ;;  %v140_v26 = vld [vmem:[%s2166_s3 + $0x28] sm:$0xff]  ;;  %v154_v27 = vld [vmem:[%s2165_s4 + $0x18] sm:$0xff] }
   0xa   :  { %1352 = vmatprep.subr.mxu0 %v148_v10  ;;  %1320 = vmatpush3.msra.mxu1 %v163_v9  ;;  %v139_v28 = vld [vmem:[%s2166_s3 + $0x20] sm:$0xff]  ;;  %v153_v29 = vld [vmem:[%s2165_s4 + $0x10] sm:$0xff]  ;;  %v138_v30 = vld [vmem:[%s2166_s3 + $0x18] sm:$0xff] }
   0xb   :  { %1353 = vmatpush3.msra.mxu0 %v148_v10  ;;  %1321 = vmatprep.subr.mxu1 %v162_v11  ;;  %v152_v31 = vld [vmem:[%s2165_s4 + $0x8] sm:$0xff]  ;;  %v137_v32 = vld [vmem:[%s2166_s3 + $0x10] sm:$0xff]  ;;  %v151_v33 = vld [vmem:[%s2165_s4] sm:$0xff] }
   0xc   :  { %1354 = vmatprep.subr.mxu0 %v147_v12  ;;  %1322 = vmatpush3.msra.mxu1 %v162_v11  ;;  %v136_v34 = vld [vmem:[%s2166_s3 + $0x8] sm:$0xff]  ;;  %v43_v35 = vld [vmem:[%s2167_s0] sm:$0xff] }
   0xd   :  { %1355 = vmatpush3.msra.mxu0 %v147_v12  ;;  %1323 = vmatprep.subr.mxu1 %v161_v13  ;;  %v1722_v36 = vld [vmem:[%s2167_s0 + $0x8] sm:$0xf]  ;;  %v135_v37 = vld [vmem:[%s2166_s3] sm:$0xff] }
   0xe   :  { %1356 = vmatprep.subr.mxu0 %v146_v14  ;;  %1324 = vmatpush3.msra.mxu1 %v161_v13  ;;  %v1196_v46 = vld [vmem:[#allocation2] ss:$0 sm:$0xff]  ;;  %v333_v41 = vld [vmem:[%s2169_s6 + $0x8] sm:$0xff] }
   0xf   :  { %1357 = vmatpush3.msra.mxu0 %v146_v14  ;;  %1325 = vmatprep.subr.mxu1 %v160_v15  ;;  %v336_v38 = vld [vmem:[%s2169_s6 + $0x20] sm:$0xff] }
  0x10   :  { %1358 = vmatprep.subr.mxu0 %v145_v16  ;;  %1326 = vmatpush3.msra.mxu1 %v160_v15  ;;  %v1197_v55 = vld [vmem:[%s2171_s7] ss:$0 sm:$0xff] }
  0x11   :  { %1359 = vmatpush3.msra.mxu0 %v145_v16  ;;  %1327 = vmatprep.subr.mxu1 %v159_v17 }
  0x12   :  { %1360 = vmatprep.subr.mxu0 %v144_v18  ;;  %1328 = vmatpush3.msra.mxu1 %v159_v17  ;;  %v1534_v17 = vmov 0.0  }
  0x13   :  { %1361 = vmatpush3.msra.mxu0 %v144_v18  ;;  %1329 = vmatprep.subr.mxu1 %v158_v19 }
  0x14   :  { %1362 = vmatprep.subr.mxu0 %v143_v20  ;;  %1330 = vmatpush3.msra.mxu1 %v158_v19 }
  0x15   :  { %1363 = vmatpush3.msra.mxu0 %v143_v20  ;;  %1331 = vmatprep.subr.mxu1 %v157_v21 }
  0x16   :  { %1364 = vmatprep.subr.mxu0 %v142_v22  ;;  %1332 = vmatpush3.msra.mxu1 %v157_v21 }
  0x17   :  { %1365 = vmatpush3.msra.mxu0 %v142_v22  ;;  %1333 = vmatprep.subr.mxu1 %v156_v23 }
  0x18   :  { %1366 = vmatprep.subr.mxu0 %v141_v24  ;;  %1334 = vmatpush3.msra.mxu1 %v156_v23 }
  0x19   :  { %1367 = vmatpush3.msra.mxu0 %v141_v24  ;;  %1335 = vmatprep.subr.mxu1 %v155_v25 }
  0x1a   :  { %1368 = vmatprep.subr.mxu0 %v140_v26  ;;  %1336 = vmatpush3.msra.mxu1 %v155_v25 }
  0x1b   :  { %1369 = vmatpush3.msra.mxu0 %v140_v26  ;;  %1337 = vmatprep.subr.mxu1 %v154_v27 }
  0x1c   :  { %1370 = vmatprep.subr.mxu0 %v139_v28  ;;  %1338 = vmatpush3.msra.mxu1 %v154_v27  ;;  %v347_v27 = vld [vmem:[%s2169_s6 + $0x78] sm:$0xff] }
  0x1d   :  { %1371 = vmatpush3.msra.mxu0 %v139_v28  ;;  %1339 = vmatprep.subr.mxu1 %v153_v29  ;;  %v346_v28 = vld [vmem:[%s2169_s6 + $0x70] sm:$0xff] }
  0x1e   :  { %1372 = vmatprep.subr.mxu0 %v138_v30  ;;  %1340 = vmatpush3.msra.mxu1 %v153_v29  ;;  %v345_v29 = vld [vmem:[%s2169_s6 + $0x68] sm:$0xff] }
  0x1f   :  { %1373 = vmatpush3.msra.mxu0 %v138_v30  ;;  %1341 = vmatprep.subr.mxu1 %v152_v31  ;;  %v343_v30 = vld [vmem:[%s2169_s6 + $0x58] sm:$0xff] }
  0x20   :  { %1374 = vmatprep.subr.mxu0 %v137_v32  ;;  %1342 = vmatpush3.msra.mxu1 %v152_v31  ;;  %v342_v31 = vld [vmem:[%s2169_s6 + $0x50] sm:$0xff] }
  0x21   :  { %1375 = vmatpush3.msra.mxu0 %v137_v32  ;;  %1343 = vmatprep.subr.mxu1 %v151_v33  ;;  %v341_v32 = vld [vmem:[%s2169_s6 + $0x48] sm:$0xff] }
  0x22   :  { %1376 = vmatprep.subr.mxu0 %v136_v34  ;;  %1344 = vmatpush3.msra.mxu1 %v151_v33  ;;  %v340_v33 = vld [vmem:[%s2169_s6 + $0x40] sm:$0xff] }
  0x23   :  { %1345 = vmatprep.mubr.f32.mxu1 %v43_v35  ;;  %1377 = vmatpush3.msra.mxu0 %v136_v34  ;;  %v339_v34 = vld [vmem:[%s2169_s6 + $0x38] sm:$0xff] }
  0x24   :  { %1346 = vmatmul.mubr.f32.vlgmr.msra.gmra.mxu1 %v1722_v36  ;;  %1378 = vmatprep.subr.mxu0 %v135_v37 }
  0x25   :  { %1415 = vmatprep.mubr.f32.mxu1 %v43_v35  ;;  %1379 = vmatpush3.msra.mxu0 %v135_v37  ;;  %v338_v35 = vld [vmem:[%s2169_s6 + $0x30] sm:$0xff]  ;;  %v337_v37 = vld [vmem:[%s2169_s6 + $0x28] sm:$0xff] }
  0x26   :  { %1418 = vmatprep.subr.mxu0 %v1534_v17  ;;  %1383 = vmatprep.subr.mxu1 %v347_v27 }
  0x27   :  { %1384 = vmatpush3.msra.mxu1 %v347_v27  ;;  %v771_v27 = vld [vmem:[%s2170_s8 + $0x80] sm:$0xff] }
  0x28   :  { %1385 = vmatprep.subr.mxu1 %v346_v28 }
  0x29   :  { %1386 = vmatpush3.msra.mxu1 %v346_v28  ;;  %v775_v28 = vld [vmem:[%s2170_s8 + $0xa0] sm:$0xff] }
  0x2a   :  { %1387 = vmatprep.subr.mxu1 %v345_v29 }
  0x2b   :  { %1388 = vmatpush3.msra.mxu1 %v345_v29  ;;  %v770_v29 = vld [vmem:[%s2170_s8 + $0x78] sm:$0xff] }
  0xc6   :  { %v1312_v39 = vpop.f32.mrf.mxu0 }
  0xc8   :  { %v126_v40 = vpop.f32.mrf.mxu0 }
  0xc9   :  { %1380 = vmatprep.mubr.f32.mxu0 %v126_v40  ;;  %v334_v40 = vld [vmem:[%s2169_s6 + $0x10] sm:$0xff] }
  0xca   :  { %1381 = vmatmul.mubr.f32.vlgmr.msra.gmra.mxu0 %v1312_v39  ;;  %v335_v39 = vld [vmem:[%s2169_s6 + $0x18] sm:$0xff] }
  0xcb   :  { %1422 = vmatprep.mubr.msk.f32.mxu0 %vm1535_vm5, %v1534_v17 }
  0xe4   :  { %v1347_v42 = vpop.f32.mrf.mxu1 }
  0xe6   :  { %v234_v45 = vpop.f32.mrf.mxu1 }
 0x18a   :  { %v1382_v43 = vpop.f32.mrf.mxu0 }
 0x18b   :  { %v315_v44 = vadd.f32 %v1382_v43, %v1347_v42  ;;  %v332_v42 = vld [vmem:[%s2169_s6] sm:$0xff] }
 0x18c   :  { %v309_v47 = vpop.f32.mrf.mxu0 }
 0x18d   :  { %v310_v48 = vadd.f32 %v309_v47, %v234_v45  ;;  %v325_v49 = vadd.f32 %v1196_v46, %v315_v44 }
 0x18f   :  { %v324_v50 = vadd.f32 %v1196_v46, %v310_v48  ;;  %v329_v53 = vmul.f32 0.01, %v325_v49  ;;  %vm327_vm3 = vcmp.gt.f32.partialorder %v325_v49, 0.0 }
 0x191   :  { %vm326_vm2 = vcmp.gt.f32.partialorder %v324_v50, 0.0  ;;  %v328_v51 = vmul.f32 0.01, %v324_v50  ;;  %v331_v54 = vsel %vm327_vm3, %v325_v49, %v329_v53  ;;  %v790_v53 = vld [vmem:[%s2170_s8 + $0x118] sm:$0xff] }
 0x193   :  { %v330_v52 = vsel %vm326_vm2, %v324_v50, %v328_v51  ;;  %v799_v50 = vld [vmem:[%s2170_s8 + $0x160] sm:$0xff]  ;;  %v796_v51 = vld [vmem:[%s2170_s8 + $0x148] sm:$0xff] }
 0x194   :  { %432 = vperm.xlu0 %1510, %v330_v52  }
 0x198   :  { %437 = vperm.xlu0 %1510, %v331_v54  }
 0x1b6   :  { %472 = vxpose.xlu0.b32.start [1/2] (short) (narrow) %v1609_v1, 8 }
 0x1ba   :  { %473 = vxpose.xlu0.b32.end [2/2] (short) (narrow) %v1623_v5, 8 }
 0x20f   :  { %v433_v57 = vpop.permute.xlu0 %432 }
 0x210   :  { %v440_v59 = vmul.f32 %v433_v57, %v1609_v1 }
 0x212   :  { %v446_v62 = vadd.f32 %v444_v58, %v440_v59 }
 0x213   :  { %v438_v61 = vpop.permute.xlu0 %437 }
 0x214   :  { %v441_v63 = vmul.f32 %v438_v61, %v1623_v5  ;;  %v448_v3 = vsel %vm49_vm0, %v446_v62, -inf }
 0x216   :  { %v447_v2 = vadd.f32 %v445_v60, %v441_v63  ;;  %v801_v63 = vld [vmem:[%s2170_s8 + $0x170] sm:$0xff] }
 0x218   :  { %v450_v4 = vsel %vm449_vm4, %v447_v2, -inf  ;;  %v800_v2 = vld [vmem:[%s2170_s8 + $0x168] sm:$0xff] }
 0x219   :  { %v451_v6 = vmax.f32 %v448_v3, %v450_v4  ;;  %v798_v3 = vld [vmem:[%s2170_s8 + $0x158] sm:$0xff]  ;;  %v797_v4 = vld [vmem:[%s2170_s8 + $0x150] sm:$0xff] }
 0x21b   :  { %v452_v7 = vrot.slane %v451_v6, 4 }
 0x21d   :  { %v453_v8 = vmax.f32 %v451_v6, %v452_v7  ;;  %v795_v6 = vld [vmem:[%s2170_s8 + $0x140] sm:$0xff]  ;;  %v794_v7 = vld [vmem:[%s2170_s8 + $0x138] sm:$0xff] }
 0x21f   :  { %v454_v9 = vrot.slane %v453_v8, 2 }
 0x221   :  { %v455_v10 = vmax.f32 %v453_v8, %v454_v9  ;;  %v792_v8 = vld [vmem:[%s2170_s8 + $0x128] sm:$0xff]  ;;  %v791_v9 = vld [vmem:[%s2170_s8 + $0x120] sm:$0xff] }
 0x223   :  { %v456_v11 = vrot.slane %v455_v10, 1 }
 0x225   :  { %v457_v12 = vmax.f32 %v455_v10, %v456_v11  ;;  %v789_v10 = vld [vmem:[%s2170_s8 + $0x110] sm:$0xff]  ;;  %v788_v11 = vld [vmem:[%s2170_s8 + $0x108] sm:$0xff] }
 0x227   :  { %v459_v13 = vmul.f32 %v457_v12, %v1623_v5  ;;  %v458_v15 = vmul.f32 %v457_v12, %v1609_v1  ;;  %v786_v12 = vld [vmem:[%s2170_s8 + $0xf8] sm:$0xff] }
 0x229   :  { %v463_v14 = vsel %vm449_vm4, %v459_v13, 0.0  ;;  %v460_v16 = vsel %vm49_vm0, %v458_v15, 0.0  ;;  %v785_v13 = vld [vmem:[%s2170_s8 + $0xf0] sm:$0xff]  ;;  %v787_v15 = vld [vmem:[%s2170_s8 + $0x100] sm:$0xff] }
 0x22a   :  { %464 = vadd.xlane.f32.xlu1 %v463_v14  ;;  %v783_v14 = vld [vmem:[%s2170_s8 + $0xe0] sm:$0xff] }
 0x22e   :  { %461 = vadd.xlane.f32.xlu1 %v460_v16  ;;  %v782_v16 = vld [vmem:[%s2170_s8 + $0xd8] sm:$0xff] }
 0x232   :  { %v1749_v25 = vpop.trf.xlu0 }
 0x2b3   :  { %v465_v18 = vpop.xlane.xlu1 %464 }
 0x2b4   :  { %v467_v19 = vsub.f32 %v331_v54, %v465_v18  ;;  %v780_v18 = vld [vmem:[%s2170_s8 + $0xc8] sm:$0xff] }
 0x2b6   :  { %v470_v20 = vmul.f32 1.442695, %v467_v19  ;;  %v784_v19 = vld [vmem:[%s2170_s8 + $0xe8] sm:$0xff] }
 0x2b7   :  { %v462_v21 = vpop.xlane.xlu1 %461 }
 0x2b8   :  { %1512 = vpow2.f32 %v470_v20  ;;  %v466_v22 = vsub.f32 %v330_v52, %v462_v21  ;;  %v793_v52 = vld [vmem:[%s2170_s8 + $0x130] sm:$0xff]  ;;  %v779_v20 = vld [vmem:[%s2170_s8 + $0xc0] sm:$0xff] }
 0x2b9   :  { %v777_v21 = vld [vmem:[%s2170_s8 + $0xb0] sm:$0xff] }
 0x2ba   :  { %v468_v23 = vmul.f32 1.442695, %v466_v22  ;;  %v781_v22 = vld [vmem:[%s2170_s8 + $0xd0] sm:$0xff] }
 0x2bc   :  { %1514 = vpow2.f32 %v468_v23  ;;  %v776_v23 = vld [vmem:[%s2170_s8 + $0xa8] sm:$0xff] }
 0x2c5   :  { %v1744_v24 = vpop.eup %1512 }
 0x2c6   :  { %1419 = vmatpush3.msk.msra.mxu0 %vm508_vm6, %v1744_v24 }
 0x2c7   :  { %1420 = vmatprep.subr.mxu0 %v1534_v17 }
 0x2c9   :  { %v1751_v26 = vpop.eup %1514 }
 0x2ca   :  { %1421 = vmatpush3.msra.mxu0 %v1751_v26 }
 0x2cb   :  { %1423 = vmatmul.mubr.msk.f32.vlgmr.msra.gmra.mxu0 %vm504_vm7, %v1749_v25 }
 0x2cc   :  { %1427 = vmatprep.mubr.msk.f32.mxu0 %vm49_vm0, %v1609_v1  ;;  %v344_v1 = vld [vmem:[%s2169_s6 + $0x60] sm:$0xff] }
 0x2cd   :  { %1389 = vmatprep.subr.mxu1 %v344_v1 }
 0x2ce   :  { %1390 = vmatpush3.msra.mxu1 %v344_v1  ;;  %v768_v1 = vld [vmem:[%s2170_s8 + $0x68] sm:$0xff] }
 0x2cf   :  { %1391 = vmatprep.subr.mxu1 %v343_v30 }
 0x2d0   :  { %1392 = vmatpush3.msra.mxu1 %v343_v30  ;;  %v772_v30 = vld [vmem:[%s2170_s8 + $0x88] sm:$0xff] }
 0x2d1   :  { %1393 = vmatprep.subr.mxu1 %v342_v31 }
 0x2d2   :  { %1394 = vmatpush3.msra.mxu1 %v342_v31  ;;  %v767_v31 = vld [vmem:[%s2170_s8 + $0x60] sm:$0xff] }
 0x2d3   :  { %1395 = vmatprep.subr.mxu1 %v341_v32 }
 0x2d4   :  { %1396 = vmatpush3.msra.mxu1 %v341_v32  ;;  %v765_v32 = vld [vmem:[%s2170_s8 + $0x50] sm:$0xff] }
 0x2d5   :  { %1397 = vmatprep.subr.mxu1 %v340_v33 }
 0x2d6   :  { %1398 = vmatpush3.msra.mxu1 %v340_v33  ;;  %v769_v33 = vld [vmem:[%s2170_s8 + $0x70] sm:$0xff] }
 0x2d7   :  { %1399 = vmatprep.subr.mxu1 %v339_v34 }
 0x2d8   :  { %1400 = vmatpush3.msra.mxu1 %v339_v34  ;;  %v764_v34 = vld [vmem:[%s2170_s8 + $0x48] sm:$0xff] }
 0x2d9   :  { %1401 = vmatprep.subr.mxu1 %v338_v35 }
 0x2da   :  { %1402 = vmatpush3.msra.mxu1 %v338_v35  ;;  %v762_v35 = vld [vmem:[%s2170_s8 + $0x38] sm:$0xff] }
 0x2db   :  { %1403 = vmatprep.subr.mxu1 %v337_v37 }
 0x2dc   :  { %1404 = vmatpush3.msra.mxu1 %v337_v37  ;;  %v766_v37 = vld [vmem:[%s2170_s8 + $0x58] sm:$0xff] }
 0x2dd   :  { %1405 = vmatprep.subr.mxu1 %v336_v38 }
 0x2de   :  { %1406 = vmatpush3.msra.mxu1 %v336_v38  ;;  %v761_v38 = vld [vmem:[%s2170_s8 + $0x30] sm:$0xff] }
 0x2df   :  { %1407 = vmatprep.subr.mxu1 %v335_v39 }
 0x2e0   :  { %1408 = vmatpush3.msra.mxu1 %v335_v39  ;;  %v759_v39 = vld [vmem:[%s2170_s8 + $0x20] sm:$0xff] }
 0x2e1   :  { %1409 = vmatprep.subr.mxu1 %v334_v40 }
 0x2e2   :  { %1410 = vmatpush3.msra.mxu1 %v334_v40  ;;  %v763_v40 = vld [vmem:[%s2170_s8 + $0x40] sm:$0xff] }
 0x2e3   :  { %1411 = vmatprep.subr.mxu1 %v333_v41 }
 0x2e4   :  { %1412 = vmatpush3.msra.mxu1 %v333_v41  ;;  %v758_v41 = vld [vmem:[%s2170_s8 + $0x18] sm:$0xff] }
 0x2e5   :  { %1413 = vmatprep.subr.mxu1 %v332_v42 }
 0x2e6   :  { %1414 = vmatpush3.msra.mxu1 %v332_v42  ;;  %v756_v42 = vld [vmem:[%s2170_s8 + $0x8] sm:$0xff] }
 0x2e7   :  { %1416 = vmatmul.mubr.f32.vlgmr.msra.gmra.mxu1 %v1722_v36  ;;  %1437 = vmatprep.subr.mxu1 %v1534_v17 }
 0x2e8   :  { %1469 = vmatprep.mubr.msk.f32.mxu1 %vm1535_vm5, %v1534_v17 }
 0x38b   :  { %v578_v43 = vpop.f32.mrf.mxu0 }
 0x38c   :  { %1425 = vmatprep.subr.msk.mxu0 %vm56_vm1, %v578_v43 }
 0x38d   :  { %v1424_v44 = vpop.f32.mrf.mxu0  ;;  %1426 = vmatpush3.msk.msra.mxu0 %vm56_vm1, %v578_v43  ;;  %v760_v43 = vld [vmem:[%s2170_s8 + $0x28] sm:$0xff] }
 0x38e   :  { %1428 = vmatmul.mubr.msk.f32.vlgmr.msra.gmra.mxu0 %vm49_vm0, %v1623_v5  ;;  %1430 = vmatprep.subr.mxu0 %v1534_v17  ;;  %v802_v5 = vld [vmem:[%s2170_s8 + $0x178] sm:$0xff]  ;;  %v755_v44 = vld [vmem:[%s2170_s8] sm:$0xff] }
 0x38f   :  { %1434 = vmatprep.mubr.msk.f32.mxu0 %vm1535_vm5, %v1534_v17  ;;  %1438 = vmatpush3.msra.mxu1 %v802_v5 }
 0x390   :  { %1439 = vmatprep.subr.mxu1 %v1534_v17 }
 0x391   :  { %1440 = vmatpush3.msra.mxu1 %v799_v50 }
 0x392   :  { %1441 = vmatprep.subr.mxu1 %v1534_v17 }
 0x393   :  { %1442 = vmatpush3.msra.mxu1 %v796_v51 }
 0x394   :  { %1443 = vmatprep.subr.mxu1 %v1534_v17 }
 0x395   :  { %1444 = vmatpush3.msra.mxu1 %v793_v52  ;;  %v848_v52 = vld [vmem:[%s2172_s9 + $0x168] sm:$0xff] }
 0x396   :  { %1445 = vmatprep.subr.mxu1 %v1534_v17 }
 0x397   :  { %1446 = vmatpush3.msra.mxu1 %v790_v53  ;;  %v846_v53 = vld [vmem:[%s2172_s9 + $0x158] sm:$0xff] }
 0x398   :  { %1447 = vmatprep.subr.mxu1 %v1534_v17 }
 0x399   :  { %1448 = vmatpush3.msra.mxu1 %v787_v15  ;;  %v824_v15 = vld [vmem:[%s2172_s9 + $0xa8] sm:$0xff] }
 0x39a   :  { %1449 = vmatprep.subr.mxu1 %v1534_v17 }
 0x39b   :  { %1450 = vmatpush3.msra.mxu1 %v784_v19  ;;  %v821_v19 = vld [vmem:[%s2172_s9 + $0x90] sm:$0xff] }
 0x39c   :  { %1451 = vmatprep.subr.mxu1 %v1534_v17 }
 0x39d   :  { %1452 = vmatpush3.msra.mxu1 %v781_v22  ;;  %v818_v22 = vld [vmem:[%s2172_s9 + $0x78] sm:$0xff] }
 0x39e   :  { %1453 = vmatprep.subr.mxu1 %v1534_v17 }
 0x3a7   :  { %v1417_v54 = vpop.f32.mrf.mxu1 }
 0x3a8   :  { %v427_v56 = vadd.f32 %v1417_v54, %v1197_v55  ;;  %v850_v54 = vld [vmem:[%s2172_s9 + $0x178] sm:$0xff] }
 0x3a9   :  { %v421_v58 = vpop.f32.mrf.mxu1 }
 0x3aa   :  { %v422_v60 = vadd.f32 %v1197_v55, %v421_v58  ;;  %v845_v55 = vld [vmem:[%s2172_s9 + $0x150] sm:$0xff]  ;;  %v842_v58 = vld [vmem:[%s2172_s9 + $0x138] sm:$0xff] }
 0x44e   :  { %v1429_v36 = vpop.f32.mrf.mxu0 }
 0x44f   :  { %1516 = vrcp.f32 %v1429_v36  ;;  %v757_v36 = vld [vmem:[%s2170_s8 + $0x10] sm:$0xff] }
 0x450   :  { %v651_v45 = vpop.f32.mrf.mxu0 }
 0x451   :  { %1518 = vrcp.f32 %v651_v45  ;;  %v849_v45 = vld [vmem:[%s2172_s9 + $0x170] sm:$0xff] }
 0x45c   :  { %v1517_v46 = vpop.eup %1516 }
 0x45d   :  { %v663_v47 = vmul.f32 %v1517_v46, %v1744_v24  ;;  %v774_v24 = vld [vmem:[%s2170_s8 + $0x98] sm:$0xff] }
 0x45e   :  { %v1519_v48 = vpop.eup %1518 }
 0x45f   :  { %671 = vperm.xlu1 %1511, %v663_v47   ;;  %v662_v49 = vmul.f32 %v1519_v48, %v1751_v26  ;;  %v773_v26 = vld [vmem:[%s2170_s8 + $0x90] sm:$0xff] }
 0x463   :  { %666 = vperm.xlu1 %1511, %v662_v49  }
 0x4da   :  { %v672_v57 = vpop.permute.xlu1 %671 }
 0x4db   :  { %v675_v59 = vmul.f32 %v672_v57, %v427_v56  ;;  %v843_v56 = vld [vmem:[%s2172_s9 + $0x140] sm:$0xff] }
 0x4dc   :  { %v847_v57 = vld [vmem:[%s2172_s9 + $0x160] sm:$0xff] }
 0x4dd   :  { %1431 = vmatpush3.msk.msra.mxu0 %vm508_vm6, %v675_v59  ;;  %v840_v59 = vld [vmem:[%s2172_s9 + $0x128] sm:$0xff] }
 0x4de   :  { %v667_v61 = vpop.permute.xlu1 %666  ;;  %1432 = vmatprep.subr.mxu0 %v1534_v17 }
 0x4df   :  { %v674_v62 = vmul.f32 %v667_v61, %v422_v60  ;;  %v844_v60 = vld [vmem:[%s2172_s9 + $0x148] sm:$0xff]  ;;  %v839_v61 = vld [vmem:[%s2172_s9 + $0x120] sm:$0xff] }
 0x4e1   :  { %1433 = vmatpush3.msra.mxu0 %v674_v62  ;;  %v837_v62 = vld [vmem:[%s2172_s9 + $0x110] sm:$0xff] }
 0x4e2   :  { %1435 = vmatmul.mubr.msk.f32.vlgmr.msra.gmra.mxu0 %vm504_vm7, %v1749_v25  ;;  %869 = vmatprep.subr.mxu0 %v801_v63  ;;  %v778_v25 = vld [vmem:[%s2170_s8 + $0xb8] sm:$0xff]  ;;  %v841_v63 = vld [vmem:[%s2172_s9 + $0x130] sm:$0xff] }
 0x4e3   :  { %870 = vmatpush1.msra.mxu0 %v800_v2  ;;  %933 = vmatprep.mubr.f32.mxu0 %v1534_v17  ;;  %v836_v2 = vld [vmem:[%s2172_s9 + $0x108] sm:$0xff] }
 0x4e4   :  { %871 = vmatprep.subr.mxu0 %v798_v3  ;;  %1454 = vmatpush3.msra.mxu1 %v778_v25  ;;  %v834_v3 = vld [vmem:[%s2172_s9 + $0xf8] sm:$0xff]  ;;  %v815_v25 = vld [vmem:[%s2172_s9 + $0x60] sm:$0xff] }
 0x4e5   :  { %872 = vmatpush1.msra.mxu0 %v797_v4  ;;  %1455 = vmatprep.subr.mxu1 %v1534_v17  ;;  %v838_v4 = vld [vmem:[%s2172_s9 + $0x118] sm:$0xff] }
 0x4e6   :  { %873 = vmatprep.subr.mxu0 %v795_v6  ;;  %1456 = vmatpush3.msra.mxu1 %v775_v28  ;;  %v833_v6 = vld [vmem:[%s2172_s9 + $0xf0] sm:$0xff]  ;;  %v812_v28 = vld [vmem:[%s2172_s9 + $0x48] sm:$0xff] }
 0x4e7   :  { %874 = vmatpush1.msra.mxu0 %v794_v7  ;;  %1457 = vmatprep.subr.mxu1 %v1534_v17  ;;  %v831_v7 = vld [vmem:[%s2172_s9 + $0xe0] sm:$0xff] }
 0x4e8   :  { %875 = vmatprep.subr.mxu0 %v792_v8  ;;  %1458 = vmatpush3.msra.mxu1 %v772_v30  ;;  %v835_v8 = vld [vmem:[%s2172_s9 + $0x100] sm:$0xff]  ;;  %v809_v30 = vld [vmem:[%s2172_s9 + $0x30] sm:$0xff] }
 0x4e9   :  { %876 = vmatpush1.msra.mxu0 %v791_v9  ;;  %1459 = vmatprep.subr.mxu1 %v1534_v17  ;;  %v830_v9 = vld [vmem:[%s2172_s9 + $0xd8] sm:$0xff] }
 0x4ea   :  { %877 = vmatprep.subr.mxu0 %v789_v10  ;;  %1460 = vmatpush3.msra.mxu1 %v769_v33  ;;  %v828_v10 = vld [vmem:[%s2172_s9 + $0xc8] sm:$0xff]  ;;  %v806_v33 = vld [vmem:[%s2172_s9 + $0x18] sm:$0xff] }
 0x4eb   :  { %878 = vmatpush1.msra.mxu0 %v788_v11  ;;  %1461 = vmatprep.subr.mxu1 %v1534_v17  ;;  %v832_v11 = vld [vmem:[%s2172_s9 + $0xe8] sm:$0xff] }
 0x4ec   :  { %879 = vmatprep.subr.mxu0 %v786_v12  ;;  %1462 = vmatpush3.msra.mxu1 %v766_v37  ;;  %v827_v12 = vld [vmem:[%s2172_s9 + $0xc0] sm:$0xff] }
 0x4ed   :  { %880 = vmatpush1.msra.mxu0 %v785_v13  ;;  %1463 = vmatprep.subr.mxu1 %v1534_v17  ;;  %v825_v13 = vld [vmem:[%s2172_s9 + $0xb0] sm:$0xff]  ;;  %v803_v37 = vld [vmem:[%s2172_s9] sm:$0xff] }
 0x4ee   :  { %881 = vmatprep.subr.mxu0 %v783_v14  ;;  %1464 = vmatpush3.msra.mxu1 %v763_v40  ;;  %v829_v14 = vld [vmem:[%s2172_s9 + $0xd0] sm:$0xff] }
 0x4ef   :  { %882 = vmatpush1.msra.mxu0 %v782_v16  ;;  %1465 = vmatprep.subr.mxu1 %v1534_v17  ;;  %v822_v16 = vld [vmem:[%s2172_s9 + $0x98] sm:$0xff] }
 0x4f0   :  { %883 = vmatprep.subr.mxu0 %v780_v18  ;;  %1466 = vmatpush3.msra.mxu1 %v760_v43  ;;  %v826_v18 = vld [vmem:[%s2172_s9 + $0xb8] sm:$0xff] }
 0x4f1   :  { %884 = vmatpush1.msra.mxu0 %v779_v20  ;;  %1467 = vmatprep.subr.mxu1 %v1534_v17  ;;  %v819_v20 = vld [vmem:[%s2172_s9 + $0x80] sm:$0xff] }
 0x4f2   :  { %885 = vmatprep.subr.mxu0 %v777_v21  ;;  %1468 = vmatpush3.msra.mxu1 %v757_v36  ;;  %v823_v21 = vld [vmem:[%s2172_s9 + $0xa0] sm:$0xff] }
 0x4f3   :  { %886 = vmatpush1.msra.mxu0 %v776_v23  ;;  %1472 = vmatprep.subr.mxu1 %v1534_v17  ;;  %v816_v23 = vld [vmem:[%s2172_s9 + $0x68] sm:$0xff] }
 0x4f4   :  { %887 = vmatprep.subr.mxu0 %v774_v24  ;;  %v820_v24 = vld [vmem:[%s2172_s9 + $0x88] sm:$0xff] }
 0x4f5   :  { %888 = vmatpush1.msra.mxu0 %v773_v26  ;;  %v813_v26 = vld [vmem:[%s2172_s9 + $0x50] sm:$0xff] }
 0x4f6   :  { %889 = vmatprep.subr.mxu0 %v771_v27  ;;  %v817_v27 = vld [vmem:[%s2172_s9 + $0x70] sm:$0xff] }
 0x4f7   :  { %890 = vmatpush1.msra.mxu0 %v770_v29  ;;  %v810_v29 = vld [vmem:[%s2172_s9 + $0x38] sm:$0xff] }
 0x4f8   :  { %891 = vmatprep.subr.mxu0 %v768_v1  ;;  %v814_v1 = vld [vmem:[%s2172_s9 + $0x58] sm:$0xff] }
 0x4f9   :  { %892 = vmatpush1.msra.mxu0 %v767_v31  ;;  %v807_v31 = vld [vmem:[%s2172_s9 + $0x20] sm:$0xff] }
 0x4fa   :  { %893 = vmatprep.subr.mxu0 %v765_v32  ;;  %v811_v32 = vld [vmem:[%s2172_s9 + $0x40] sm:$0xff] }
 0x4fb   :  { %894 = vmatpush1.msra.mxu0 %v764_v34  ;;  %v804_v34 = vld [vmem:[%s2172_s9 + $0x8] sm:$0xff] }
 0x4fc   :  { %895 = vmatprep.subr.mxu0 %v762_v35  ;;  %v808_v35 = vld [vmem:[%s2172_s9 + $0x28] sm:$0xff] }
 0x4fd   :  { %896 = vmatpush1.msra.mxu0 %v761_v38  ;;  %v805_v38 = vld [vmem:[%s2172_s9 + $0x10] sm:$0xff] }
 0x4fe   :  { %897 = vmatprep.subr.mxu0 %v759_v39 }
 0x4ff   :  { %898 = vmatpush1.msra.mxu0 %v758_v41  ;;  %v854_v41 = vlaneseq }
 0x500   :  { %899 = vmatprep.subr.mxu0 %v756_v42 }
 0x501   :  { %900 = vmatpush1.msra.mxu0 %v755_v44  ;;  %v855_v42 = vshrl.u32 %v854_v41, 7  ;;  %v851_v44 = vld [vmem:[%s2173_s10] sm:$0x7] }
 0x502   :  { %1026 = vmatprep.subr.mxu0 %v849_v45  ;;  %v852_v45 = vld [vmem:[%s2174_s11] sm:$0x7] }
 0x503   :  { %v856_v43 = vsub.s32 0, %v855_v42 }
 0x5a2   :  { %v745_v46 = vpop.f32.mrf.mxu0 }
 0x5a3   :  { %v750_v47 = vmul.f32 1.442695, %v745_v46  ;;  %vm749_vm8 = vcmp.gt.f32.partialorder %v745_v46, 0.0 }
 0x5a4   :  { %v1436_v48 = vpop.f32.mrf.mxu0 }
 0x5a5   :  { %1520 = vpow2.f32 %v750_v47  ;;  %v1014_v47 = vrot.slane %v852_v45, %v856_v43 }
 0x5b2   :  { %v1521_v49 = vpop.eup %1520 }
 0x5b3   :  { %v1205_v5 = vadd.f32 -1.0, %v1521_v49 }
 0x5b5   :  { %v753_v50 = vsel %vm749_vm8, %v745_v46, %v1205_v5  ;;  %v857_v46 = vrot.slane %v851_v44, %v856_v43 }
 0x5b6   :  { %v754_v51 = vmax.f32 %v753_v50, 0.0 }
 0x5b8   :  { %934 = vmatmul.mubr.f32.vlgmr.msra.gmra.mxu0 %v754_v51  ;;  %1470 = vmatmul.mubr.f32.vlgmr.msra.gmra.mxu1 %v754_v51 }
 0x5b9   :  { %1027 = vmatpush1.msra.mxu0 %v848_v52  ;;  %1090 = vmatprep.mubr.f32.mxu0 %v1534_v17 }
 0x5ba   :  { %1028 = vmatprep.subr.mxu0 %v846_v53  ;;  %1473 = vmatpush3.msra.mxu1 %v850_v54 }
 0x5bb   :  { %1029 = vmatpush1.msra.mxu0 %v845_v55  ;;  %1474 = vmatprep.subr.mxu1 %v1534_v17 }
 0x5bc   :  { %1030 = vmatprep.subr.mxu0 %v843_v56  ;;  %1475 = vmatpush3.msra.mxu1 %v847_v57 }
 0x5bd   :  { %1031 = vmatpush1.msra.mxu0 %v842_v58  ;;  %1476 = vmatprep.subr.mxu1 %v1534_v17 }
 0x5be   :  { %1032 = vmatprep.subr.mxu0 %v840_v59  ;;  %1477 = vmatpush3.msra.mxu1 %v844_v60 }
 0x5bf   :  { %1033 = vmatpush1.msra.mxu0 %v839_v61  ;;  %1478 = vmatprep.subr.mxu1 %v1534_v17 }
 0x5c0   :  { %1034 = vmatprep.subr.mxu0 %v837_v62  ;;  %1479 = vmatpush3.msra.mxu1 %v841_v63  ;;  %v864_v63 = vsub.s32 2, %v855_v42 }
 0x5c1   :  { %1035 = vmatpush1.msra.mxu0 %v836_v2  ;;  %1480 = vmatprep.subr.mxu1 %v1534_v17 }
 0x5c2   :  { %1036 = vmatprep.subr.mxu0 %v834_v3  ;;  %1481 = vmatpush3.msra.mxu1 %v838_v4  ;;  %v1022_v2 = vrot.slane %v852_v45, %v864_v63  ;;  %v865_v4 = vrot.slane %v851_v44, %v864_v63 }
 0x5c3   :  { %1037 = vmatpush1.msra.mxu0 %v833_v6  ;;  %1482 = vmatprep.subr.mxu1 %v1534_v17 }
 0x5c4   :  { %1038 = vmatprep.subr.mxu0 %v831_v7  ;;  %1483 = vmatpush3.msra.mxu1 %v835_v8 }
 0x5c5   :  { %1039 = vmatpush1.msra.mxu0 %v830_v9  ;;  %1484 = vmatprep.subr.mxu1 %v1534_v17 }
 0x5c6   :  { %1040 = vmatprep.subr.mxu0 %v828_v10  ;;  %1485 = vmatpush3.msra.mxu1 %v832_v11 }
 0x5c7   :  { %1041 = vmatpush1.msra.mxu0 %v827_v12  ;;  %1486 = vmatprep.subr.mxu1 %v1534_v17 }
 0x5c8   :  { %1042 = vmatprep.subr.mxu0 %v825_v13  ;;  %1487 = vmatpush3.msra.mxu1 %v829_v14 }
 0x5c9   :  { %1043 = vmatpush1.msra.mxu0 %v824_v15  ;;  %1488 = vmatprep.subr.mxu1 %v1534_v17  ;;  %v1532_v15 = vld [vmem:[%s2163_s1] sm:$0x3] }
 0x5ca   :  { %1044 = vmatprep.subr.mxu0 %v822_v16  ;;  %1489 = vmatpush3.msra.mxu1 %v826_v18 }
 0x5cb   :  { %1045 = vmatpush1.msra.mxu0 %v821_v19  ;;  %1490 = vmatprep.subr.mxu1 %v1534_v17 }
 0x5cc   :  { %1046 = vmatprep.subr.mxu0 %v819_v20  ;;  %1491 = vmatpush3.msra.mxu1 %v823_v21 }
 0x5cd   :  { %1047 = vmatpush1.msra.mxu0 %v818_v22  ;;  %1492 = vmatprep.subr.mxu1 %v1534_v17 }
 0x5ce   :  { %1048 = vmatprep.subr.mxu0 %v816_v23  ;;  %1493 = vmatpush3.msra.mxu1 %v820_v24 }
 0x5cf   :  { %1049 = vmatpush1.msra.mxu0 %v815_v25  ;;  %1494 = vmatprep.subr.mxu1 %v1534_v17 }
 0x5d0   :  { %1050 = vmatprep.subr.mxu0 %v813_v26  ;;  %1495 = vmatpush3.msra.mxu1 %v817_v27 }
 0x5d1   :  { %1051 = vmatpush1.msra.mxu0 %v812_v28  ;;  %1496 = vmatprep.subr.mxu1 %v1534_v17 }
 0x5d2   :  { %1052 = vmatprep.subr.mxu0 %v810_v29  ;;  %1497 = vmatpush3.msra.mxu1 %v814_v1 }
 0x5d3   :  { %1053 = vmatpush1.msra.mxu0 %v809_v30  ;;  %1498 = vmatprep.subr.mxu1 %v1534_v17 }
 0x5d4   :  { %1054 = vmatprep.subr.mxu0 %v807_v31  ;;  %1499 = vmatpush3.msra.mxu1 %v811_v32 }
 0x5d5   :  { %1055 = vmatpush1.msra.mxu0 %v806_v33  ;;  %1500 = vmatprep.subr.mxu1 %v1534_v17 }
 0x5d6   :  { %1056 = vmatprep.subr.mxu0 %v804_v34  ;;  %1501 = vmatpush3.msra.mxu1 %v808_v35 }
 0x5d7   :  { %1057 = vmatpush1.msra.mxu0 %v803_v37  ;;  %1502 = vmatprep.subr.mxu1 %v1534_v17 }
 0x5d8   :  { %1091 = vmatmul.mubr.f32.vlgmr.msra.gmra.mxu0 %v1604_v0  ;;  %1503 = vmatpush3.msra.mxu1 %v805_v38 }
 0x5d9   :  { %1504 = vmatprep.mubr.msk.f32.mxu1 %vm1535_vm5, %v1534_v17  ;;  %v860_v17 = vsub.s32 1, %v855_v42 }
 0x5da   :  { %1505 = vmatmul.mubr.f32.vlgmr.msra.gmra.mxu1 %v1604_v0 }
 0x5db   :  { %v1018_v50 = vrot.slane %v852_v45, %v860_v17  ;;  %v861_v53 = vrot.slane %v851_v44, %v860_v17 }
 0x678   :  { %v1006_v39 = vpop.f32.mrf.mxu1  ;;  %v935_v36 = vpop.f32.mrf.mxu0 }
 0x679   :  { %v936_v0 = vadd.f32 %v935_v36, %v857_v46  ;;  %v1007_v9 = vadd.f32 %v1006_v39, %v865_v4 }
 0x67a   :  { %v1471_v40 = vpop.f32.mrf.mxu1  ;;  %v937_v48 = vpop.f32.mrf.mxu0 }
 0x67b   :  { %v938_v58 = vadd.f32 %v937_v48, %v861_v53 }
 0x698   :  { %v1092_v49 = vpop.f32.mrf.mxu0 }
 0x699   :  { %v1093_v5 = vadd.f32 %v1092_v49, %v1014_v47 }
 0x69a   :  { %v1094_v51 = vpop.f32.mrf.mxu0  ;;  %v1163_v52 = vpop.f32.mrf.mxu1 }
 0x69b   :  { %v1167_v54 = vadd.f32 %v1093_v5, %v936_v0  ;;  %v1095_v57 = vadd.f32 %v1094_v51, %v1018_v50  ;;  %v1164_v7 = vadd.f32 %v1163_v52, %v1022_v2 }
 0x69c   :  { %v1506_v55 = vpop.f32.mrf.mxu1 }
 0x69d   :  { %v1206_v56 = vmul.f32 -1.442695, %v1167_v54  ;;  %v1174_v59 = vadd.f32 %v1095_v57, %v938_v58 }
 0x69f   :  { %1522 = vpow2.f32 %v1206_v56  ;;  %v1207_v60 = vmul.f32 -1.442695, %v1174_v59 }
 0x6a1   :  { %1524 = vpow2.f32 %v1207_v60 }
 0x6ac   :  { %v1523_v61 = vpop.eup %1522 }
 0x6ad   :  { %v1171_v62 = vadd.f32 1.0, %v1523_v61 }
 0x6ae   :  { %v1525_v3 = vpop.eup %1524 }
 0x6af   :  { %1526 = vrcp.f32 %v1171_v62  ;;  %v1178_v6 = vadd.f32 1.0, %v1525_v3 }
 0x6b1   :  { %1528 = vrcp.f32 %v1178_v6 }
 0x6bc   :  { %v1527_v8 = vpop.eup %1526 }
 0x6bd   :  { %v1181_v10 = vmul.f32 %v1527_v8, %v1164_v7 }
 0x6be   :  { %v1529_v12 = vpop.eup %1528 }
 0x6bf   :  { %v1182_v11 = vadd.f32 %v1181_v10, %v1007_v9  ;;  %v1184_v13 = vsub.f32 1.0, %v1529_v12  ;;  %v1186_v16 = vmul.f32 %v1532_v15, %v1529_v12 }
 0x6c1   :  { %1530 = vtanh.f32 %v1182_v11 }
 0x6ce   :  { %v1531_v14 = vpop.eup %1530 }
 0x6cf   :  { %v1185_v18 = vmul.f32 %v1531_v14, %v1184_v13 }
 0x6d1   :  { %v1187_v19 = vadd.f32 %v1186_v16, %v1185_v18 }
 0x6d3   :  { %1188 = vst [vmem:[%s2175_s12] sm:$0x3] %v1187_v19 }

// kernel: attentive_fp_forward.11
= control target key start
LH: loop header
LB: loop body
LE: loop exit
PB: predicated region body
PF: predicated region fallthrough
CT: control target
= control target key end

     0   :  { %v203_v1 = vmov 0.0   ;;  %vm204_vm0 = vmmov 0   ;;  %s283_s0 = inlined_call_operand.vmem [shape: f32[2,128], index: 0, kind: input, shape index: {}]   ;;  %s284_s1 = inlined_call_operand.vmem [shape: f32[128,32], index: 1, kind: input, shape index: {}]   ;;  %s285_s2 = inlined_call_operand.vmem [shape: f32[1,32], index: 2, kind: input, shape index: {}]   ;;  %s286_s3 = inlined_call_operand.hbm [shape: f32[2,32], index: 3, kind: output, shape index: {}]  }
   0x1   :  { %v31_v0 = vld [vmem:[%s284_s1 + $0x78] sm:$0xff]  ;;  %143 = vmatprep.subr.mxu0 %v203_v1  ;;  %v30_v2 = vld [vmem:[%s284_s1 + $0x70] sm:$0xff]  ;;  %175 = vmatprep.mubr.msk.f32.mxu0 %vm204_vm0, %v203_v1  ;;  %v29_v3 = vld [vmem:[%s284_s1 + $0x68] sm:$0xff] }
   0x2   :  { %144 = vmatpush3.msra.mxu0 %v31_v0  ;;  %v28_v4 = vld [vmem:[%s284_s1 + $0x60] sm:$0xff] }
   0x3   :  { %145 = vmatprep.subr.mxu0 %v203_v1 }
   0x4   :  { %146 = vmatpush3.msra.mxu0 %v30_v2 }
   0x5   :  { %147 = vmatprep.subr.mxu0 %v203_v1 }
   0x6   :  { %148 = vmatpush3.msra.mxu0 %v29_v3 }
   0x7   :  { %8 = vsyncpa [#allocation3], 0  ;;  %149 = vmatprep.subr.mxu0 %v203_v1  ;;  %v27_v5 = vld [vmem:[%s284_s1 + $0x58] sm:$0xff]  ;;  %v26_v6 = vld [vmem:[%s284_s1 + $0x50] sm:$0xff]  ;;  %s205_s21 = smov [#allocation2]   ;;  %vm109_vm1 = vcmask 254976  }
   0x8   :  { %150 = vmatpush3.msra.mxu0 %v28_v4  ;;  %v25_v7 = vld [vmem:[%s284_s1 + $0x48] sm:$0xff]  ;;  %v24_v8 = vld [vmem:[%s284_s1 + $0x40] sm:$0xff]  ;;  %v23_v9 = vld [vmem:[%s284_s1 + $0x38] sm:$0xff]  ;;  %s117_s22 = sshll.u32 %s205_s21, 4  ;;  %s118_s22 = int_to_ptr.vmem [resolvable:$true] %s117_s22 }
   0x9   :  { %151 = vmatprep.subr.mxu0 %v203_v1  ;;  %v22_v10 = vld [vmem:[%s284_s1 + $0x30] sm:$0xff]  ;;  %v21_v11 = vld [vmem:[%s284_s1 + $0x28] sm:$0xff]  ;;  %v20_v12 = vld [vmem:[%s284_s1 + $0x20] sm:$0xff]  ;;  %p186_p1 = scmp.lt.s32.totalorder %s118_s22, %s118_s22 }
   0xa   :  { %152 = vmatpush3.msra.mxu0 %v27_v5  ;;  %v19_v13 = vld [vmem:[%s284_s1 + $0x18] sm:$0xff]  ;;  %v18_v14 = vld [vmem:[%s284_s1 + $0x10] sm:$0xff]  ;;  %v17_v15 = vld [vmem:[%s284_s1 + $0x8] sm:$0xff] }
   0xb   :  { %153 = vmatprep.subr.mxu0 %v203_v1  ;;  %v16_v16 = vld [vmem:[%s284_s1] sm:$0xff]  ;;  %s181_s1 = scalar_lea.vmem %s118_s22, 32 }
   0xc   :  { %154 = vmatpush3.msra.mxu0 %v26_v6  ;;  %v15_v17 = vld [vmem:[%s283_s0] sm:$0x3]  ;;  %p182_p0 = scmp.ne.s32.totalorder %s118_s22, %s181_s1  ;;  %p187_p2 = scmp.lt.s32.totalorder %s181_s1, %s181_s1 }
   0xd   :  { %155 = vmatprep.subr.mxu0 %v203_v1  ;;  %v125_v18 = vld [vmem:[%s285_s2] ss:$0 sm:$0xff] }
   0xe   :  { %156 = vmatpush3.msra.mxu0 %v25_v7  ;;  %p188_p3 = por %p187_p2, %p186_p1 }
   0xf   :  { %157 = vmatprep.subr.mxu0 %v203_v1 }
  0x10   :  { %158 = vmatpush3.msra.mxu0 %v24_v8  ;;  %p189_p4 = pnand %p188_p3, %p182_p0 }
  0x11   :  { %159 = vmatprep.subr.mxu0 %v203_v1 }
  0x12   :  { %160 = vmatpush3.msra.mxu0 %v23_v9 }
  0x13   :  { %161 = vmatprep.subr.mxu0 %v203_v1 }
  0x14   :  { %162 = vmatpush3.msra.mxu0 %v22_v10 }
  0x15   :  { %163 = vmatprep.subr.mxu0 %v203_v1 }
  0x16   :  { %164 = vmatpush3.msra.mxu0 %v21_v11 }
  0x17   :  { %165 = vmatprep.subr.mxu0 %v203_v1 }
  0x18   :  { %166 = vmatpush3.msra.mxu0 %v20_v12 }
  0x19   :  { %167 = vmatprep.subr.mxu0 %v203_v1 }
  0x1a   :  { %168 = vmatpush3.msra.mxu0 %v19_v13 }
  0x1b   :  { %169 = vmatprep.subr.mxu0 %v203_v1 }
  0x1c   :  { %170 = vmatpush3.msra.mxu0 %v18_v14 }
  0x1d   :  { %171 = vmatprep.subr.mxu0 %v203_v1 }
  0x1e   :  { %172 = vmatpush3.msra.mxu0 %v17_v15 }
  0x1f   :  { %173 = vmatprep.subr.mxu0 %v203_v1 }
  0x20   :  { %174 = vmatpush3.msra.mxu0 %v16_v16 }
  0x21   :  { %176 = vmatmul.mubr.f32.vlgmr.msra.gmra.mxu0 %v15_v17 }
  0xe1   :  { %v105_v19 = vpop.f32.mrf.mxu0 }
  0xe2   :  { %v106_v20 = vadd.f32 %v125_v18, %v105_v19 }
  0xe3   :  { %v177_v21 = vpop.f32.mrf.mxu0 }
  0xe4   :  { %110 = vst.msk [vmem:[#allocation2] sm:$0x3] %vm109_vm1, %v106_v20 }
  0xe5   :  { %192 = shalt.err (!%p189_p4)
}
  0xe6   :  { %120 = dma.vmem_to_hbm [thread:$0]  %s118_s22, 32, %s286_s3, [#allocation3]  }
  0xe7   :  { %201 = dma.done.wait [#allocation3], 32  }
  0xe8   :  { %202 = vsyncadd [#allocation3], 4294967264 }
  0xe9   :  { %124 = vsyncpa [#allocation3], 1 }

// kernel: attentive_fp_forward.7
= control target key start
LH: loop header
LB: loop body
LE: loop exit
PB: predicated region body
PF: predicated region fallthrough
CT: control target
= control target key end

     0   :  { %s2931_s0 = inlined_call_operand.vmem [shape: f32[12,128], index: 0, kind: input, shape index: {}]   ;;  %s2932_s1 = inlined_call_operand.vmem [shape: s32[24], index: 1, kind: input, shape index: {}]   ;;  %s2933_s2 = inlined_call_operand.vmem [shape: s32[24], index: 2, kind: input, shape index: {}]   ;;  %s2934_s3 = inlined_call_operand.vmem [shape: f32[24,12], index: 3, kind: input, shape index: {}]   ;;  %s2935_s4 = inlined_call_operand.vmem [shape: f32[128,1], index: 4, kind: input, shape index: {}]   ;;  %s2936_s5 = inlined_call_operand.vmem [shape: f32[128,1], index: 5, kind: input, shape index: {}]   ;;  %s2937_s6 = inlined_call_operand.<no memory space> [shape: f32[1,1], index: 6, kind: input, shape index: {}]   ;;  %s2938_s7 = inlined_call_operand.vmem [shape: f32[128,128], index: 7, kind: input, shape index: {}]   ;;  %s2939_s8 = inlined_call_operand.vmem [shape: f32[1,128], index: 8, kind: input, shape index: {}]   ;;  %s2940_s9 = inlined_call_operand.vmem [shape: f32[128,384], index: 9, kind: input, shape index: {}]   ;;  %s2941_s10 = inlined_call_operand.vmem [shape: f32[128,384], index: 10, kind: input, shape index: {}]   ;;  %s2942_s11 = inlined_call_operand.vmem [shape: f32[1,384], index: 11, kind: input, shape index: {}]   ;;  %s2943_s12 = inlined_call_operand.vmem [shape: f32[1,384], index: 12, kind: input, shape index: {}]   ;;  %s2944_s13 = inlined_call_operand.vmem [shape: f32[12,128], index: 13, kind: output, shape index: {}]  }
   0x1   :  { %v18_v0 = vstv %s2937_s6 }
   0x2   :  { %19 = vst [vmem:[#allocation4] sm:$0x1] %v18_v0 }
   0x3   :  { %20 = vsyncpa [#allocation6], 0  ;;  %s30_s29 = sshll.u32 %s2932_s1, 4  ;;  %s31_s29 = int_to_ptr.vmem [resolvable:$true] %s30_s29 }
   0x4   :  { %21 = vsyncpa [#allocation8], 0  ;;  %s40_s15 = sshll.u32 %s2933_s2, 4  ;;  %s1935_s16 = scalar_lea.vmem %s31_s29, 16  ;;  %s41_s15 = int_to_ptr.vmem [resolvable:$true] %s40_s15 }
   0x5   :  { %p1936_p0 = scmp.ne.s32.totalorder %s31_s29, %s1935_s16  ;;  %p1940_p1 = scmp.lt.s32.totalorder %s31_s29, %s31_s29 }
   0x6   :  { %p1941_p2 = scmp.lt.s32.totalorder %s1935_s16, %s1935_s16 }
   0x8   :  { %p1942_p3 = por %p1941_p2, %p1940_p1 }
   0xa   :  { %p1943_p4 = pnand %p1942_p3, %p1936_p0 }
   0xc   :  { %1946 = shalt.err (!%p1943_p4)
}
   0xd   :  { %s1963_s6 = smov [#allocation5]   ;;  %s1947_s17 = scalar_lea.vmem %s41_s15, 16 }
   0xe   :  { %33 = dma.vmem_to_smem %s31_s29, 16, %s1963_s6, [#allocation6]  }
   0xf   :  { %p1948_p5 = scmp.ne.s32.totalorder %s41_s15, %s1947_s17  ;;  %p1952_p6 = scmp.lt.s32.totalorder %s41_s15, %s41_s15 }
  0x10   :  { %p1953_p7 = scmp.lt.s32.totalorder %s1947_s17, %s1947_s17 }
  0x12   :  { %p1954_p8 = por %p1953_p7, %p1952_p6 }
  0x14   :  { %p1955_p9 = pnand %p1954_p8, %p1948_p5 }
  0x16   :  { %1958 = shalt.err (!%p1955_p9)
}
  0x17   :  { %s1964_s1 = smov [#allocation7]  }
  0x18   :  { %43 = dma.vmem_to_smem %s41_s15, 16, %s1964_s1, [#allocation8]  }
  0x19   :  { %1959 = dma.done.wait [#allocation6], 16  }
  0x1a   :  { %1960 = vsyncadd [#allocation6], 4294967280 }
  0x1b   :  { %1961 = dma.done.wait [#allocation8], 16  }
  0x1c   :  { %1962 = vsyncadd [#allocation8], 4294967280 }
  0x1d   :  { %70 = sfence }
  0x1e   :  { %v300_v1 = vld [vmem:[%s2936_s5 + $0x78] sm:$0xff]  ;;  %v1965_v3 = vmov 0.0   ;;  %v299_v4 = vld [vmem:[%s2936_s5 + $0x70] sm:$0xff]  ;;  %s2061_s25 = sld [smem:[#allocation5]]  ;;  %v298_v6 = vld [vmem:[%s2936_s5 + $0x68] sm:$0xff]  ;;  %vm1966_vm0 = vmmov 0  }
  0x1f   :  { %v284_v2 = vld [vmem:[%s2935_s4 + $0x78] sm:$0xff]  ;;  %1668 = vmatprep.subr.mxu0 %v1965_v3  ;;  %1709 = vmatprep.subr.mxu1 %v1965_v3  ;;  %v283_v5 = vld [vmem:[%s2935_s4 + $0x70] sm:$0xff]  ;;  %s2063_s26 = sld [smem:[#allocation5 + $0x1]]  ;;  %v282_v7 = vld [vmem:[%s2935_s4 + $0x68] sm:$0xff]  ;;  %vm613_vm4 = vcmask 97280   ;;  %vm678_vm5 = vcmask 195584  }
  0x20   :  { %1669 = vmatpush3.msra.mxu0 %v300_v1  ;;  %1710 = vmatpush3.msra.mxu1 %v284_v2  ;;  %s2073_s14 = sld [smem:[#allocation5 + $0x2]]  ;;  %v297_v8 = vld [vmem:[%s2936_s5 + $0x60] sm:$0xff]  ;;  %v296_v10 = vld [vmem:[%s2936_s5 + $0x58] sm:$0xff]  ;;  %v295_v12 = vld [vmem:[%s2936_s5 + $0x50] sm:$0xff]  ;;  %vm769_vm6 = vcmask 1043456  }
  0x21   :  { %1670 = vmatprep.subr.mxu0 %v1965_v3  ;;  %1711 = vmatprep.subr.mxu1 %v1965_v3  ;;  %s2075_s15 = sld [smem:[#allocation5 + $0x3]]  ;;  %v281_v9 = vld [vmem:[%s2935_s4 + $0x60] sm:$0xff]  ;;  %v280_v11 = vld [vmem:[%s2935_s4 + $0x58] sm:$0xff]  ;;  %v279_v13 = vld [vmem:[%s2935_s4 + $0x50] sm:$0xff] }
  0x22   :  { %1671 = vmatpush3.msra.mxu0 %v299_v4  ;;  %1712 = vmatpush3.msra.mxu1 %v283_v5  ;;  %s2085_s2 = sld [smem:[#allocation5 + $0x4]]  ;;  %v294_v14 = vld [vmem:[%s2936_s5 + $0x48] sm:$0xff]  ;;  %v293_v21 = vld [vmem:[%s2936_s5 + $0x40] sm:$0xff]  ;;  %v292_v25 = vld [vmem:[%s2936_s5 + $0x38] sm:$0xff] }
  0x23   :  { %1672 = vmatprep.subr.mxu0 %v1965_v3  ;;  %1713 = vmatprep.subr.mxu1 %v1965_v3  ;;  %s2087_s18 = sld [smem:[#allocation5 + $0x5]]  ;;  %v278_v15 = vld [vmem:[%s2935_s4 + $0x48] sm:$0xff]  ;;  %v277_v22 = vld [vmem:[%s2935_s4 + $0x40] sm:$0xff]  ;;  %v276_v26 = vld [vmem:[%s2935_s4 + $0x38] sm:$0xff] }
  0x24   :  { %1673 = vmatpush3.msra.mxu0 %v298_v6  ;;  %1714 = vmatpush3.msra.mxu1 %v282_v7  ;;  %s72_s27 = scalar_lea.vmem %s2931_s0, %s2061_s25  ;;  %s2101_s28 = sld [smem:[#allocation5 + $0x6]]  ;;  %v291_v29 = vld [vmem:[%s2936_s5 + $0x30] sm:$0xff]  ;;  %v290_v32 = vld [vmem:[%s2936_s5 + $0x28] sm:$0xff]  ;;  %v289_v36 = vld [vmem:[%s2936_s5 + $0x20] sm:$0xff] }
  0x25   :  { %1674 = vmatprep.subr.mxu0 %v1965_v3  ;;  %1715 = vmatprep.subr.mxu1 %v1965_v3  ;;  %s76_s16 = scalar_lea.vmem %s2931_s0, %s2063_s26  ;;  %s2107_s6 = sld [smem:[#allocation5 + $0x7]]  ;;  %v73_v16 = vld [vmem:[%s72_s27] sm:$0x1]  ;;  %v275_v30 = vld [vmem:[%s2935_s4 + $0x30] sm:$0xff]  ;;  %v274_v33 = vld [vmem:[%s2935_s4 + $0x28] sm:$0xff] }
  0x26   :  { %1675 = vmatpush3.msra.mxu0 %v297_v8  ;;  %1716 = vmatpush3.msra.mxu1 %v281_v9  ;;  %s80_s22 = scalar_lea.vmem %s2931_s0, %s2073_s14  ;;  %s2121_s26 = sld [smem:[#allocation7]]  ;;  %74 = vst [vmem:[#allocation2] sm:$0x1] %v73_v16  ;;  %v77_v17 = vld [vmem:[%s76_s16] sm:$0x1]  ;;  %v288_v40 = vld [vmem:[%s2936_s5 + $0x18] sm:$0xff] }
  0x27   :  { %1676 = vmatprep.subr.mxu0 %v1965_v3  ;;  %1717 = vmatprep.subr.mxu1 %v1965_v3  ;;  %s84_s25 = scalar_lea.vmem %s2931_s0, %s2075_s15  ;;  %s2133_s19 = sld [smem:[#allocation7 + $0x1]]  ;;  %v81_v18 = vld [vmem:[%s80_s22] sm:$0x1]  ;;  %78 = vst [vmem:[#allocation2 + $0x1] sm:$0x1] %v77_v17  ;;  %v272_v41 = vld [vmem:[%s2935_s4 + $0x18] sm:$0xff] }
  0x28   :  { %1677 = vmatpush3.msra.mxu0 %v296_v10  ;;  %1718 = vmatpush3.msra.mxu1 %v280_v11  ;;  %v85_v19 = vld [vmem:[%s84_s25] sm:$0x1]  ;;  %s88_s27 = scalar_lea.vmem %s2931_s0, %s2085_s2  ;;  %82 = vst [vmem:[#allocation2 + $0x2] sm:$0x1] %v81_v18  ;;  %s2145_s24 = sld [smem:[#allocation7 + $0x2]]  ;;  %v287_v44 = vld [vmem:[%s2936_s5 + $0x10] sm:$0xff] }
  0x29   :  { %1678 = vmatprep.subr.mxu0 %v1965_v3  ;;  %1719 = vmatprep.subr.mxu1 %v1965_v3  ;;  %86 = vst [vmem:[#allocation2 + $0x3] sm:$0x1] %v85_v19  ;;  %v89_v20 = vld [vmem:[%s88_s27] sm:$0x1]  ;;  %s92_s23 = scalar_lea.vmem %s2931_s0, %s2087_s18  ;;  %s2159_s1 = sld [smem:[#allocation7 + $0x3]]  ;;  %v271_v45 = vld [vmem:[%s2935_s4 + $0x10] sm:$0xff] }
  0x2a   :  { %1679 = vmatpush3.msra.mxu0 %v295_v12  ;;  %1720 = vmatpush3.msra.mxu1 %v279_v13  ;;  %90 = vst [vmem:[#allocation2 + $0x4] sm:$0x1] %v89_v20  ;;  %v93_v23 = vld [vmem:[%s92_s23] sm:$0x1]  ;;  %s96_s18 = scalar_lea.vmem %s2931_s0, %s2101_s28  ;;  %s2165_s27 = sld [smem:[#allocation7 + $0x4]]  ;;  %v286_v48 = vld [vmem:[%s2936_s5 + $0x8] sm:$0xff] }
  0x2b   :  { %1680 = vmatprep.subr.mxu0 %v1965_v3  ;;  %1721 = vmatprep.subr.mxu1 %v1965_v3  ;;  %94 = vst [vmem:[#allocation2 + $0x5] sm:$0x1] %v93_v23  ;;  %v97_v24 = vld [vmem:[%s96_s18] sm:$0x1]  ;;  %s100_s20 = scalar_lea.vmem %s2931_s0, %s2107_s6  ;;  %s2179_s2 = sld [smem:[#allocation7 + $0x5]]  ;;  %v270_v49 = vld [vmem:[%s2935_s4 + $0x8] sm:$0xff] }
  0x2c   :  { %1681 = vmatpush3.msra.mxu0 %v294_v14  ;;  %1722 = vmatpush3.msra.mxu1 %v278_v15  ;;  %98 = vst [vmem:[#allocation2 + $0x6] sm:$0x1] %v97_v24  ;;  %v101_v27 = vld [vmem:[%s100_s20] sm:$0x1]  ;;  %s168_s6 = scalar_lea.vmem %s2931_s0, %s2121_s26  ;;  %s2185_s18 = sld [smem:[#allocation7 + $0x6]] }
  0x2d   :  { %1682 = vmatprep.subr.mxu0 %v1965_v3  ;;  %1723 = vmatprep.subr.mxu1 %v1965_v3  ;;  %102 = vst [vmem:[#allocation2 + $0x7] sm:$0x1] %v101_v27  ;;  %v169_v28 = vld [vmem:[%s168_s6] sm:$0x1]  ;;  %s172_s17 = scalar_lea.vmem %s2931_s0, %s2133_s19  ;;  %s2195_s15 = sld [smem:[#allocation7 + $0x7]] }
  0x2e   :  { %1683 = vmatpush3.msra.mxu0 %v293_v21  ;;  %1724 = vmatpush3.msra.mxu1 %v277_v22  ;;  %170 = vst [vmem:[#allocation3] sm:$0x1] %v169_v28  ;;  %v173_v31 = vld [vmem:[%s172_s17] sm:$0x1]  ;;  %s176_s28 = scalar_lea.vmem %s2931_s0, %s2145_s24  ;;  %s2201_s23 = sld [smem:[#allocation5 + $0x8]] }
  0x2f   :  { %1684 = vmatprep.subr.mxu0 %v1965_v3  ;;  %1725 = vmatprep.subr.mxu1 %v1965_v3  ;;  %174 = vst [vmem:[#allocation3 + $0x1] sm:$0x1] %v173_v31  ;;  %v177_v34 = vld [vmem:[%s176_s28] sm:$0x1]  ;;  %s180_s24 = scalar_lea.vmem %s2931_s0, %s2159_s1  ;;  %s2215_s25 = sld [smem:[#allocation5 + $0x9]] }
  0x30   :  { %1685 = vmatpush3.msra.mxu0 %v292_v25  ;;  %1726 = vmatpush3.msra.mxu1 %v276_v26  ;;  %178 = vst [vmem:[#allocation3 + $0x2] sm:$0x1] %v177_v34  ;;  %v181_v35 = vld [vmem:[%s180_s24] sm:$0x1]  ;;  %s184_s20 = scalar_lea.vmem %s2931_s0, %s2165_s27  ;;  %s2221_s19 = sld [smem:[#allocation5 + $0xa]]  ;;  %v1967_v25 = vmov 0  }
  0x31   :  { %1686 = vmatprep.subr.mxu0 %v1965_v3  ;;  %1727 = vmatprep.subr.mxu1 %v1965_v3  ;;  %v273_v37 = vld [vmem:[%s2935_s4 + $0x20] sm:$0xff]  ;;  %182 = vst [vmem:[#allocation3 + $0x3] sm:$0x1] %v181_v35  ;;  %s188_s27 = scalar_lea.vmem %s2931_s0, %s2179_s2  ;;  %s2235_s29 = sld [smem:[#allocation5 + $0xb]]  ;;  %v1544_v27 = vld [vmem:[#allocation4] ss:$0 sm:$0xff] }
  0x32   :  { %1687 = vmatpush3.msra.mxu0 %v291_v29  ;;  %1728 = vmatpush3.msra.mxu1 %v275_v30  ;;  %v185_v38 = vld [vmem:[%s184_s20] sm:$0x1]  ;;  %s192_s24 = scalar_lea.vmem %s2931_s0, %s2185_s18  ;;  %s2241_s14 = sld [smem:[#allocation5 + $0xc]] }
  0x33   :  { %1688 = vmatprep.subr.mxu0 %v1965_v3  ;;  %1729 = vmatprep.subr.mxu1 %v1965_v3  ;;  %186 = vst [vmem:[#allocation3 + $0x4] sm:$0x1] %v185_v38  ;;  %v189_v39 = vld [vmem:[%s188_s27] sm:$0x1]  ;;  %s196_s18 = scalar_lea.vmem %s2931_s0, %s2195_s15  ;;  %s2255_s16 = sld [smem:[#allocation5 + $0xd]] }
  0x34   :  { %1689 = vmatpush3.msra.mxu0 %v290_v32  ;;  %1730 = vmatpush3.msra.mxu1 %v274_v33  ;;  %190 = vst [vmem:[#allocation3 + $0x5] sm:$0x1] %v189_v39  ;;  %v193_v42 = vld [vmem:[%s192_s24] sm:$0x1]  ;;  %s104_s27 = scalar_lea.vmem %s2931_s0, %s2201_s23  ;;  %s2261_s30 = sld [smem:[#allocation5 + $0xe]] }
  0x35   :  { %1690 = vmatprep.subr.mxu0 %v1965_v3  ;;  %1731 = vmatprep.subr.mxu1 %v1965_v3  ;;  %194 = vst [vmem:[#allocation3 + $0x6] sm:$0x1] %v193_v42  ;;  %v197_v43 = vld [vmem:[%s196_s18] sm:$0x1]  ;;  %s108_s23 = scalar_lea.vmem %s2931_s0, %s2215_s25  ;;  %s2275_s21 = sld [smem:[#allocation5 + $0xf]] }
  0x36   :  { %1691 = vmatpush3.msra.mxu0 %v289_v36  ;;  %1732 = vmatpush3.msra.mxu1 %v273_v37  ;;  %198 = vst [vmem:[#allocation3 + $0x7] sm:$0x1] %v197_v43  ;;  %v105_v46 = vld [vmem:[%s104_s27] sm:$0x1]  ;;  %s112_s18 = scalar_lea.vmem %s2931_s0, %s2221_s19  ;;  %s2281_s22 = sld [smem:[#allocation7 + $0x8]] }
  0x37   :  { %1692 = vmatprep.subr.mxu0 %v1965_v3  ;;  %1733 = vmatprep.subr.mxu1 %v1965_v3  ;;  %106 = vst [vmem:[#allocation2 + $0x8] sm:$0x1] %v105_v46  ;;  %v109_v47 = vld [vmem:[%s108_s23] sm:$0x1]  ;;  %s116_s19 = scalar_lea.vmem %s2931_s0, %s2235_s29  ;;  %s2295_s26 = sld [smem:[#allocation7 + $0x9]] }
  0x38   :  { %1693 = vmatpush3.msra.mxu0 %v288_v40  ;;  %1734 = vmatpush3.msra.mxu1 %v272_v41  ;;  %110 = vst [vmem:[#allocation2 + $0x9] sm:$0x1] %v109_v47  ;;  %v113_v50 = vld [vmem:[%s112_s18] sm:$0x1]  ;;  %s120_s23 = scalar_lea.vmem %s2931_s0, %s2241_s14  ;;  %s2301_s28 = sld [smem:[#allocation7 + $0xa]] }
  0x39   :  { %1694 = vmatprep.subr.mxu0 %v1965_v3  ;;  %1735 = vmatprep.subr.mxu1 %v1965_v3  ;;  %114 = vst [vmem:[#allocation2 + $0xa] sm:$0x1] %v113_v50  ;;  %v117_v51 = vld [vmem:[%s116_s19] sm:$0x1]  ;;  %s124_s27 = scalar_lea.vmem %s2931_s0, %s2255_s16  ;;  %s2312_s25 = sld [smem:[#allocation7 + $0xb]] }
  0x3a   :  { %1695 = vmatpush3.msra.mxu0 %v287_v44  ;;  %1736 = vmatpush3.msra.mxu1 %v271_v45  ;;  %v285_v52 = vld [vmem:[%s2936_s5] sm:$0xff]  ;;  %118 = vst [vmem:[#allocation2 + $0xb] sm:$0x1] %v117_v51  ;;  %s128_s5 = scalar_lea.vmem %s2931_s0, %s2261_s30  ;;  %s2321_s19 = sld [smem:[#allocation7 + $0xc]] }
  0x3b   :  { %1696 = vmatprep.subr.mxu0 %v1965_v3  ;;  %1737 = vmatprep.subr.mxu1 %v1965_v3  ;;  %v121_v53 = vld [vmem:[%s120_s23] sm:$0x1]  ;;  %s132_s20 = scalar_lea.vmem %s2931_s0, %s2275_s21  ;;  %s2331_s2 = sld [smem:[#allocation7 + $0xd]] }
  0x3c   :  { %1697 = vmatpush3.msra.mxu0 %v286_v48  ;;  %1738 = vmatpush3.msra.mxu1 %v270_v49  ;;  %v269_v54 = vld [vmem:[%s2935_s4] sm:$0xff]  ;;  %122 = vst [vmem:[#allocation2 + $0xc] sm:$0x1] %v121_v53  ;;  %s200_s1 = scalar_lea.vmem %s2931_s0, %s2281_s22  ;;  %s2339_s18 = sld [smem:[#allocation7 + $0xe]] }
  0x3d   :  { %v125_v55 = vld [vmem:[%s124_s27] sm:$0x1]  ;;  %1698 = vmatprep.subr.mxu0 %v1965_v3  ;;  %1739 = vmatprep.subr.mxu1 %v1965_v3  ;;  %v266_v58 = vld [vmem:[#allocation3] sm:$0xff]  ;;  %s204_s6 = scalar_lea.vmem %s2931_s0, %s2295_s26  ;;  %s2347_s27 = sld [smem:[#allocation7 + $0xf]] }
  0x3e   :  { %v2325_v56 = vld [vmem:[#allocation2] sm:$0xff]  ;;  %126 = vst [vmem:[#allocation2 + $0xd] sm:$0x1] %v125_v55  ;;  %1699 = vmatpush3.msra.mxu0 %v285_v52  ;;  %1700 = vmatprep.mubr.msk.f32.mxu0 %vm1966_vm0, %v1965_v3  ;;  %s208_s17 = scalar_lea.vmem %s2931_s0, %s2301_s28  ;;  %s2354_s24 = sld [smem:[#allocation5 + $0x10]]  ;;  %v2466_v52 = vld [vmem:[%s2934_s3 + $0x8] sm:$0xff] }
  0x3f   :  { %v129_v57 = vld [vmem:[%s128_s5] sm:$0x1]  ;;  %1740 = vmatpush3.msra.mxu1 %v269_v54  ;;  %1741 = vmatprep.mubr.msk.f32.mxu1 %vm1966_vm0, %v1965_v3  ;;  %s212_s5 = scalar_lea.vmem %s2931_s0, %s2312_s25  ;;  %s2364_s16 = sld [smem:[#allocation5 + $0x11]]  ;;  %v605_v54 = vsub.f32 1.0, %v2466_v52 }
  0x40   :  { %130 = vst [vmem:[#allocation2 + $0xe] sm:$0x1] %v129_v57  ;;  %v133_v59 = vld [vmem:[%s132_s20] sm:$0x1]  ;;  %1701 = vmatmul.mubr.f32.vlgmr.msra.gmra.mxu0 %v2325_v56  ;;  %1742 = vmatmul.mubr.f32.vlgmr.msra.gmra.mxu1 %v266_v58  ;;  %s216_s20 = scalar_lea.vmem %s2931_s0, %s2321_s19  ;;  %s2370_s30 = sld [smem:[#allocation5 + $0x12]]  ;;  %v2478_v58 = vld [vmem:[%s2934_s3 + $0x10] sm:$0xff] }
  0x41   :  { %134 = vst [vmem:[#allocation2 + $0xf] sm:$0x1] %v133_v59  ;;  %v201_v60 = vld [vmem:[%s200_s1] sm:$0x1]  ;;  %1703 = vmatprep.mubr.msk.f32.mxu0 %vm1966_vm0, %v1965_v3  ;;  %1744 = vmatprep.mubr.msk.f32.mxu1 %vm1966_vm0, %v1965_v3  ;;  %s220_s25 = scalar_lea.vmem %s2931_s0, %s2331_s2  ;;  %s2377_s21 = sld [smem:[#allocation5 + $0x13]] }
  0x42   :  { %202 = vst [vmem:[#allocation3 + $0x8] sm:$0x1] %v201_v60  ;;  %v205_v61 = vld [vmem:[%s204_s6] sm:$0x1]  ;;  %1750 = vmatprep.subr.mxu0 %v1965_v3  ;;  %s224_s19 = scalar_lea.vmem %s2931_s0, %s2339_s18  ;;  %s2383_s22 = sld [smem:[#allocation5 + $0x14]]  ;;  %1897 = vset.pattern.permute.xlu0 %v1967_v25 }
  0x43   :  { %206 = vst [vmem:[#allocation3 + $0x9] sm:$0x1] %v205_v61  ;;  %v209_v62 = vld [vmem:[%s208_s17] sm:$0x1]  ;;  %s228_s26 = scalar_lea.vmem %s2931_s0, %s2347_s27  ;;  %s2389_s15 = sld [smem:[#allocation5 + $0x15]]  ;;  %1898 = vset.pattern.permute.xlu1 %v1967_v25 }
  0x44   :  { %210 = vst [vmem:[#allocation3 + $0xa] sm:$0x1] %v209_v62  ;;  %v213_v63 = vld [vmem:[%s212_s5] sm:$0x1]  ;;  %s136_s18 = scalar_lea.vmem %s2931_s0, %s2354_s24  ;;  %s1519_s28 = sld [smem:[#allocation5 + $0x16]] }
  0x45   :  { %214 = vst [vmem:[#allocation3 + $0xb] sm:$0x1] %v213_v63  ;;  %v217_v0 = vld [vmem:[%s216_s20] sm:$0x1]  ;;  %s140_s27 = scalar_lea.vmem %s2931_s0, %s2364_s16  ;;  %s1520_s23 = sld [smem:[#allocation5 + $0x17]]  ;;  %v606_v63 = vsub.f32 1.0, %v2478_v58 }
  0x46   :  { %218 = vst [vmem:[#allocation3 + $0xc] sm:$0x1] %v217_v0  ;;  %v221_v1 = vld [vmem:[%s220_s25] sm:$0x1]  ;;  %s144_s24 = scalar_lea.vmem %s2931_s0, %s2370_s30  ;;  %s1536_s29 = sld [smem:[#allocation7 + $0x10]] }
  0x47   :  { %222 = vst [vmem:[#allocation3 + $0xd] sm:$0x1] %v221_v1  ;;  %v225_v2 = vld [vmem:[%s224_s19] sm:$0x1]  ;;  %s148_s14 = scalar_lea.vmem %s2931_s0, %s2377_s21  ;;  %s2412_s17 = sld [smem:[#allocation7 + $0x11]] }
  0x48   :  { %v2391_v4 = vld [vmem:[#allocation2 + $0x8] sm:$0xff]  ;;  %226 = vst [vmem:[#allocation3 + $0xe] sm:$0x1] %v225_v2  ;;  %v229_v5 = vld [vmem:[%s228_s26] sm:$0x1]  ;;  %s152_s2 = scalar_lea.vmem %s2931_s0, %s2383_s22  ;;  %s1538_s5 = sld [smem:[#allocation7 + $0x12]] }
  0x49   :  { %1704 = vmatmul.mubr.f32.gmra.mxu0 %v2391_v4  ;;  %230 = vst [vmem:[#allocation3 + $0xf] sm:$0x1] %v229_v5  ;;  %v137_v6 = vld [vmem:[%s136_s18] sm:$0x1]  ;;  %s156_s4 = scalar_lea.vmem %s2931_s0, %s2389_s15  ;;  %s1539_s20 = sld [smem:[#allocation7 + $0x13]] }
  0x4a   :  { %1706 = vmatprep.mubr.msk.f32.mxu0 %vm1966_vm0, %v1965_v3  ;;  %138 = vst [vmem:[#allocation2 + $0x10] sm:$0x1] %v137_v6  ;;  %v141_v7 = vld [vmem:[%s140_s27] sm:$0x1]  ;;  %s160_s1 = scalar_lea.vmem %s2931_s0, %s1519_s28  ;;  %s1540_s25 = sld [smem:[#allocation7 + $0x14]] }
  0x4b   :  { %142 = vst [vmem:[#allocation2 + $0x11] sm:$0x1] %v141_v7  ;;  %v145_v8 = vld [vmem:[%s144_s24] sm:$0x1]  ;;  %s164_s6 = scalar_lea.vmem %s2931_s0, %s1520_s23  ;;  %s1541_s19 = sld [smem:[#allocation7 + $0x15]] }
  0x4c   :  { %146 = vst [vmem:[#allocation2 + $0x12] sm:$0x1] %v145_v8  ;;  %v149_v9 = vld [vmem:[%s148_s14] sm:$0x1]  ;;  %s232_s16 = scalar_lea.vmem %s2931_s0, %s1536_s29  ;;  %s1542_s26 = sld [smem:[#allocation7 + $0x16]] }
  0x4d   :  { %150 = vst [vmem:[#allocation2 + $0x13] sm:$0x1] %v149_v9  ;;  %v153_v10 = vld [vmem:[%s152_s2] sm:$0x1]  ;;  %s236_s18 = scalar_lea.vmem %s2931_s0, %s2412_s17  ;;  %s1543_s30 = sld [smem:[#allocation7 + $0x17]] }
  0x4e   :  { %154 = vst [vmem:[#allocation2 + $0x14] sm:$0x1] %v153_v10  ;;  %v157_v11 = vld [vmem:[%s156_s4] sm:$0x1]  ;;  %s240_s21 = scalar_lea.vmem %s2931_s0, %s1538_s5  ;;  %v608_v59 = vmul.f32 -1e+30, %v605_v54 }
  0x4f   :  { %158 = vst [vmem:[#allocation2 + $0x15] sm:$0x1] %v157_v11  ;;  %v161_v12 = vld [vmem:[%s160_s1] sm:$0x1]  ;;  %s244_s1 = scalar_lea.vmem %s2931_s0, %s1539_s20  ;;  %v609_v2 = vmul.f32 -1e+30, %v606_v63 }
  0x50   :  { %v267_v13 = vld [vmem:[#allocation3 + $0x8] sm:$0xff]  ;;  %162 = vst [vmem:[#allocation2 + $0x16] sm:$0x1] %v161_v12  ;;  %s248_s22 = scalar_lea.vmem %s2931_s0, %s1540_s25  ;;  %v483_v54 = vld [vmem:[%s2938_s7 + $0x18] sm:$0xff] }
  0x51   :  { %v165_v14 = vld [vmem:[%s164_s6] sm:$0x1]  ;;  %1745 = vmatmul.mubr.f32.gmra.mxu1 %v267_v13  ;;  %s252_s14 = scalar_lea.vmem %s2931_s0, %s1541_s19 }
  0x52   :  { %166 = vst [vmem:[#allocation2 + $0x17] sm:$0x1] %v165_v14  ;;  %v233_v15 = vld [vmem:[%s232_s16] sm:$0x1]  ;;  %1747 = vmatprep.mubr.msk.f32.mxu1 %vm1966_vm0, %v1965_v3  ;;  %s256_s28 = scalar_lea.vmem %s2931_s0, %s1542_s26 }
  0x53   :  { %234 = vst [vmem:[#allocation3 + $0x10] sm:$0x1] %v233_v15  ;;  %v237_v16 = vld [vmem:[%s236_s18] sm:$0x1]  ;;  %s260_s18 = scalar_lea.vmem %s2931_s0, %s1543_s30 }
  0x54   :  { %238 = vst [vmem:[#allocation3 + $0x11] sm:$0x1] %v237_v16  ;;  %v241_v17 = vld [vmem:[%s240_s21] sm:$0x1] }
  0x55   :  { %242 = vst [vmem:[#allocation3 + $0x12] sm:$0x1] %v241_v17  ;;  %v245_v18 = vld [vmem:[%s244_s1] sm:$0x1] }
  0x56   :  { %246 = vst [vmem:[#allocation3 + $0x13] sm:$0x1] %v245_v18  ;;  %v249_v19 = vld [vmem:[%s248_s22] sm:$0x1] }
  0x57   :  { %250 = vst [vmem:[#allocation3 + $0x14] sm:$0x1] %v249_v19  ;;  %v253_v20 = vld [vmem:[%s252_s14] sm:$0x1] }
  0x58   :  { %254 = vst [vmem:[#allocation3 + $0x15] sm:$0x1] %v253_v20  ;;  %v257_v21 = vld [vmem:[%s256_s28] sm:$0x1] }
  0x59   :  { %v2455_v22 = vld [vmem:[#allocation2 + $0x10] sm:$0xff]  ;;  %258 = vst [vmem:[#allocation3 + $0x16] sm:$0x1] %v257_v21  ;;  %v261_v23 = vld [vmem:[%s260_s18] sm:$0x1] }
  0x5a   :  { %1707 = vmatmul.mubr.f32.gmra.mxu0 %v2455_v22  ;;  %262 = vst [vmem:[#allocation3 + $0x17] sm:$0x1] %v261_v23  ;;  %v2471_v53 = vld [vmem:[%s2934_s3] sm:$0xff] }
  0x5b   :  { %1782 = vmatprep.mubr.msk.f32.mxu0 %vm1966_vm0, %v1965_v3  ;;  %v604_v57 = vsub.f32 1.0, %v2471_v53 }
  0x5d   :  { %v607_v61 = vmul.f32 -1e+30, %v604_v57  ;;  %v481_v57 = vld [vmem:[%s2938_s7 + $0x8] sm:$0xff] }
  0x61   :  { %v268_v24 = vld [vmem:[#allocation3 + $0x10] sm:$0xff] }
  0x62   :  { %1748 = vmatmul.mubr.f32.gmra.mxu1 %v268_v24 }
 0x100   :  { %v368_v26 = vpop.f32.mrf.mxu0  ;;  %v448_v28 = vpop.f32.mrf.mxu1 }
 0x101   :  { %v449_v29 = vadd.f32 %v448_v28, %v368_v26 }
 0x102   :  { %v1702_v30 = vpop.f32.mrf.mxu0  ;;  %v1743_v31 = vpop.f32.mrf.mxu1 }
 0x103   :  { %v468_v32 = vadd.f32 %v1544_v27, %v449_v29 }
 0x105   :  { %vm471_vm1 = vcmp.gt.f32.partialorder %v468_v32, 0.0  ;;  %v474_v33 = vmul.f32 0.01, %v468_v32 }
 0x107   :  { %v2460_v35 = vsel %vm471_vm1, %v468_v32, %v474_v33 }
 0x108   :  { %588 = vperm.xlu0 %1897, %v2460_v35  }
 0x109   :  { %v373_v34 = vpop.f32.mrf.mxu0 }
 0x10b   :  { %v1705_v36 = vpop.f32.mrf.mxu0 }
 0x111   :  { %v453_v37 = vpop.f32.mrf.mxu1 }
 0x112   :  { %v454_v38 = vadd.f32 %v453_v37, %v373_v34 }
 0x113   :  { %v1746_v39 = vpop.f32.mrf.mxu1 }
 0x114   :  { %v469_v40 = vadd.f32 %v1544_v27, %v454_v38 }
 0x116   :  { %vm472_vm2 = vcmp.gt.f32.partialorder %v469_v40, 0.0  ;;  %v475_v41 = vmul.f32 0.01, %v469_v40 }
 0x118   :  { %v478_v42 = vsel %vm472_vm2, %v469_v40, %v475_v41  ;;  %v495_v40 = vld [vmem:[%s2938_s7 + $0x78] sm:$0xff]  ;;  %v494_v41 = vld [vmem:[%s2938_s7 + $0x70] sm:$0xff] }
 0x119   :  { %593 = vperm.xlu0 %1897, %v478_v42   ;;  %1751 = vmatpush3.msra.mxu0 %v495_v40  ;;  %v992_v40 = vld [vmem:[%s2940_s9 + $0xe0] sm:$0xff] }
 0x11a   :  { %v378_v43 = vpop.f32.mrf.mxu0  ;;  %1752 = vmatprep.subr.mxu0 %v1965_v3 }
 0x11b   :  { %1753 = vmatpush3.msra.mxu0 %v494_v41  ;;  %v996_v41 = vld [vmem:[%s2940_s9 + $0x100] sm:$0xff] }
 0x11c   :  { %v1708_v44 = vpop.f32.mrf.mxu0  ;;  %1754 = vmatprep.subr.mxu0 %v1965_v3 }
 0x11d   :  { %v491_v44 = vld [vmem:[%s2938_s7 + $0x58] sm:$0xff] }
 0x122   :  { %v458_v45 = vpop.f32.mrf.mxu1 }
 0x123   :  { %v459_v46 = vadd.f32 %v458_v45, %v378_v43  ;;  %v492_v43 = vld [vmem:[%s2938_s7 + $0x60] sm:$0xff]  ;;  %v490_v45 = vld [vmem:[%s2938_s7 + $0x50] sm:$0xff] }
 0x124   :  { %v1749_v47 = vpop.f32.mrf.mxu1 }
 0x125   :  { %v470_v48 = vadd.f32 %v1544_v27, %v459_v46  ;;  %v489_v46 = vld [vmem:[%s2938_s7 + $0x48] sm:$0xff]  ;;  %v488_v47 = vld [vmem:[%s2938_s7 + $0x40] sm:$0xff] }
 0x127   :  { %vm473_vm3 = vcmp.gt.f32.partialorder %v470_v48, 0.0  ;;  %v476_v49 = vmul.f32 0.01, %v470_v48 }
 0x129   :  { %v479_v50 = vsel %vm473_vm3, %v470_v48, %v476_v49  ;;  %v487_v48 = vld [vmem:[%s2938_s7 + $0x38] sm:$0xff]  ;;  %v486_v49 = vld [vmem:[%s2938_s7 + $0x30] sm:$0xff] }
 0x12a   :  { %598 = vperm.xlu1 %1898, %v479_v50  }
 0x183   :  { %v589_v51 = vpop.permute.xlu0 %588 }
 0x184   :  { %v601_v62 = vmul.f32 %v589_v51, %v2471_v53  ;;  %v484_v51 = vld [vmem:[%s2938_s7 + $0x20] sm:$0xff] }
 0x186   :  { %v610_v1 = vadd.f32 %v607_v61, %v601_v62 }
 0x188   :  { %v614_v8 = vsel %vm613_vm4, %v610_v1, -inf }
 0x194   :  { %v594_v55 = vpop.permute.xlu0 %593 }
 0x195   :  { %v602_v60 = vmul.f32 %v594_v55, %v2466_v52  ;;  %v482_v55 = vld [vmem:[%s2938_s7 + $0x10] sm:$0xff] }
 0x197   :  { %v611_v0 = vadd.f32 %v608_v59, %v602_v60  ;;  %v480_v59 = vld [vmem:[%s2938_s7] sm:$0xff] }
 0x199   :  { %v615_v6 = vsel %vm613_vm4, %v611_v0, -inf }
 0x19a   :  { %v617_v10 = vmax.f32 %v614_v8, %v615_v6 }
 0x1a5   :  { %v599_v5 = vpop.permute.xlu1 %598 }
 0x1a6   :  { %v603_v7 = vmul.f32 %v599_v5, %v2478_v58 }
 0x1a8   :  { %v612_v9 = vadd.f32 %v609_v2, %v603_v7 }
 0x1aa   :  { %v616_v11 = vsel %vm613_vm4, %v612_v9, -inf }
 0x1ab   :  { %v618_v12 = vmax.f32 %v617_v10, %v616_v11 }
 0x1ad   :  { %v619_v13 = vrot.slane %v618_v12, 4 }
 0x1af   :  { %v620_v14 = vmax.f32 %v618_v12, %v619_v13  ;;  %v1011_v12 = vld [vmem:[%s2940_s9 + $0x178] sm:$0xff]  ;;  %v1008_v13 = vld [vmem:[%s2940_s9 + $0x160] sm:$0xff] }
 0x1b1   :  { %v621_v15 = vrot.slane %v620_v14, 2 }
 0x1b3   :  { %v622_v16 = vmax.f32 %v620_v14, %v621_v15  ;;  %v1005_v14 = vld [vmem:[%s2940_s9 + $0x148] sm:$0xff]  ;;  %v1002_v15 = vld [vmem:[%s2940_s9 + $0x130] sm:$0xff] }
 0x1b5   :  { %v623_v17 = vrot.slane %v622_v16, 1 }
 0x1b7   :  { %v624_v18 = vmax.f32 %v622_v16, %v623_v17  ;;  %v999_v16 = vld [vmem:[%s2940_s9 + $0x118] sm:$0xff]  ;;  %v1545_v17 = vld [vmem:[%s2939_s8] ss:$0 sm:$0xff] }
 0x1b9   :  { %v627_v19 = vmul.f32 %v624_v18, %v2478_v58  ;;  %v626_v20 = vmul.f32 %v624_v18, %v2466_v52  ;;  %v625_v24 = vmul.f32 %v624_v18, %v2471_v53 }
 0x1bb   :  { %v634_v21 = vsel %vm613_vm4, %v627_v19, 0.0  ;;  %v631_v23 = vsel %vm613_vm4, %v626_v20, 0.0  ;;  %v628_v25 = vsel %vm613_vm4, %v625_v24, 0.0 }
 0x1bc   :  { %635 = vadd.xlane.f32.xlu1 %v634_v21  ;;  %632 = vadd.xlane.f32.xlu0 %v631_v23 }
 0x1c0   :  { %629 = vadd.xlane.f32.xlu0 %v628_v25 }
 0x1ef   :  { %646 = vxpose.xlu1.b32.start [1/3] (short) (narrow) %v2471_v53, 16 }
 0x1f3   :  { %647 = vxpose.xlu1.b32.cont [2/3] (short) (narrow) %v2466_v52, 16 }
 0x1f7   :  { %648 = vxpose.xlu1.b32.end [3/3] (short) (narrow) %v2478_v58, 16 }
 0x245   :  { %v636_v26 = vpop.xlane.xlu1 %635  ;;  %v633_v27 = vpop.xlane.xlu0 %632 }
 0x246   :  { %v639_v28 = vsub.f32 %v479_v50, %v636_v26  ;;  %v638_v29 = vsub.f32 %v478_v42, %v633_v27  ;;  %v493_v42 = vld [vmem:[%s2938_s7 + $0x68] sm:$0xff] }
 0x247   :  { %1755 = vmatpush3.msra.mxu0 %v493_v42  ;;  %v485_v50 = vld [vmem:[%s2938_s7 + $0x28] sm:$0xff]  ;;  %v991_v42 = vld [vmem:[%s2940_s9 + $0xd8] sm:$0xff] }
 0x248   :  { %v644_v30 = vmul.f32 1.442695, %v639_v28  ;;  %v642_v31 = vmul.f32 1.442695, %v638_v29  ;;  %1756 = vmatprep.subr.mxu0 %v1965_v3  ;;  %v1010_v28 = vld [vmem:[%s2940_s9 + $0x170] sm:$0xff]  ;;  %v1009_v29 = vld [vmem:[%s2940_s9 + $0x168] sm:$0xff] }
 0x249   :  { %v630_v32 = vpop.xlane.xlu0 %629  ;;  %1757 = vmatpush3.msra.mxu0 %v492_v43  ;;  %v989_v43 = vld [vmem:[%s2940_s9 + $0xc8] sm:$0xff] }
 0x24a   :  { %1899 = vpow2.f32 %v644_v30  ;;  %v637_v33 = vsub.f32 %v2460_v35, %v630_v32  ;;  %1758 = vmatprep.subr.mxu0 %v1965_v3  ;;  %v1007_v30 = vld [vmem:[%s2940_s9 + $0x158] sm:$0xff]  ;;  %v1004_v32 = vld [vmem:[%s2940_s9 + $0x140] sm:$0xff] }
 0x24b   :  { %1901 = vpow2.f32 %v642_v31  ;;  %1759 = vmatpush3.msra.mxu0 %v491_v44  ;;  %v1006_v31 = vld [vmem:[%s2940_s9 + $0x150] sm:$0xff]  ;;  %v993_v44 = vld [vmem:[%s2940_s9 + $0xe8] sm:$0xff] }
 0x24c   :  { %v640_v34 = vmul.f32 1.442695, %v637_v33  ;;  %1760 = vmatprep.subr.mxu0 %v1965_v3  ;;  %v1003_v33 = vld [vmem:[%s2940_s9 + $0x138] sm:$0xff] }
 0x24d   :  { %1761 = vmatpush3.msra.mxu0 %v490_v45  ;;  %v988_v45 = vld [vmem:[%s2940_s9 + $0xc0] sm:$0xff] }
 0x24e   :  { %1903 = vpow2.f32 %v640_v34  ;;  %1762 = vmatprep.subr.mxu0 %v1965_v3  ;;  %v1001_v34 = vld [vmem:[%s2940_s9 + $0x128] sm:$0xff] }
 0x24f   :  { %1763 = vmatpush3.msra.mxu0 %v489_v46  ;;  %v986_v46 = vld [vmem:[%s2940_s9 + $0xb0] sm:$0xff] }
 0x250   :  { %1764 = vmatprep.subr.mxu0 %v1965_v3 }
 0x251   :  { %1765 = vmatpush3.msra.mxu0 %v488_v47  ;;  %v990_v47 = vld [vmem:[%s2940_s9 + $0xd0] sm:$0xff] }
 0x252   :  { %1766 = vmatprep.subr.mxu0 %v1965_v3 }
 0x253   :  { %1767 = vmatpush3.msra.mxu0 %v487_v48  ;;  %v985_v48 = vld [vmem:[%s2940_s9 + $0xa8] sm:$0xff] }
 0x254   :  { %1768 = vmatprep.subr.mxu0 %v1965_v3 }
 0x255   :  { %1769 = vmatpush3.msra.mxu0 %v486_v49  ;;  %v983_v49 = vld [vmem:[%s2940_s9 + $0x98] sm:$0xff] }
 0x256   :  { %1770 = vmatprep.subr.mxu0 %v1965_v3 }
 0x257   :  { %v2497_v36 = vpop.eup %1899  ;;  %1771 = vmatpush3.msra.mxu0 %v485_v50  ;;  %v987_v50 = vld [vmem:[%s2940_s9 + $0xb8] sm:$0xff] }
 0x258   :  { %1791 = vmatprep.subr.mxu1 %v2497_v36  ;;  %v2500_v37 = vpop.eup %1901  ;;  %1772 = vmatprep.subr.mxu0 %v1965_v3 }
 0x259   :  { %1792 = vmatpush3.msra.mxu1 %v2497_v36  ;;  %1773 = vmatpush3.msra.mxu0 %v484_v51  ;;  %v982_v51 = vld [vmem:[%s2940_s9 + $0x90] sm:$0xff] }
 0x25a   :  { %1793 = vmatprep.subr.mxu1 %v2500_v37  ;;  %1774 = vmatprep.subr.mxu0 %v1965_v3 }
 0x25b   :  { %v2504_v38 = vpop.eup %1903  ;;  %1794 = vmatpush3.msra.mxu1 %v2500_v37  ;;  %1775 = vmatpush3.msra.mxu0 %v483_v54  ;;  %v980_v54 = vld [vmem:[%s2940_s9 + $0x80] sm:$0xff] }
 0x25c   :  { %1795 = vmatprep.subr.mxu1 %v2504_v38  ;;  %1776 = vmatprep.subr.mxu0 %v1965_v3 }
 0x25d   :  { %1796 = vmatpush3.msra.mxu1 %v2504_v38  ;;  %1777 = vmatpush3.msra.mxu0 %v482_v55  ;;  %v984_v55 = vld [vmem:[%s2940_s9 + $0xa0] sm:$0xff] }
 0x25e   :  { %1800 = vmatprep.subr.mxu1 %v1965_v3  ;;  %1778 = vmatprep.subr.mxu0 %v1965_v3 }
 0x25f   :  { %1779 = vmatpush3.msra.mxu0 %v481_v57  ;;  %v979_v57 = vld [vmem:[%s2940_s9 + $0x78] sm:$0xff] }
 0x260   :  { %1780 = vmatprep.subr.mxu0 %v1965_v3 }
 0x261   :  { %1781 = vmatpush3.msra.mxu0 %v480_v59  ;;  %v977_v59 = vld [vmem:[%s2940_s9 + $0x68] sm:$0xff] }
 0x262   :  { %1783 = vmatmul.mubr.f32.vlgmr.msra.gmra.mxu0 %v2325_v56  ;;  %1822 = vmatprep.subr.mxu0 %v1011_v12 }
 0x263   :  { %1785 = vmatprep.mubr.msk.f32.mxu0 %vm1966_vm0, %v1965_v3  ;;  %1823 = vmatpush3.msra.mxu0 %v1011_v12 }
 0x264   :  { %1824 = vmatprep.subr.mxu0 %v1008_v13 }
 0x265   :  { %1825 = vmatpush3.msra.mxu0 %v1008_v13 }
 0x266   :  { %1786 = vmatmul.mubr.f32.gmra.mxu0 %v2391_v4  ;;  %1826 = vmatprep.subr.mxu0 %v1005_v14 }
 0x267   :  { %1788 = vmatprep.mubr.msk.f32.mxu0 %vm1966_vm0, %v1965_v3  ;;  %1827 = vmatpush3.msra.mxu0 %v1005_v14 }
 0x268   :  { %1828 = vmatprep.subr.mxu0 %v1002_v15 }
 0x269   :  { %1829 = vmatpush3.msra.mxu0 %v1002_v15 }
 0x26a   :  { %1789 = vmatmul.mubr.f32.gmra.mxu0 %v2455_v22  ;;  %1830 = vmatprep.subr.mxu0 %v999_v16 }
 0x26b   :  { %v2510_v35 = vpop.trf.xlu1  ;;  %1831 = vmatpush3.msra.mxu0 %v999_v16 }
 0x26c   :  { %1797 = vmatprep.mubr.msk.f32.mxu1 %vm678_vm5, %v2510_v35  ;;  %1832 = vmatprep.subr.mxu0 %v996_v41 }
 0x26d   :  { %1833 = vmatpush3.msra.mxu0 %v996_v41  ;;  %v1041_v41 = vld [vmem:[%s2941_s10 + $0xe8] sm:$0xff] }
 0x26e   :  { %1834 = vmatprep.subr.mxu0 %v993_v44 }
 0x26f   :  { %v2514_v39 = vpop.trf.xlu1  ;;  %1835 = vmatpush3.msra.mxu0 %v993_v44  ;;  %v1038_v44 = vld [vmem:[%s2941_s10 + $0xd0] sm:$0xff] }
 0x270   :  { %1798 = vmatmul.mubr.msk.f32.vlgmr.msra.gmra.mxu1 %vm678_vm5, %v2514_v39  ;;  %1836 = vmatprep.subr.mxu0 %v990_v47 }
 0x271   :  { %1804 = vmatprep.mubr.msk.f32.mxu1 %vm1966_vm0, %v1965_v3  ;;  %1837 = vmatpush3.msra.mxu0 %v990_v47  ;;  %v1035_v47 = vld [vmem:[%s2941_s10 + $0xb8] sm:$0xff] }
 0x272   :  { %1838 = vmatprep.subr.mxu0 %v987_v50 }
 0x273   :  { %1839 = vmatpush3.msra.mxu0 %v987_v50  ;;  %v1032_v50 = vld [vmem:[%s2941_s10 + $0xa0] sm:$0xff] }
 0x274   :  { %1840 = vmatprep.subr.mxu0 %v984_v55 }
 0x275   :  { %1841 = vmatpush3.msra.mxu0 %v984_v55  ;;  %v1029_v55 = vld [vmem:[%s2941_s10 + $0x88] sm:$0xff] }
 0x322   :  { %v569_v56 = vpop.f32.mrf.mxu0 }
 0x323   :  { %v570_v24 = vadd.f32 %v1545_v17, %v569_v56  ;;  %v974_v56 = vld [vmem:[%s2940_s9 + $0x50] sm:$0xff] }
 0x324   :  { %v1784_v4 = vpop.f32.mrf.mxu0 }
 0x325   :  { %v978_v4 = vld [vmem:[%s2940_s9 + $0x70] sm:$0xff] }
 0x326   :  { %v574_v22 = vpop.f32.mrf.mxu0 }
 0x327   :  { %v575_v20 = vadd.f32 %v1545_v17, %v574_v22  ;;  %v973_v22 = vld [vmem:[%s2940_s9 + $0x48] sm:$0xff] }
 0x328   :  { %v1787_v62 = vpop.f32.mrf.mxu0 }
 0x329   :  { %v971_v62 = vld [vmem:[%s2940_s9 + $0x38] sm:$0xff] }
 0x32a   :  { %v579_v5 = vpop.f32.mrf.mxu0 }
 0x32b   :  { %v580_v19 = vadd.f32 %v1545_v17, %v579_v5  ;;  %v969_v5 = vld [vmem:[%s2940_s9 + $0x28] sm:$0xff] }
 0x32c   :  { %v1790_v7 = vpop.f32.mrf.mxu0  ;;  %v1057_v17 = vld [vmem:[%s2941_s10 + $0x168] sm:$0xff] }
 0x32d   :  { %v1058_v7 = vld [vmem:[%s2941_s10 + $0x170] sm:$0xff] }
 0x330   :  { %v1799_v60 = vpop.f32.mrf.mxu1 }
 0x331   :  { %1801 = vmatpush3.msk.msra.mxu1 %vm769_vm6, %v1799_v60  ;;  %v981_v60 = vld [vmem:[%s2940_s9 + $0x88] sm:$0xff] }
 0x332   :  { %v751_v61 = vpop.f32.mrf.mxu1  ;;  %1802 = vmatprep.subr.mxu1 %v1965_v3  ;;  %1842 = vmatprep.subr.mxu0 %v981_v60 }
 0x333   :  { %1803 = vmatpush3.msra.mxu1 %v751_v61  ;;  %v976_v61 = vld [vmem:[%s2940_s9 + $0x60] sm:$0xff]  ;;  %1843 = vmatpush3.msra.mxu0 %v981_v60  ;;  %v1026_v60 = vld [vmem:[%s2941_s10 + $0x70] sm:$0xff] }
 0x334   :  { %1805 = vmatmul.mubr.msk.f32.vlgmr.msra.gmra.mxu1 %vm613_vm4, %v2471_v53  ;;  %1844 = vmatprep.subr.mxu0 %v978_v4 }
 0x335   :  { %1807 = vmatprep.mubr.msk.f32.mxu1 %vm1966_vm0, %v1965_v3  ;;  %1845 = vmatpush3.msra.mxu0 %v978_v4  ;;  %v1023_v4 = vld [vmem:[%s2941_s10 + $0x58] sm:$0xff] }
 0x338   :  { %1808 = vmatmul.mubr.msk.f32.gmra.mxu1 %vm613_vm4, %v2466_v52 }
 0x339   :  { %1810 = vmatprep.mubr.msk.f32.mxu1 %vm1966_vm0, %v1965_v3 }
 0x33c   :  { %1811 = vmatmul.mubr.msk.f32.gmra.mxu1 %vm613_vm4, %v2478_v58 }
 0x33d   :  { %1819 = vmatprep.mubr.msk.f32.mxu1 %vm678_vm5, %v2510_v35  ;;  %v995_v35 = vld [vmem:[%s2940_s9 + $0xf8] sm:$0xff] }
 0x3f4   :  { %v839_v53 = vpop.f32.mrf.mxu1 }
 0x3f6   :  { %v1806_v63 = vpop.f32.mrf.mxu1 }
 0x3f7   :  { %v970_v63 = vld [vmem:[%s2940_s9 + $0x30] sm:$0xff] }
 0x3f8   :  { %v844_v0 = vpop.f32.mrf.mxu1 }
 0x3f9   :  { %1905 = vrcp.f32 %v844_v0  ;;  %v968_v0 = vld [vmem:[%s2940_s9 + $0x20] sm:$0xff] }
 0x3fa   :  { %v1809_v1 = vpop.f32.mrf.mxu1 }
 0x3fb   :  { %v972_v1 = vld [vmem:[%s2940_s9 + $0x40] sm:$0xff] }
 0x3fc   :  { %v849_v2 = vpop.f32.mrf.mxu1 }
 0x3fd   :  { %1907 = vrcp.f32 %v849_v2  ;;  %v967_v2 = vld [vmem:[%s2940_s9 + $0x18] sm:$0xff] }
 0x3fe   :  { %v1812_v52 = vpop.f32.mrf.mxu1  ;;  %1909 = vrcp.f32 %v839_v53  ;;  %v975_v53 = vld [vmem:[%s2940_s9 + $0x58] sm:$0xff] }
 0x3ff   :  { %1846 = vmatprep.subr.mxu0 %v975_v53  ;;  %v965_v52 = vld [vmem:[%s2940_s9 + $0x8] sm:$0xff] }
 0x400   :  { %1847 = vmatpush3.msra.mxu0 %v975_v53  ;;  %v1020_v53 = vld [vmem:[%s2941_s10 + $0x40] sm:$0xff] }
 0x401   :  { %1848 = vmatprep.subr.mxu0 %v972_v1 }
 0x402   :  { %1849 = vmatpush3.msra.mxu0 %v972_v1  ;;  %v1017_v1 = vld [vmem:[%s2941_s10 + $0x28] sm:$0xff] }
 0x403   :  { %1850 = vmatprep.subr.mxu0 %v969_v5 }
 0x404   :  { %1851 = vmatpush3.msra.mxu0 %v969_v5  ;;  %v1063_v5 = vlaneseq }
 0x406   :  { %v1906_v6 = vpop.eup %1905 }
 0x407   :  { %v857_v58 = vmul.f32 %v1906_v6, %v2500_v37  ;;  %v998_v37 = vld [vmem:[%s2940_s9 + $0x110] sm:$0xff]  ;;  %v964_v6 = vld [vmem:[%s2940_s9] sm:$0xff] }
 0x409   :  { %866 = vperm.xlu0 %1897, %v857_v58   ;;  %v966_v58 = vld [vmem:[%s2940_s9 + $0x10] sm:$0xff] }
 0x40a   :  { %v1908_v8 = vpop.eup %1907  ;;  %1852 = vmatprep.subr.mxu0 %v966_v58 }
 0x40b   :  { %v858_v9 = vmul.f32 %v1908_v8, %v2497_v36  ;;  %v1910_v10 = vpop.eup %1909  ;;  %v1000_v36 = vld [vmem:[%s2940_s9 + $0x120] sm:$0xff]  ;;  %1853 = vmatpush3.msra.mxu0 %v966_v58  ;;  %v1059_v8 = vld [vmem:[%s2941_s10 + $0x178] sm:$0xff]  ;;  %v1064_v58 = vshrl.u32 %v1063_v5, 7 }
 0x40c   :  { %v856_v11 = vmul.f32 %v1910_v10, %v2504_v38  ;;  %v997_v38 = vld [vmem:[%s2940_s9 + $0x108] sm:$0xff]  ;;  %1857 = vmatprep.subr.mxu0 %v1059_v8 }
 0x40d   :  { %871 = vperm.xlu0 %1897, %v858_v9  }
 0x411   :  { %861 = vperm.xlu0 %1897, %v856_v11  }
 0x484   :  { %v867_v18 = vpop.permute.xlu0 %866 }
 0x485   :  { %v875_v25 = vmul.f32 %v867_v18, %v575_v20 }
 0x488   :  { %v872_v21 = vpop.permute.xlu0 %871 }
 0x489   :  { %v876_v23 = vmul.f32 %v872_v21, %v580_v19  ;;  %v1055_v19 = vld [vmem:[%s2941_s10 + $0x158] sm:$0xff]  ;;  %v1054_v21 = vld [vmem:[%s2941_s10 + $0x150] sm:$0xff] }
 0x48b   :  { %1813 = vmatprep.subr.mxu1 %v876_v23 }
 0x48c   :  { %v862_v26 = vpop.permute.xlu0 %861  ;;  %1814 = vmatpush3.msra.mxu1 %v876_v23  ;;  %v1052_v23 = vld [vmem:[%s2941_s10 + $0x140] sm:$0xff] }
 0x48d   :  { %v874_v27 = vmul.f32 %v862_v26, %v570_v24  ;;  %1815 = vmatprep.subr.mxu1 %v875_v25  ;;  %v1051_v24 = vld [vmem:[%s2941_s10 + $0x138] sm:$0xff]  ;;  %v1056_v26 = vld [vmem:[%s2941_s10 + $0x160] sm:$0xff] }
 0x48e   :  { %1816 = vmatpush3.msra.mxu1 %v875_v25  ;;  %v1049_v25 = vld [vmem:[%s2941_s10 + $0x128] sm:$0xff] }
 0x48f   :  { %1817 = vmatprep.subr.mxu1 %v874_v27 }
 0x490   :  { %1818 = vmatpush3.msra.mxu1 %v874_v27  ;;  %v1048_v27 = vld [vmem:[%s2941_s10 + $0x120] sm:$0xff] }
 0x491   :  { %1820 = vmatmul.mubr.msk.f32.vlgmr.msra.gmra.mxu1 %vm678_vm5, %v2514_v39  ;;  %1078 = vmatprep.subr.mxu1 %v1010_v28  ;;  %v994_v39 = vld [vmem:[%s2940_s9 + $0xf0] sm:$0xff] }
 0x492   :  { %1079 = vmatpush1.msra.mxu1 %v1009_v29  ;;  %1142 = vmatprep.mubr.f32.mxu1 %v1965_v3  ;;  %v1046_v28 = vld [vmem:[%s2941_s10 + $0x110] sm:$0xff]  ;;  %v1053_v29 = vld [vmem:[%s2941_s10 + $0x148] sm:$0xff] }
 0x493   :  { %1080 = vmatprep.subr.mxu1 %v1007_v30  ;;  %v1045_v30 = vld [vmem:[%s2941_s10 + $0x108] sm:$0xff] }
 0x494   :  { %1081 = vmatpush1.msra.mxu1 %v1006_v31  ;;  %v1043_v31 = vld [vmem:[%s2941_s10 + $0xf8] sm:$0xff] }
 0x495   :  { %1082 = vmatprep.subr.mxu1 %v1004_v32  ;;  %v1050_v32 = vld [vmem:[%s2941_s10 + $0x130] sm:$0xff] }
 0x496   :  { %1083 = vmatpush1.msra.mxu1 %v1003_v33  ;;  %v1042_v33 = vld [vmem:[%s2941_s10 + $0xf0] sm:$0xff] }
 0x497   :  { %1084 = vmatprep.subr.mxu1 %v1001_v34  ;;  %v1040_v34 = vld [vmem:[%s2941_s10 + $0xe0] sm:$0xff] }
 0x498   :  { %1085 = vmatpush1.msra.mxu1 %v1000_v36  ;;  %v1047_v36 = vld [vmem:[%s2941_s10 + $0x118] sm:$0xff] }
 0x499   :  { %1086 = vmatprep.subr.mxu1 %v998_v37  ;;  %v1039_v37 = vld [vmem:[%s2941_s10 + $0xd8] sm:$0xff] }
 0x49a   :  { %1087 = vmatpush1.msra.mxu1 %v997_v38  ;;  %v1037_v38 = vld [vmem:[%s2941_s10 + $0xc8] sm:$0xff] }
 0x49b   :  { %1088 = vmatprep.subr.mxu1 %v995_v35  ;;  %v1044_v35 = vld [vmem:[%s2941_s10 + $0x100] sm:$0xff] }
 0x49c   :  { %1089 = vmatpush1.msra.mxu1 %v994_v39  ;;  %v1036_v39 = vld [vmem:[%s2941_s10 + $0xc0] sm:$0xff] }
 0x49d   :  { %1090 = vmatprep.subr.mxu1 %v992_v40  ;;  %v1034_v40 = vld [vmem:[%s2941_s10 + $0xb0] sm:$0xff] }
 0x49e   :  { %1091 = vmatpush1.msra.mxu1 %v991_v42  ;;  %v1033_v42 = vld [vmem:[%s2941_s10 + $0xa8] sm:$0xff] }
 0x49f   :  { %1092 = vmatprep.subr.mxu1 %v989_v43  ;;  %v1031_v43 = vld [vmem:[%s2941_s10 + $0x98] sm:$0xff] }
 0x4a0   :  { %1093 = vmatpush1.msra.mxu1 %v988_v45  ;;  %v1030_v45 = vld [vmem:[%s2941_s10 + $0x90] sm:$0xff] }
 0x4a1   :  { %1094 = vmatprep.subr.mxu1 %v986_v46  ;;  %v1028_v46 = vld [vmem:[%s2941_s10 + $0x80] sm:$0xff] }
 0x4a2   :  { %1095 = vmatpush1.msra.mxu1 %v985_v48  ;;  %v1027_v48 = vld [vmem:[%s2941_s10 + $0x78] sm:$0xff] }
 0x4a3   :  { %1096 = vmatprep.subr.mxu1 %v983_v49  ;;  %v1025_v49 = vld [vmem:[%s2941_s10 + $0x68] sm:$0xff] }
 0x4a4   :  { %1097 = vmatpush1.msra.mxu1 %v982_v51  ;;  %v1024_v51 = vld [vmem:[%s2941_s10 + $0x60] sm:$0xff] }
 0x4a5   :  { %1098 = vmatprep.subr.mxu1 %v980_v54  ;;  %v1022_v54 = vld [vmem:[%s2941_s10 + $0x50] sm:$0xff] }
 0x4a6   :  { %1099 = vmatpush1.msra.mxu1 %v979_v57  ;;  %v1021_v57 = vld [vmem:[%s2941_s10 + $0x48] sm:$0xff] }
 0x4a7   :  { %1100 = vmatprep.subr.mxu1 %v977_v59  ;;  %v1019_v59 = vld [vmem:[%s2941_s10 + $0x38] sm:$0xff] }
 0x4a8   :  { %1101 = vmatpush1.msra.mxu1 %v976_v61  ;;  %v1018_v61 = vld [vmem:[%s2941_s10 + $0x30] sm:$0xff] }
 0x4a9   :  { %1102 = vmatprep.subr.mxu1 %v974_v56  ;;  %v1016_v56 = vld [vmem:[%s2941_s10 + $0x20] sm:$0xff] }
 0x4aa   :  { %1103 = vmatpush1.msra.mxu1 %v973_v22  ;;  %v1015_v22 = vld [vmem:[%s2941_s10 + $0x18] sm:$0xff] }
 0x4ab   :  { %1104 = vmatprep.subr.mxu1 %v971_v62  ;;  %v1013_v62 = vld [vmem:[%s2941_s10 + $0x8] sm:$0xff] }
 0x4ac   :  { %1105 = vmatpush1.msra.mxu1 %v970_v63  ;;  %v1012_v63 = vld [vmem:[%s2941_s10] sm:$0xff] }
 0x4ad   :  { %1106 = vmatprep.subr.mxu1 %v968_v0  ;;  %v2899_v0 = vld [vmem:[%s2931_s0] sm:$0xff] }
 0x4ae   :  { %1107 = vmatpush1.msra.mxu1 %v967_v2  ;;  %v1014_v2 = vld [vmem:[%s2941_s10 + $0x10] sm:$0xff] }
 0x4af   :  { %1108 = vmatprep.subr.mxu1 %v965_v52  ;;  %v2912_v52 = vld [vmem:[%s2931_s0 + $0x8] sm:$0xf] }
 0x4b0   :  { %1109 = vmatpush1.msra.mxu1 %v964_v6 }
 0x4b1   :  { %1246 = vmatprep.subr.mxu1 %v1058_v7 }
 0x551   :  { %v1821_v9 = vpop.f32.mrf.mxu1 }
 0x552   :  { %v956_v10 = vmul.f32 1.442695, %v1821_v9  ;;  %vm953_vm8 = vcmp.gt.f32.partialorder %v1821_v9, 0.0 }
 0x553   :  { %v943_v11 = vpop.f32.mrf.mxu1 }
 0x554   :  { %1911 = vpow2.f32 %v956_v10  ;;  %v954_v12 = vmul.f32 1.442695, %v943_v11  ;;  %vm952_vm7 = vcmp.gt.f32.partialorder %v943_v11, 0.0  ;;  %v1061_v10 = vld [vmem:[%s2943_s12] sm:$0x7] }
 0x556   :  { %1913 = vpow2.f32 %v954_v12 }
 0x561   :  { %v1912_v13 = vpop.eup %1911 }
 0x562   :  { %v1555_v15 = vadd.f32 -1.0, %v1912_v13 }
 0x563   :  { %v1914_v14 = vpop.eup %1913 }
 0x564   :  { %v1554_v16 = vadd.f32 -1.0, %v1914_v14  ;;  %v961_v20 = vsel %vm953_vm8, %v1821_v9, %v1555_v15  ;;  %v1069_v14 = vsub.s32 1, %v1064_v58 }
 0x566   :  { %v960_v18 = vsel %vm952_vm7, %v943_v11, %v1554_v16 }
 0x567   :  { %1143 = vmatmul.mubr.f32.vlgmr.msra.gmra.mxu1 %v960_v18  ;;  %1854 = vmatprep.mubr.f32.mxu0 %v960_v18  ;;  %v1238_v18 = vrot.slane %v1061_v10, %v1069_v14 }
 0x568   :  { %1247 = vmatpush1.msra.mxu1 %v1057_v17  ;;  %1855 = vmatmul.mubr.f32.vlgmr.msra.gmra.mxu0 %v961_v20 }
 0x569   :  { %1248 = vmatprep.subr.mxu1 %v1055_v19  ;;  %1148 = vmatprep.mubr.f32.mxu1 %v1965_v3 }
 0x56a   :  { %1249 = vmatpush1.msra.mxu1 %v1054_v21  ;;  %1858 = vmatpush3.msra.mxu0 %v1059_v8  ;;  %v1065_v8 = vsub.s32 0, %v1064_v58 }
 0x56b   :  { %1250 = vmatprep.subr.mxu1 %v1052_v23  ;;  %1149 = vmatmul.mubr.f32.gmra.mxu1 %v961_v20 }
 0x56c   :  { %1251 = vmatpush1.msra.mxu1 %v1051_v24  ;;  %1310 = vmatprep.mubr.f32.mxu1 %v1965_v3  ;;  %v1234_v12 = vrot.slane %v1061_v10, %v1065_v8 }
 0x56d   :  { %1252 = vmatprep.subr.mxu1 %v1049_v25  ;;  %1859 = vmatprep.subr.mxu0 %v1056_v26 }
 0x56e   :  { %1253 = vmatpush1.msra.mxu1 %v1048_v27  ;;  %1860 = vmatpush3.msra.mxu0 %v1056_v26 }
 0x56f   :  { %1254 = vmatprep.subr.mxu1 %v1046_v28  ;;  %1861 = vmatprep.subr.mxu0 %v1053_v29 }
 0x570   :  { %1255 = vmatpush1.msra.mxu1 %v1045_v30  ;;  %1862 = vmatpush3.msra.mxu0 %v1053_v29 }
 0x571   :  { %1256 = vmatprep.subr.mxu1 %v1043_v31  ;;  %1863 = vmatprep.subr.mxu0 %v1050_v32 }
 0x572   :  { %1257 = vmatpush1.msra.mxu1 %v1042_v33  ;;  %1864 = vmatpush3.msra.mxu0 %v1050_v32 }
 0x573   :  { %1258 = vmatprep.subr.mxu1 %v1040_v34  ;;  %1865 = vmatprep.subr.mxu0 %v1047_v36 }
 0x574   :  { %1259 = vmatpush1.msra.mxu1 %v1039_v37  ;;  %1866 = vmatpush3.msra.mxu0 %v1047_v36 }
 0x575   :  { %1260 = vmatprep.subr.mxu1 %v1037_v38  ;;  %1867 = vmatprep.subr.mxu0 %v1044_v35 }
 0x576   :  { %1261 = vmatpush1.msra.mxu1 %v1036_v39  ;;  %1868 = vmatpush3.msra.mxu0 %v1044_v35 }
 0x577   :  { %1262 = vmatprep.subr.mxu1 %v1034_v40  ;;  %1869 = vmatprep.subr.mxu0 %v1041_v41 }
 0x578   :  { %1263 = vmatpush1.msra.mxu1 %v1033_v42  ;;  %1870 = vmatpush3.msra.mxu0 %v1041_v41 }
 0x579   :  { %1264 = vmatprep.subr.mxu1 %v1031_v43  ;;  %1871 = vmatprep.subr.mxu0 %v1038_v44 }
 0x57a   :  { %1265 = vmatpush1.msra.mxu1 %v1030_v45  ;;  %1872 = vmatpush3.msra.mxu0 %v1038_v44  ;;  %v1073_v45 = vsub.s32 2, %v1064_v58 }
 0x57b   :  { %1266 = vmatprep.subr.mxu1 %v1028_v46  ;;  %1873 = vmatprep.subr.mxu0 %v1035_v47 }
 0x57c   :  { %1267 = vmatpush1.msra.mxu1 %v1027_v48  ;;  %1874 = vmatpush3.msra.mxu0 %v1035_v47  ;;  %v1242_v46 = vrot.slane %v1061_v10, %v1073_v45 }
 0x57d   :  { %1268 = vmatprep.subr.mxu1 %v1025_v49  ;;  %1875 = vmatprep.subr.mxu0 %v1032_v50 }
 0x57e   :  { %1269 = vmatpush1.msra.mxu1 %v1024_v51  ;;  %1876 = vmatpush3.msra.mxu0 %v1032_v50 }
 0x57f   :  { %1270 = vmatprep.subr.mxu1 %v1022_v54  ;;  %1877 = vmatprep.subr.mxu0 %v1029_v55 }
 0x580   :  { %1271 = vmatpush1.msra.mxu1 %v1021_v57  ;;  %1878 = vmatpush3.msra.mxu0 %v1029_v55 }
 0x581   :  { %1272 = vmatprep.subr.mxu1 %v1019_v59  ;;  %1879 = vmatprep.subr.mxu0 %v1026_v60 }
 0x582   :  { %1273 = vmatpush1.msra.mxu1 %v1018_v61  ;;  %1880 = vmatpush3.msra.mxu0 %v1026_v60 }
 0x583   :  { %1274 = vmatprep.subr.mxu1 %v1016_v56  ;;  %1881 = vmatprep.subr.mxu0 %v1023_v4 }
 0x584   :  { %1275 = vmatpush1.msra.mxu1 %v1015_v22  ;;  %1882 = vmatpush3.msra.mxu0 %v1023_v4 }
 0x585   :  { %1276 = vmatprep.subr.mxu1 %v1013_v62  ;;  %1883 = vmatprep.subr.mxu0 %v1020_v53 }
 0x586   :  { %1277 = vmatpush1.msra.mxu1 %v1012_v63  ;;  %1884 = vmatpush3.msra.mxu0 %v1020_v53 }
 0x587   :  { %1311 = vmatmul.mubr.f32.vlgmr.msra.gmra.mxu1 %v2899_v0  ;;  %1885 = vmatprep.subr.mxu0 %v1017_v1 }
 0x588   :  { %1316 = vmatprep.mubr.f32.mxu1 %v1965_v3  ;;  %1886 = vmatpush3.msra.mxu0 %v1017_v1  ;;  %v1060_v3 = vld [vmem:[%s2942_s11] sm:$0x7] }
 0x589   :  { %1887 = vmatprep.subr.mxu0 %v1014_v2  ;;  %1889 = vmatprep.mubr.f32.mxu0 %v2899_v0  ;;  %v1066_v11 = vrot.slane %v1060_v3, %v1065_v8  ;;  %v1070_v20 = vrot.slane %v1060_v3, %v1069_v14  ;;  %v1074_v54 = vrot.slane %v1060_v3, %v1073_v45 }
 0x58a   :  { %1888 = vmatpush3.msra.mxu0 %v1014_v2 }
 0x58b   :  { %1317 = vmatmul.mubr.f32.gmra.mxu1 %v2912_v52  ;;  %1890 = vmatmul.mubr.f32.vlgmr.msra.gmra.mxu0 %v2912_v52 }
 0x627   :  { %v1144_v6 = vpop.f32.mrf.mxu1 }
 0x628   :  { %v1145_v16 = vadd.f32 %v1144_v6, %v1066_v11  ;;  %v1856_v39 = vpop.f32.mrf.mxu0 }
 0x629   :  { %v1146_v7 = vpop.f32.mrf.mxu1  ;;  %v1227_v22 = vadd.f32 %v1856_v39, %v1074_v54 }
 0x62a   :  { %v1147_v29 = vadd.f32 %v1146_v7, %v1070_v20  ;;  %v1221_v42 = vpop.f32.mrf.mxu0 }
 0x62b   :  { %v1150_v9 = vpop.f32.mrf.mxu1  ;;  %v1222_v59 = vadd.f32 %v1221_v42, %v1074_v54 }
 0x62c   :  { %v1151_v24 = vadd.f32 %v1150_v9, %v1066_v11 }
 0x62d   :  { %v1152_v13 = vpop.f32.mrf.mxu1 }
 0x62e   :  { %v1153_v34 = vadd.f32 %v1152_v13, %v1070_v20 }
 0x647   :  { %v1312_v15 = vpop.f32.mrf.mxu1 }
 0x648   :  { %v1313_v17 = vadd.f32 %v1312_v15, %v1234_v12 }
 0x649   :  { %v1314_v19 = vpop.f32.mrf.mxu1 }
 0x64a   :  { %v1398_v21 = vadd.f32 %v1313_v17, %v1145_v16  ;;  %v1315_v26 = vadd.f32 %v1314_v19, %v1238_v18 }
 0x64b   :  { %v1318_v23 = vpop.f32.mrf.mxu1  ;;  %v1891_v44 = vpop.f32.mrf.mxu0 }
 0x64c   :  { %v1556_v25 = vmul.f32 -1.442695, %v1398_v21  ;;  %v1319_v27 = vadd.f32 %v1318_v23, %v1234_v12  ;;  %v1412_v32 = vadd.f32 %v1315_v26, %v1147_v29  ;;  %v1395_v61 = vadd.f32 %v1891_v44, %v1242_v46 }
 0x64d   :  { %v1320_v28 = vpop.f32.mrf.mxu1  ;;  %v1389_v48 = vpop.f32.mrf.mxu0 }
 0x64e   :  { %1915 = vpow2.f32 %v1556_v25  ;;  %v1399_v30 = vadd.f32 %v1319_v27, %v1151_v24  ;;  %v1321_v31 = vadd.f32 %v1320_v28, %v1238_v18  ;;  %v1558_v37 = vmul.f32 -1.442695, %v1412_v32 }
 0x64f   :  { %v1390_v51 = vadd.f32 %v1389_v48, %v1242_v46 }
 0x650   :  { %v1557_v33 = vmul.f32 -1.442695, %v1399_v30  ;;  %v1413_v36 = vadd.f32 %v1321_v31, %v1153_v34 }
 0x652   :  { %1917 = vpow2.f32 %v1557_v33  ;;  %v1559_v38 = vmul.f32 -1.442695, %v1413_v36 }
 0x653   :  { %1919 = vpow2.f32 %v1558_v37 }
 0x654   :  { %1921 = vpow2.f32 %v1559_v38 }
 0x65b   :  { %v1916_v35 = vpop.eup %1915 }
 0x65c   :  { %v1406_v40 = vadd.f32 1.0, %v1916_v35 }
 0x65e   :  { %1923 = vrcp.f32 %v1406_v40 }
 0x65f   :  { %v1918_v41 = vpop.eup %1917 }
 0x660   :  { %v1407_v43 = vadd.f32 1.0, %v1918_v41  ;;  %v1920_v47 = vpop.eup %1919 }
 0x661   :  { %v1922_v49 = vpop.eup %1921  ;;  %v1420_v50 = vadd.f32 1.0, %v1920_v47 }
 0x662   :  { %1925 = vrcp.f32 %v1407_v43  ;;  %v1421_v57 = vadd.f32 1.0, %v1922_v49 }
 0x663   :  { %1927 = vrcp.f32 %v1420_v50 }
 0x664   :  { %1929 = vrcp.f32 %v1421_v57 }
 0x66b   :  { %v1924_v55 = vpop.eup %1923 }
 0x66c   :  { %v1426_v60 = vmul.f32 %v1924_v55, %v1390_v51 }
 0x66e   :  { %v1428_v56 = vadd.f32 %v1426_v60, %v1222_v59 }
 0x66f   :  { %v1926_v4 = vpop.eup %1925 }
 0x670   :  { %v1427_v62 = vmul.f32 %v1926_v4, %v1395_v61  ;;  %1931 = vtanh.f32 %v1428_v56  ;;  %v1928_v63 = vpop.eup %1927 }
 0x671   :  { %v1930_v1 = vpop.eup %1929  ;;  %v1432_v2 = vsub.f32 1.0, %v1928_v63  ;;  %v1436_v6 = vmul.f32 %v1928_v63, %v2899_v0 }
 0x672   :  { %v1429_v53 = vadd.f32 %v1427_v62, %v1227_v22  ;;  %v1433_v7 = vsub.f32 1.0, %v1930_v1  ;;  %v1437_v9 = vmul.f32 %v1930_v1, %v2912_v52 }
 0x674   :  { %1933 = vtanh.f32 %v1429_v53 }
 0x67d   :  { %v1932_v5 = vpop.eup %1931 }
 0x67e   :  { %v1434_v58 = vmul.f32 %v1932_v5, %v1432_v2 }
 0x680   :  { %v1438_v8 = vadd.f32 %v1436_v6, %v1434_v58 }
 0x681   :  { %v1934_v3 = vpop.eup %1933 }
 0x682   :  { %v1435_v10 = vmul.f32 %v1934_v3, %v1433_v7  ;;  %v1440_v11 = vmax.f32 %v1438_v8, 0.0 }
 0x684   :  { %v1439_v12 = vadd.f32 %v1437_v9, %v1435_v10  ;;  %1442 = vst [vmem:[%s2944_s13] sm:$0xff] %v1440_v11 }
 0x686   :  { %v1441_v13 = vmax.f32 %v1439_v12, 0.0 }
 0x688   :  { %1443 = vst [vmem:[%s2944_s13 + $0x8] sm:$0xf] %v1441_v13 }
 0x689   :  { %1448 = vsyncpa [#allocation6], 1 }
 0x68a   :  { %1449 = vsyncpa [#allocation8], 1 }

// kernel: attentive_fp_forward.6
= control target key start
LH: loop header
LB: loop body
LE: loop exit
PB: predicated region body
PF: predicated region fallthrough
CT: control target
= control target key end

     0   :  { %s3459_s0 = inlined_call_operand.hbm [shape: f32[12,24], index: 0, kind: input, shape index: {}]   ;;  %s3460_s1 = inlined_call_operand.vmem [shape: f32[24,8], index: 1, kind: input, shape index: {}]   ;;  %s3461_s2 = inlined_call_operand.hbm [shape: s32[24], index: 2, kind: input, shape index: {}]   ;;  %s3462_s3 = inlined_call_operand.hbm [shape: s32[24], index: 3, kind: input, shape index: {}]   ;;  %s3463_s4 = inlined_call_operand.vmem [shape: f32[24,12], index: 4, kind: input, shape index: {}]   ;;  %s3464_s5 = inlined_call_operand.hbm [shape: f32[24,128], index: 5, kind: input, shape index: {}]   ;;  %s3465_s6 = inlined_call_operand.hbm [shape: f32[1,128], index: 6, kind: input, shape index: {}]   ;;  %s3466_s7 = inlined_call_operand.hbm [shape: f32[24,128], index: 7, kind: input, shape index: {}]   ;;  %s3467_s8 = inlined_call_operand.hbm [shape: f32[8,128], index: 8, kind: input, shape index: {}]   ;;  %s3468_s9 = inlined_call_operand.hbm [shape: f32[1,128], index: 9, kind: input, shape index: {}]   ;;  %s3469_s10 = inlined_call_operand.vmem [shape: f32[128,1], index: 10, kind: input, shape index: {}]   ;;  %s3470_s11 = inlined_call_operand.vmem [shape: f32[128,1], index: 11, kind: input, shape index: {}]   ;;  %s3471_s12 = inlined_call_operand.<no memory space> [shape: f32[1,1], index: 12, kind: input, shape index: {}]   ;;  %s3472_s13 = inlined_call_operand.hbm [shape: f32[128,128], index: 13, kind: input, shape index: {}]   ;;  %s3473_s14 = inlined_call_operand.hbm [shape: f32[1,128], index: 14, kind: input, shape index: {}]   ;;  %s3474_s15 = inlined_call_operand.vmem [shape: f32[128,384], index: 15, kind: input, shape index: {}]   ;;  %s3475_s16 = inlined_call_operand.hbm [shape: f32[128,384], index: 16, kind: input, shape index: {}]   ;;  %s3476_s17 = inlined_call_operand.hbm [shape: f32[1,384], index: 17, kind: input, shape index: {}]   ;;  %s3477_s18 = inlined_call_operand.hbm [shape: f32[1,384], index: 18, kind: input, shape index: {}]   ;;  %s3478_s19 = inlined_call_operand.vmem [shape: f32[12,128], index: 19, kind: output, shape index: {}]  }
   0x1   :  { %3483 = sst [smem:[#allocation59_spill]] %s3459_s0  ;;  %v24_v0 = vstv %s3471_s12 }
   0x2   :  { %3484 = sst [smem:[#allocation60_spill]] %s3460_s1  ;;  %25 = vst [vmem:[#allocation6] sm:$0x1] %v24_v0 }
   0x3   :  { %3485 = sst [smem:[#allocation61_spill]] %s3461_s2 }
   0x4   :  { %3486 = sst [smem:[#allocation62_spill]] %s3462_s3 }
   0x5   :  { %3487 = sst [smem:[#allocation63_spill]] %s3463_s4 }
   0x6   :  { %3488 = sst [smem:[#allocation64_spill]] %s3474_s15 }
   0x7   :  { %3489 = sst [smem:[#allocation65_spill]] %s3478_s19 }
   0x8   :  { %26 = vsyncpa [#allocation8], 0 }
   0x9   :  { %27 = vsyncpa [#allocation9], 0 }
   0xa   :  { %28 = vsyncpa [#allocation12], 0 }
   0xb   :  { %29 = vsyncpa [#allocation14], 0 }
   0xc   :  { %30 = vsyncpa [#allocation17], 0 }
   0xd   :  { %31 = vsyncpa [#allocation20], 0 }
   0xe   :  { %32 = vsyncpa [#allocation23], 0 }
   0xf   :  { %33 = vsyncpa [#allocation26], 0  ;;  %s2705_s20 = smov [#allocation13]   ;;  %s2706_s1 = smov [#allocation16]  }
  0x10   :  { %s71_s21 = sshll.u32 %s2705_s20, 4  ;;  %s93_s22 = sshll.u32 %s2706_s1, 4  ;;  %s72_s21 = int_to_ptr.vmem [resolvable:$true] %s71_s21  ;;  %s94_s22 = int_to_ptr.vmem [resolvable:$true] %s93_s22 }
  0x11   :  { %s2461_s2 = scalar_lea.vmem %s72_s21, 384  ;;  %p2466_p1 = scmp.lt.s32.totalorder %s72_s21, %s72_s21 }
  0x12   :  { %p2462_p0 = scmp.ne.s32.totalorder %s72_s21, %s2461_s2  ;;  %p2467_p2 = scmp.lt.s32.totalorder %s2461_s2, %s2461_s2 }
  0x14   :  { %p2468_p3 = por %p2467_p2, %p2466_p1 }
  0x16   :  { %p2469_p4 = pnand %p2468_p3, %p2462_p0 }
  0x18   :  { %2472 = shalt.err (!%p2469_p4)
}
  0x19   :  { %s2707_s12 = smov 128   ;;  %s2708_s23 = smov 8  }
  0x1a   :  { %77 = dma.hbm_to_vmem [thread:$0]  %s3464_s5, 384, %s72_s21, [#allocation14], %s2707_s12, %s2707_s12, %s2708_s23  }
  0x1b   :  { %s2481_s3 = scalar_lea.vmem %s94_s22, 384  ;;  %p2486_p6 = scmp.lt.s32.totalorder %s94_s22, %s94_s22 }
  0x1c   :  { %p2482_p5 = scmp.ne.s32.totalorder %s94_s22, %s2481_s3  ;;  %p2487_p7 = scmp.lt.s32.totalorder %s2481_s3, %s2481_s3 }
  0x1e   :  { %p2488_p8 = por %p2487_p7, %p2486_p6 }
  0x20   :  { %p2489_p9 = pnand %p2488_p8, %p2482_p5 }
  0x22   :  { %2492 = shalt.err (!%p2489_p9)
}
  0x23   :  { %99 = dma.hbm_to_vmem [thread:$0]  %s3466_s7, 384, %s94_s22, [#allocation17], %s2707_s12, %s2707_s12, %s2708_s23  }
  0x24   :  { %s2709_s28 = smov [#allocation19]   ;;  %s2710_s0 = smov [#allocation22]  }
  0x25   :  { %s116_s29 = sshll.u32 %s2709_s28, 4  ;;  %s144_s30 = sshll.u32 %s2710_s0, 4  ;;  %s117_s29 = int_to_ptr.vmem [resolvable:$true] %s116_s29  ;;  %s145_s30 = int_to_ptr.vmem [resolvable:$true] %s144_s30 }
  0x26   :  { %s2501_s5 = scalar_lea.vmem %s117_s29, 16  ;;  %s2505_s20 = scalar_lea.vmem %s117_s29, 32 }
  0x27   :  { %p2502_p10 = scmp.ne.s32.totalorder %s117_s29, %s2501_s5  ;;  %p2506_p11 = scmp.lt.s32.totalorder %s117_s29, %s117_s29 }
  0x28   :  { %p2507_p12 = scmp.lt.s32.totalorder %s2505_s20, %s2501_s5 }
  0x2a   :  { %p2508_p13 = por %p2507_p12, %p2506_p11 }
  0x2c   :  { %p2509_p0 = pnand %p2508_p13, %p2502_p10 }
  0x2e   :  { %2512 = shalt.err (!%p2509_p0)
}
  0x2f   :  { %119 = dma.hbm_to_vmem [thread:$0]  %s3468_s9, 16, %s117_s29, [#allocation20]  }
  0x30   :  { %s2521_s2 = scalar_lea.vmem %s145_s30, 16  ;;  %s2525_s7 = scalar_lea.vmem %s145_s30, 32 }
  0x31   :  { %p2522_p1 = scmp.ne.s32.totalorder %s145_s30, %s2521_s2  ;;  %p2526_p2 = scmp.lt.s32.totalorder %s145_s30, %s145_s30 }
  0x32   :  { %p2527_p3 = scmp.lt.s32.totalorder %s2525_s7, %s2521_s2 }
  0x34   :  { %p2528_p4 = por %p2527_p3, %p2526_p2 }
  0x36   :  { %p2529_p5 = pnand %p2528_p4, %p2522_p1 }
  0x38   :  { %2532 = shalt.err (!%p2529_p5)
}
  0x39   :  { %147 = dma.hbm_to_vmem [thread:$0]  %s3473_s14, 16, %s145_s30, [#allocation23]  }
  0x3a   :  { %s2711_s25 = smov [#allocation25]   ;;  %s2712_s26 = smov [#allocation7]  }
  0x3b   :  { %s168_s3 = sshll.u32 %s2711_s25, 4  ;;  %s39_s27 = sshll.u32 %s2712_s26, 4  ;;  %s169_s3 = int_to_ptr.vmem [resolvable:$true] %s168_s3  ;;  %s40_s27 = int_to_ptr.vmem [resolvable:$true] %s39_s27 }
  0x3c   :  { %s2541_s28 = scalar_lea.vmem %s169_s3, 48  ;;  %s2545_s9 = scalar_lea.vmem %s169_s3, 64 }
  0x3d   :  { %p2542_p6 = scmp.ne.s32.totalorder %s169_s3, %s2541_s28  ;;  %p2546_p7 = scmp.lt.s32.totalorder %s169_s3, %s169_s3 }
  0x3e   :  { %p2547_p8 = scmp.lt.s32.totalorder %s2545_s9, %s2541_s28 }
  0x40   :  { %p2548_p9 = por %p2547_p8, %p2546_p7 }
  0x42   :  { %p2549_p10 = pnand %p2548_p9, %p2542_p6 }
  0x44   :  { %2552 = shalt.err (!%p2549_p10)
}
  0x45   :  { %171 = dma.hbm_to_vmem [thread:$0]  %s3476_s17, 48, %s169_s3, [#allocation26]  }
  0x46   :  { %s2561_s5 = scalar_lea.vmem %s40_s27, 256  ;;  %p2566_p12 = scmp.lt.s32.totalorder %s40_s27, %s40_s27 }
  0x47   :  { %p2562_p11 = scmp.ne.s32.totalorder %s40_s27, %s2561_s5  ;;  %p2567_p13 = scmp.lt.s32.totalorder %s2561_s5, %s2561_s5 }
  0x49   :  { %p2568_p0 = por %p2567_p13, %p2566_p12 }
  0x4b   :  { %p2569_p1 = pnand %p2568_p0, %p2562_p11 }
  0x4d   :  { %2572 = shalt.err (!%p2569_p1)
}
  0x4e   :  { %s3490_s20 = sld [smem:[#allocation59_spill]]  ;;  %s2713_s21 = smov [#allocation10]  }
  0x4f   :  { %s3491_s7 = sld [smem:[#allocation61_spill]]  ;;  %s2714_s17 = smov [#allocation11]  }
  0x50   :  { %s3492_s25 = sld [smem:[#allocation62_spill]]  ;;  %s2715_s3 = smov [#allocation15]  }
  0x51   :  { %s84_s26 = sshll.u32 %s2715_s3, 4  ;;  %s2716_s28 = smov [#allocation18]   ;;  %s85_s26 = int_to_ptr.vmem [resolvable:$true] %s84_s26 }
  0x52   :  { %s106_s9 = sshll.u32 %s2716_s28, 4  ;;  %s2597_s29 = scalar_lea.vmem %s85_s26, 16  ;;  %s107_s9 = int_to_ptr.vmem [resolvable:$true] %s106_s9 }
  0x53   :  { %p2598_p2 = scmp.ne.s32.totalorder %s85_s26, %s2597_s29  ;;  %s2601_s0 = scalar_lea.vmem %s85_s26, 32 }
  0x54   :  { %45 = dma.hbm_to_vmem [thread:$0]  %s3490_s20, 256, %s40_s27, [#allocation8], %s2707_s12, %s2707_s12, %s2708_s23  }
  0x55   :  { %55 = dma.hbm_to_smem %s3491_s7, 16, %s2713_s21, [#allocation9]  }
  0x56   :  { %63 = dma.hbm_to_smem %s3492_s25, 16, %s2714_s17, [#allocation12]  }
  0x57   :  { %p2602_p3 = scmp.lt.s32.totalorder %s85_s26, %s85_s26  ;;  %p2603_p4 = scmp.lt.s32.totalorder %s2601_s0, %s2597_s29 }
  0x59   :  { %p2604_p5 = por %p2603_p4, %p2602_p3 }
  0x5b   :  { %p2605_p6 = pnand %p2604_p5, %p2598_p2 }
  0x5d   :  { %2608 = shalt.err (!%p2605_p6)
}
  0x5e   :  { %87 = dma.hbm_to_vmem [thread:$0]  %s3465_s6, 16, %s85_s26, [#allocation14]  }
  0x5f   :  { %s2617_s14 = scalar_lea.vmem %s107_s9, 128  ;;  %p2622_p8 = scmp.lt.s32.totalorder %s107_s9, %s107_s9 }
  0x60   :  { %p2618_p7 = scmp.ne.s32.totalorder %s107_s9, %s2617_s14  ;;  %p2623_p9 = scmp.lt.s32.totalorder %s2617_s14, %s2617_s14 }
  0x62   :  { %p2624_p10 = por %p2623_p9, %p2622_p8 }
  0x64   :  { %p2625_p11 = pnand %p2624_p10, %p2618_p7 }
  0x66   :  { %2628 = shalt.err (!%p2625_p11)
}
  0x67   :  { %109 = dma.hbm_to_vmem [thread:$0]  %s3467_s8, 128, %s107_s9, [#allocation17]  }
  0x68   :  { %s2717_s21 = smov [#allocation21]   ;;  %s2718_s2 = smov [#allocation24]  }
  0x69   :  { %s131_s1 = sshll.u32 %s2717_s21, 4  ;;  %s155_s7 = sshll.u32 %s2718_s2, 4  ;;  %s132_s1 = int_to_ptr.vmem [resolvable:$true] %s131_s1  ;;  %s156_s7 = int_to_ptr.vmem [resolvable:$true] %s155_s7 }
  0x6a   :  { %s2637_s17 = scalar_lea.vmem %s132_s1, 2048  ;;  %p2642_p13 = scmp.lt.s32.totalorder %s132_s1, %s132_s1 }
  0x6b   :  { %p2638_p12 = scmp.ne.s32.totalorder %s132_s1, %s2637_s17  ;;  %p2643_p0 = scmp.lt.s32.totalorder %s2637_s17, %s2637_s17 }
  0x6d   :  { %p2644_p1 = por %p2643_p0, %p2642_p13 }
  0x6f   :  { %p2645_p2 = pnand %p2644_p1, %p2638_p12 }
  0x71   :  { %2648 = shalt.err (!%p2645_p2)
}
  0x72   :  { %137 = dma.hbm_to_vmem [thread:$0]  %s3472_s13, 2048, %s132_s1, [#allocation20], %s2707_s12, %s2707_s12, %s2708_s23  }
  0x73   :  { %s2657_s8 = scalar_lea.vmem %s156_s7, 6144  ;;  %p2662_p4 = scmp.lt.s32.totalorder %s156_s7, %s156_s7 }
  0x74   :  { %p2658_p3 = scmp.ne.s32.totalorder %s156_s7, %s2657_s8  ;;  %p2663_p5 = scmp.lt.s32.totalorder %s2657_s8, %s2657_s8 }
  0x76   :  { %p2664_p6 = por %p2663_p5, %p2662_p4 }
  0x78   :  { %p2665_p7 = pnand %p2664_p6, %p2658_p3 }
  0x7a   :  { %2668 = shalt.err (!%p2665_p7)
}
  0x7b   :  { %s2719_s24 = smov 384   ;;  %s2720_s25 = smov 24  }
  0x7c   :  { %161 = dma.hbm_to_vmem [thread:$0]  %s3475_s16, 6144, %s156_s7, [#allocation23], %s2719_s24, %s2719_s24, %s2720_s25  }
  0x7d   :  { %s2721_s28 = smov [#allocation27]  }
  0x7e   :  { %s178_s9 = sshll.u32 %s2721_s28, 4  ;;  %s179_s9 = int_to_ptr.vmem [resolvable:$true] %s178_s9 }
  0x7f   :  { %s2677_s29 = scalar_lea.vmem %s179_s9, 48  ;;  %s2681_s0 = scalar_lea.vmem %s179_s9, 64 }
  0x80   :  { %p2678_p8 = scmp.ne.s32.totalorder %s179_s9, %s2677_s29  ;;  %p2682_p9 = scmp.lt.s32.totalorder %s179_s9, %s179_s9 }
  0x81   :  { %p2683_p10 = scmp.lt.s32.totalorder %s2681_s0, %s2677_s29 }
  0x83   :  { %p2684_p11 = por %p2683_p10, %p2682_p9 }
  0x85   :  { %p2685_p12 = pnand %p2684_p11, %p2678_p8 }
  0x87   :  { %2688 = shalt.err (!%p2685_p12)
}
  0x88   :  { %181 = dma.hbm_to_vmem [thread:$0]  %s3477_s18, 48, %s179_s9, [#allocation26]  }
  0x89   :  { %2689 = dma.done.wait [#allocation8], 256  }
  0x8a   :  { %2690 = vsyncadd [#allocation8], 4294967040 }
  0x8b   :  { %2691 = dma.done.wait [#allocation9], 16  }
  0x8c   :  { %2692 = vsyncadd [#allocation9], 4294967280 }
  0x8d   :  { %2693 = dma.done.wait [#allocation12], 16  }
  0x8e   :  { %2694 = vsyncadd [#allocation12], 4294967280 }
  0x8f   :  { %2695 = dma.done.wait [#allocation14], 400  }
  0x90   :  { %2696 = vsyncadd [#allocation14], 4294966896 }
  0x91   :  { %2697 = dma.done.wait [#allocation17], 512  }
  0x92   :  { %2698 = vsyncadd [#allocation17], 4294966784 }
  0x93   :  { %2699 = dma.done.wait [#allocation20], 2064  }
  0x94   :  { %2700 = vsyncadd [#allocation20], 4294965232 }
  0x95   :  { %2701 = dma.done.wait [#allocation23], 6160  }
  0x96   :  { %2702 = vsyncadd [#allocation23], 4294961136 }
  0x97   :  { %2703 = dma.done.wait [#allocation26], 96  }
  0x98   :  { %2704 = vsyncadd [#allocation26], 4294967200 }
  0x99   :  { %221 = sfence }
  0x9a   :  { %v226_v1 = vld [vmem:[#allocation13 + $0x10] sm:$0xff]  ;;  %v225_v3 = vld [vmem:[#allocation13 + $0x8] sm:$0xff]  ;;  %v224_v5 = vld [vmem:[#allocation13] sm:$0xff]  ;;  %vm234_vm0 = vcmask 195584   ;;  %v2722_v11 = vmov 0.0   ;;  %vm2723_vm1 = vmmov 0  }
  0x9b   :  { %v326_v2 = vld [vmem:[#allocation16 + $0x10] sm:$0xff]  ;;  %2142 = vmatprep.subr.mxu0 %v226_v1  ;;  %v325_v4 = vld [vmem:[#allocation16 + $0x8] sm:$0xff]  ;;  %v324_v6 = vld [vmem:[#allocation16] sm:$0xff]  ;;  %s3493_s5 = sld [smem:[#allocation60_spill]]  ;;  %vm610_vm2 = vcmask 64512   ;;  %vm1059_vm11 = vcmask 97280  }
  0x9c   :  { %2151 = vmatprep.subr.mxu1 %v326_v2  ;;  %2143 = vmatpush3.msra.mxu0 %v226_v1  ;;  %v222_v7 = vld [vmem:[#allocation7] sm:$0xff]  ;;  %v223_v8 = vld [vmem:[#allocation7 + $0x8] sm:$0xf]  ;;  %v744_v17 = vld [vmem:[%s3470_s11 + $0x68] sm:$0xff]  ;;  %s3035_s26 = sld [smem:[#allocation10]]  ;;  %vm1214_vm12 = vcmask 1043456  }
  0x9d   :  { %2152 = vmatpush3.msra.mxu1 %v326_v2  ;;  %2144 = vmatprep.subr.mxu0 %v225_v3  ;;  %v602_v9 = vld [vmem:[#allocation18] sm:$0xff]  ;;  %v728_v18 = vld [vmem:[%s3469_s10 + $0x68] sm:$0xff]  ;;  %v743_v19 = vld [vmem:[%s3470_s11 + $0x60] sm:$0xff]  ;;  %s3037_s28 = sld [smem:[#allocation10 + $0x1]] }
  0x9e   :  { %2153 = vmatprep.subr.mxu1 %v325_v4  ;;  %2145 = vmatpush3.msra.mxu0 %v225_v3  ;;  %v746_v10 = vld [vmem:[%s3470_s11 + $0x78] sm:$0xff]  ;;  %v745_v14 = vld [vmem:[%s3470_s11 + $0x70] sm:$0xff]  ;;  %v727_v21 = vld [vmem:[%s3469_s10 + $0x60] sm:$0xff]  ;;  %s3041_s9 = sld [smem:[#allocation11]] }
  0x9f   :  { %2154 = vmatpush3.msra.mxu1 %v325_v4  ;;  %2146 = vmatprep.subr.mxu0 %v224_v5  ;;  %v730_v13 = vld [vmem:[%s3469_s10 + $0x78] sm:$0xff]  ;;  %v729_v15 = vld [vmem:[%s3469_s10 + $0x70] sm:$0xff]  ;;  %v740_v26 = vld [vmem:[%s3470_s11 + $0x48] sm:$0xff]  ;;  %s3043_s29 = sld [smem:[#allocation11 + $0x1]] }
  0xa0   :  { %2155 = vmatprep.subr.mxu1 %v324_v6  ;;  %2147 = vmatpush3.msra.mxu0 %v224_v5  ;;  %v742_v22 = vld [vmem:[%s3470_s11 + $0x58] sm:$0xff]  ;;  %v741_v24 = vld [vmem:[%s3470_s11 + $0x50] sm:$0xff]  ;;  %v724_v27 = vld [vmem:[%s3469_s10 + $0x48] sm:$0xff]  ;;  %s3047_s0 = sld [smem:[#allocation11 + $0x3]] }
  0xa1   :  { %2148 = vmatprep.mubr.msk.f32.mxu0 %vm234_vm0, %v222_v7  ;;  %2156 = vmatpush3.msra.mxu1 %v324_v6  ;;  %v599_v12 = vld [vmem:[%s3493_s5] sm:$0xff]  ;;  %v600_v16 = vld [vmem:[%s3493_s5 + $0x8] sm:$0xff]  ;;  %v601_v20 = vld [vmem:[%s3493_s5 + $0x10] sm:$0xff]  ;;  %s3049_s13 = sld [smem:[#allocation11 + $0x4]] }
  0xa2   :  { %2157 = vmatprep.mubr.msk.f32.mxu1 %vm234_vm0, %v222_v7  ;;  %2149 = vmatmul.mubr.msk.f32.vlgmr.msra.gmra.mxu0 %vm234_vm0, %v223_v8  ;;  %v726_v23 = vld [vmem:[%s3469_s10 + $0x58] sm:$0xff]  ;;  %v725_v25 = vld [vmem:[%s3469_s10 + $0x50] sm:$0xff]  ;;  %v739_v28 = vld [vmem:[%s3470_s11 + $0x40] sm:$0xff]  ;;  %s3051_s12 = sld [smem:[#allocation11 + $0x5]] }
  0xa3   :  { %2158 = vmatmul.mubr.msk.f32.vlgmr.msra.gmra.mxu1 %vm234_vm0, %v223_v8  ;;  %2160 = vmatprep.subr.mxu0 %v2722_v11  ;;  %v723_v29 = vld [vmem:[%s3469_s10 + $0x40] sm:$0xff]  ;;  %v738_v30 = vld [vmem:[%s3470_s11 + $0x38] sm:$0xff]  ;;  %v737_v32 = vld [vmem:[%s3470_s11 + $0x30] sm:$0xff]  ;;  %s3053_s16 = sld [smem:[#allocation11 + $0x6]] }
  0xa4   :  { %2162 = vmatprep.mubr.msk.f32.mxu0 %vm2723_vm1, %v2722_v11  ;;  %2161 = vmatpush3.msra.mxu0 %v602_v9  ;;  %v722_v31 = vld [vmem:[%s3469_s10 + $0x38] sm:$0xff]  ;;  %v721_v33 = vld [vmem:[%s3469_s10 + $0x30] sm:$0xff]  ;;  %v736_v34 = vld [vmem:[%s3470_s11 + $0x28] sm:$0xff]  ;;  %s3055_s18 = sld [smem:[#allocation11 + $0x7]] }
  0xa5   :  { %2171 = vmatprep.subr.mxu1 %v2722_v11  ;;  %2212 = vmatprep.subr.mxu0 %v2722_v11  ;;  %v720_v35 = vld [vmem:[%s3469_s10 + $0x28] sm:$0xff]  ;;  %v735_v36 = vld [vmem:[%s3470_s11 + $0x20] sm:$0xff]  ;;  %v734_v38 = vld [vmem:[%s3470_s11 + $0x18] sm:$0xff]  ;;  %s3057_s23 = sld [smem:[#allocation10 + $0x3]] }
  0xa6   :  { %2172 = vmatpush3.msra.mxu1 %v746_v10  ;;  %2163 = vmatmul.mubr.msk.f32.vlgmr.msra.gmra.mxu0 %vm610_vm2, %v599_v12  ;;  %v719_v37 = vld [vmem:[%s3469_s10 + $0x20] sm:$0xff]  ;;  %v718_v39 = vld [vmem:[%s3469_s10 + $0x18] sm:$0xff]  ;;  %v733_v40 = vld [vmem:[%s3470_s11 + $0x10] sm:$0xff]  ;;  %s3059_s27 = sld [smem:[#allocation10 + $0x4]] }
  0xa7   :  { %2173 = vmatprep.subr.mxu1 %v2722_v11  ;;  %2165 = vmatprep.mubr.msk.f32.mxu0 %vm2723_vm1, %v2722_v11  ;;  %v717_v41 = vld [vmem:[%s3469_s10 + $0x10] sm:$0xff]  ;;  %v732_v42 = vld [vmem:[%s3470_s11 + $0x8] sm:$0xff]  ;;  %v731_v44 = vld [vmem:[%s3470_s11] sm:$0xff]  ;;  %s3039_s11 = sld [smem:[#allocation10 + $0x2]] }
  0xa8   :  { %2213 = vmatpush3.msra.mxu0 %v730_v13  ;;  %2174 = vmatpush3.msra.mxu1 %v745_v14  ;;  %v716_v43 = vld [vmem:[%s3469_s10 + $0x8] sm:$0xff]  ;;  %v715_v45 = vld [vmem:[%s3469_s10] sm:$0xff]  ;;  %s3045_s10 = sld [smem:[#allocation11 + $0x2]]  ;;  %v1949_v46 = vld [vmem:[#allocation15] ss:$0 sm:$0xff] }
  0xa9   :  { %2214 = vmatprep.subr.mxu0 %v2722_v11  ;;  %2175 = vmatprep.subr.mxu1 %v2722_v11  ;;  %3494 = sst [smem:[#allocation36_spill]] %s3051_s12  ;;  %v3144_v6 = vld [vmem:[#allocation19] ss:$0 sm:$0xff] }
  0xaa   :  { %2215 = vmatpush3.msra.mxu0 %v729_v15  ;;  %2176 = vmatpush3.msra.mxu1 %v744_v17  ;;  %3495 = sst [smem:[#allocation37_spill]] %s3053_s16 }
  0xab   :  { %2166 = vmatmul.mubr.msk.f32.gmra.mxu0 %vm610_vm2, %v600_v16  ;;  %2216 = vmatprep.subr.mxu0 %v2722_v11  ;;  %3496 = sst [smem:[#allocation38_spill]] %s3055_s18 }
  0xac   :  { %2168 = vmatprep.mubr.msk.f32.mxu0 %vm2723_vm1, %v2722_v11  ;;  %2177 = vmatprep.subr.mxu1 %v2722_v11  ;;  %s3061_s5 = sld [smem:[#allocation10 + $0x5]] }
  0xad   :  { %2217 = vmatpush3.msra.mxu0 %v728_v18  ;;  %2178 = vmatpush3.msra.mxu1 %v743_v19  ;;  %s3063_s14 = sld [smem:[#allocation10 + $0x6]] }
  0xae   :  { %2218 = vmatprep.subr.mxu0 %v2722_v11  ;;  %2179 = vmatprep.subr.mxu1 %v2722_v11  ;;  %s3065_s30 = sld [smem:[#allocation10 + $0x7]] }
  0xaf   :  { %2169 = vmatmul.mubr.msk.f32.gmra.mxu0 %vm610_vm2, %v601_v20  ;;  %2203 = vmatprep.mubr.msk.f32.mxu1 %vm2723_vm1, %v2722_v11  ;;  %s3067_s20 = sld [smem:[#allocation10 + $0x8]] }
  0xb0   :  { %2219 = vmatpush3.msra.mxu0 %v727_v21  ;;  %2244 = vmatprep.mubr.msk.f32.mxu0 %vm2723_vm1, %v2722_v11  ;;  %s3069_s21 = sld [smem:[#allocation10 + $0x9]] }
  0xb1   :  { %2220 = vmatprep.subr.mxu0 %v2722_v11  ;;  %2180 = vmatpush3.msra.mxu1 %v742_v22  ;;  %s3071_s1 = sld [smem:[#allocation10 + $0xa]] }
  0xb2   :  { %2181 = vmatprep.subr.mxu1 %v2722_v11  ;;  %2221 = vmatpush3.msra.mxu0 %v726_v23  ;;  %s3073_s2 = sld [smem:[#allocation10 + $0xb]] }
  0xb3   :  { %2222 = vmatprep.subr.mxu0 %v2722_v11  ;;  %2182 = vmatpush3.msra.mxu1 %v741_v24  ;;  %s3075_s7 = sld [smem:[#allocation10 + $0xc]] }
  0xb4   :  { %2183 = vmatprep.subr.mxu1 %v2722_v11  ;;  %2223 = vmatpush3.msra.mxu0 %v725_v25  ;;  %s3077_s17 = sld [smem:[#allocation10 + $0xd]] }
  0xb5   :  { %2184 = vmatpush3.msra.mxu1 %v740_v26  ;;  %2224 = vmatprep.subr.mxu0 %v2722_v11  ;;  %s3079_s6 = sld [smem:[#allocation10 + $0xe]] }
  0xb6   :  { %2185 = vmatprep.subr.mxu1 %v2722_v11  ;;  %2225 = vmatpush3.msra.mxu0 %v724_v27  ;;  %s3081_s22 = sld [smem:[#allocation10 + $0xf]] }
  0xb7   :  { %2186 = vmatpush3.msra.mxu1 %v739_v28  ;;  %2226 = vmatprep.subr.mxu0 %v2722_v11  ;;  %s3083_s8 = sld [smem:[#allocation10 + $0x10]] }
  0xb8   :  { %2187 = vmatprep.subr.mxu1 %v2722_v11  ;;  %2227 = vmatpush3.msra.mxu0 %v723_v29  ;;  %s3085_s24 = sld [smem:[#allocation10 + $0x11]] }
  0xb9   :  { %2188 = vmatpush3.msra.mxu1 %v738_v30  ;;  %2228 = vmatprep.subr.mxu0 %v2722_v11  ;;  %s3087_s25 = sld [smem:[#allocation10 + $0x12]] }
  0xba   :  { %2189 = vmatprep.subr.mxu1 %v2722_v11  ;;  %2229 = vmatpush3.msra.mxu0 %v722_v31  ;;  %s3089_s3 = sld [smem:[#allocation10 + $0x13]] }
  0xbb   :  { %2190 = vmatpush3.msra.mxu1 %v737_v32  ;;  %2230 = vmatprep.subr.mxu0 %v2722_v11  ;;  %s3091_s19 = sld [smem:[#allocation10 + $0x14]] }
  0xbc   :  { %2191 = vmatprep.subr.mxu1 %v2722_v11  ;;  %2231 = vmatpush3.msra.mxu0 %v721_v33  ;;  %3497 = sst [smem:[#allocation39_spill]] %s3081_s22 }
  0xbd   :  { %2192 = vmatpush3.msra.mxu1 %v736_v34  ;;  %2232 = vmatprep.subr.mxu0 %v2722_v11  ;;  %3498 = sst [smem:[#allocation40_spill]] %s3083_s8 }
  0xbe   :  { %2193 = vmatprep.subr.mxu1 %v2722_v11  ;;  %2233 = vmatpush3.msra.mxu0 %v720_v35  ;;  %3499 = sst [smem:[#allocation41_spill]] %s3085_s24 }
  0xbf   :  { %2194 = vmatpush3.msra.mxu1 %v735_v36  ;;  %2234 = vmatprep.subr.mxu0 %v2722_v11  ;;  %3500 = sst [smem:[#allocation42_spill]] %s3087_s25 }
  0xc0   :  { %2195 = vmatprep.subr.mxu1 %v2722_v11  ;;  %2235 = vmatpush3.msra.mxu0 %v719_v37  ;;  %3501 = sst [smem:[#allocation43_spill]] %s3089_s3 }
  0xc1   :  { %2196 = vmatpush3.msra.mxu1 %v734_v38  ;;  %2236 = vmatprep.subr.mxu0 %v2722_v11  ;;  %3502 = sst [smem:[#allocation44_spill]] %s3091_s19 }
  0xc2   :  { %2197 = vmatprep.subr.mxu1 %v2722_v11  ;;  %2237 = vmatpush3.msra.mxu0 %v718_v39  ;;  %s3093_s15 = sld [smem:[#allocation10 + $0x15]] }
  0xc3   :  { %2198 = vmatpush3.msra.mxu1 %v733_v40  ;;  %2238 = vmatprep.subr.mxu0 %v2722_v11  ;;  %s3095_s4 = sld [smem:[#allocation10 + $0x16]]  ;;  %v941_v40 = vld [vmem:[#allocation21 + $0x78] sm:$0xff] }
  0xc4   :  { %2199 = vmatprep.subr.mxu1 %v2722_v11  ;;  %2239 = vmatpush3.msra.mxu0 %v717_v41  ;;  %s3097_s18 = sld [smem:[#allocation10 + $0x17]] }
  0xc5   :  { %2200 = vmatpush3.msra.mxu1 %v732_v42  ;;  %2240 = vmatprep.subr.mxu0 %v2722_v11  ;;  %s3099_s16 = sld [smem:[#allocation11 + $0x8]] }
  0xc6   :  { %2201 = vmatprep.subr.mxu1 %v2722_v11  ;;  %2241 = vmatpush3.msra.mxu0 %v716_v43  ;;  %s3101_s12 = sld [smem:[#allocation11 + $0x9]] }
  0xc7   :  { %2202 = vmatpush3.msra.mxu1 %v731_v44  ;;  %2242 = vmatprep.subr.mxu0 %v2722_v11  ;;  %s3103_s22 = sld [smem:[#allocation11 + $0xa]] }
  0xc8   :  { %2243 = vmatpush3.msra.mxu0 %v715_v45  ;;  %2253 = vmatprep.subr.mxu1 %v2722_v11  ;;  %3503 = sst [smem:[#allocation45_spill]] %s3093_s15 }
  0xc9   :  { %3504 = sst [smem:[#allocation46_spill]] %s3095_s4 }
  0xca   :  { %s3105_s8 = sld [smem:[#allocation11 + $0xb]] }
  0xcb   :  { %3505 = sst [smem:[#allocation47_spill]] %s3099_s16 }
  0xcc   :  { %3506 = sst [smem:[#allocation48_spill]] %s3101_s12 }
  0xcd   :  { %s3107_s24 = sld [smem:[#allocation11 + $0xc]] }
  0xce   :  { %s3109_s25 = sld [smem:[#allocation11 + $0xd]] }
  0xcf   :  { %s3111_s3 = sld [smem:[#allocation11 + $0xe]] }
  0xd0   :  { %3507 = sst [smem:[#allocation49_spill]] %s3105_s8 }
  0xd1   :  { %s3113_s19 = sld [smem:[#allocation11 + $0xf]] }
  0xd2   :  { %s3115_s15 = sld [smem:[#allocation11 + $0x10]] }
  0xd3   :  { %s3117_s4 = sld [smem:[#allocation11 + $0x11]] }
  0xd4   :  { %3508 = sst [smem:[#allocation50_spill]] %s3109_s25 }
  0xd5   :  { %s3119_s16 = sld [smem:[#allocation11 + $0x12]] }
  0xd6   :  { %s3121_s12 = sld [smem:[#allocation11 + $0x13]] }
  0xd7   :  { %s3123_s8 = sld [smem:[#allocation11 + $0x14]] }
  0xd8   :  { %3509 = sst [smem:[#allocation51_spill]] %s3115_s15  ;;  %s425_s15 = scalar_lea.vmem [#allocation3], %s3061_s5 }
  0xd9   :  { %3510 = sst [smem:[#allocation52_spill]] %s3117_s4  ;;  %s413_s4 = scalar_lea.vmem [#allocation3], %s3039_s11 }
  0xda   :  { %s3125_s25 = sld [smem:[#allocation11 + $0x15]]  ;;  %s445_s11 = scalar_lea.vmem [#allocation3], %s3071_s1 }
  0xdb   :  { %3511 = sst [smem:[#allocation53_spill]] %s3119_s16  ;;  %s409_s16 = scalar_lea.vmem [#allocation3], %s3037_s28 }
  0xdc   :  { %3512 = sst [smem:[#allocation54_spill]] %s3121_s12  ;;  %s405_s12 = scalar_lea.vmem [#allocation3], %s3035_s26 }
  0xdd   :  { %3513 = sst [smem:[#allocation55_spill]] %s3123_s8  ;;  %s429_s26 = scalar_lea.vmem [#allocation3], %s3063_s14 }
  0xde   :  { %s3129_s8 = sld [smem:[#allocation11 + $0x16]]  ;;  %s437_s28 = scalar_lea.vmem [#allocation3], %s3067_s20 }
  0xdf   :  { %s501_s5 = scalar_lea.vmem [#allocation2], %s3041_s9  ;;  %s3517_s14 = sld [smem:[#allocation36_spill]] }
  0xe0   :  { %3514 = sst [smem:[#allocation56_spill]] %s3125_s25  ;;  %s509_s20 = scalar_lea.vmem [#allocation2], %s3045_s10 }
  0xe1   :  { %s3131_s25 = sld [smem:[#allocation11 + $0x17]] }
  0xe2   :  { %s3519_s1 = sld [smem:[#allocation38_spill]] }
  0xe3   :  { %s3521_s9 = sld [smem:[#allocation40_spill]] }
  0xe4   :  { %3515 = sst [smem:[#allocation57_spill]] %s3129_s8  ;;  %s417_s8 = scalar_lea.vmem [#allocation3], %s3057_s23 }
  0xe5   :  { %s457_s23 = scalar_lea.vmem [#allocation3], %s3077_s17  ;;  %s517_s17 = scalar_lea.vmem [#allocation2], %s3049_s13 }
  0xe6   :  { %s3523_s10 = sld [smem:[#allocation42_spill]] }
  0xe7   :  { %3516 = sst [smem:[#allocation58_spill]] %s3131_s25  ;;  %s421_s25 = scalar_lea.vmem [#allocation3], %s3059_s27 }
  0xe8   :  { %s461_s27 = scalar_lea.vmem [#allocation3], %s3079_s6  ;;  %s521_s6 = scalar_lea.vmem [#allocation2], %s3517_s14 }
  0xe9   :  { %s3526_s13 = sld [smem:[#allocation45_spill]] }
  0xef   :  { %s489_s14 = scalar_lea.vmem [#allocation3], %s3526_s13  ;;  %s3537_s13 = sld [smem:[#allocation56_spill]] }
 0x162   :  { %v2150_v47 = vpop.f32.mrf.mxu0 }
 0x163   :  { %v2159_v48 = vpop.f32.mrf.mxu1  ;;  %v313_v49 = vadd.f32 %v2150_v47, %v1949_v46 }
 0x164   :  { %403 = vst [vmem:[#allocation3 + $0x8] sm:$0xf] %v2159_v48  ;;  %v307_v50 = vpop.f32.mrf.mxu0 }
 0x165   :  { %v393_v51 = vpop.f32.mrf.mxu1  ;;  %vm317_vm3 = vcmp.gt.f32.partialorder %v313_v49, 0.0  ;;  %v319_v52 = vmul.f32 0.01, %v313_v49  ;;  %v308_v53 = vadd.f32 %v1949_v46, %v307_v50  ;;  %v940_v46 = vld [vmem:[#allocation21 + $0x70] sm:$0xff] }
 0x166   :  { %402 = vst [vmem:[#allocation3] sm:$0xff] %v393_v51  ;;  %v3127_v54 = vpop.f32.mrf.mxu0 }
 0x167   :  { %v321_v55 = vsel %vm317_vm3, %v313_v49, %v319_v52  ;;  %vm316_vm4 = vcmp.gt.f32.partialorder %v308_v53, 0.0  ;;  %v318_v56 = vmul.f32 0.01, %v308_v53  ;;  %v687_v25 = vadd.f32 %v3144_v6, %v3127_v54 }
 0x168   :  { %323 = vst [vmem:[#allocation2 + $0x8] sm:$0xf] %v321_v55  ;;  %v2164_v57 = vpop.f32.mrf.mxu0 }
 0x169   :  { %v320_v58 = vsel %vm316_vm4, %v308_v53, %v318_v56 }
 0x16a   :  { %322 = vst [vmem:[#allocation2] sm:$0xff] %v320_v58 }
 0x16b   :  { %v3133_v59 = vpop.f32.mrf.mxu0 }
 0x16c   :  { %v692_v39 = vadd.f32 %v3144_v6, %v3133_v59 }
 0x16d   :  { %v406_v60 = vld [vmem:[%s405_s12] sm:$0x1]  ;;  %v2167_v63 = vpop.f32.mrf.mxu0  ;;  %s449_s12 = scalar_lea.vmem [#allocation3], %s3073_s2  ;;  %s3520_s2 = sld [smem:[#allocation39_spill]] }
 0x16e   :  { %v410_v61 = vld [vmem:[%s409_s16] sm:$0x1]  ;;  %407 = vst [vmem:[#allocation4] sm:$0x1] %v406_v60  ;;  %s453_s16 = scalar_lea.vmem [#allocation3], %s3075_s7  ;;  %s513_s7 = scalar_lea.vmem [#allocation2], %s3047_s0 }
 0x16f   :  { %v414_v62 = vld [vmem:[%s413_s4] sm:$0x1]  ;;  %411 = vst [vmem:[#allocation4 + $0x1] sm:$0x1] %v410_v61  ;;  %s433_s4 = scalar_lea.vmem [#allocation3], %s3065_s30  ;;  %v3146_v7 = vpop.f32.mrf.mxu0  ;;  %s505_s30 = scalar_lea.vmem [#allocation2], %s3043_s29 }
 0x170   :  { %415 = vst [vmem:[#allocation4 + $0x2] sm:$0x1] %v414_v62  ;;  %v418_v0 = vld [vmem:[%s417_s8] sm:$0x1]  ;;  %s3522_s29 = sld [smem:[#allocation41_spill]]  ;;  %v697_v51 = vadd.f32 %v3144_v6, %v3146_v7  ;;  %v936_v7 = vld [vmem:[#allocation21 + $0x50] sm:$0xff] }
 0x171   :  { %v422_v1 = vld [vmem:[%s421_s25] sm:$0x1]  ;;  %419 = vst [vmem:[#allocation4 + $0x3] sm:$0x1] %v418_v0  ;;  %v2170_v15 = vpop.f32.mrf.mxu0  ;;  %s529_s25 = scalar_lea.vmem [#allocation2], %s3519_s1  ;;  %s3525_s0 = sld [smem:[#allocation44_spill]] }
 0x172   :  { %v426_v2 = vld [vmem:[%s425_s15] sm:$0x1]  ;;  %423 = vst [vmem:[#allocation4 + $0x4] sm:$0x1] %v422_v1  ;;  %s441_s15 = scalar_lea.vmem [#allocation3], %s3069_s21  ;;  %s3518_s21 = sld [smem:[#allocation37_spill]] }
 0x173   :  { %427 = vst [vmem:[#allocation4 + $0x5] sm:$0x1] %v426_v2  ;;  %v430_v3 = vld [vmem:[%s429_s26] sm:$0x1]  ;;  %s3524_s26 = sld [smem:[#allocation43_spill]]  ;;  %v939_v0 = vld [vmem:[#allocation21 + $0x68] sm:$0xff] }
 0x174   :  { %v434_v4 = vld [vmem:[%s433_s4] sm:$0x1]  ;;  %431 = vst [vmem:[#allocation4 + $0x6] sm:$0x1] %v430_v3  ;;  %s465_s4 = scalar_lea.vmem [#allocation3], %s3520_s2  ;;  %s3531_s1 = sld [smem:[#allocation50_spill]] }
 0x175   :  { %v438_v5 = vld [vmem:[%s437_s28] sm:$0x1]  ;;  %435 = vst [vmem:[#allocation4 + $0x7] sm:$0x1] %v434_v4  ;;  %s469_s28 = scalar_lea.vmem [#allocation3], %s3521_s9  ;;  %s3532_s9 = sld [smem:[#allocation51_spill]] }
 0x176   :  { %439 = vst [vmem:[#allocation4 + $0x8] sm:$0x1] %v438_v5  ;;  %v442_v8 = vld [vmem:[%s441_s15] sm:$0x1]  ;;  %s473_s15 = scalar_lea.vmem [#allocation3], %s3522_s29  ;;  %s3533_s29 = sld [smem:[#allocation52_spill]] }
 0x177   :  { %v446_v9 = vld [vmem:[%s445_s11] sm:$0x1]  ;;  %443 = vst [vmem:[#allocation4 + $0x9] sm:$0x1] %v442_v8  ;;  %s3527_s11 = sld [smem:[#allocation46_spill]]  ;;  %v937_v5 = vld [vmem:[#allocation21 + $0x58] sm:$0xff] }
 0x178   :  { %v450_v10 = vld [vmem:[%s449_s12] sm:$0x1]  ;;  %447 = vst [vmem:[#allocation4 + $0xa] sm:$0x1] %v446_v9  ;;  %s525_s8 = scalar_lea.vmem [#allocation2], %s3518_s21  ;;  %s477_s12 = scalar_lea.vmem [#allocation3], %s3523_s10 }
 0x179   :  { %451 = vst [vmem:[#allocation4 + $0xb] sm:$0x1] %v450_v10  ;;  %v454_v12 = vld [vmem:[%s453_s16] sm:$0x1]  ;;  %s481_s16 = scalar_lea.vmem [#allocation3], %s3524_s26  ;;  %s3530_s21 = sld [smem:[#allocation49_spill]] }
 0x17a   :  { %v458_v13 = vld [vmem:[%s457_s23] sm:$0x1]  ;;  %455 = vst [vmem:[#allocation4 + $0xc] sm:$0x1] %v454_v12  ;;  %s3528_s23 = sld [smem:[#allocation47_spill]]  ;;  %s553_s10 = scalar_lea.vmem [#allocation2], %s3531_s1 }
 0x17b   :  { %v462_v14 = vld [vmem:[%s461_s27] sm:$0x1]  ;;  %459 = vst [vmem:[#allocation4 + $0xd] sm:$0x1] %v458_v13  ;;  %s485_s27 = scalar_lea.vmem [#allocation3], %s3525_s0  ;;  %s565_s26 = scalar_lea.vmem [#allocation2], %s3532_s9 }
 0x17c   :  { %v502_v16 = vld [vmem:[%s501_s5] sm:$0x1]  ;;  %463 = vst [vmem:[#allocation4 + $0xe] sm:$0x1] %v462_v14  ;;  %s3529_s5 = sld [smem:[#allocation48_spill]]  ;;  %v935_v9 = vld [vmem:[#allocation21 + $0x48] sm:$0xff] }
 0x17d   :  { %v506_v17 = vld [vmem:[%s505_s30] sm:$0x1]  ;;  %503 = vst [vmem:[#allocation5] sm:$0x1] %v502_v16  ;;  %s493_s30 = scalar_lea.vmem [#allocation3], %s3527_s11  ;;  %s3536_s0 = sld [smem:[#allocation55_spill]] }
 0x17e   :  { %v510_v18 = vld [vmem:[%s509_s20] sm:$0x1]  ;;  %507 = vst [vmem:[#allocation5 + $0x1] sm:$0x1] %v506_v17  ;;  %s497_s20 = scalar_lea.vmem [#allocation3], %s3097_s18  ;;  %v933_v12 = vld [vmem:[#allocation21 + $0x38] sm:$0xff] }
 0x17f   :  { %511 = vst [vmem:[#allocation5 + $0x2] sm:$0x1] %v510_v18  ;;  %v514_v19 = vld [vmem:[%s513_s7] sm:$0x1]  ;;  %s545_s18 = scalar_lea.vmem [#allocation2], %s3530_s21  ;;  %v932_v13 = vld [vmem:[#allocation21 + $0x30] sm:$0xff] }
 0x180   :  { %v518_v20 = vld [vmem:[%s517_s17] sm:$0x1]  ;;  %515 = vst [vmem:[#allocation5 + $0x3] sm:$0x1] %v514_v19  ;;  %s533_s2 = scalar_lea.vmem [#allocation2], %s3528_s23  ;;  %s541_s17 = scalar_lea.vmem [#allocation2], %s3103_s22 }
 0x181   :  { %v522_v21 = vld [vmem:[%s521_s6] sm:$0x1]  ;;  %519 = vst [vmem:[#allocation5 + $0x4] sm:$0x1] %v518_v20  ;;  %s549_s6 = scalar_lea.vmem [#allocation2], %s3107_s24  ;;  %s557_s22 = scalar_lea.vmem [#allocation2], %s3111_s3 }
 0x182   :  { %523 = vst [vmem:[#allocation5 + $0x5] sm:$0x1] %v522_v21  ;;  %v526_v22 = vld [vmem:[%s525_s8] sm:$0x1]  ;;  %s537_s7 = scalar_lea.vmem [#allocation2], %s3529_s5  ;;  %s3534_s8 = sld [smem:[#allocation53_spill]] }
 0x183   :  { %v530_v23 = vld [vmem:[%s529_s25] sm:$0x1]  ;;  %527 = vst [vmem:[#allocation5 + $0x6] sm:$0x1] %v526_v22  ;;  %s561_s25 = scalar_lea.vmem [#allocation2], %s3113_s19  ;;  %s569_s24 = scalar_lea.vmem [#allocation2], %s3533_s29 }
 0x184   :  { %v466_v24 = vld [vmem:[%s465_s4] sm:$0x1]  ;;  %531 = vst [vmem:[#allocation5 + $0x7] sm:$0x1] %v530_v23  ;;  %s3535_s4 = sld [smem:[#allocation54_spill]]  ;;  %s581_s11 = scalar_lea.vmem [#allocation2], %s3536_s0 }
 0x185   :  { %467 = vst [vmem:[#allocation4 + $0xf] sm:$0x1] %v466_v24  ;;  %v470_v26 = vld [vmem:[%s469_s28] sm:$0x1]  ;;  %s3538_s3 = sld [smem:[#allocation57_spill]]  ;;  %v931_v14 = vld [vmem:[#allocation21 + $0x28] sm:$0xff] }
 0x186   :  { %v474_v27 = vld [vmem:[%s473_s15] sm:$0x1]  ;;  %471 = vst [vmem:[#allocation4 + $0x10] sm:$0x1] %v470_v26  ;;  %s3539_s28 = sld [smem:[#allocation58_spill]]  ;;  %v929_v16 = vld [vmem:[#allocation21 + $0x18] sm:$0xff] }
 0x187   :  { %v478_v28 = vld [vmem:[%s477_s12] sm:$0x1]  ;;  %475 = vst [vmem:[#allocation4 + $0x11] sm:$0x1] %v474_v27  ;;  %s585_s12 = scalar_lea.vmem [#allocation2], %s3537_s13  ;;  %v928_v17 = vld [vmem:[#allocation21 + $0x10] sm:$0xff] }
 0x188   :  { %479 = vst [vmem:[#allocation4 + $0x12] sm:$0x1] %v478_v28  ;;  %v482_v29 = vld [vmem:[%s481_s16] sm:$0x1]  ;;  %s573_s19 = scalar_lea.vmem [#allocation2], %s3534_s8  ;;  %v927_v18 = vld [vmem:[#allocation21 + $0x8] sm:$0xff] }
 0x189   :  { %v486_v30 = vld [vmem:[%s485_s27] sm:$0x1]  ;;  %483 = vst [vmem:[#allocation4 + $0x13] sm:$0x1] %v482_v29  ;;  %v2724_v20 = vmov 0  }
 0x18a   :  { %v490_v31 = vld [vmem:[%s489_s14] sm:$0x1]  ;;  %487 = vst [vmem:[#allocation4 + $0x14] sm:$0x1] %v486_v30  ;;  %s577_s15 = scalar_lea.vmem [#allocation2], %s3535_s4  ;;  %2415 = vset.pattern.permute.xlu0 %v2724_v20  ;;  %2416 = vset.pattern.permute.xlu1 %v2724_v20  ;;  %s3540_s14 = sld [smem:[#allocation63_spill]] }
 0x18b   :  { %491 = vst [vmem:[#allocation4 + $0x15] sm:$0x1] %v490_v31  ;;  %v494_v32 = vld [vmem:[%s493_s30] sm:$0x1]  ;;  %v712_v53 = vld [vmem:[#allocation5] sm:$0xff]  ;;  %s589_s16 = scalar_lea.vmem [#allocation2], %s3538_s3 }
 0x18c   :  { %v498_v33 = vld [vmem:[%s497_s20] sm:$0x1]  ;;  %495 = vst [vmem:[#allocation4 + $0x16] sm:$0x1] %v494_v32  ;;  %v597_v50 = vld [vmem:[#allocation4 + $0x8] sm:$0xff]  ;;  %2245 = vmatmul.mubr.f32.vlgmr.msra.gmra.mxu0 %v712_v53  ;;  %s593_s23 = scalar_lea.vmem [#allocation2], %s3539_s28 }
 0x18d   :  { %v596_v34 = vld [vmem:[#allocation4] sm:$0xff]  ;;  %499 = vst [vmem:[#allocation4 + $0x17] sm:$0x1] %v498_v33  ;;  %v701_v55 = vadd.f32 %v692_v39, %v597_v50  ;;  %2247 = vmatprep.mubr.msk.f32.mxu0 %vm2723_vm1, %v2722_v11  ;;  %v2004_v22 = vld [vmem:[#allocation6] ss:$0 sm:$0xff] }
 0x18e   :  { %v700_v35 = vadd.f32 %v687_v25, %v596_v34  ;;  %v534_v36 = vld [vmem:[%s533_s2] sm:$0x1] }
 0x18f   :  { %v538_v37 = vld [vmem:[%s537_s7] sm:$0x1]  ;;  %535 = vst [vmem:[#allocation5 + $0x8] sm:$0x1] %v534_v36  ;;  %vm704_vm6 = vcmp.gt.f32.partialorder %v701_v55, 0.0 }
 0x190   :  { %v542_v38 = vld [vmem:[%s541_s17] sm:$0x1]  ;;  %539 = vst [vmem:[#allocation5 + $0x9] sm:$0x1] %v538_v37  ;;  %v706_v44 = vmul.f32 0.01, %v700_v35 }
 0x191   :  { %543 = vst [vmem:[#allocation5 + $0xa] sm:$0x1] %v542_v38  ;;  %v546_v41 = vld [vmem:[%s545_s18] sm:$0x1]  ;;  %vm703_vm5 = vcmp.gt.f32.partialorder %v700_v35, 0.0  ;;  %v3244_v53 = vld [vmem:[%s3540_s14 + $0x8] sm:$0xff] }
 0x192   :  { %v550_v42 = vld [vmem:[%s549_s6] sm:$0x1]  ;;  %547 = vst [vmem:[#allocation5 + $0xb] sm:$0x1] %v546_v41  ;;  %v3188_v52 = vsel %vm703_vm5, %v700_v35, %v706_v44  ;;  %v707_v62 = vmul.f32 0.01, %v701_v55 }
 0x193   :  { %v554_v43 = vld [vmem:[%s553_s10] sm:$0x1]  ;;  %551 = vst [vmem:[#allocation5 + $0xc] sm:$0x1] %v550_v42  ;;  %2204 = vmatmul.mubr.f32.vlgmr.msra.gmra.mxu1 %v3188_v52  ;;  %s3541_s17 = sld [smem:[#allocation64_spill]] }
 0x194   :  { %555 = vst [vmem:[#allocation5 + $0xd] sm:$0x1] %v554_v43  ;;  %v558_v45 = vld [vmem:[%s557_s22] sm:$0x1]  ;;  %2254 = vmatpush3.msra.mxu1 %v941_v40  ;;  %2206 = vmatprep.mubr.msk.f32.mxu1 %vm2723_vm1, %v2722_v11  ;;  %v598_v61 = vld [vmem:[#allocation4 + $0x10] sm:$0xff]  ;;  %v710_v1 = vsel %vm704_vm6, %v701_v55, %v707_v62  ;;  %s3542_s22 = sld [smem:[#allocation65_spill]] }
 0x195   :  { %559 = vst [vmem:[#allocation5 + $0xe] sm:$0x1] %v558_v45  ;;  %v562_v47 = vld [vmem:[%s561_s25] sm:$0x1]  ;;  %2255 = vmatprep.subr.mxu1 %v2722_v11  ;;  %v702_v63 = vadd.f32 %v697_v51, %v598_v61 }
 0x196   :  { %v566_v48 = vld [vmem:[%s565_s26] sm:$0x1]  ;;  %563 = vst [vmem:[#allocation5 + $0xf] sm:$0x1] %v562_v47  ;;  %2256 = vmatpush3.msra.mxu1 %v940_v46 }
 0x197   :  { %v570_v49 = vld [vmem:[%s569_s24] sm:$0x1]  ;;  %567 = vst [vmem:[#allocation5 + $0x10] sm:$0x1] %v566_v48  ;;  %2257 = vmatprep.subr.mxu1 %v2722_v11  ;;  %2207 = vmatmul.mubr.f32.gmra.mxu1 %v710_v1  ;;  %vm705_vm7 = vcmp.gt.f32.partialorder %v702_v63, 0.0 }
 0x198   :  { %571 = vst [vmem:[#allocation5 + $0x11] sm:$0x1] %v570_v49  ;;  %v574_v54 = vld [vmem:[%s573_s19] sm:$0x1]  ;;  %v708_v3 = vmul.f32 0.01, %v702_v63  ;;  %2258 = vmatpush3.msra.mxu1 %v939_v0  ;;  %2209 = vmatprep.mubr.msk.f32.mxu1 %vm2723_vm1, %v2722_v11 }
 0x199   :  { %575 = vst [vmem:[#allocation5 + $0x12] sm:$0x1] %v574_v54  ;;  %v578_v56 = vld [vmem:[%s577_s15] sm:$0x1]  ;;  %2259 = vmatprep.subr.mxu1 %v2722_v11 }
 0x19a   :  { %v582_v57 = vld [vmem:[%s581_s11] sm:$0x1]  ;;  %579 = vst [vmem:[#allocation5 + $0x13] sm:$0x1] %v578_v56  ;;  %v711_v6 = vsel %vm705_vm7, %v702_v63, %v708_v3  ;;  %v1051_v56 = vsub.f32 1.0, %v3244_v53 }
 0x19b   :  { %v586_v58 = vld [vmem:[%s585_s12] sm:$0x1]  ;;  %583 = vst [vmem:[#allocation5 + $0x14] sm:$0x1] %v582_v57  ;;  %2210 = vmatmul.mubr.f32.gmra.mxu1 %v711_v6  ;;  %v3251_v57 = vld [vmem:[%s3540_s14 + $0x10] sm:$0xff] }
 0x19c   :  { %587 = vst [vmem:[#allocation5 + $0x15] sm:$0x1] %v586_v58  ;;  %v590_v59 = vld [vmem:[%s589_s16] sm:$0x1]  ;;  %2285 = vmatprep.mubr.msk.f32.mxu1 %vm2723_vm1, %v2722_v11  ;;  %v1052_v61 = vsub.f32 1.0, %v3251_v57 }
 0x19d   :  { %v594_v60 = vld [vmem:[%s593_s23] sm:$0x1]  ;;  %591 = vst [vmem:[#allocation5 + $0x16] sm:$0x1] %v590_v59 }
 0x19e   :  { %595 = vst [vmem:[#allocation5 + $0x17] sm:$0x1] %v594_v60  ;;  %v938_v2 = vld [vmem:[#allocation21 + $0x60] sm:$0xff]  ;;  %v1054_v60 = vmul.f32 -1e+30, %v1051_v56 }
 0x19f   :  { %v713_v4 = vld [vmem:[#allocation5 + $0x8] sm:$0xff]  ;;  %2260 = vmatpush3.msra.mxu1 %v938_v2  ;;  %v1055_v2 = vmul.f32 -1e+30, %v1052_v61  ;;  %v2005_v61 = vld [vmem:[#allocation22] ss:$0 sm:$0xff] }
 0x1a0   :  { %2248 = vmatmul.mubr.f32.gmra.mxu0 %v713_v4  ;;  %2261 = vmatprep.subr.mxu1 %v2722_v11  ;;  %v934_v10 = vld [vmem:[#allocation21 + $0x40] sm:$0xff] }
 0x1a1   :  { %2250 = vmatprep.mubr.msk.f32.mxu0 %vm2723_vm1, %v2722_v11  ;;  %2262 = vmatpush3.msra.mxu1 %v937_v5  ;;  %v930_v15 = vld [vmem:[#allocation21 + $0x20] sm:$0xff] }
 0x1a2   :  { %2263 = vmatprep.subr.mxu1 %v2722_v11  ;;  %v926_v19 = vld [vmem:[#allocation21] sm:$0xff] }
 0x1a3   :  { %2264 = vmatpush3.msra.mxu1 %v936_v7  ;;  %v1453_v56 = vld [vmem:[%s3541_s17 + $0x160] sm:$0xff] }
 0x1a4   :  { %2265 = vmatprep.subr.mxu1 %v2722_v11 }
 0x1a5   :  { %v714_v8 = vld [vmem:[#allocation5 + $0x10] sm:$0xff]  ;;  %2266 = vmatpush3.msra.mxu1 %v935_v9 }
 0x1a6   :  { %2251 = vmatmul.mubr.f32.gmra.mxu0 %v714_v8  ;;  %2267 = vmatprep.subr.mxu1 %v2722_v11 }
 0x1a7   :  { %2268 = vmatpush3.msra.mxu1 %v934_v10 }
 0x1a8   :  { %2269 = vmatprep.subr.mxu1 %v2722_v11 }
 0x1a9   :  { %2270 = vmatpush3.msra.mxu1 %v933_v12 }
 0x1aa   :  { %2271 = vmatprep.subr.mxu1 %v2722_v11 }
 0x1ab   :  { %2272 = vmatpush3.msra.mxu1 %v932_v13 }
 0x1ac   :  { %2273 = vmatprep.subr.mxu1 %v2722_v11 }
 0x1ad   :  { %2274 = vmatpush3.msra.mxu1 %v931_v14 }
 0x1ae   :  { %2275 = vmatprep.subr.mxu1 %v2722_v11 }
 0x1af   :  { %2276 = vmatpush3.msra.mxu1 %v930_v15 }
 0x1b0   :  { %2277 = vmatprep.subr.mxu1 %v2722_v11 }
 0x1b1   :  { %2278 = vmatpush3.msra.mxu1 %v929_v16 }
 0x1b2   :  { %2279 = vmatprep.subr.mxu1 %v2722_v11 }
 0x1b3   :  { %2280 = vmatpush3.msra.mxu1 %v928_v17 }
 0x1b4   :  { %2281 = vmatprep.subr.mxu1 %v2722_v11 }
 0x1b5   :  { %2282 = vmatpush3.msra.mxu1 %v927_v18 }
 0x1b6   :  { %2283 = vmatprep.subr.mxu1 %v2722_v11 }
 0x1b7   :  { %2284 = vmatpush3.msra.mxu1 %v926_v19 }
 0x1b8   :  { %2286 = vmatmul.mubr.f32.vlgmr.msra.gmra.mxu1 %v3188_v52  ;;  %v3239_v52 = vld [vmem:[%s3540_s14] sm:$0xff] }
 0x1b9   :  { %2288 = vmatprep.mubr.msk.f32.mxu1 %vm2723_vm1, %v2722_v11  ;;  %v1050_v55 = vsub.f32 1.0, %v3239_v52 }
 0x1bb   :  { %v1053_v58 = vmul.f32 -1e+30, %v1050_v55  ;;  %v1456_v55 = vld [vmem:[%s3541_s17 + $0x178] sm:$0xff] }
 0x1bc   :  { %2289 = vmatmul.mubr.f32.gmra.mxu1 %v710_v1  ;;  %2325 = vmatprep.subr.mxu1 %v1456_v55 }
 0x1bd   :  { %2291 = vmatprep.mubr.msk.f32.mxu1 %vm2723_vm1, %v2722_v11  ;;  %2326 = vmatpush3.msra.mxu1 %v1456_v55 }
 0x1be   :  { %2327 = vmatprep.subr.mxu1 %v1453_v56 }
 0x1bf   :  { %2328 = vmatpush3.msra.mxu1 %v1453_v56 }
 0x1c0   :  { %2292 = vmatmul.mubr.f32.gmra.mxu1 %v711_v6 }
 0x24c   :  { %v894_v23 = vpop.f32.mrf.mxu0 }
 0x24e   :  { %v2246_v26 = vpop.f32.mrf.mxu0 }
 0x253   :  { %v814_v21 = vpop.f32.mrf.mxu1 }
 0x254   :  { %v895_v24 = vadd.f32 %v894_v23, %v814_v21 }
 0x255   :  { %v2205_v25 = vpop.f32.mrf.mxu1 }
 0x256   :  { %v914_v27 = vadd.f32 %v2004_v22, %v895_v24 }
 0x257   :  { %v819_v28 = vpop.f32.mrf.mxu1 }
 0x258   :  { %vm917_vm8 = vcmp.gt.f32.partialorder %v914_v27, 0.0  ;;  %v920_v29 = vmul.f32 0.01, %v914_v27 }
 0x259   :  { %v2208_v31 = vpop.f32.mrf.mxu1 }
 0x25a   :  { %v3227_v32 = vsel %vm917_vm8, %v914_v27, %v920_v29 }
 0x25b   :  { %1034 = vperm.xlu0 %2415, %v3227_v32   ;;  %v824_v35 = vpop.f32.mrf.mxu1 }
 0x25d   :  { %v2211_v38 = vpop.f32.mrf.mxu1 }
 0x260   :  { %v899_v30 = vpop.f32.mrf.mxu0 }
 0x261   :  { %v900_v33 = vadd.f32 %v899_v30, %v819_v28 }
 0x262   :  { %v2249_v34 = vpop.f32.mrf.mxu0 }
 0x263   :  { %v915_v36 = vadd.f32 %v2004_v22, %v900_v33 }
 0x265   :  { %vm918_vm9 = vcmp.gt.f32.partialorder %v915_v36, 0.0  ;;  %v921_v40 = vmul.f32 0.01, %v915_v36 }
 0x266   :  { %v904_v37 = vpop.f32.mrf.mxu0 }
 0x267   :  { %v905_v39 = vadd.f32 %v904_v37, %v824_v35  ;;  %v924_v43 = vsel %vm918_vm9, %v915_v36, %v921_v40 }
 0x268   :  { %v2252_v41 = vpop.f32.mrf.mxu0  ;;  %1039 = vperm.xlu0 %2415, %v924_v43  }
 0x269   :  { %v916_v42 = vadd.f32 %v2004_v22, %v905_v39 }
 0x26b   :  { %vm919_vm10 = vcmp.gt.f32.partialorder %v916_v42, 0.0  ;;  %v922_v44 = vmul.f32 0.01, %v916_v42 }
 0x26d   :  { %v925_v45 = vsel %vm919_vm10, %v916_v42, %v922_v44 }
 0x26e   :  { %1044 = vperm.xlu1 %2416, %v925_v45  }
 0x278   :  { %v3230_v46 = vpop.f32.mrf.mxu1 }
 0x27a   :  { %v2287_v47 = vpop.f32.mrf.mxu1 }
 0x27c   :  { %v3232_v48 = vpop.f32.mrf.mxu1 }
 0x27e   :  { %v2290_v49 = vpop.f32.mrf.mxu1 }
 0x280   :  { %v3234_v50 = vpop.f32.mrf.mxu1 }
 0x282   :  { %v2293_v51 = vpop.f32.mrf.mxu1 }
 0x2d6   :  { %v1035_v54 = vpop.permute.xlu0 %1034 }
 0x2d7   :  { %v1047_v59 = vmul.f32 %v1035_v54, %v3239_v52 }
 0x2d9   :  { %v1056_v0 = vadd.f32 %v1053_v58, %v1047_v59  ;;  %v1447_v58 = vld [vmem:[%s3541_s17 + $0x130] sm:$0xff]  ;;  %v1444_v59 = vld [vmem:[%s3541_s17 + $0x118] sm:$0xff] }
 0x2db   :  { %v1060_v6 = vsel %vm1059_vm11, %v1056_v0, -inf  ;;  %v1021_v0 = vadd.f32 %v2005_v61, %v3232_v48  ;;  %v1451_v48 = vld [vmem:[%s3541_s17 + $0x150] sm:$0xff] }
 0x2e3   :  { %v1040_v62 = vpop.permute.xlu0 %1039 }
 0x2e4   :  { %v1048_v63 = vmul.f32 %v1040_v62, %v3244_v53  ;;  %v1026_v62 = vadd.f32 %v2005_v61, %v3234_v50  ;;  %v1454_v50 = vld [vmem:[%s3541_s17 + $0x168] sm:$0xff] }
 0x2e6   :  { %v1057_v1 = vadd.f32 %v1054_v60, %v1048_v63 }
 0x2e8   :  { %v1061_v4 = vsel %vm1059_vm11, %v1057_v1, -inf }
 0x2e9   :  { %v1045_v3 = vpop.permute.xlu1 %1044  ;;  %v1063_v8 = vmax.f32 %v1060_v6, %v1061_v4  ;;  %v1455_v6 = vld [vmem:[%s3541_s17 + $0x170] sm:$0xff] }
 0x2ea   :  { %v1049_v5 = vmul.f32 %v1045_v3, %v3251_v57 }
 0x2ec   :  { %v1058_v7 = vadd.f32 %v1055_v2, %v1049_v5  ;;  %v1016_v2 = vadd.f32 %v2005_v61, %v3230_v46  ;;  %v1452_v46 = vld [vmem:[%s3541_s17 + $0x158] sm:$0xff] }
 0x2ee   :  { %v1062_v9 = vsel %vm1059_vm11, %v1058_v7, -inf  ;;  %v1449_v7 = vld [vmem:[%s3541_s17 + $0x140] sm:$0xff] }
 0x2ef   :  { %v1064_v10 = vmax.f32 %v1063_v8, %v1062_v9  ;;  %v1448_v8 = vld [vmem:[%s3541_s17 + $0x138] sm:$0xff]  ;;  %v1446_v9 = vld [vmem:[%s3541_s17 + $0x128] sm:$0xff] }
 0x2f1   :  { %v1065_v12 = vrot.slane %v1064_v10, 4 }
 0x2f3   :  { %v1066_v13 = vmax.f32 %v1064_v10, %v1065_v12  ;;  %v1445_v10 = vld [vmem:[%s3541_s17 + $0x120] sm:$0xff]  ;;  %v1443_v12 = vld [vmem:[%s3541_s17 + $0x110] sm:$0xff] }
 0x2f5   :  { %v1067_v14 = vrot.slane %v1066_v13, 2 }
 0x2f7   :  { %v1068_v15 = vmax.f32 %v1066_v13, %v1067_v14  ;;  %v1442_v13 = vld [vmem:[%s3541_s17 + $0x108] sm:$0xff]  ;;  %v1440_v14 = vld [vmem:[%s3541_s17 + $0xf8] sm:$0xff] }
 0x2f9   :  { %v1069_v16 = vrot.slane %v1068_v15, 1 }
 0x2fb   :  { %v1070_v17 = vmax.f32 %v1068_v15, %v1069_v16  ;;  %v1439_v15 = vld [vmem:[%s3541_s17 + $0xf0] sm:$0xff]  ;;  %v1441_v16 = vld [vmem:[%s3541_s17 + $0x100] sm:$0xff] }
 0x2fd   :  { %v1073_v18 = vmul.f32 %v1070_v17, %v3251_v57  ;;  %v1072_v19 = vmul.f32 %v1070_v17, %v3244_v53  ;;  %v1071_v22 = vmul.f32 %v1070_v17, %v3239_v52  ;;  %v1437_v17 = vld [vmem:[%s3541_s17 + $0xe0] sm:$0xff] }
 0x2ff   :  { %v1080_v20 = vsel %vm1059_vm11, %v1073_v18, 0.0  ;;  %v1077_v21 = vsel %vm1059_vm11, %v1072_v19, 0.0  ;;  %v1074_v23 = vsel %vm1059_vm11, %v1071_v22, 0.0  ;;  %v1436_v18 = vld [vmem:[%s3541_s17 + $0xd8] sm:$0xff]  ;;  %v1438_v19 = vld [vmem:[%s3541_s17 + $0xe8] sm:$0xff]  ;;  %v1435_v22 = vld [vmem:[%s3541_s17 + $0xd0] sm:$0xff] }
 0x300   :  { %1081 = vadd.xlane.f32.xlu1 %v1080_v20  ;;  %1078 = vadd.xlane.f32.xlu0 %v1077_v21  ;;  %v1434_v20 = vld [vmem:[%s3541_s17 + $0xc8] sm:$0xff]  ;;  %v1433_v21 = vld [vmem:[%s3541_s17 + $0xc0] sm:$0xff] }
 0x304   :  { %1075 = vadd.xlane.f32.xlu0 %v1074_v23  ;;  %v1431_v23 = vld [vmem:[%s3541_s17 + $0xb0] sm:$0xff] }
 0x333   :  { %1092 = vxpose.xlu1.b32.start [1/3] (short) (narrow) %v3239_v52, 16 }
 0x337   :  { %1093 = vxpose.xlu1.b32.cont [2/3] (short) (narrow) %v3244_v53, 16 }
 0x33b   :  { %1094 = vxpose.xlu1.b32.end [3/3] (short) (narrow) %v3251_v57, 16 }
 0x389   :  { %v1082_v24 = vpop.xlane.xlu1 %1081  ;;  %v1079_v25 = vpop.xlane.xlu0 %1078 }
 0x38a   :  { %v1085_v26 = vsub.f32 %v925_v45, %v1082_v24  ;;  %v1084_v27 = vsub.f32 %v924_v43, %v1079_v25  ;;  %v1430_v24 = vld [vmem:[%s3541_s17 + $0xa8] sm:$0xff]  ;;  %v1432_v25 = vld [vmem:[%s3541_s17 + $0xb8] sm:$0xff] }
 0x38c   :  { %v1090_v28 = vmul.f32 1.442695, %v1085_v26  ;;  %v1088_v29 = vmul.f32 1.442695, %v1084_v27  ;;  %v1428_v26 = vld [vmem:[%s3541_s17 + $0x98] sm:$0xff]  ;;  %v1427_v27 = vld [vmem:[%s3541_s17 + $0x90] sm:$0xff] }
 0x38d   :  { %v1076_v30 = vpop.xlane.xlu0 %1075 }
 0x38e   :  { %2417 = vpow2.f32 %v1090_v28  ;;  %v1083_v31 = vsub.f32 %v3227_v32, %v1076_v30  ;;  %v1429_v28 = vld [vmem:[%s3541_s17 + $0xa0] sm:$0xff]  ;;  %v1424_v30 = vld [vmem:[%s3541_s17 + $0x78] sm:$0xff] }
 0x38f   :  { %2419 = vpow2.f32 %v1088_v29  ;;  %v1425_v29 = vld [vmem:[%s3541_s17 + $0x80] sm:$0xff] }
 0x390   :  { %v1086_v33 = vmul.f32 1.442695, %v1083_v31  ;;  %v1426_v31 = vld [vmem:[%s3541_s17 + $0x88] sm:$0xff] }
 0x392   :  { %2421 = vpow2.f32 %v1086_v33  ;;  %v1422_v33 = vld [vmem:[%s3541_s17 + $0x68] sm:$0xff] }
 0x39b   :  { %v2418_v34 = vpop.eup %2417 }
 0x39c   :  { %2294 = vmatprep.subr.mxu0 %v2418_v34  ;;  %v2420_v35 = vpop.eup %2419 }
 0x39d   :  { %2295 = vmatpush3.msra.mxu0 %v2418_v34 }
 0x39e   :  { %2296 = vmatprep.subr.mxu0 %v2420_v35 }
 0x39f   :  { %v2422_v36 = vpop.eup %2421  ;;  %2297 = vmatpush3.msra.mxu0 %v2420_v35 }
 0x3a0   :  { %2298 = vmatprep.subr.mxu0 %v2422_v36 }
 0x3a1   :  { %2299 = vmatpush3.msra.mxu0 %v2422_v36 }
 0x3a2   :  { %2303 = vmatprep.subr.mxu0 %v2722_v11 }
 0x3af   :  { %v1108_v37 = vpop.trf.xlu1 }
 0x3b0   :  { %2300 = vmatprep.mubr.msk.f32.mxu0 %vm234_vm0, %v1108_v37 }
 0x3b3   :  { %v3272_v38 = vpop.trf.xlu1 }
 0x3b4   :  { %2301 = vmatmul.mubr.msk.f32.vlgmr.msra.gmra.mxu0 %vm234_vm0, %v3272_v38 }
 0x3b5   :  { %2307 = vmatprep.mubr.msk.f32.mxu0 %vm2723_vm1, %v2722_v11 }
 0x474   :  { %v2302_v32 = vpop.f32.mrf.mxu0 }
 0x475   :  { %2304 = vmatpush3.msk.msra.mxu0 %vm1214_vm12, %v2302_v32  ;;  %v1416_v32 = vld [vmem:[%s3541_s17 + $0x38] sm:$0xff] }
 0x476   :  { %v1196_v39 = vpop.f32.mrf.mxu0  ;;  %2305 = vmatprep.subr.mxu0 %v2722_v11 }
 0x477   :  { %2306 = vmatpush3.msra.mxu0 %v1196_v39  ;;  %v1415_v39 = vld [vmem:[%s3541_s17 + $0x30] sm:$0xff] }
 0x478   :  { %2308 = vmatmul.mubr.msk.f32.vlgmr.msra.gmra.mxu0 %vm1059_vm11, %v3239_v52 }
 0x479   :  { %2310 = vmatprep.mubr.msk.f32.mxu0 %vm2723_vm1, %v2722_v11 }
 0x47c   :  { %2311 = vmatmul.mubr.msk.f32.gmra.mxu0 %vm1059_vm11, %v3244_v53 }
 0x47d   :  { %2313 = vmatprep.mubr.msk.f32.mxu0 %vm2723_vm1, %v2722_v11 }
 0x480   :  { %2314 = vmatmul.mubr.msk.f32.gmra.mxu0 %vm1059_vm11, %v3251_v57  ;;  %v1450_v57 = vld [vmem:[%s3541_s17 + $0x148] sm:$0xff] }
 0x481   :  { %2322 = vmatprep.mubr.msk.f32.mxu0 %vm234_vm0, %v1108_v37  ;;  %2329 = vmatprep.subr.mxu1 %v1450_v57  ;;  %v1418_v37 = vld [vmem:[%s3541_s17 + $0x48] sm:$0xff] }
 0x482   :  { %2330 = vmatpush3.msra.mxu1 %v1450_v57 }
 0x483   :  { %2331 = vmatprep.subr.mxu1 %v1447_v58 }
 0x484   :  { %2332 = vmatpush3.msra.mxu1 %v1447_v58 }
 0x485   :  { %2333 = vmatprep.subr.mxu1 %v1444_v59 }
 0x486   :  { %2334 = vmatpush3.msra.mxu1 %v1444_v59 }
 0x487   :  { %2335 = vmatprep.subr.mxu1 %v1441_v16 }
 0x488   :  { %2336 = vmatpush3.msra.mxu1 %v1441_v16  ;;  %v1482_v16 = vld [vmem:[#allocation24 + $0xc8] sm:$0xff] }
 0x489   :  { %2337 = vmatprep.subr.mxu1 %v1438_v19 }
 0x48a   :  { %2338 = vmatpush3.msra.mxu1 %v1438_v19  ;;  %v1479_v19 = vld [vmem:[#allocation24 + $0xb0] sm:$0xff] }
 0x48b   :  { %2339 = vmatprep.subr.mxu1 %v1435_v22 }
 0x48c   :  { %2340 = vmatpush3.msra.mxu1 %v1435_v22  ;;  %v1476_v22 = vld [vmem:[#allocation24 + $0x98] sm:$0xff] }
 0x48d   :  { %2341 = vmatprep.subr.mxu1 %v1432_v25 }
 0x48e   :  { %2342 = vmatpush3.msra.mxu1 %v1432_v25  ;;  %v1473_v25 = vld [vmem:[#allocation24 + $0x80] sm:$0xff] }
 0x48f   :  { %2343 = vmatprep.subr.mxu1 %v1429_v28 }
 0x490   :  { %2344 = vmatpush3.msra.mxu1 %v1429_v28  ;;  %v1470_v28 = vld [vmem:[#allocation24 + $0x68] sm:$0xff] }
 0x491   :  { %2345 = vmatprep.subr.mxu1 %v1426_v31 }
 0x492   :  { %2346 = vmatpush3.msra.mxu1 %v1426_v31  ;;  %v1467_v31 = vld [vmem:[#allocation24 + $0x50] sm:$0xff] }
 0x538   :  { %v1284_v40 = vpop.f32.mrf.mxu0 }
 0x53a   :  { %v2309_v41 = vpop.f32.mrf.mxu0 }
 0x53b   :  { %v1413_v41 = vld [vmem:[%s3541_s17 + $0x20] sm:$0xff] }
 0x53c   :  { %v1289_v42 = vpop.f32.mrf.mxu0 }
 0x53d   :  { %2423 = vrcp.f32 %v1289_v42  ;;  %v1412_v42 = vld [vmem:[%s3541_s17 + $0x18] sm:$0xff] }
 0x53e   :  { %v2312_v43 = vpop.f32.mrf.mxu0 }
 0x53f   :  { %v1414_v43 = vld [vmem:[%s3541_s17 + $0x28] sm:$0xff] }
 0x540   :  { %v1294_v44 = vpop.f32.mrf.mxu0 }
 0x541   :  { %2425 = vrcp.f32 %v1294_v44  ;;  %v1410_v44 = vld [vmem:[%s3541_s17 + $0x8] sm:$0xff] }
 0x542   :  { %v2315_v45 = vpop.f32.mrf.mxu0  ;;  %2427 = vrcp.f32 %v1284_v40  ;;  %v1417_v40 = vld [vmem:[%s3541_s17 + $0x40] sm:$0xff] }
 0x543   :  { %v1409_v45 = vld [vmem:[%s3541_s17] sm:$0xff] }
 0x54a   :  { %v2424_v47 = vpop.eup %2423 }
 0x54b   :  { %v1302_v49 = vmul.f32 %v2424_v47, %v2420_v35  ;;  %v1423_v35 = vld [vmem:[%s3541_s17 + $0x70] sm:$0xff] }
 0x54c   :  { %2347 = vmatprep.subr.mxu1 %v1423_v35  ;;  %v1411_v47 = vld [vmem:[%s3541_s17 + $0x10] sm:$0xff] }
 0x54d   :  { %1311 = vperm.xlu0 %2415, %v1302_v49   ;;  %2348 = vmatpush3.msra.mxu1 %v1423_v35  ;;  %v1503_v49 = vld [vmem:[#allocation24 + $0x170] sm:$0xff]  ;;  %v1464_v35 = vld [vmem:[#allocation24 + $0x38] sm:$0xff] }
 0x54e   :  { %v2426_v51 = vpop.eup %2425 }
 0x54f   :  { %v1303_v52 = vmul.f32 %v2426_v51, %v2418_v34  ;;  %v2428_v53 = vpop.eup %2427  ;;  %v1421_v34 = vld [vmem:[%s3541_s17 + $0x60] sm:$0xff]  ;;  %v1504_v51 = vld [vmem:[#allocation24 + $0x178] sm:$0xff] }
 0x550   :  { %v1301_v54 = vmul.f32 %v2428_v53, %v2422_v36  ;;  %v1419_v36 = vld [vmem:[%s3541_s17 + $0x50] sm:$0xff] }
 0x551   :  { %1316 = vperm.xlu0 %2415, %v1303_v52  }
 0x555   :  { %1306 = vperm.xlu0 %2415, %v1301_v54  }
 0x5c8   :  { %v1312_v60 = vpop.permute.xlu0 %1311 }
 0x5c9   :  { %v1320_v3 = vmul.f32 %v1312_v60, %v1021_v0  ;;  %v1502_v60 = vld [vmem:[#allocation24 + $0x168] sm:$0xff]  ;;  %v1499_v0 = vld [vmem:[#allocation24 + $0x150] sm:$0xff] }
 0x5cc   :  { %v1317_v63 = vpop.permute.xlu0 %1316 }
 0x5cd   :  { %v1321_v1 = vmul.f32 %v1317_v63, %v1026_v62  ;;  %v1500_v62 = vld [vmem:[#allocation24 + $0x158] sm:$0xff] }
 0x5cf   :  { %2316 = vmatprep.subr.mxu0 %v1321_v1 }
 0x5d0   :  { %2317 = vmatpush3.msra.mxu0 %v1321_v1  ;;  %v1307_v4 = vpop.permute.xlu0 %1306  ;;  %v1501_v1 = vld [vmem:[#allocation24 + $0x160] sm:$0xff] }
 0x5d1   :  { %v1319_v5 = vmul.f32 %v1307_v4, %v1016_v2  ;;  %2318 = vmatprep.subr.mxu0 %v1320_v3  ;;  %v1497_v2 = vld [vmem:[#allocation24 + $0x140] sm:$0xff]  ;;  %v1498_v4 = vld [vmem:[#allocation24 + $0x148] sm:$0xff] }
 0x5d2   :  { %2319 = vmatpush3.msra.mxu0 %v1320_v3  ;;  %v3440_v3 = vld [vmem:[#allocation2] sm:$0xff] }
 0x5d3   :  { %2320 = vmatprep.subr.mxu0 %v1319_v5 }
 0x5d4   :  { %2321 = vmatpush3.msra.mxu0 %v1319_v5  ;;  %v1496_v5 = vld [vmem:[#allocation24 + $0x138] sm:$0xff] }
 0x5d5   :  { %2323 = vmatmul.mubr.msk.f32.vlgmr.msra.gmra.mxu0 %vm234_vm0, %v3272_v38  ;;  %1523 = vmatprep.subr.mxu0 %v1455_v6  ;;  %v1420_v38 = vld [vmem:[%s3541_s17 + $0x58] sm:$0xff]  ;;  %v1494_v6 = vld [vmem:[#allocation24 + $0x128] sm:$0xff] }
 0x5d6   :  { %1524 = vmatpush1.msra.mxu0 %v1454_v50  ;;  %1587 = vmatprep.mubr.f32.mxu0 %v2722_v11  ;;  %v1495_v50 = vld [vmem:[#allocation24 + $0x130] sm:$0xff] }
 0x5d7   :  { %1525 = vmatprep.subr.mxu0 %v1452_v46  ;;  %2349 = vmatprep.subr.mxu1 %v1420_v38  ;;  %v1493_v46 = vld [vmem:[#allocation24 + $0x120] sm:$0xff] }
 0x5d8   :  { %1526 = vmatpush1.msra.mxu0 %v1451_v48  ;;  %2350 = vmatpush3.msra.mxu1 %v1420_v38  ;;  %v1491_v48 = vld [vmem:[#allocation24 + $0x110] sm:$0xff]  ;;  %v1461_v38 = vld [vmem:[#allocation24 + $0x20] sm:$0xff] }
 0x5d9   :  { %1527 = vmatprep.subr.mxu0 %v1449_v7  ;;  %2351 = vmatprep.subr.mxu1 %v1417_v40  ;;  %v1492_v7 = vld [vmem:[#allocation24 + $0x118] sm:$0xff] }
 0x5da   :  { %1528 = vmatpush1.msra.mxu0 %v1448_v8  ;;  %2352 = vmatpush3.msra.mxu1 %v1417_v40  ;;  %v1490_v8 = vld [vmem:[#allocation24 + $0x108] sm:$0xff] }
 0x5db   :  { %1529 = vmatprep.subr.mxu0 %v1446_v9  ;;  %2353 = vmatprep.subr.mxu1 %v1414_v43  ;;  %v1488_v9 = vld [vmem:[#allocation24 + $0xf8] sm:$0xff]  ;;  %v1458_v40 = vld [vmem:[#allocation24 + $0x8] sm:$0xff] }
 0x5dc   :  { %1530 = vmatpush1.msra.mxu0 %v1445_v10  ;;  %2354 = vmatpush3.msra.mxu1 %v1414_v43  ;;  %v1489_v10 = vld [vmem:[#allocation24 + $0x100] sm:$0xff]  ;;  %v3446_v43 = vld [vmem:[#allocation2 + $0x8] sm:$0xf] }
 0x5dd   :  { %1531 = vmatprep.subr.mxu0 %v1443_v12  ;;  %2355 = vmatprep.subr.mxu1 %v1411_v47  ;;  %v1487_v12 = vld [vmem:[#allocation24 + $0xf0] sm:$0xff] }
 0x5de   :  { %1532 = vmatpush1.msra.mxu0 %v1442_v13  ;;  %2356 = vmatpush3.msra.mxu1 %v1411_v47  ;;  %v1485_v13 = vld [vmem:[#allocation24 + $0xe0] sm:$0xff] }
 0x5df   :  { %1533 = vmatprep.subr.mxu0 %v1440_v14  ;;  %2360 = vmatprep.subr.mxu1 %v1504_v51  ;;  %v1486_v14 = vld [vmem:[#allocation24 + $0xe8] sm:$0xff] }
 0x5e0   :  { %1534 = vmatpush1.msra.mxu0 %v1439_v15  ;;  %v1484_v15 = vld [vmem:[#allocation24 + $0xd8] sm:$0xff] }
 0x5e1   :  { %1535 = vmatprep.subr.mxu0 %v1437_v17  ;;  %v1483_v17 = vld [vmem:[#allocation24 + $0xd0] sm:$0xff] }
 0x5e2   :  { %1536 = vmatpush1.msra.mxu0 %v1436_v18  ;;  %v1481_v18 = vld [vmem:[#allocation24 + $0xc0] sm:$0xff] }
 0x5e3   :  { %1537 = vmatprep.subr.mxu0 %v1434_v20  ;;  %v1480_v20 = vld [vmem:[#allocation24 + $0xb8] sm:$0xff] }
 0x5e4   :  { %1538 = vmatpush1.msra.mxu0 %v1433_v21  ;;  %v1478_v21 = vld [vmem:[#allocation24 + $0xa8] sm:$0xff] }
 0x5e5   :  { %1539 = vmatprep.subr.mxu0 %v1431_v23  ;;  %v1477_v23 = vld [vmem:[#allocation24 + $0xa0] sm:$0xff] }
 0x5e6   :  { %1540 = vmatpush1.msra.mxu0 %v1430_v24  ;;  %v1475_v24 = vld [vmem:[#allocation24 + $0x90] sm:$0xff] }
 0x5e7   :  { %1541 = vmatprep.subr.mxu0 %v1428_v26  ;;  %v1474_v26 = vld [vmem:[#allocation24 + $0x88] sm:$0xff] }
 0x5e8   :  { %1542 = vmatpush1.msra.mxu0 %v1427_v27  ;;  %v1472_v27 = vld [vmem:[#allocation24 + $0x78] sm:$0xff] }
 0x5e9   :  { %1543 = vmatprep.subr.mxu0 %v1425_v29  ;;  %v1471_v29 = vld [vmem:[#allocation24 + $0x70] sm:$0xff] }
 0x5ea   :  { %1544 = vmatpush1.msra.mxu0 %v1424_v30  ;;  %v1469_v30 = vld [vmem:[#allocation24 + $0x60] sm:$0xff] }
 0x5eb   :  { %1545 = vmatprep.subr.mxu0 %v1422_v33  ;;  %v1468_v33 = vld [vmem:[#allocation24 + $0x58] sm:$0xff] }
 0x5ec   :  { %1546 = vmatpush1.msra.mxu0 %v1421_v34  ;;  %v1466_v34 = vld [vmem:[#allocation24 + $0x48] sm:$0xff] }
 0x5ed   :  { %1547 = vmatprep.subr.mxu0 %v1419_v36  ;;  %v1465_v36 = vld [vmem:[#allocation24 + $0x40] sm:$0xff] }
 0x5ee   :  { %1548 = vmatpush1.msra.mxu0 %v1418_v37  ;;  %v1463_v37 = vld [vmem:[#allocation24 + $0x30] sm:$0xff] }
 0x5ef   :  { %1549 = vmatprep.subr.mxu0 %v1416_v32  ;;  %v1462_v32 = vld [vmem:[#allocation24 + $0x28] sm:$0xff] }
 0x5f0   :  { %1550 = vmatpush1.msra.mxu0 %v1415_v39  ;;  %v1460_v39 = vld [vmem:[#allocation24 + $0x18] sm:$0xff] }
 0x5f1   :  { %1551 = vmatprep.subr.mxu0 %v1413_v41  ;;  %v1457_v41 = vld [vmem:[#allocation24] sm:$0xff] }
 0x5f2   :  { %1552 = vmatpush1.msra.mxu0 %v1412_v42  ;;  %v1459_v42 = vld [vmem:[#allocation24 + $0x10] sm:$0xff] }
 0x5f3   :  { %1553 = vmatprep.subr.mxu0 %v1410_v44  ;;  %v1508_v44 = vlaneseq }
 0x5f4   :  { %1554 = vmatpush1.msra.mxu0 %v1409_v45 }
 0x5f5   :  { %1691 = vmatprep.subr.mxu0 %v1503_v49  ;;  %v1509_v47 = vshrl.u32 %v1508_v44, 7 }
 0x695   :  { %v2324_v52 = vpop.f32.mrf.mxu0 }
 0x696   :  { %v1401_v53 = vmul.f32 1.442695, %v2324_v52  ;;  %vm1398_vm14 = vcmp.gt.f32.partialorder %v2324_v52, 0.0 }
 0x697   :  { %v1388_v54 = vpop.f32.mrf.mxu0 }
 0x698   :  { %2429 = vpow2.f32 %v1401_v53  ;;  %v1399_v55 = vmul.f32 1.442695, %v1388_v54  ;;  %vm1397_vm13 = vcmp.gt.f32.partialorder %v1388_v54, 0.0 }
 0x69a   :  { %2431 = vpow2.f32 %v1399_v55 }
 0x6a5   :  { %v2430_v56 = vpop.eup %2429 }
 0x6a6   :  { %v2015_v58 = vadd.f32 -1.0, %v2430_v56 }
 0x6a7   :  { %v2432_v57 = vpop.eup %2431 }
 0x6a8   :  { %v2014_v59 = vadd.f32 -1.0, %v2432_v57  ;;  %v1406_v63 = vsel %vm1398_vm14, %v2324_v52, %v2015_v58  ;;  %v1505_v52 = vld [vmem:[#allocation25] sm:$0x7]  ;;  %v1514_v58 = vsub.s32 1, %v1509_v47 }
 0x6aa   :  { %v1405_v61 = vsel %vm1397_vm13, %v1388_v54, %v2014_v59  ;;  %v1506_v54 = vld [vmem:[#allocation27] sm:$0x7] }
 0x6ab   :  { %1588 = vmatmul.mubr.f32.vlgmr.msra.gmra.mxu0 %v1405_v61  ;;  %2357 = vmatprep.mubr.f32.mxu1 %v1405_v61 }
 0x6ac   :  { %1692 = vmatpush1.msra.mxu0 %v1502_v60  ;;  %2358 = vmatmul.mubr.f32.vlgmr.msra.gmra.mxu1 %v1406_v63 }
 0x6ad   :  { %1693 = vmatprep.subr.mxu0 %v1500_v62  ;;  %2361 = vmatpush3.msra.mxu1 %v1504_v51  ;;  %v1510_v51 = vsub.s32 0, %v1509_v47  ;;  %v1683_v62 = vrot.slane %v1506_v54, %v1514_v58 }
 0x6ae   :  { %1694 = vmatpush1.msra.mxu0 %v1499_v0  ;;  %2362 = vmatprep.subr.mxu1 %v1501_v1 }
 0x6af   :  { %2392 = vmatprep.mubr.f32.mxu1 %v3440_v3  ;;  %1593 = vmatprep.mubr.f32.mxu0 %v2722_v11  ;;  %v1511_v55 = vrot.slane %v1505_v52, %v1510_v51  ;;  %v1679_v56 = vrot.slane %v1506_v54, %v1510_v51 }
 0x6b0   :  { %1695 = vmatprep.subr.mxu0 %v1497_v2  ;;  %2363 = vmatpush3.msra.mxu1 %v1501_v1 }
 0x6b1   :  { %1594 = vmatmul.mubr.f32.gmra.mxu0 %v1406_v63  ;;  %2364 = vmatprep.subr.mxu1 %v1498_v4 }
 0x6b2   :  { %1696 = vmatpush1.msra.mxu0 %v1496_v5  ;;  %2365 = vmatpush3.msra.mxu1 %v1498_v4 }
 0x6b3   :  { %1697 = vmatprep.subr.mxu0 %v1494_v6  ;;  %2366 = vmatprep.subr.mxu1 %v1495_v50 }
 0x6b4   :  { %1698 = vmatpush1.msra.mxu0 %v1493_v46  ;;  %2367 = vmatpush3.msra.mxu1 %v1495_v50 }
 0x6b5   :  { %1699 = vmatprep.subr.mxu0 %v1491_v48  ;;  %2368 = vmatprep.subr.mxu1 %v1492_v7 }
 0x6b6   :  { %1700 = vmatpush1.msra.mxu0 %v1490_v8  ;;  %2369 = vmatpush3.msra.mxu1 %v1492_v7 }
 0x6b7   :  { %1701 = vmatprep.subr.mxu0 %v1488_v9  ;;  %2370 = vmatprep.subr.mxu1 %v1489_v10 }
 0x6b8   :  { %1702 = vmatpush1.msra.mxu0 %v1487_v12  ;;  %2371 = vmatpush3.msra.mxu1 %v1489_v10 }
 0x6b9   :  { %1703 = vmatprep.subr.mxu0 %v1485_v13  ;;  %2372 = vmatprep.subr.mxu1 %v1486_v14 }
 0x6ba   :  { %1704 = vmatpush1.msra.mxu0 %v1484_v15  ;;  %2373 = vmatpush3.msra.mxu1 %v1486_v14 }
 0x6bb   :  { %1705 = vmatprep.subr.mxu0 %v1482_v16  ;;  %2374 = vmatprep.subr.mxu1 %v1483_v17 }
 0x6bc   :  { %1706 = vmatpush1.msra.mxu0 %v1481_v18  ;;  %2375 = vmatpush3.msra.mxu1 %v1483_v17 }
 0x6bd   :  { %1707 = vmatprep.subr.mxu0 %v1479_v19  ;;  %2376 = vmatprep.subr.mxu1 %v1480_v20 }
 0x6be   :  { %1708 = vmatpush1.msra.mxu0 %v1478_v21  ;;  %2377 = vmatpush3.msra.mxu1 %v1480_v20 }
 0x6bf   :  { %1709 = vmatprep.subr.mxu0 %v1476_v22  ;;  %2378 = vmatprep.subr.mxu1 %v1477_v23 }
 0x6c0   :  { %1710 = vmatpush1.msra.mxu0 %v1475_v24  ;;  %2379 = vmatpush3.msra.mxu1 %v1477_v23  ;;  %v1518_v23 = vsub.s32 2, %v1509_v47 }
 0x6c1   :  { %1711 = vmatprep.subr.mxu0 %v1473_v25  ;;  %2380 = vmatprep.subr.mxu1 %v1474_v26 }
 0x6c2   :  { %1712 = vmatpush1.msra.mxu0 %v1472_v27  ;;  %2381 = vmatpush3.msra.mxu1 %v1474_v26  ;;  %v1687_v26 = vrot.slane %v1506_v54, %v1518_v23 }
 0x6c3   :  { %1713 = vmatprep.subr.mxu0 %v1470_v28  ;;  %2382 = vmatprep.subr.mxu1 %v1471_v29  ;;  %v1519_v28 = vrot.slane %v1505_v52, %v1518_v23 }
 0x6c4   :  { %1714 = vmatpush1.msra.mxu0 %v1469_v30  ;;  %2383 = vmatpush3.msra.mxu1 %v1471_v29 }
 0x6c5   :  { %1715 = vmatprep.subr.mxu0 %v1467_v31  ;;  %2384 = vmatprep.subr.mxu1 %v1468_v33 }
 0x6c6   :  { %1716 = vmatpush1.msra.mxu0 %v1466_v34  ;;  %2385 = vmatpush3.msra.mxu1 %v1468_v33 }
 0x6c7   :  { %1717 = vmatprep.subr.mxu0 %v1464_v35  ;;  %2386 = vmatprep.subr.mxu1 %v1465_v36 }
 0x6c8   :  { %1718 = vmatpush1.msra.mxu0 %v1463_v37  ;;  %2387 = vmatpush3.msra.mxu1 %v1465_v36 }
 0x6c9   :  { %1719 = vmatprep.subr.mxu0 %v1461_v38  ;;  %2388 = vmatprep.subr.mxu1 %v1462_v32 }
 0x6ca   :  { %1720 = vmatpush1.msra.mxu0 %v1460_v39  ;;  %2389 = vmatpush3.msra.mxu1 %v1462_v32 }
 0x6cb   :  { %1721 = vmatprep.subr.mxu0 %v1458_v40  ;;  %1755 = vmatprep.mubr.f32.mxu0 %v2722_v11 }
 0x6cc   :  { %1722 = vmatpush1.msra.mxu0 %v1457_v41  ;;  %2390 = vmatprep.subr.mxu1 %v1459_v42 }
 0x6cd   :  { %1756 = vmatmul.mubr.f32.vlgmr.msra.gmra.mxu0 %v3440_v3  ;;  %2391 = vmatpush3.msra.mxu1 %v1459_v42 }
 0x6ce   :  { %2393 = vmatmul.mubr.f32.vlgmr.msra.gmra.mxu1 %v3446_v43  ;;  %1761 = vmatprep.mubr.f32.mxu0 %v2722_v11  ;;  %v1515_v11 = vrot.slane %v1505_v52, %v1514_v58 }
 0x6d1   :  { %1762 = vmatmul.mubr.f32.gmra.mxu0 %v3446_v43 }
 0x76b   :  { %v1589_v45 = vpop.f32.mrf.mxu0 }
 0x76c   :  { %v1590_v60 = vadd.f32 %v1589_v45, %v1511_v55  ;;  %v2359_v17 = vpop.f32.mrf.mxu1 }
 0x76d   :  { %v1591_v49 = vpop.f32.mrf.mxu0  ;;  %v1672_v38 = vadd.f32 %v2359_v17, %v1519_v28 }
 0x76e   :  { %v1592_v46 = vadd.f32 %v1591_v49, %v1515_v11  ;;  %v1666_v20 = vpop.f32.mrf.mxu1 }
 0x76f   :  { %v1667_v33 = vadd.f32 %v1666_v20, %v1519_v28 }
 0x771   :  { %v1595_v53 = vpop.f32.mrf.mxu0 }
 0x772   :  { %v1596_v2 = vadd.f32 %v1595_v53, %v1511_v55 }
 0x773   :  { %v1597_v57 = vpop.f32.mrf.mxu0 }
 0x774   :  { %v1598_v10 = vadd.f32 %v1597_v57, %v1515_v11 }
 0x78d   :  { %v1757_v59 = vpop.f32.mrf.mxu0 }
 0x78e   :  { %v1758_v61 = vadd.f32 %v1757_v59, %v1679_v56  ;;  %v2394_v21 = vpop.f32.mrf.mxu1 }
 0x78f   :  { %v1759_v63 = vpop.f32.mrf.mxu0  ;;  %v1840_v35 = vadd.f32 %v2394_v21, %v1687_v26 }
 0x790   :  { %v1843_v0 = vadd.f32 %v1758_v61, %v1590_v60  ;;  %v1760_v5 = vadd.f32 %v1759_v63, %v1683_v62  ;;  %v1834_v24 = vpop.f32.mrf.mxu1 }
 0x791   :  { %v1763_v1 = vpop.f32.mrf.mxu0  ;;  %v1835_v29 = vadd.f32 %v1834_v24, %v1687_v26 }
 0x792   :  { %v2016_v4 = vmul.f32 -1.442695, %v1843_v0  ;;  %v1764_v6 = vadd.f32 %v1763_v1, %v1679_v56  ;;  %v1857_v8 = vadd.f32 %v1760_v5, %v1592_v46 }
 0x793   :  { %v1765_v50 = vpop.f32.mrf.mxu0 }
 0x794   :  { %2433 = vpow2.f32 %v2016_v4  ;;  %v1844_v48 = vadd.f32 %v1764_v6, %v1596_v2  ;;  %v1766_v7 = vadd.f32 %v1765_v50, %v1683_v62  ;;  %v2018_v13 = vmul.f32 -1.442695, %v1857_v8 }
 0x796   :  { %v2017_v9 = vmul.f32 -1.442695, %v1844_v48  ;;  %v1858_v12 = vadd.f32 %v1766_v7, %v1598_v10 }
 0x798   :  { %2435 = vpow2.f32 %v2017_v9  ;;  %v2019_v14 = vmul.f32 -1.442695, %v1858_v12 }
 0x799   :  { %2437 = vpow2.f32 %v2018_v13 }
 0x79a   :  { %2439 = vpow2.f32 %v2019_v14 }
 0x7a1   :  { %v2434_v15 = vpop.eup %2433 }
 0x7a2   :  { %v1851_v16 = vadd.f32 1.0, %v2434_v15 }
 0x7a4   :  { %2441 = vrcp.f32 %v1851_v16 }
 0x7a5   :  { %v2436_v18 = vpop.eup %2435 }
 0x7a6   :  { %v1852_v19 = vadd.f32 1.0, %v2436_v18  ;;  %v2438_v22 = vpop.eup %2437 }
 0x7a7   :  { %v2440_v25 = vpop.eup %2439  ;;  %v1865_v27 = vadd.f32 1.0, %v2438_v22 }
 0x7a8   :  { %2443 = vrcp.f32 %v1852_v19  ;;  %v1866_v31 = vadd.f32 1.0, %v2440_v25 }
 0x7a9   :  { %2445 = vrcp.f32 %v1865_v27 }
 0x7aa   :  { %2447 = vrcp.f32 %v1866_v31 }
 0x7b1   :  { %v2442_v30 = vpop.eup %2441 }
 0x7b2   :  { %v1871_v34 = vmul.f32 %v2442_v30, %v1835_v29 }
 0x7b4   :  { %v1873_v36 = vadd.f32 %v1871_v34, %v1667_v33 }
 0x7b5   :  { %v2444_v37 = vpop.eup %2443 }
 0x7b6   :  { %2449 = vtanh.f32 %v1873_v36  ;;  %v1872_v32 = vmul.f32 %v2444_v37, %v1840_v35  ;;  %v2446_v40 = vpop.eup %2445 }
 0x7b7   :  { %v2448_v41 = vpop.eup %2447  ;;  %v1877_v42 = vsub.f32 1.0, %v2446_v40  ;;  %v1881_v45 = vmul.f32 %v2446_v40, %v3440_v3 }
 0x7b8   :  { %v1874_v39 = vadd.f32 %v1872_v32, %v1672_v38  ;;  %v1878_v51 = vsub.f32 1.0, %v2448_v41  ;;  %v1882_v55 = vmul.f32 %v2448_v41, %v3446_v43 }
 0x7ba   :  { %2451 = vtanh.f32 %v1874_v39 }
 0x7c3   :  { %v2450_v44 = vpop.eup %2449 }
 0x7c4   :  { %v1879_v47 = vmul.f32 %v2450_v44, %v1877_v42 }
 0x7c6   :  { %v1883_v49 = vadd.f32 %v1881_v45, %v1879_v47 }
 0x7c7   :  { %v2452_v52 = vpop.eup %2451 }
 0x7c8   :  { %v1885_v53 = vmax.f32 %v1883_v49, 0.0  ;;  %v1880_v54 = vmul.f32 %v2452_v52, %v1878_v51 }
 0x7ca   :  { %1887 = vst [vmem:[%s3542_s22] sm:$0xff] %v1885_v53  ;;  %v1884_v56 = vadd.f32 %v1882_v55, %v1880_v54 }
 0x7cc   :  { %v1886_v57 = vmax.f32 %v1884_v56, 0.0 }
 0x7ce   :  { %1888 = vst [vmem:[%s3542_s22 + $0x8] sm:$0xf] %v1886_v57 }
 0x7cf   :  { %1893 = vsyncpa [#allocation8], 1 }
 0x7d0   :  { %1894 = vsyncpa [#allocation14], 1 }
 0x7d1   :  { %1895 = vsyncpa [#allocation17], 1 }
 0x7d2   :  { %1896 = vsyncpa [#allocation20], 1 }
 0x7d3   :  { %1897 = vsyncpa [#allocation23], 1 }
 0x7d4   :  { %1898 = vsyncpa [#allocation26], 1 }
 0x7d5   :  { %1899 = vsyncpa [#allocation9], 1 }
 0x7d6   :  { %1900 = vsyncpa [#allocation12], 1 }

</bundles_post_ra>
